<compile_context>
chip_gen: v7x
topology: tpu7x:2x2x1
jax: 0.10.0
libtpu: 0.0.40
codegen_flags: <defaults>
</compile_context>

<pallas_src>
import jax
import jax.numpy as jnp
from jax import lax
from jax.experimental import pallas as pl
from jax.experimental.pallas import tpu as pltpu

CP = 128  # padded channel width (TPU lane width)


# ----------------------------------------------------------------------------
# Fused kernel: one grid step == one image, everything resident in VMEM.
# ----------------------------------------------------------------------------
def _cnn_kernel(patch_ref, w1_ref, b1_ref, w2_ref, b2_ref,
                wf1_ref, bf1_ref, wf2_ref, bf2_ref,
                out_ref, a1_ref, p1_ref, p2_ref):
    f32 = jnp.float32

    # ---------------- conv1 (im2col matmul) + ReLU -> a1 (26, 26, 128) -------
    w1 = w1_ref[...]                              # (16, 128): rows 0..8 = taps
    b1 = b1_ref[...]                              # (1, 128)
    for h in range(26):
        pr = patch_ref[0, h]                      # (26, 16) patches for row h
        row = jnp.dot(pr, w1, preferred_element_type=f32) + b1
        a1_ref[h] = jnp.maximum(row, 0.0)         # (26, 128)

    # ---------------- maxpool 2x2: 26x26 -> 13x13 ----------------------------
    # Even/odd column compaction done with 0/1 selection matrices on the MXU.
    cols26 = lax.broadcasted_iota(jnp.int32, (13, 26), 1)
    rows26 = lax.broadcasted_iota(jnp.int32, (13, 26), 0)
    sel_e26 = (cols26 == 2 * rows26).astype(f32)
    sel_o26 = (cols26 == 2 * rows26 + 1).astype(f32)
    for i in range(13):
        m = jnp.maximum(a1_ref[2 * i], a1_ref[2 * i + 1])          # (26, 128)
        p1_ref[i] = jnp.maximum(
            jnp.dot(sel_e26, m, preferred_element_type=f32),
            jnp.dot(sel_o26, m, preferred_element_type=f32))       # (13, 128)

    # ---------------- conv2 + ReLU + maxpool 2x2 (fused) ---------------------
    w2 = w2_ref[...]                              # (1152, 128): rows = (tap, cin)
    b2 = b2_ref[...]                              # (1, 128)
    cols11 = lax.broadcasted_iota(jnp.int32, (5, 11), 1)
    rows11 = lax.broadcasted_iota(jnp.int32, (5, 11), 0)
    sel_e11 = (cols11 == 2 * rows11).astype(f32)
    sel_o11 = (cols11 == 2 * rows11 + 1).astype(f32)

    def conv2_row(h):
        # in-kernel im2col: 9 shifted (11, 128) slices -> (11, 1152) lane-dense
        pieces = [p1_ref[h + dy, pl.ds(dx, 11), :]
                  for dy in range(3) for dx in range(3)]
        lhs = jnp.concatenate(pieces, axis=1)                      # (11, 1152)
        acc = jnp.dot(lhs, w2, preferred_element_type=f32) + b2
        return jnp.maximum(acc, 0.0)                               # (11, 128)

    for i in range(5):
        m = jnp.maximum(conv2_row(2 * i), conv2_row(2 * i + 1))    # (11, 128)
        p2_ref[i] = jnp.maximum(
            jnp.dot(sel_e11, m, preferred_element_type=f32),
            jnp.dot(sel_o11, m, preferred_element_type=f32))       # (5, 128)

    # ---------------- flatten + fc1 + ReLU + fc2 -----------------------------
    # Flatten order (c, h, w) of PyTorch is folded into the fc1 weight packing,
    # so the kernel just concatenates the 25 (1,128) spatial vectors on lanes.
    feats = jnp.concatenate(
        [p2_ref[h, pl.ds(w, 1), :] for h in range(5) for w in range(5)],
        axis=1)                                                    # (1, 3200)
    h1 = jnp.maximum(
        jnp.dot(feats, wf1_ref[...], preferred_element_type=f32) + bf1_ref[...],
        0.0)                                                       # (1, 128)
    out = jnp.dot(h1, wf2_ref[...], preferred_element_type=f32) + bf2_ref[...]
    out_ref[0] = out.astype(out_ref.dtype)                         # (1, 128)


# ----------------------------------------------------------------------------
# Host wrapper
# ----------------------------------------------------------------------------
@jax.jit
def cnn_forward(params, x_nchw):
    x = x_nchw.astype(jnp.float32)[:, 0]          # (B, 28, 28), Cin == 1
    B = x.shape[0]

    # conv1 im2col on the host glue (input plane is tiny: B*28*28 floats).
    # TODO(synk): move the conv1 patch construction in-kernel as well.
    cols = [x[:, dy:dy + 26, dx:dx + 26] for dy in range(3) for dx in range(3)]
    patches = jnp.stack(cols, axis=-1)            # (B, 26, 26, 9)
    patches = jnp.pad(patches, ((0, 0), (0, 0), (0, 0), (0, 7)))  # (B,26,26,16)

    out = pl.pallas_call(
        _cnn_kernel,
        out_shape=jax.ShapeDtypeStruct((B, 1, CP), jnp.float32),
        grid=(B,),
        in_specs=[
            pl.BlockSpec((1, 26, 26, 16), lambda b: (b, 0, 0, 0)),  # patches
            pl.BlockSpec((16, CP), lambda b: (0, 0)),               # w1
            pl.BlockSpec((1, CP), lambda b: (0, 0)),                # b1
            pl.BlockSpec((9 * CP, CP), lambda b: (0, 0)),           # w2
            pl.BlockSpec((1, CP), lambda b: (0, 0)),                # b2
            pl.BlockSpec((25 * CP, CP), lambda b: (0, 0)),          # fc1 w
            pl.BlockSpec((1, CP), lambda b: (0, 0)),                # fc1 b
            pl.BlockSpec((CP, CP), lambda b: (0, 0)),               # fc2 w
            pl.BlockSpec((1, CP), lambda b: (0, 0)),                # fc2 b
        ],
        out_specs=pl.BlockSpec((1, 1, CP), lambda b: (b, 0, 0)),
        scratch_shapes=[
            pltpu.VMEM((26, 26, CP), jnp.float32),   # conv1+relu output
            pltpu.VMEM((13, 13, CP), jnp.float32),   # pool1 output
            pltpu.VMEM((5, 5, CP), jnp.float32),     # pool2 output
        ],
        compiler_params=pltpu.CompilerParams(
            dimension_semantics=("parallel",),       # batch across TCs (v7x)
            vmem_limit_bytes=32 * 1024 * 1024,
        ),
    )(patches, params["w1"], params["b1"], params["w2"], params["b2"],
      params["wf1"], params["bf1"], params["wf2"], params["bf2"])

    return out[:, 0, :10]


# ----------------------------------------------------------------------------
# Parameters: PyTorch-default-style init + packing for the fused kernel.
# ----------------------------------------------------------------------------
def init_raw_params(key):
    def uniform(k, shape, fan_in):
        bound = 1.0 / jnp.sqrt(jnp.float32(fan_in))
        return jax.random.uniform(k, shape, jnp.float32, -bound, bound)

    ks = jax.random.split(key, 8)
    conv1_w = uniform(ks[0], (16, 1, 3, 3), 1 * 3 * 3)
    conv1_b = uniform(ks[1], (16,), 1 * 3 * 3)
    conv2_w = uniform(ks[2], (32, 16, 3, 3), 16 * 3 * 3)
    conv2_b = uniform(ks[3], (32,), 16 * 3 * 3)
    fc1_w = uniform(ks[4], (128, 800), 800)
    fc1_b = uniform(ks[5], (128,), 800)
    fc2_w = uniform(ks[6], (10, 128), 128)
    fc2_b = uniform(ks[7], (10,), 128)
    return (conv1_w, conv1_b, conv2_w, conv2_b, fc1_w, fc1_b, fc2_w, fc2_b)


def pack_params(conv1_w, conv1_b, conv2_w, conv2_b, fc1_w, fc1_b, fc2_w, fc2_b):
    # conv1: (16,1,3,3) -> rows = tap (dy*3+dx), cols = cout, padded to (16,128)
    w1 = jnp.transpose(conv1_w, (2, 3, 1, 0)).reshape(9, 16)
    w1p = jnp.zeros((16, CP), jnp.float32).at[:9, :16].set(w1)
    b1p = jnp.zeros((1, CP), jnp.float32).at[0, :16].set(conv1_b)

    # conv2: (32,16,3,3) -> (dy,dx,ci,co), pad ci/co to 128 -> (9*128, 128)
    w2 = jnp.transpose(conv2_w, (2, 3, 1, 0))                       # (3,3,16,32)
    w2p = (jnp.zeros((3, 3, CP, CP), jnp.float32)
           .at[:, :, :16, :32].set(w2).reshape(9 * CP, CP))
    b2p = jnp.zeros((1, CP), jnp.float32).at[0, :32].set(conv2_b)

    # fc1: (128, 800) with input order (c, h, w) -> rows ordered ((h*5+w)*128+c)
    wf1 = jnp.transpose(fc1_w.reshape(128, 32, 5, 5), (2, 3, 1, 0))  # (5,5,32,128)
    wf1p = (jnp.zeros((5, 5, CP, CP), jnp.float32)
            .at[:, :, :32, :].set(wf1).reshape(25 * CP, CP))
    bf1p = fc1_b.reshape(1, CP)

    # fc2: (10,128) -> transpose, pad outputs to 128
    wf2p = jnp.zeros((CP, CP), jnp.float32).at[:, :10].set(fc2_w.T)
    bf2p = jnp.zeros((1, CP), jnp.float32).at[0, :10].set(fc2_b)

    return {"w1": w1p, "b1": b1p, "w2": w2p, "b2": b2p,
            "wf1": wf1p, "bf1": bf1p, "wf2": wf2p, "bf2": bf2p}


# ----------------------------------------------------------------------------
# Pure-JAX reference (mirrors the PyTorch module) for a correctness check.
# ----------------------------------------------------------------------------
def _maxpool2x2_nchw(y):
    b, c, h, w = y.shape
    hp, wp = h // 2, w // 2
    y = y[:, :, :hp * 2, :wp * 2].reshape(b, c, hp, 2, wp, 2)
    return y.max(axis=(3, 5))


def cnn_reference(raw, x):
    (c1w, c1b, c2w, c2b, f1w, f1b, f2w, f2b) = raw
    dn = ("NCHW", "OIHW", "NCHW")
    hp = lax.Precision.HIGHEST
    y = lax.conv_general_dilated(x, c1w, (1, 1), "VALID",
                                 dimension_numbers=dn, precision=hp)
    y = jnp.maximum(y + c1b[None, :, None, None], 0.0)
    y = _maxpool2x2_nchw(y)
    y = lax.conv_general_dilated(y, c2w, (1, 1), "VALID",
                                 dimension_numbers=dn, precision=hp)
    y = jnp.maximum(y + c2b[None, :, None, None], 0.0)
    y = _maxpool2x2_nchw(y)
    y = y.reshape(y.shape[0], -1)
    y = jnp.maximum(jnp.dot(y, f1w.T, precision=hp) + f1b, 0.0)
    return jnp.dot(y, f2w.T, precision=hp) + f2b


if __name__ == "__main__":
    key = jax.random.PRNGKey(0)
    k_param, k_data = jax.random.split(key)
    raw = init_raw_params(k_param)
    params = pack_params(*raw)
    # Batch of 2 MNIST-sized images, NCHW like the PyTorch module expects.
    x = jax.random.normal(k_data, (2, 1, 28, 28), dtype=jnp.float32)

    out = cnn_forward(params, x)
    out = jax.block_until_ready(out)

    assert out.shape == (2, 10), out.shape
    assert bool(jnp.all(jnp.isfinite(out)))

    ref = cnn_reference(raw, x)
    err = float(jnp.max(jnp.abs(out - ref)))
    assert err < 2e-2, f"max abs error vs reference: {err}"

    print("KERNEL_OK")
</pallas_src>

<mosaic_0001>
module attributes {stable_mosaic.version = 11 : i64} {
  func.func @_cnn_kernel(%arg0: i32, %arg1: memref<1x26x26x16xf32, #tpu.memory_space<vmem>>, %arg2: memref<16x128xf32, #tpu.memory_space<vmem>>, %arg3: memref<1x128xf32, #tpu.memory_space<vmem>>, %arg4: memref<1152x128xf32, #tpu.memory_space<vmem>>, %arg5: memref<1x128xf32, #tpu.memory_space<vmem>>, %arg6: memref<3200x128xf32, #tpu.memory_space<vmem>>, %arg7: memref<1x128xf32, #tpu.memory_space<vmem>>, %arg8: memref<128x128xf32, #tpu.memory_space<vmem>>, %arg9: memref<1x128xf32, #tpu.memory_space<vmem>>, %arg10: memref<1x1x128xf32, #tpu.memory_space<vmem>>, %arg11: memref<26x26x128xf32, #tpu.memory_space<vmem>>, %arg12: memref<13x13x128xf32, #tpu.memory_space<vmem>>, %arg13: memref<5x5x128xf32, #tpu.memory_space<vmem>>) attributes {dimension_semantics = [#tpu.dimension_semantics<parallel>], iteration_bounds = array<i64: 2>, scalar_prefetch = 0 : i64, scratch_operands = 3 : i64, tpu.core_type = #tpu.core_type<tc>, window_params = [{transform_indices = @transform_0, window_bounds = array<i64: 1, 26, 26, 16>}, {pipeline_mode = #tpu.pipeline_mode<synchronous>, transform_indices = @transform_1, window_bounds = array<i64: 16, 128>}, {pipeline_mode = #tpu.pipeline_mode<synchronous>, transform_indices = @transform_2, window_bounds = array<i64: 1, 128>}, {pipeline_mode = #tpu.pipeline_mode<synchronous>, transform_indices = @transform_3, window_bounds = array<i64: 1152, 128>}, {pipeline_mode = #tpu.pipeline_mode<synchronous>, transform_indices = @transform_4, window_bounds = array<i64: 1, 128>}, {pipeline_mode = #tpu.pipeline_mode<synchronous>, transform_indices = @transform_5, window_bounds = array<i64: 3200, 128>}, {pipeline_mode = #tpu.pipeline_mode<synchronous>, transform_indices = @transform_6, window_bounds = array<i64: 1, 128>}, {pipeline_mode = #tpu.pipeline_mode<synchronous>, transform_indices = @transform_7, window_bounds = array<i64: 128, 128>}, {pipeline_mode = #tpu.pipeline_mode<synchronous>, transform_indices = @transform_8, window_bounds = array<i64: 1, 128>}, {transform_indices = @transform_9, window_bounds = array<i64: 1, 1, 128>}]} {
    %c0 = arith.constant 0 : index
    %c0_0 = arith.constant 0 : index
    %0 = vector.load %arg2[%c0, %c0_0] : memref<16x128xf32, #tpu.memory_space<vmem>>, vector<16x128xf32>
    %c0_1 = arith.constant 0 : index
    %c0_2 = arith.constant 0 : index
    %1 = vector.load %arg3[%c0_1, %c0_2] : memref<1x128xf32, #tpu.memory_space<vmem>>, vector<1x128xf32>
    %c0_3 = arith.constant 0 : index
    %c0_4 = arith.constant 0 : index
    %c0_5 = arith.constant 0 : index
    %c0_6 = arith.constant 0 : index
    %2 = vector.load %arg1[%c0_3, %c0_4, %c0_5, %c0_6] : memref<1x26x26x16xf32, #tpu.memory_space<vmem>>, vector<1x1x26x16xf32>
    %3 = vector.shape_cast %2 : vector<1x1x26x16xf32> to vector<26x16xf32>
    %cst = arith.constant dense<0.000000e+00> : vector<26x128xf32>
    %4 = tpu.matmul %3, %0, %cst {dimension_numbers = #tpu.dot_dimension_numbers<[1], [0], [0], [1], [0, 0, 1, 1], [], []>} : vector<26x16xf32>, vector<16x128xf32>, vector<26x128xf32> -> vector<26x128xf32>
    %5 = vector.broadcast %1 : vector<1x128xf32> to vector<26x128xf32>
    %6 = arith.addf %4, %5 : vector<26x128xf32>
    %cst_7 = arith.constant 0.000000e+00 : f32
    %7 = vector.broadcast %cst_7 : f32 to vector<26x128xf32>
    %8 = arith.maximumf %6, %7 : vector<26x128xf32>
    %c0_8 = arith.constant 0 : index
    %c0_9 = arith.constant 0 : index
    %c0_10 = arith.constant 0 : index
    %9 = vector.load %arg11[%c0_8, %c0_9, %c0_10] : memref<26x26x128xf32, #tpu.memory_space<vmem>>, vector<1x26x128xf32>
    %10 = vector.shape_cast %9 : vector<1x26x128xf32> to vector<26x128xf32>
    %11 = vector.shape_cast %8 : vector<26x128xf32> to vector<1x26x128xf32>
    tpu.vector_store %arg11[%c0_8, %c0_9, %c0_10], %11 {strides = array<i32>} : memref<26x26x128xf32, #tpu.memory_space<vmem>>, vector<1x26x128xf32>,
    %c0_11 = arith.constant 0 : index
    %c1 = arith.constant 1 : index
    %c0_12 = arith.constant 0 : index
    %c0_13 = arith.constant 0 : index
    %12 = vector.load %arg1[%c0_11, %c1, %c0_12, %c0_13] : memref<1x26x26x16xf32, #tpu.memory_space<vmem>>, vector<1x1x26x16xf32>
    %13 = vector.shape_cast %12 : vector<1x1x26x16xf32> to vector<26x16xf32>
    %cst_14 = arith.constant dense<0.000000e+00> : vector<26x128xf32>
    %14 = tpu.matmul %13, %0, %cst_14 {dimension_numbers = #tpu.dot_dimension_numbers<[1], [0], [0], [1], [0, 0, 1, 1], [], []>} : vector<26x16xf32>, vector<16x128xf32>, vector<26x128xf32> -> vector<26x128xf32>
    %15 = vector.broadcast %1 : vector<1x128xf32> to vector<26x128xf32>
    %16 = arith.addf %14, %15 : vector<26x128xf32>
    %cst_15 = arith.constant 0.000000e+00 : f32
    %17 = vector.broadcast %cst_15 : f32 to vector<26x128xf32>
    %18 = arith.maximumf %16, %17 : vector<26x128xf32>
    %c1_16 = arith.constant 1 : index
    %c0_17 = arith.constant 0 : index
    %c0_18 = arith.constant 0 : index
    %19 = vector.load %arg11[%c1_16, %c0_17, %c0_18] : memref<26x26x128xf32, #tpu.memory_space<vmem>>, vector<1x26x128xf32>
    %20 = vector.shape_cast %19 : vector<1x26x128xf32> to vector<26x128xf32>
    %21 = vector.shape_cast %18 : vector<26x128xf32> to vector<1x26x128xf32>
    tpu.vector_store %arg11[%c1_16, %c0_17, %c0_18], %21 {strides = array<i32>} : memref<26x26x128xf32, #tpu.memory_space<vmem>>, vector<1x26x128xf32>,
    %c0_19 = arith.constant 0 : index
    %c2 = arith.constant 2 : index
    %c0_20 = arith.constant 0 : index
    %c0_21 = arith.constant 0 : index
    %22 = vector.load %arg1[%c0_19, %c2, %c0_20, %c0_21] : memref<1x26x26x16xf32, #tpu.memory_space<vmem>>, vector<1x1x26x16xf32>
    %23 = vector.shape_cast %22 : vector<1x1x26x16xf32> to vector<26x16xf32>
    %cst_22 = arith.constant dense<0.000000e+00> : vector<26x128xf32>
    %24 = tpu.matmul %23, %0, %cst_22 {dimension_numbers = #tpu.dot_dimension_numbers<[1], [0], [0], [1], [0, 0, 1, 1], [], []>} : vector<26x16xf32>, vector<16x128xf32>, vector<26x128xf32> -> vector<26x128xf32>
    %25 = vector.broadcast %1 : vector<1x128xf32> to vector<26x128xf32>
    %26 = arith.addf %24, %25 : vector<26x128xf32>
    %cst_23 = arith.constant 0.000000e+00 : f32
    %27 = vector.broadcast %cst_23 : f32 to vector<26x128xf32>
    %28 = arith.maximumf %26, %27 : vector<26x128xf32>
    %c2_24 = arith.constant 2 : index
    %c0_25 = arith.constant 0 : index
    %c0_26 = arith.constant 0 : index
    %29 = vector.load %arg11[%c2_24, %c0_25, %c0_26] : memref<26x26x128xf32, #tpu.memory_space<vmem>>, vector<1x26x128xf32>
    %30 = vector.shape_cast %29 : vector<1x26x128xf32> to vector<26x128xf32>
    %31 = vector.shape_cast %28 : vector<26x128xf32> to vector<1x26x128xf32>
    tpu.vector_store %arg11[%c2_24, %c0_25, %c0_26], %31 {strides = array<i32>} : memref<26x26x128xf32, #tpu.memory_space<vmem>>, vector<1x26x128xf32>,
    %c0_27 = arith.constant 0 : index
    %c3 = arith.constant 3 : index
    %c0_28 = arith.constant 0 : index
    %c0_29 = arith.constant 0 : index
    %32 = vector.load %arg1[%c0_27, %c3, %c0_28, %c0_29] : memref<1x26x26x16xf32, #tpu.memory_space<vmem>>, vector<1x1x26x16xf32>
    %33 = vector.shape_cast %32 : vector<1x1x26x16xf32> to vector<26x16xf32>
    %cst_30 = arith.constant dense<0.000000e+00> : vector<26x128xf32>
    %34 = tpu.matmul %33, %0, %cst_30 {dimension_numbers = #tpu.dot_dimension_numbers<[1], [0], [0], [1], [0, 0, 1, 1], [], []>} : vector<26x16xf32>, vector<16x128xf32>, vector<26x128xf32> -> vector<26x128xf32>
    %35 = vector.broadcast %1 : vector<1x128xf32> to vector<26x128xf32>
    %36 = arith.addf %34, %35 : vector<26x128xf32>
    %cst_31 = arith.constant 0.000000e+00 : f32
    %37 = vector.broadcast %cst_31 : f32 to vector<26x128xf32>
    %38 = arith.maximumf %36, %37 : vector<26x128xf32>
    %c3_32 = arith.constant 3 : index
    %c0_33 = arith.constant 0 : index
    %c0_34 = arith.constant 0 : index
    %39 = vector.load %arg11[%c3_32, %c0_33, %c0_34] : memref<26x26x128xf32, #tpu.memory_space<vmem>>, vector<1x26x128xf32>
    %40 = vector.shape_cast %39 : vector<1x26x128xf32> to vector<26x128xf32>
    %41 = vector.shape_cast %38 : vector<26x128xf32> to vector<1x26x128xf32>
    tpu.vector_store %arg11[%c3_32, %c0_33, %c0_34], %41 {strides = array<i32>} : memref<26x26x128xf32, #tpu.memory_space<vmem>>, vector<1x26x128xf32>,
    %c0_35 = arith.constant 0 : index
    %c4 = arith.constant 4 : index
    %c0_36 = arith.constant 0 : index
    %c0_37 = arith.constant 0 : index
    %42 = vector.load %arg1[%c0_35, %c4, %c0_36, %c0_37] : memref<1x26x26x16xf32, #tpu.memory_space<vmem>>, vector<1x1x26x16xf32>
    %43 = vector.shape_cast %42 : vector<1x1x26x16xf32> to vector<26x16xf32>
    %cst_38 = arith.constant dense<0.000000e+00> : vector<26x128xf32>
    %44 = tpu.matmul %43, %0, %cst_38 {dimension_numbers = #tpu.dot_dimension_numbers<[1], [0], [0], [1], [0, 0, 1, 1], [], []>} : vector<26x16xf32>, vector<16x128xf32>, vector<26x128xf32> -> vector<26x128xf32>
    %45 = vector.broadcast %1 : vector<1x128xf32> to vector<26x128xf32>
    %46 = arith.addf %44, %45 : vector<26x128xf32>
    %cst_39 = arith.constant 0.000000e+00 : f32
    %47 = vector.broadcast %cst_39 : f32 to vector<26x128xf32>
    %48 = arith.maximumf %46, %47 : vector<26x128xf32>
    %c4_40 = arith.constant 4 : index
    %c0_41 = arith.constant 0 : index
    %c0_42 = arith.constant 0 : index
    %49 = vector.load %arg11[%c4_40, %c0_41, %c0_42] : memref<26x26x128xf32, #tpu.memory_space<vmem>>, vector<1x26x128xf32>
    %50 = vector.shape_cast %49 : vector<1x26x128xf32> to vector<26x128xf32>
    %51 = vector.shape_cast %48 : vector<26x128xf32> to vector<1x26x128xf32>
    tpu.vector_store %arg11[%c4_40, %c0_41, %c0_42], %51 {strides = array<i32>} : memref<26x26x128xf32, #tpu.memory_space<vmem>>, vector<1x26x128xf32>,
    %c0_43 = arith.constant 0 : index
    %c5 = arith.constant 5 : index
    %c0_44 = arith.constant 0 : index
    %c0_45 = arith.constant 0 : index
    %52 = vector.load %arg1[%c0_43, %c5, %c0_44, %c0_45] : memref<1x26x26x16xf32, #tpu.memory_space<vmem>>, vector<1x1x26x16xf32>
    %53 = vector.shape_cast %52 : vector<1x1x26x16xf32> to vector<26x16xf32>
    %cst_46 = arith.constant dense<0.000000e+00> : vector<26x128xf32>
    %54 = tpu.matmul %53, %0, %cst_46 {dimension_numbers = #tpu.dot_dimension_numbers<[1], [0], [0], [1], [0, 0, 1, 1], [], []>} : vector<26x16xf32>, vector<16x128xf32>, vector<26x128xf32> -> vector<26x128xf32>
    %55 = vector.broadcast %1 : vector<1x128xf32> to vector<26x128xf32>
    %56 = arith.addf %54, %55 : vector<26x128xf32>
    %cst_47 = arith.constant 0.000000e+00 : f32
    %57 = vector.broadcast %cst_47 : f32 to vector<26x128xf32>
    %58 = arith.maximumf %56, %57 : vector<26x128xf32>
    %c5_48 = arith.constant 5 : index
    %c0_49 = arith.constant 0 : index
    %c0_50 = arith.constant 0 : index
    %59 = vector.load %arg11[%c5_48, %c0_49, %c0_50] : memref<26x26x128xf32, #tpu.memory_space<vmem>>, vector<1x26x128xf32>
    %60 = vector.shape_cast %59 : vector<1x26x128xf32> to vector<26x128xf32>
    %61 = vector.shape_cast %58 : vector<26x128xf32> to vector<1x26x128xf32>
    tpu.vector_store %arg11[%c5_48, %c0_49, %c0_50], %61 {strides = array<i32>} : memref<26x26x128xf32, #tpu.memory_space<vmem>>, vector<1x26x128xf32>,
    %c0_51 = arith.constant 0 : index
    %c6 = arith.constant 6 : index
    %c0_52 = arith.constant 0 : index
    %c0_53 = arith.constant 0 : index
    %62 = vector.load %arg1[%c0_51, %c6, %c0_52, %c0_53] : memref<1x26x26x16xf32, #tpu.memory_space<vmem>>, vector<1x1x26x16xf32>
    %63 = vector.shape_cast %62 : vector<1x1x26x16xf32> to vector<26x16xf32>
    %cst_54 = arith.constant dense<0.000000e+00> : vector<26x128xf32>
    %64 = tpu.matmul %63, %0, %cst_54 {dimension_numbers = #tpu.dot_dimension_numbers<[1], [0], [0], [1], [0, 0, 1, 1], [], []>} : vector<26x16xf32>, vector<16x128xf32>, vector<26x128xf32> -> vector<26x128xf32>
    %65 = vector.broadcast %1 : vector<1x128xf32> to vector<26x128xf32>
    %66 = arith.addf %64, %65 : vector<26x128xf32>
    %cst_55 = arith.constant 0.000000e+00 : f32
    %67 = vector.broadcast %cst_55 : f32 to vector<26x128xf32>
    %68 = arith.maximumf %66, %67 : vector<26x128xf32>
    %c6_56 = arith.constant 6 : index
    %c0_57 = arith.constant 0 : index
    %c0_58 = arith.constant 0 : index
    %69 = vector.load %arg11[%c6_56, %c0_57, %c0_58] : memref<26x26x128xf32, #tpu.memory_space<vmem>>, vector<1x26x128xf32>
    %70 = vector.shape_cast %69 : vector<1x26x128xf32> to vector<26x128xf32>
    %71 = vector.shape_cast %68 : vector<26x128xf32> to vector<1x26x128xf32>
    tpu.vector_store %arg11[%c6_56, %c0_57, %c0_58], %71 {strides = array<i32>} : memref<26x26x128xf32, #tpu.memory_space<vmem>>, vector<1x26x128xf32>,
    %c0_59 = arith.constant 0 : index
    %c7 = arith.constant 7 : index
    %c0_60 = arith.constant 0 : index
    %c0_61 = arith.constant 0 : index
    %72 = vector.load %arg1[%c0_59, %c7, %c0_60, %c0_61] : memref<1x26x26x16xf32, #tpu.memory_space<vmem>>, vector<1x1x26x16xf32>
    %73 = vector.shape_cast %72 : vector<1x1x26x16xf32> to vector<26x16xf32>
    %cst_62 = arith.constant dense<0.000000e+00> : vector<26x128xf32>
    %74 = tpu.matmul %73, %0, %cst_62 {dimension_numbers = #tpu.dot_dimension_numbers<[1], [0], [0], [1], [0, 0, 1, 1], [], []>} : vector<26x16xf32>, vector<16x128xf32>, vector<26x128xf32> -> vector<26x128xf32>
    %75 = vector.broadcast %1 : vector<1x128xf32> to vector<26x128xf32>
    %76 = arith.addf %74, %75 : vector<26x128xf32>
    %cst_63 = arith.constant 0.000000e+00 : f32
    %77 = vector.broadcast %cst_63 : f32 to vector<26x128xf32>
    %78 = arith.maximumf %76, %77 : vector<26x128xf32>
    %c7_64 = arith.constant 7 : index
    %c0_65 = arith.constant 0 : index
    %c0_66 = arith.constant 0 : index
    %79 = vector.load %arg11[%c7_64, %c0_65, %c0_66] : memref<26x26x128xf32, #tpu.memory_space<vmem>>, vector<1x26x128xf32>
    %80 = vector.shape_cast %79 : vector<1x26x128xf32> to vector<26x128xf32>
    %81 = vector.shape_cast %78 : vector<26x128xf32> to vector<1x26x128xf32>
    tpu.vector_store %arg11[%c7_64, %c0_65, %c0_66], %81 {strides = array<i32>} : memref<26x26x128xf32, #tpu.memory_space<vmem>>, vector<1x26x128xf32>,
    %c0_67 = arith.constant 0 : index
    %c8 = arith.constant 8 : index
    %c0_68 = arith.constant 0 : index
    %c0_69 = arith.constant 0 : index
    %82 = vector.load %arg1[%c0_67, %c8, %c0_68, %c0_69] : memref<1x26x26x16xf32, #tpu.memory_space<vmem>>, vector<1x1x26x16xf32>
    %83 = vector.shape_cast %82 : vector<1x1x26x16xf32> to vector<26x16xf32>
    %cst_70 = arith.constant dense<0.000000e+00> : vector<26x128xf32>
    %84 = tpu.matmul %83, %0, %cst_70 {dimension_numbers = #tpu.dot_dimension_numbers<[1], [0], [0], [1], [0, 0, 1, 1], [], []>} : vector<26x16xf32>, vector<16x128xf32>, vector<26x128xf32> -> vector<26x128xf32>
    %85 = vector.broadcast %1 : vector<1x128xf32> to vector<26x128xf32>
    %86 = arith.addf %84, %85 : vector<26x128xf32>
    %cst_71 = arith.constant 0.000000e+00 : f32
    %87 = vector.broadcast %cst_71 : f32 to vector<26x128xf32>
    %88 = arith.maximumf %86, %87 : vector<26x128xf32>
    %c8_72 = arith.constant 8 : index
    %c0_73 = arith.constant 0 : index
    %c0_74 = arith.constant 0 : index
    %89 = vector.load %arg11[%c8_72, %c0_73, %c0_74] : memref<26x26x128xf32, #tpu.memory_space<vmem>>, vector<1x26x128xf32>
    %90 = vector.shape_cast %89 : vector<1x26x128xf32> to vector<26x128xf32>
    %91 = vector.shape_cast %88 : vector<26x128xf32> to vector<1x26x128xf32>
    tpu.vector_store %arg11[%c8_72, %c0_73, %c0_74], %91 {strides = array<i32>} : memref<26x26x128xf32, #tpu.memory_space<vmem>>, vector<1x26x128xf32>,
    %c0_75 = arith.constant 0 : index
    %c9 = arith.constant 9 : index
    %c0_76 = arith.constant 0 : index
    %c0_77 = arith.constant 0 : index
    %92 = vector.load %arg1[%c0_75, %c9, %c0_76, %c0_77] : memref<1x26x26x16xf32, #tpu.memory_space<vmem>>, vector<1x1x26x16xf32>
    %93 = vector.shape_cast %92 : vector<1x1x26x16xf32> to vector<26x16xf32>
    %cst_78 = arith.constant dense<0.000000e+00> : vector<26x128xf32>
    %94 = tpu.matmul %93, %0, %cst_78 {dimension_numbers = #tpu.dot_dimension_numbers<[1], [0], [0], [1], [0, 0, 1, 1], [], []>} : vector<26x16xf32>, vector<16x128xf32>, vector<26x128xf32> -> vector<26x128xf32>
    %95 = vector.broadcast %1 : vector<1x128xf32> to vector<26x128xf32>
    %96 = arith.addf %94, %95 : vector<26x128xf32>
    %cst_79 = arith.constant 0.000000e+00 : f32
    %97 = vector.broadcast %cst_79 : f32 to vector<26x128xf32>
    %98 = arith.maximumf %96, %97 : vector<26x128xf32>
    %c9_80 = arith.constant 9 : index
    %c0_81 = arith.constant 0 : index
    %c0_82 = arith.constant 0 : index
    %99 = vector.load %arg11[%c9_80, %c0_81, %c0_82] : memref<26x26x128xf32, #tpu.memory_space<vmem>>, vector<1x26x128xf32>
    %100 = vector.shape_cast %99 : vector<1x26x128xf32> to vector<26x128xf32>
    %101 = vector.shape_cast %98 : vector<26x128xf32> to vector<1x26x128xf32>
    tpu.vector_store %arg11[%c9_80, %c0_81, %c0_82], %101 {strides = array<i32>} : memref<26x26x128xf32, #tpu.memory_space<vmem>>, vector<1x26x128xf32>,
    %c0_83 = arith.constant 0 : index
    %c10 = arith.constant 10 : index
    %c0_84 = arith.constant 0 : index
    %c0_85 = arith.constant 0 : index
    %102 = vector.load %arg1[%c0_83, %c10, %c0_84, %c0_85] : memref<1x26x26x16xf32, #tpu.memory_space<vmem>>, vector<1x1x26x16xf32>
    %103 = vector.shape_cast %102 : vector<1x1x26x16xf32> to vector<26x16xf32>
    %cst_86 = arith.constant dense<0.000000e+00> : vector<26x128xf32>
    %104 = tpu.matmul %103, %0, %cst_86 {dimension_numbers = #tpu.dot_dimension_numbers<[1], [0], [0], [1], [0, 0, 1, 1], [], []>} : vector<26x16xf32>, vector<16x128xf32>, vector<26x128xf32> -> vector<26x128xf32>
    %105 = vector.broadcast %1 : vector<1x128xf32> to vector<26x128xf32>
    %106 = arith.addf %104, %105 : vector<26x128xf32>
    %cst_87 = arith.constant 0.000000e+00 : f32
    %107 = vector.broadcast %cst_87 : f32 to vector<26x128xf32>
    %108 = arith.maximumf %106, %107 : vector<26x128xf32>
    %c10_88 = arith.constant 10 : index
    %c0_89 = arith.constant 0 : index
    %c0_90 = arith.constant 0 : index
    %109 = vector.load %arg11[%c10_88, %c0_89, %c0_90] : memref<26x26x128xf32, #tpu.memory_space<vmem>>, vector<1x26x128xf32>
    %110 = vector.shape_cast %109 : vector<1x26x128xf32> to vector<26x128xf32>
    %111 = vector.shape_cast %108 : vector<26x128xf32> to vector<1x26x128xf32>
    tpu.vector_store %arg11[%c10_88, %c0_89, %c0_90], %111 {strides = array<i32>} : memref<26x26x128xf32, #tpu.memory_space<vmem>>, vector<1x26x128xf32>,
    %c0_91 = arith.constant 0 : index
    %c11 = arith.constant 11 : index
    %c0_92 = arith.constant 0 : index
    %c0_93 = arith.constant 0 : index
    %112 = vector.load %arg1[%c0_91, %c11, %c0_92, %c0_93] : memref<1x26x26x16xf32, #tpu.memory_space<vmem>>, vector<1x1x26x16xf32>
    %113 = vector.shape_cast %112 : vector<1x1x26x16xf32> to vector<26x16xf32>
    %cst_94 = arith.constant dense<0.000000e+00> : vector<26x128xf32>
    %114 = tpu.matmul %113, %0, %cst_94 {dimension_numbers = #tpu.dot_dimension_numbers<[1], [0], [0], [1], [0, 0, 1, 1], [], []>} : vector<26x16xf32>, vector<16x128xf32>, vector<26x128xf32> -> vector<26x128xf32>
    %115 = vector.broadcast %1 : vector<1x128xf32> to vector<26x128xf32>
    %116 = arith.addf %114, %115 : vector<26x128xf32>
    %cst_95 = arith.constant 0.000000e+00 : f32
    %117 = vector.broadcast %cst_95 : f32 to vector<26x128xf32>
    %118 = arith.maximumf %116, %117 : vector<26x128xf32>
    %c11_96 = arith.constant 11 : index
    %c0_97 = arith.constant 0 : index
    %c0_98 = arith.constant 0 : index
    %119 = vector.load %arg11[%c11_96, %c0_97, %c0_98] : memref<26x26x128xf32, #tpu.memory_space<vmem>>, vector<1x26x128xf32>
    %120 = vector.shape_cast %119 : vector<1x26x128xf32> to vector<26x128xf32>
    %121 = vector.shape_cast %118 : vector<26x128xf32> to vector<1x26x128xf32>
    tpu.vector_store %arg11[%c11_96, %c0_97, %c0_98], %121 {strides = array<i32>} : memref<26x26x128xf32, #tpu.memory_space<vmem>>, vector<1x26x128xf32>,
    %c0_99 = arith.constant 0 : index
    %c12 = arith.constant 12 : index
    %c0_100 = arith.constant 0 : index
    %c0_101 = arith.constant 0 : index
    %122 = vector.load %arg1[%c0_99, %c12, %c0_100, %c0_101] : memref<1x26x26x16xf32, #tpu.memory_space<vmem>>, vector<1x1x26x16xf32>
    %123 = vector.shape_cast %122 : vector<1x1x26x16xf32> to vector<26x16xf32>
    %cst_102 = arith.constant dense<0.000000e+00> : vector<26x128xf32>
    %124 = tpu.matmul %123, %0, %cst_102 {dimension_numbers = #tpu.dot_dimension_numbers<[1], [0], [0], [1], [0, 0, 1, 1], [], []>} : vector<26x16xf32>, vector<16x128xf32>, vector<26x128xf32> -> vector<26x128xf32>
    %125 = vector.broadcast %1 : vector<1x128xf32> to vector<26x128xf32>
    %126 = arith.addf %124, %125 : vector<26x128xf32>
    %cst_103 = arith.constant 0.000000e+00 : f32
    %127 = vector.broadcast %cst_103 : f32 to vector<26x128xf32>
    %128 = arith.maximumf %126, %127 : vector<26x128xf32>
    %c12_104 = arith.constant 12 : index
    %c0_105 = arith.constant 0 : index
    %c0_106 = arith.constant 0 : index
    %129 = vector.load %arg11[%c12_104, %c0_105, %c0_106] : memref<26x26x128xf32, #tpu.memory_space<vmem>>, vector<1x26x128xf32>
    %130 = vector.shape_cast %129 : vector<1x26x128xf32> to vector<26x128xf32>
    %131 = vector.shape_cast %128 : vector<26x128xf32> to vector<1x26x128xf32>
    tpu.vector_store %arg11[%c12_104, %c0_105, %c0_106], %131 {strides = array<i32>} : memref<26x26x128xf32, #tpu.memory_space<vmem>>, vector<1x26x128xf32>,
    %c0_107 = arith.constant 0 : index
    %c13 = arith.constant 13 : index
    %c0_108 = arith.constant 0 : index
    %c0_109 = arith.constant 0 : index
    %132 = vector.load %arg1[%c0_107, %c13, %c0_108, %c0_109] : memref<1x26x26x16xf32, #tpu.memory_space<vmem>>, vector<1x1x26x16xf32>
    %133 = vector.shape_cast %132 : vector<1x1x26x16xf32> to vector<26x16xf32>
    %cst_110 = arith.constant dense<0.000000e+00> : vector<26x128xf32>
    %134 = tpu.matmul %133, %0, %cst_110 {dimension_numbers = #tpu.dot_dimension_numbers<[1], [0], [0], [1], [0, 0, 1, 1], [], []>} : vector<26x16xf32>, vector<16x128xf32>, vector<26x128xf32> -> vector<26x128xf32>
    %135 = vector.broadcast %1 : vector<1x128xf32> to vector<26x128xf32>
    %136 = arith.addf %134, %135 : vector<26x128xf32>
    %cst_111 = arith.constant 0.000000e+00 : f32
    %137 = vector.broadcast %cst_111 : f32 to vector<26x128xf32>
    %138 = arith.maximumf %136, %137 : vector<26x128xf32>
    %c13_112 = arith.constant 13 : index
    %c0_113 = arith.constant 0 : index
    %c0_114 = arith.constant 0 : index
    %139 = vector.load %arg11[%c13_112, %c0_113, %c0_114] : memref<26x26x128xf32, #tpu.memory_space<vmem>>, vector<1x26x128xf32>
    %140 = vector.shape_cast %139 : vector<1x26x128xf32> to vector<26x128xf32>
    %141 = vector.shape_cast %138 : vector<26x128xf32> to vector<1x26x128xf32>
    tpu.vector_store %arg11[%c13_112, %c0_113, %c0_114], %141 {strides = array<i32>} : memref<26x26x128xf32, #tpu.memory_space<vmem>>, vector<1x26x128xf32>,
    %c0_115 = arith.constant 0 : index
    %c14 = arith.constant 14 : index
    %c0_116 = arith.constant 0 : index
    %c0_117 = arith.constant 0 : index
    %142 = vector.load %arg1[%c0_115, %c14, %c0_116, %c0_117] : memref<1x26x26x16xf32, #tpu.memory_space<vmem>>, vector<1x1x26x16xf32>
    %143 = vector.shape_cast %142 : vector<1x1x26x16xf32> to vector<26x16xf32>
    %cst_118 = arith.constant dense<0.000000e+00> : vector<26x128xf32>
    %144 = tpu.matmul %143, %0, %cst_118 {dimension_numbers = #tpu.dot_dimension_numbers<[1], [0], [0], [1], [0, 0, 1, 1], [], []>} : vector<26x16xf32>, vector<16x128xf32>, vector<26x128xf32> -> vector<26x128xf32>
    %145 = vector.broadcast %1 : vector<1x128xf32> to vector<26x128xf32>
    %146 = arith.addf %144, %145 : vector<26x128xf32>
    %cst_119 = arith.constant 0.000000e+00 : f32
    %147 = vector.broadcast %cst_119 : f32 to vector<26x128xf32>
    %148 = arith.maximumf %146, %147 : vector<26x128xf32>
    %c14_120 = arith.constant 14 : index
    %c0_121 = arith.constant 0 : index
    %c0_122 = arith.constant 0 : index
    %149 = vector.load %arg11[%c14_120, %c0_121, %c0_122] : memref<26x26x128xf32, #tpu.memory_space<vmem>>, vector<1x26x128xf32>
    %150 = vector.shape_cast %149 : vector<1x26x128xf32> to vector<26x128xf32>
    %151 = vector.shape_cast %148 : vector<26x128xf32> to vector<1x26x128xf32>
    tpu.vector_store %arg11[%c14_120, %c0_121, %c0_122], %151 {strides = array<i32>} : memref<26x26x128xf32, #tpu.memory_space<vmem>>, vector<1x26x128xf32>,
    %c0_123 = arith.constant 0 : index
    %c15 = arith.constant 15 : index
    %c0_124 = arith.constant 0 : index
    %c0_125 = arith.constant 0 : index
    %152 = vector.load %arg1[%c0_123, %c15, %c0_124, %c0_125] : memref<1x26x26x16xf32, #tpu.memory_space<vmem>>, vector<1x1x26x16xf32>
    %153 = vector.shape_cast %152 : vector<1x1x26x16xf32> to vector<26x16xf32>
    %cst_126 = arith.constant dense<0.000000e+00> : vector<26x128xf32>
    %154 = tpu.matmul %153, %0, %cst_126 {dimension_numbers = #tpu.dot_dimension_numbers<[1], [0], [0], [1], [0, 0, 1, 1], [], []>} : vector<26x16xf32>, vector<16x128xf32>, vector<26x128xf32> -> vector<26x128xf32>
    %155 = vector.broadcast %1 : vector<1x128xf32> to vector<26x128xf32>
    %156 = arith.addf %154, %155 : vector<26x128xf32>
    %cst_127 = arith.constant 0.000000e+00 : f32
    %157 = vector.broadcast %cst_127 : f32 to vector<26x128xf32>
    %158 = arith.maximumf %156, %157 : vector<26x128xf32>
    %c15_128 = arith.constant 15 : index
    %c0_129 = arith.constant 0 : index
    %c0_130 = arith.constant 0 : index
    %159 = vector.load %arg11[%c15_128, %c0_129, %c0_130] : memref<26x26x128xf32, #tpu.memory_space<vmem>>, vector<1x26x128xf32>
    %160 = vector.shape_cast %159 : vector<1x26x128xf32> to vector<26x128xf32>
    %161 = vector.shape_cast %158 : vector<26x128xf32> to vector<1x26x128xf32>
    tpu.vector_store %arg11[%c15_128, %c0_129, %c0_130], %161 {strides = array<i32>} : memref<26x26x128xf32, #tpu.memory_space<vmem>>, vector<1x26x128xf32>,
    %c0_131 = arith.constant 0 : index
    %c16 = arith.constant 16 : index
    %c0_132 = arith.constant 0 : index
    %c0_133 = arith.constant 0 : index
    %162 = vector.load %arg1[%c0_131, %c16, %c0_132, %c0_133] : memref<1x26x26x16xf32, #tpu.memory_space<vmem>>, vector<1x1x26x16xf32>
    %163 = vector.shape_cast %162 : vector<1x1x26x16xf32> to vector<26x16xf32>
    %cst_134 = arith.constant dense<0.000000e+00> : vector<26x128xf32>
    %164 = tpu.matmul %163, %0, %cst_134 {dimension_numbers = #tpu.dot_dimension_numbers<[1], [0], [0], [1], [0, 0, 1, 1], [], []>} : vector<26x16xf32>, vector<16x128xf32>, vector<26x128xf32> -> vector<26x128xf32>
    %165 = vector.broadcast %1 : vector<1x128xf32> to vector<26x128xf32>
    %166 = arith.addf %164, %165 : vector<26x128xf32>
    %cst_135 = arith.constant 0.000000e+00 : f32
    %167 = vector.broadcast %cst_135 : f32 to vector<26x128xf32>
    %168 = arith.maximumf %166, %167 : vector<26x128xf32>
    %c16_136 = arith.constant 16 : index
    %c0_137 = arith.constant 0 : index
    %c0_138 = arith.constant 0 : index
    %169 = vector.load %arg11[%c16_136, %c0_137, %c0_138] : memref<26x26x128xf32, #tpu.memory_space<vmem>>, vector<1x26x128xf32>
    %170 = vector.shape_cast %169 : vector<1x26x128xf32> to vector<26x128xf32>
    %171 = vector.shape_cast %168 : vector<26x128xf32> to vector<1x26x128xf32>
    tpu.vector_store %arg11[%c16_136, %c0_137, %c0_138], %171 {strides = array<i32>} : memref<26x26x128xf32, #tpu.memory_space<vmem>>, vector<1x26x128xf32>,
    %c0_139 = arith.constant 0 : index
    %c17 = arith.constant 17 : index
    %c0_140 = arith.constant 0 : index
    %c0_141 = arith.constant 0 : index
    %172 = vector.load %arg1[%c0_139, %c17, %c0_140, %c0_141] : memref<1x26x26x16xf32, #tpu.memory_space<vmem>>, vector<1x1x26x16xf32>
    %173 = vector.shape_cast %172 : vector<1x1x26x16xf32> to vector<26x16xf32>
    %cst_142 = arith.constant dense<0.000000e+00> : vector<26x128xf32>
    %174 = tpu.matmul %173, %0, %cst_142 {dimension_numbers = #tpu.dot_dimension_numbers<[1], [0], [0], [1], [0, 0, 1, 1], [], []>} : vector<26x16xf32>, vector<16x128xf32>, vector<26x128xf32> -> vector<26x128xf32>
    %175 = vector.broadcast %1 : vector<1x128xf32> to vector<26x128xf32>
    %176 = arith.addf %174, %175 : vector<26x128xf32>
    %cst_143 = arith.constant 0.000000e+00 : f32
    %177 = vector.broadcast %cst_143 : f32 to vector<26x128xf32>
    %178 = arith.maximumf %176, %177 : vector<26x128xf32>
    %c17_144 = arith.constant 17 : index
    %c0_145 = arith.constant 0 : index
    %c0_146 = arith.constant 0 : index
    %179 = vector.load %arg11[%c17_144, %c0_145, %c0_146] : memref<26x26x128xf32, #tpu.memory_space<vmem>>, vector<1x26x128xf32>
    %180 = vector.shape_cast %179 : vector<1x26x128xf32> to vector<26x128xf32>
    %181 = vector.shape_cast %178 : vector<26x128xf32> to vector<1x26x128xf32>
    tpu.vector_store %arg11[%c17_144, %c0_145, %c0_146], %181 {strides = array<i32>} : memref<26x26x128xf32, #tpu.memory_space<vmem>>, vector<1x26x128xf32>,
    %c0_147 = arith.constant 0 : index
    %c18 = arith.constant 18 : index
    %c0_148 = arith.constant 0 : index
    %c0_149 = arith.constant 0 : index
    %182 = vector.load %arg1[%c0_147, %c18, %c0_148, %c0_149] : memref<1x26x26x16xf32, #tpu.memory_space<vmem>>, vector<1x1x26x16xf32>
    %183 = vector.shape_cast %182 : vector<1x1x26x16xf32> to vector<26x16xf32>
    %cst_150 = arith.constant dense<0.000000e+00> : vector<26x128xf32>
    %184 = tpu.matmul %183, %0, %cst_150 {dimension_numbers = #tpu.dot_dimension_numbers<[1], [0], [0], [1], [0, 0, 1, 1], [], []>} : vector<26x16xf32>, vector<16x128xf32>, vector<26x128xf32> -> vector<26x128xf32>
    %185 = vector.broadcast %1 : vector<1x128xf32> to vector<26x128xf32>
    %186 = arith.addf %184, %185 : vector<26x128xf32>
    %cst_151 = arith.constant 0.000000e+00 : f32
    %187 = vector.broadcast %cst_151 : f32 to vector<26x128xf32>
    %188 = arith.maximumf %186, %187 : vector<26x128xf32>
    %c18_152 = arith.constant 18 : index
    %c0_153 = arith.constant 0 : index
    %c0_154 = arith.constant 0 : index
    %189 = vector.load %arg11[%c18_152, %c0_153, %c0_154] : memref<26x26x128xf32, #tpu.memory_space<vmem>>, vector<1x26x128xf32>
    %190 = vector.shape_cast %189 : vector<1x26x128xf32> to vector<26x128xf32>
    %191 = vector.shape_cast %188 : vector<26x128xf32> to vector<1x26x128xf32>
    tpu.vector_store %arg11[%c18_152, %c0_153, %c0_154], %191 {strides = array<i32>} : memref<26x26x128xf32, #tpu.memory_space<vmem>>, vector<1x26x128xf32>,
    %c0_155 = arith.constant 0 : index
    %c19 = arith.constant 19 : index
    %c0_156 = arith.constant 0 : index
    %c0_157 = arith.constant 0 : index
    %192 = vector.load %arg1[%c0_155, %c19, %c0_156, %c0_157] : memref<1x26x26x16xf32, #tpu.memory_space<vmem>>, vector<1x1x26x16xf32>
    %193 = vector.shape_cast %192 : vector<1x1x26x16xf32> to vector<26x16xf32>
    %cst_158 = arith.constant dense<0.000000e+00> : vector<26x128xf32>
    %194 = tpu.matmul %193, %0, %cst_158 {dimension_numbers = #tpu.dot_dimension_numbers<[1], [0], [0], [1], [0, 0, 1, 1], [], []>} : vector<26x16xf32>, vector<16x128xf32>, vector<26x128xf32> -> vector<26x128xf32>
    %195 = vector.broadcast %1 : vector<1x128xf32> to vector<26x128xf32>
    %196 = arith.addf %194, %195 : vector<26x128xf32>
    %cst_159 = arith.constant 0.000000e+00 : f32
    %197 = vector.broadcast %cst_159 : f32 to vector<26x128xf32>
    %198 = arith.maximumf %196, %197 : vector<26x128xf32>
    %c19_160 = arith.constant 19 : index
    %c0_161 = arith.constant 0 : index
    %c0_162 = arith.constant 0 : index
    %199 = vector.load %arg11[%c19_160, %c0_161, %c0_162] : memref<26x26x128xf32, #tpu.memory_space<vmem>>, vector<1x26x128xf32>
    %200 = vector.shape_cast %199 : vector<1x26x128xf32> to vector<26x128xf32>
    %201 = vector.shape_cast %198 : vector<26x128xf32> to vector<1x26x128xf32>
    tpu.vector_store %arg11[%c19_160, %c0_161, %c0_162], %201 {strides = array<i32>} : memref<26x26x128xf32, #tpu.memory_space<vmem>>, vector<1x26x128xf32>,
    %c0_163 = arith.constant 0 : index
    %c20 = arith.constant 20 : index
    %c0_164 = arith.constant 0 : index
    %c0_165 = arith.constant 0 : index
    %202 = vector.load %arg1[%c0_163, %c20, %c0_164, %c0_165] : memref<1x26x26x16xf32, #tpu.memory_space<vmem>>, vector<1x1x26x16xf32>
    %203 = vector.shape_cast %202 : vector<1x1x26x16xf32> to vector<26x16xf32>
    %cst_166 = arith.constant dense<0.000000e+00> : vector<26x128xf32>
    %204 = tpu.matmul %203, %0, %cst_166 {dimension_numbers = #tpu.dot_dimension_numbers<[1], [0], [0], [1], [0, 0, 1, 1], [], []>} : vector<26x16xf32>, vector<16x128xf32>, vector<26x128xf32> -> vector<26x128xf32>
    %205 = vector.broadcast %1 : vector<1x128xf32> to vector<26x128xf32>
    %206 = arith.addf %204, %205 : vector<26x128xf32>
    %cst_167 = arith.constant 0.000000e+00 : f32
    %207 = vector.broadcast %cst_167 : f32 to vector<26x128xf32>
    %208 = arith.maximumf %206, %207 : vector<26x128xf32>
    %c20_168 = arith.constant 20 : index
    %c0_169 = arith.constant 0 : index
    %c0_170 = arith.constant 0 : index
    %209 = vector.load %arg11[%c20_168, %c0_169, %c0_170] : memref<26x26x128xf32, #tpu.memory_space<vmem>>, vector<1x26x128xf32>
    %210 = vector.shape_cast %209 : vector<1x26x128xf32> to vector<26x128xf32>
    %211 = vector.shape_cast %208 : vector<26x128xf32> to vector<1x26x128xf32>
    tpu.vector_store %arg11[%c20_168, %c0_169, %c0_170], %211 {strides = array<i32>} : memref<26x26x128xf32, #tpu.memory_space<vmem>>, vector<1x26x128xf32>,
    %c0_171 = arith.constant 0 : index
    %c21 = arith.constant 21 : index
    %c0_172 = arith.constant 0 : index
    %c0_173 = arith.constant 0 : index
    %212 = vector.load %arg1[%c0_171, %c21, %c0_172, %c0_173] : memref<1x26x26x16xf32, #tpu.memory_space<vmem>>, vector<1x1x26x16xf32>
    %213 = vector.shape_cast %212 : vector<1x1x26x16xf32> to vector<26x16xf32>
    %cst_174 = arith.constant dense<0.000000e+00> : vector<26x128xf32>
    %214 = tpu.matmul %213, %0, %cst_174 {dimension_numbers = #tpu.dot_dimension_numbers<[1], [0], [0], [1], [0, 0, 1, 1], [], []>} : vector<26x16xf32>, vector<16x128xf32>, vector<26x128xf32> -> vector<26x128xf32>
    %215 = vector.broadcast %1 : vector<1x128xf32> to vector<26x128xf32>
    %216 = arith.addf %214, %215 : vector<26x128xf32>
    %cst_175 = arith.constant 0.000000e+00 : f32
    %217 = vector.broadcast %cst_175 : f32 to vector<26x128xf32>
    %218 = arith.maximumf %216, %217 : vector<26x128xf32>
    %c21_176 = arith.constant 21 : index
    %c0_177 = arith.constant 0 : index
    %c0_178 = arith.constant 0 : index
    %219 = vector.load %arg11[%c21_176, %c0_177, %c0_178] : memref<26x26x128xf32, #tpu.memory_space<vmem>>, vector<1x26x128xf32>
    %220 = vector.shape_cast %219 : vector<1x26x128xf32> to vector<26x128xf32>
    %221 = vector.shape_cast %218 : vector<26x128xf32> to vector<1x26x128xf32>
    tpu.vector_store %arg11[%c21_176, %c0_177, %c0_178], %221 {strides = array<i32>} : memref<26x26x128xf32, #tpu.memory_space<vmem>>, vector<1x26x128xf32>,
    %c0_179 = arith.constant 0 : index
    %c22 = arith.constant 22 : index
    %c0_180 = arith.constant 0 : index
    %c0_181 = arith.constant 0 : index
    %222 = vector.load %arg1[%c0_179, %c22, %c0_180, %c0_181] : memref<1x26x26x16xf32, #tpu.memory_space<vmem>>, vector<1x1x26x16xf32>
    %223 = vector.shape_cast %222 : vector<1x1x26x16xf32> to vector<26x16xf32>
    %cst_182 = arith.constant dense<0.000000e+00> : vector<26x128xf32>
    %224 = tpu.matmul %223, %0, %cst_182 {dimension_numbers = #tpu.dot_dimension_numbers<[1], [0], [0], [1], [0, 0, 1, 1], [], []>} : vector<26x16xf32>, vector<16x128xf32>, vector<26x128xf32> -> vector<26x128xf32>
    %225 = vector.broadcast %1 : vector<1x128xf32> to vector<26x128xf32>
    %226 = arith.addf %224, %225 : vector<26x128xf32>
    %cst_183 = arith.constant 0.000000e+00 : f32
    %227 = vector.broadcast %cst_183 : f32 to vector<26x128xf32>
    %228 = arith.maximumf %226, %227 : vector<26x128xf32>
    %c22_184 = arith.constant 22 : index
    %c0_185 = arith.constant 0 : index
    %c0_186 = arith.constant 0 : index
    %229 = vector.load %arg11[%c22_184, %c0_185, %c0_186] : memref<26x26x128xf32, #tpu.memory_space<vmem>>, vector<1x26x128xf32>
    %230 = vector.shape_cast %229 : vector<1x26x128xf32> to vector<26x128xf32>
    %231 = vector.shape_cast %228 : vector<26x128xf32> to vector<1x26x128xf32>
    tpu.vector_store %arg11[%c22_184, %c0_185, %c0_186], %231 {strides = array<i32>} : memref<26x26x128xf32, #tpu.memory_space<vmem>>, vector<1x26x128xf32>,
    %c0_187 = arith.constant 0 : index
    %c23 = arith.constant 23 : index
    %c0_188 = arith.constant 0 : index
    %c0_189 = arith.constant 0 : index
    %232 = vector.load %arg1[%c0_187, %c23, %c0_188, %c0_189] : memref<1x26x26x16xf32, #tpu.memory_space<vmem>>, vector<1x1x26x16xf32>
    %233 = vector.shape_cast %232 : vector<1x1x26x16xf32> to vector<26x16xf32>
    %cst_190 = arith.constant dense<0.000000e+00> : vector<26x128xf32>
    %234 = tpu.matmul %233, %0, %cst_190 {dimension_numbers = #tpu.dot_dimension_numbers<[1], [0], [0], [1], [0, 0, 1, 1], [], []>} : vector<26x16xf32>, vector<16x128xf32>, vector<26x128xf32> -> vector<26x128xf32>
    %235 = vector.broadcast %1 : vector<1x128xf32> to vector<26x128xf32>
    %236 = arith.addf %234, %235 : vector<26x128xf32>
    %cst_191 = arith.constant 0.000000e+00 : f32
    %237 = vector.broadcast %cst_191 : f32 to vector<26x128xf32>
    %238 = arith.maximumf %236, %237 : vector<26x128xf32>
    %c23_192 = arith.constant 23 : index
    %c0_193 = arith.constant 0 : index
    %c0_194 = arith.constant 0 : index
    %239 = vector.load %arg11[%c23_192, %c0_193, %c0_194] : memref<26x26x128xf32, #tpu.memory_space<vmem>>, vector<1x26x128xf32>
    %240 = vector.shape_cast %239 : vector<1x26x128xf32> to vector<26x128xf32>
    %241 = vector.shape_cast %238 : vector<26x128xf32> to vector<1x26x128xf32>
    tpu.vector_store %arg11[%c23_192, %c0_193, %c0_194], %241 {strides = array<i32>} : memref<26x26x128xf32, #tpu.memory_space<vmem>>, vector<1x26x128xf32>,
    %c0_195 = arith.constant 0 : index
    %c24 = arith.constant 24 : index
    %c0_196 = arith.constant 0 : index
    %c0_197 = arith.constant 0 : index
    %242 = vector.load %arg1[%c0_195, %c24, %c0_196, %c0_197] : memref<1x26x26x16xf32, #tpu.memory_space<vmem>>, vector<1x1x26x16xf32>
    %243 = vector.shape_cast %242 : vector<1x1x26x16xf32> to vector<26x16xf32>
    %cst_198 = arith.constant dense<0.000000e+00> : vector<26x128xf32>
    %244 = tpu.matmul %243, %0, %cst_198 {dimension_numbers = #tpu.dot_dimension_numbers<[1], [0], [0], [1], [0, 0, 1, 1], [], []>} : vector<26x16xf32>, vector<16x128xf32>, vector<26x128xf32> -> vector<26x128xf32>
    %245 = vector.broadcast %1 : vector<1x128xf32> to vector<26x128xf32>
    %246 = arith.addf %244, %245 : vector<26x128xf32>
    %cst_199 = arith.constant 0.000000e+00 : f32
    %247 = vector.broadcast %cst_199 : f32 to vector<26x128xf32>
    %248 = arith.maximumf %246, %247 : vector<26x128xf32>
    %c24_200 = arith.constant 24 : index
    %c0_201 = arith.constant 0 : index
    %c0_202 = arith.constant 0 : index
    %249 = vector.load %arg11[%c24_200, %c0_201, %c0_202] : memref<26x26x128xf32, #tpu.memory_space<vmem>>, vector<1x26x128xf32>
    %250 = vector.shape_cast %249 : vector<1x26x128xf32> to vector<26x128xf32>
    %251 = vector.shape_cast %248 : vector<26x128xf32> to vector<1x26x128xf32>
    tpu.vector_store %arg11[%c24_200, %c0_201, %c0_202], %251 {strides = array<i32>} : memref<26x26x128xf32, #tpu.memory_space<vmem>>, vector<1x26x128xf32>,
    %c0_203 = arith.constant 0 : index
    %c25 = arith.constant 25 : index
    %c0_204 = arith.constant 0 : index
    %c0_205 = arith.constant 0 : index
    %252 = vector.load %arg1[%c0_203, %c25, %c0_204, %c0_205] : memref<1x26x26x16xf32, #tpu.memory_space<vmem>>, vector<1x1x26x16xf32>
    %253 = vector.shape_cast %252 : vector<1x1x26x16xf32> to vector<26x16xf32>
    %cst_206 = arith.constant dense<0.000000e+00> : vector<26x128xf32>
    %254 = tpu.matmul %253, %0, %cst_206 {dimension_numbers = #tpu.dot_dimension_numbers<[1], [0], [0], [1], [0, 0, 1, 1], [], []>} : vector<26x16xf32>, vector<16x128xf32>, vector<26x128xf32> -> vector<26x128xf32>
    %255 = vector.broadcast %1 : vector<1x128xf32> to vector<26x128xf32>
    %256 = arith.addf %254, %255 : vector<26x128xf32>
    %cst_207 = arith.constant 0.000000e+00 : f32
    %257 = vector.broadcast %cst_207 : f32 to vector<26x128xf32>
    %258 = arith.maximumf %256, %257 : vector<26x128xf32>
    %c25_208 = arith.constant 25 : index
    %c0_209 = arith.constant 0 : index
    %c0_210 = arith.constant 0 : index
    %259 = vector.load %arg11[%c25_208, %c0_209, %c0_210] : memref<26x26x128xf32, #tpu.memory_space<vmem>>, vector<1x26x128xf32>
    %260 = vector.shape_cast %259 : vector<1x26x128xf32> to vector<26x128xf32>
    %261 = vector.shape_cast %258 : vector<26x128xf32> to vector<1x26x128xf32>
    tpu.vector_store %arg11[%c25_208, %c0_209, %c0_210], %261 {strides = array<i32>} : memref<26x26x128xf32, #tpu.memory_space<vmem>>, vector<1x26x128xf32>,
    %262 = tpu.iota {dimensions = array<i32: 1>} : vector<13x26xi32>
    %263 = tpu.iota {dimensions = array<i32: 0>} : vector<13x26xi32>
    %c2_i32 = arith.constant 2 : i32
    %264 = vector.broadcast %c2_i32 : i32 to vector<13x26xi32>
    %265 = arith.muli %264, %263 : vector<13x26xi32>
    %266 = arith.cmpi eq, %262, %265 : vector<13x26xi32>
    %267 = arith.extui %266 : vector<13x26xi1> to vector<13x26xi32>
    %268 = arith.sitofp %267 : vector<13x26xi32> to vector<13x26xf32>
    %c2_i32_211 = arith.constant 2 : i32
    %269 = vector.broadcast %c2_i32_211 : i32 to vector<13x26xi32>
    %270 = arith.muli %269, %263 : vector<13x26xi32>
    %c1_i32 = arith.constant 1 : i32
    %271 = vector.broadcast %c1_i32 : i32 to vector<13x26xi32>
    %272 = arith.addi %270, %271 : vector<13x26xi32>
    %273 = arith.cmpi eq, %262, %272 : vector<13x26xi32>
    %274 = arith.extui %273 : vector<13x26xi1> to vector<13x26xi32>
    %275 = arith.sitofp %274 : vector<13x26xi32> to vector<13x26xf32>
    %c0_212 = arith.constant 0 : index
    %c0_213 = arith.constant 0 : index
    %c0_214 = arith.constant 0 : index
    %276 = vector.load %arg11[%c0_212, %c0_213, %c0_214] : memref<26x26x128xf32, #tpu.memory_space<vmem>>, vector<1x26x128xf32>
    %277 = vector.shape_cast %276 : vector<1x26x128xf32> to vector<26x128xf32>
    %c1_215 = arith.constant 1 : index
    %c0_216 = arith.constant 0 : index
    %c0_217 = arith.constant 0 : index
    %278 = vector.load %arg11[%c1_215, %c0_216, %c0_217] : memref<26x26x128xf32, #tpu.memory_space<vmem>>, vector<1x26x128xf32>
    %279 = vector.shape_cast %278 : vector<1x26x128xf32> to vector<26x128xf32>
    %280 = arith.maximumf %277, %279 : vector<26x128xf32>
    %cst_218 = arith.constant dense<0.000000e+00> : vector<13x128xf32>
    %281 = tpu.matmul %268, %280, %cst_218 {dimension_numbers = #tpu.dot_dimension_numbers<[1], [0], [0], [1], [0, 0, 1, 1], [], []>} : vector<13x26xf32>, vector<26x128xf32>, vector<13x128xf32> -> vector<13x128xf32>
    %cst_219 = arith.constant dense<0.000000e+00> : vector<13x128xf32>
    %282 = tpu.matmul %275, %280, %cst_219 {dimension_numbers = #tpu.dot_dimension_numbers<[1], [0], [0], [1], [0, 0, 1, 1], [], []>} : vector<13x26xf32>, vector<26x128xf32>, vector<13x128xf32> -> vector<13x128xf32>
    %283 = arith.maximumf %281, %282 : vector<13x128xf32>
    %c0_220 = arith.constant 0 : index
    %c0_221 = arith.constant 0 : index
    %c0_222 = arith.constant 0 : index
    %284 = vector.load %arg12[%c0_220, %c0_221, %c0_222] : memref<13x13x128xf32, #tpu.memory_space<vmem>>, vector<1x13x128xf32>
    %285 = vector.shape_cast %284 : vector<1x13x128xf32> to vector<13x128xf32>
    %286 = vector.shape_cast %283 : vector<13x128xf32> to vector<1x13x128xf32>
    tpu.vector_store %arg12[%c0_220, %c0_221, %c0_222], %286 {strides = array<i32>} : memref<13x13x128xf32, #tpu.memory_space<vmem>>, vector<1x13x128xf32>,
    %c2_223 = arith.constant 2 : index
    %c0_224 = arith.constant 0 : index
    %c0_225 = arith.constant 0 : index
    %287 = vector.load %arg11[%c2_223, %c0_224, %c0_225] : memref<26x26x128xf32, #tpu.memory_space<vmem>>, vector<1x26x128xf32>
    %288 = vector.shape_cast %287 : vector<1x26x128xf32> to vector<26x128xf32>
    %c3_226 = arith.constant 3 : index
    %c0_227 = arith.constant 0 : index
    %c0_228 = arith.constant 0 : index
    %289 = vector.load %arg11[%c3_226, %c0_227, %c0_228] : memref<26x26x128xf32, #tpu.memory_space<vmem>>, vector<1x26x128xf32>
    %290 = vector.shape_cast %289 : vector<1x26x128xf32> to vector<26x128xf32>
    %291 = arith.maximumf %288, %290 : vector<26x128xf32>
    %cst_229 = arith.constant dense<0.000000e+00> : vector<13x128xf32>
    %292 = tpu.matmul %268, %291, %cst_229 {dimension_numbers = #tpu.dot_dimension_numbers<[1], [0], [0], [1], [0, 0, 1, 1], [], []>} : vector<13x26xf32>, vector<26x128xf32>, vector<13x128xf32> -> vector<13x128xf32>
    %cst_230 = arith.constant dense<0.000000e+00> : vector<13x128xf32>
    %293 = tpu.matmul %275, %291, %cst_230 {dimension_numbers = #tpu.dot_dimension_numbers<[1], [0], [0], [1], [0, 0, 1, 1], [], []>} : vector<13x26xf32>, vector<26x128xf32>, vector<13x128xf32> -> vector<13x128xf32>
    %294 = arith.maximumf %292, %293 : vector<13x128xf32>
    %c1_231 = arith.constant 1 : index
    %c0_232 = arith.constant 0 : index
    %c0_233 = arith.constant 0 : index
    %295 = vector.load %arg12[%c1_231, %c0_232, %c0_233] : memref<13x13x128xf32, #tpu.memory_space<vmem>>, vector<1x13x128xf32>
    %296 = vector.shape_cast %295 : vector<1x13x128xf32> to vector<13x128xf32>
    %297 = vector.shape_cast %294 : vector<13x128xf32> to vector<1x13x128xf32>
    tpu.vector_store %arg12[%c1_231, %c0_232, %c0_233], %297 {strides = array<i32>} : memref<13x13x128xf32, #tpu.memory_space<vmem>>, vector<1x13x128xf32>,
    %c4_234 = arith.constant 4 : index
    %c0_235 = arith.constant 0 : index
    %c0_236 = arith.constant 0 : index
    %298 = vector.load %arg11[%c4_234, %c0_235, %c0_236] : memref<26x26x128xf32, #tpu.memory_space<vmem>>, vector<1x26x128xf32>
    %299 = vector.shape_cast %298 : vector<1x26x128xf32> to vector<26x128xf32>
    %c5_237 = arith.constant 5 : index
    %c0_238 = arith.constant 0 : index
    %c0_239 = arith.constant 0 : index
    %300 = vector.load %arg11[%c5_237, %c0_238, %c0_239] : memref<26x26x128xf32, #tpu.memory_space<vmem>>, vector<1x26x128xf32>
    %301 = vector.shape_cast %300 : vector<1x26x128xf32> to vector<26x128xf32>
    %302 = arith.maximumf %299, %301 : vector<26x128xf32>
    %cst_240 = arith.constant dense<0.000000e+00> : vector<13x128xf32>
    %303 = tpu.matmul %268, %302, %cst_240 {dimension_numbers = #tpu.dot_dimension_numbers<[1], [0], [0], [1], [0, 0, 1, 1], [], []>} : vector<13x26xf32>, vector<26x128xf32>, vector<13x128xf32> -> vector<13x128xf32>
    %cst_241 = arith.constant dense<0.000000e+00> : vector<13x128xf32>
    %304 = tpu.matmul %275, %302, %cst_241 {dimension_numbers = #tpu.dot_dimension_numbers<[1], [0], [0], [1], [0, 0, 1, 1], [], []>} : vector<13x26xf32>, vector<26x128xf32>, vector<13x128xf32> -> vector<13x128xf32>
    %305 = arith.maximumf %303, %304 : vector<13x128xf32>
    %c2_242 = arith.constant 2 : index
    %c0_243 = arith.constant 0 : index
    %c0_244 = arith.constant 0 : index
    %306 = vector.load %arg12[%c2_242, %c0_243, %c0_244] : memref<13x13x128xf32, #tpu.memory_space<vmem>>, vector<1x13x128xf32>
    %307 = vector.shape_cast %306 : vector<1x13x128xf32> to vector<13x128xf32>
    %308 = vector.shape_cast %305 : vector<13x128xf32> to vector<1x13x128xf32>
    tpu.vector_store %arg12[%c2_242, %c0_243, %c0_244], %308 {strides = array<i32>} : memref<13x13x128xf32, #tpu.memory_space<vmem>>, vector<1x13x128xf32>,
    %c6_245 = arith.constant 6 : index
    %c0_246 = arith.constant 0 : index
    %c0_247 = arith.constant 0 : index
    %309 = vector.load %arg11[%c6_245, %c0_246, %c0_247] : memref<26x26x128xf32, #tpu.memory_space<vmem>>, vector<1x26x128xf32>
    %310 = vector.shape_cast %309 : vector<1x26x128xf32> to vector<26x128xf32>
    %c7_248 = arith.constant 7 : index
    %c0_249 = arith.constant 0 : index
    %c0_250 = arith.constant 0 : index
    %311 = vector.load %arg11[%c7_248, %c0_249, %c0_250] : memref<26x26x128xf32, #tpu.memory_space<vmem>>, vector<1x26x128xf32>
    %312 = vector.shape_cast %311 : vector<1x26x128xf32> to vector<26x128xf32>
    %313 = arith.maximumf %310, %312 : vector<26x128xf32>
    %cst_251 = arith.constant dense<0.000000e+00> : vector<13x128xf32>
    %314 = tpu.matmul %268, %313, %cst_251 {dimension_numbers = #tpu.dot_dimension_numbers<[1], [0], [0], [1], [0, 0, 1, 1], [], []>} : vector<13x26xf32>, vector<26x128xf32>, vector<13x128xf32> -> vector<13x128xf32>
    %cst_252 = arith.constant dense<0.000000e+00> : vector<13x128xf32>
    %315 = tpu.matmul %275, %313, %cst_252 {dimension_numbers = #tpu.dot_dimension_numbers<[1], [0], [0], [1], [0, 0, 1, 1], [], []>} : vector<13x26xf32>, vector<26x128xf32>, vector<13x128xf32> -> vector<13x128xf32>
    %316 = arith.maximumf %314, %315 : vector<13x128xf32>
    %c3_253 = arith.constant 3 : index
    %c0_254 = arith.constant 0 : index
    %c0_255 = arith.constant 0 : index
    %317 = vector.load %arg12[%c3_253, %c0_254, %c0_255] : memref<13x13x128xf32, #tpu.memory_space<vmem>>, vector<1x13x128xf32>
    %318 = vector.shape_cast %317 : vector<1x13x128xf32> to vector<13x128xf32>
    %319 = vector.shape_cast %316 : vector<13x128xf32> to vector<1x13x128xf32>
    tpu.vector_store %arg12[%c3_253, %c0_254, %c0_255], %319 {strides = array<i32>} : memref<13x13x128xf32, #tpu.memory_space<vmem>>, vector<1x13x128xf32>,
    %c8_256 = arith.constant 8 : index
    %c0_257 = arith.constant 0 : index
    %c0_258 = arith.constant 0 : index
    %320 = vector.load %arg11[%c8_256, %c0_257, %c0_258] : memref<26x26x128xf32, #tpu.memory_space<vmem>>, vector<1x26x128xf32>
    %321 = vector.shape_cast %320 : vector<1x26x128xf32> to vector<26x128xf32>
    %c9_259 = arith.constant 9 : index
    %c0_260 = arith.constant 0 : index
    %c0_261 = arith.constant 0 : index
    %322 = vector.load %arg11[%c9_259, %c0_260, %c0_261] : memref<26x26x128xf32, #tpu.memory_space<vmem>>, vector<1x26x128xf32>
    %323 = vector.shape_cast %322 : vector<1x26x128xf32> to vector<26x128xf32>
    %324 = arith.maximumf %321, %323 : vector<26x128xf32>
    %cst_262 = arith.constant dense<0.000000e+00> : vector<13x128xf32>
    %325 = tpu.matmul %268, %324, %cst_262 {dimension_numbers = #tpu.dot_dimension_numbers<[1], [0], [0], [1], [0, 0, 1, 1], [], []>} : vector<13x26xf32>, vector<26x128xf32>, vector<13x128xf32> -> vector<13x128xf32>
    %cst_263 = arith.constant dense<0.000000e+00> : vector<13x128xf32>
    %326 = tpu.matmul %275, %324, %cst_263 {dimension_numbers = #tpu.dot_dimension_numbers<[1], [0], [0], [1], [0, 0, 1, 1], [], []>} : vector<13x26xf32>, vector<26x128xf32>, vector<13x128xf32> -> vector<13x128xf32>
    %327 = arith.maximumf %325, %326 : vector<13x128xf32>
    %c4_264 = arith.constant 4 : index
    %c0_265 = arith.constant 0 : index
    %c0_266 = arith.constant 0 : index
    %328 = vector.load %arg12[%c4_264, %c0_265, %c0_266] : memref<13x13x128xf32, #tpu.memory_space<vmem>>, vector<1x13x128xf32>
    %329 = vector.shape_cast %328 : vector<1x13x128xf32> to vector<13x128xf32>
    %330 = vector.shape_cast %327 : vector<13x128xf32> to vector<1x13x128xf32>
    tpu.vector_store %arg12[%c4_264, %c0_265, %c0_266], %330 {strides = array<i32>} : memref<13x13x128xf32, #tpu.memory_space<vmem>>, vector<1x13x128xf32>,
    %c10_267 = arith.constant 10 : index
    %c0_268 = arith.constant 0 : index
    %c0_269 = arith.constant 0 : index
    %331 = vector.load %arg11[%c10_267, %c0_268, %c0_269] : memref<26x26x128xf32, #tpu.memory_space<vmem>>, vector<1x26x128xf32>
    %332 = vector.shape_cast %331 : vector<1x26x128xf32> to vector<26x128xf32>
    %c11_270 = arith.constant 11 : index
    %c0_271 = arith.constant 0 : index
    %c0_272 = arith.constant 0 : index
    %333 = vector.load %arg11[%c11_270, %c0_271, %c0_272] : memref<26x26x128xf32, #tpu.memory_space<vmem>>, vector<1x26x128xf32>
    %334 = vector.shape_cast %333 : vector<1x26x128xf32> to vector<26x128xf32>
    %335 = arith.maximumf %332, %334 : vector<26x128xf32>
    %cst_273 = arith.constant dense<0.000000e+00> : vector<13x128xf32>
    %336 = tpu.matmul %268, %335, %cst_273 {dimension_numbers = #tpu.dot_dimension_numbers<[1], [0], [0], [1], [0, 0, 1, 1], [], []>} : vector<13x26xf32>, vector<26x128xf32>, vector<13x128xf32> -> vector<13x128xf32>
    %cst_274 = arith.constant dense<0.000000e+00> : vector<13x128xf32>
    %337 = tpu.matmul %275, %335, %cst_274 {dimension_numbers = #tpu.dot_dimension_numbers<[1], [0], [0], [1], [0, 0, 1, 1], [], []>} : vector<13x26xf32>, vector<26x128xf32>, vector<13x128xf32> -> vector<13x128xf32>
    %338 = arith.maximumf %336, %337 : vector<13x128xf32>
    %c5_275 = arith.constant 5 : index
    %c0_276 = arith.constant 0 : index
    %c0_277 = arith.constant 0 : index
    %339 = vector.load %arg12[%c5_275, %c0_276, %c0_277] : memref<13x13x128xf32, #tpu.memory_space<vmem>>, vector<1x13x128xf32>
    %340 = vector.shape_cast %339 : vector<1x13x128xf32> to vector<13x128xf32>
    %341 = vector.shape_cast %338 : vector<13x128xf32> to vector<1x13x128xf32>
    tpu.vector_store %arg12[%c5_275, %c0_276, %c0_277], %341 {strides = array<i32>} : memref<13x13x128xf32, #tpu.memory_space<vmem>>, vector<1x13x128xf32>,
    %c12_278 = arith.constant 12 : index
    %c0_279 = arith.constant 0 : index
    %c0_280 = arith.constant 0 : index
    %342 = vector.load %arg11[%c12_278, %c0_279, %c0_280] : memref<26x26x128xf32, #tpu.memory_space<vmem>>, vector<1x26x128xf32>
    %343 = vector.shape_cast %342 : vector<1x26x128xf32> to vector<26x128xf32>
    %c13_281 = arith.constant 13 : index
    %c0_282 = arith.constant 0 : index
    %c0_283 = arith.constant 0 : index
    %344 = vector.load %arg11[%c13_281, %c0_282, %c0_283] : memref<26x26x128xf32, #tpu.memory_space<vmem>>, vector<1x26x128xf32>
    %345 = vector.shape_cast %344 : vector<1x26x128xf32> to vector<26x128xf32>
    %346 = arith.maximumf %343, %345 : vector<26x128xf32>
    %cst_284 = arith.constant dense<0.000000e+00> : vector<13x128xf32>
    %347 = tpu.matmul %268, %346, %cst_284 {dimension_numbers = #tpu.dot_dimension_numbers<[1], [0], [0], [1], [0, 0, 1, 1], [], []>} : vector<13x26xf32>, vector<26x128xf32>, vector<13x128xf32> -> vector<13x128xf32>
    %cst_285 = arith.constant dense<0.000000e+00> : vector<13x128xf32>
    %348 = tpu.matmul %275, %346, %cst_285 {dimension_numbers = #tpu.dot_dimension_numbers<[1], [0], [0], [1], [0, 0, 1, 1], [], []>} : vector<13x26xf32>, vector<26x128xf32>, vector<13x128xf32> -> vector<13x128xf32>
    %349 = arith.maximumf %347, %348 : vector<13x128xf32>
    %c6_286 = arith.constant 6 : index
    %c0_287 = arith.constant 0 : index
    %c0_288 = arith.constant 0 : index
    %350 = vector.load %arg12[%c6_286, %c0_287, %c0_288] : memref<13x13x128xf32, #tpu.memory_space<vmem>>, vector<1x13x128xf32>
    %351 = vector.shape_cast %350 : vector<1x13x128xf32> to vector<13x128xf32>
    %352 = vector.shape_cast %349 : vector<13x128xf32> to vector<1x13x128xf32>
    tpu.vector_store %arg12[%c6_286, %c0_287, %c0_288], %352 {strides = array<i32>} : memref<13x13x128xf32, #tpu.memory_space<vmem>>, vector<1x13x128xf32>,
    %c14_289 = arith.constant 14 : index
    %c0_290 = arith.constant 0 : index
    %c0_291 = arith.constant 0 : index
    %353 = vector.load %arg11[%c14_289, %c0_290, %c0_291] : memref<26x26x128xf32, #tpu.memory_space<vmem>>, vector<1x26x128xf32>
    %354 = vector.shape_cast %353 : vector<1x26x128xf32> to vector<26x128xf32>
    %c15_292 = arith.constant 15 : index
    %c0_293 = arith.constant 0 : index
    %c0_294 = arith.constant 0 : index
    %355 = vector.load %arg11[%c15_292, %c0_293, %c0_294] : memref<26x26x128xf32, #tpu.memory_space<vmem>>, vector<1x26x128xf32>
    %356 = vector.shape_cast %355 : vector<1x26x128xf32> to vector<26x128xf32>
    %357 = arith.maximumf %354, %356 : vector<26x128xf32>
    %cst_295 = arith.constant dense<0.000000e+00> : vector<13x128xf32>
    %358 = tpu.matmul %268, %357, %cst_295 {dimension_numbers = #tpu.dot_dimension_numbers<[1], [0], [0], [1], [0, 0, 1, 1], [], []>} : vector<13x26xf32>, vector<26x128xf32>, vector<13x128xf32> -> vector<13x128xf32>
    %cst_296 = arith.constant dense<0.000000e+00> : vector<13x128xf32>
    %359 = tpu.matmul %275, %357, %cst_296 {dimension_numbers = #tpu.dot_dimension_numbers<[1], [0], [0], [1], [0, 0, 1, 1], [], []>} : vector<13x26xf32>, vector<26x128xf32>, vector<13x128xf32> -> vector<13x128xf32>
    %360 = arith.maximumf %358, %359 : vector<13x128xf32>
    %c7_297 = arith.constant 7 : index
    %c0_298 = arith.constant 0 : index
    %c0_299 = arith.constant 0 : index
    %361 = vector.load %arg12[%c7_297, %c0_298, %c0_299] : memref<13x13x128xf32, #tpu.memory_space<vmem>>, vector<1x13x128xf32>
    %362 = vector.shape_cast %361 : vector<1x13x128xf32> to vector<13x128xf32>
    %363 = vector.shape_cast %360 : vector<13x128xf32> to vector<1x13x128xf32>
    tpu.vector_store %arg12[%c7_297, %c0_298, %c0_299], %363 {strides = array<i32>} : memref<13x13x128xf32, #tpu.memory_space<vmem>>, vector<1x13x128xf32>,
    %c16_300 = arith.constant 16 : index
    %c0_301 = arith.constant 0 : index
    %c0_302 = arith.constant 0 : index
    %364 = vector.load %arg11[%c16_300, %c0_301, %c0_302] : memref<26x26x128xf32, #tpu.memory_space<vmem>>, vector<1x26x128xf32>
    %365 = vector.shape_cast %364 : vector<1x26x128xf32> to vector<26x128xf32>
    %c17_303 = arith.constant 17 : index
    %c0_304 = arith.constant 0 : index
    %c0_305 = arith.constant 0 : index
    %366 = vector.load %arg11[%c17_303, %c0_304, %c0_305] : memref<26x26x128xf32, #tpu.memory_space<vmem>>, vector<1x26x128xf32>
    %367 = vector.shape_cast %366 : vector<1x26x128xf32> to vector<26x128xf32>
    %368 = arith.maximumf %365, %367 : vector<26x128xf32>
    %cst_306 = arith.constant dense<0.000000e+00> : vector<13x128xf32>
    %369 = tpu.matmul %268, %368, %cst_306 {dimension_numbers = #tpu.dot_dimension_numbers<[1], [0], [0], [1], [0, 0, 1, 1], [], []>} : vector<13x26xf32>, vector<26x128xf32>, vector<13x128xf32> -> vector<13x128xf32>
    %cst_307 = arith.constant dense<0.000000e+00> : vector<13x128xf32>
    %370 = tpu.matmul %275, %368, %cst_307 {dimension_numbers = #tpu.dot_dimension_numbers<[1], [0], [0], [1], [0, 0, 1, 1], [], []>} : vector<13x26xf32>, vector<26x128xf32>, vector<13x128xf32> -> vector<13x128xf32>
    %371 = arith.maximumf %369, %370 : vector<13x128xf32>
    %c8_308 = arith.constant 8 : index
    %c0_309 = arith.constant 0 : index
    %c0_310 = arith.constant 0 : index
    %372 = vector.load %arg12[%c8_308, %c0_309, %c0_310] : memref<13x13x128xf32, #tpu.memory_space<vmem>>, vector<1x13x128xf32>
    %373 = vector.shape_cast %372 : vector<1x13x128xf32> to vector<13x128xf32>
    %374 = vector.shape_cast %371 : vector<13x128xf32> to vector<1x13x128xf32>
    tpu.vector_store %arg12[%c8_308, %c0_309, %c0_310], %374 {strides = array<i32>} : memref<13x13x128xf32, #tpu.memory_space<vmem>>, vector<1x13x128xf32>,
    %c18_311 = arith.constant 18 : index
    %c0_312 = arith.constant 0 : index
    %c0_313 = arith.constant 0 : index
    %375 = vector.load %arg11[%c18_311, %c0_312, %c0_313] : memref<26x26x128xf32, #tpu.memory_space<vmem>>, vector<1x26x128xf32>
    %376 = vector.shape_cast %375 : vector<1x26x128xf32> to vector<26x128xf32>
    %c19_314 = arith.constant 19 : index
    %c0_315 = arith.constant 0 : index
    %c0_316 = arith.constant 0 : index
    %377 = vector.load %arg11[%c19_314, %c0_315, %c0_316] : memref<26x26x128xf32, #tpu.memory_space<vmem>>, vector<1x26x128xf32>
    %378 = vector.shape_cast %377 : vector<1x26x128xf32> to vector<26x128xf32>
    %379 = arith.maximumf %376, %378 : vector<26x128xf32>
    %cst_317 = arith.constant dense<0.000000e+00> : vector<13x128xf32>
    %380 = tpu.matmul %268, %379, %cst_317 {dimension_numbers = #tpu.dot_dimension_numbers<[1], [0], [0], [1], [0, 0, 1, 1], [], []>} : vector<13x26xf32>, vector<26x128xf32>, vector<13x128xf32> -> vector<13x128xf32>
    %cst_318 = arith.constant dense<0.000000e+00> : vector<13x128xf32>
    %381 = tpu.matmul %275, %379, %cst_318 {dimension_numbers = #tpu.dot_dimension_numbers<[1], [0], [0], [1], [0, 0, 1, 1], [], []>} : vector<13x26xf32>, vector<26x128xf32>, vector<13x128xf32> -> vector<13x128xf32>
    %382 = arith.maximumf %380, %381 : vector<13x128xf32>
    %c9_319 = arith.constant 9 : index
    %c0_320 = arith.constant 0 : index
    %c0_321 = arith.constant 0 : index
    %383 = vector.load %arg12[%c9_319, %c0_320, %c0_321] : memref<13x13x128xf32, #tpu.memory_space<vmem>>, vector<1x13x128xf32>
    %384 = vector.shape_cast %383 : vector<1x13x128xf32> to vector<13x128xf32>
    %385 = vector.shape_cast %382 : vector<13x128xf32> to vector<1x13x128xf32>
    tpu.vector_store %arg12[%c9_319, %c0_320, %c0_321], %385 {strides = array<i32>} : memref<13x13x128xf32, #tpu.memory_space<vmem>>, vector<1x13x128xf32>,
    %c20_322 = arith.constant 20 : index
    %c0_323 = arith.constant 0 : index
    %c0_324 = arith.constant 0 : index
    %386 = vector.load %arg11[%c20_322, %c0_323, %c0_324] : memref<26x26x128xf32, #tpu.memory_space<vmem>>, vector<1x26x128xf32>
    %387 = vector.shape_cast %386 : vector<1x26x128xf32> to vector<26x128xf32>
    %c21_325 = arith.constant 21 : index
    %c0_326 = arith.constant 0 : index
    %c0_327 = arith.constant 0 : index
    %388 = vector.load %arg11[%c21_325, %c0_326, %c0_327] : memref<26x26x128xf32, #tpu.memory_space<vmem>>, vector<1x26x128xf32>
    %389 = vector.shape_cast %388 : vector<1x26x128xf32> to vector<26x128xf32>
    %390 = arith.maximumf %387, %389 : vector<26x128xf32>
    %cst_328 = arith.constant dense<0.000000e+00> : vector<13x128xf32>
    %391 = tpu.matmul %268, %390, %cst_328 {dimension_numbers = #tpu.dot_dimension_numbers<[1], [0], [0], [1], [0, 0, 1, 1], [], []>} : vector<13x26xf32>, vector<26x128xf32>, vector<13x128xf32> -> vector<13x128xf32>
    %cst_329 = arith.constant dense<0.000000e+00> : vector<13x128xf32>
    %392 = tpu.matmul %275, %390, %cst_329 {dimension_numbers = #tpu.dot_dimension_numbers<[1], [0], [0], [1], [0, 0, 1, 1], [], []>} : vector<13x26xf32>, vector<26x128xf32>, vector<13x128xf32> -> vector<13x128xf32>
    %393 = arith.maximumf %391, %392 : vector<13x128xf32>
    %c10_330 = arith.constant 10 : index
    %c0_331 = arith.constant 0 : index
    %c0_332 = arith.constant 0 : index
    %394 = vector.load %arg12[%c10_330, %c0_331, %c0_332] : memref<13x13x128xf32, #tpu.memory_space<vmem>>, vector<1x13x128xf32>
    %395 = vector.shape_cast %394 : vector<1x13x128xf32> to vector<13x128xf32>
    %396 = vector.shape_cast %393 : vector<13x128xf32> to vector<1x13x128xf32>
    tpu.vector_store %arg12[%c10_330, %c0_331, %c0_332], %396 {strides = array<i32>} : memref<13x13x128xf32, #tpu.memory_space<vmem>>, vector<1x13x128xf32>,
    %c22_333 = arith.constant 22 : index
    %c0_334 = arith.constant 0 : index
    %c0_335 = arith.constant 0 : index
    %397 = vector.load %arg11[%c22_333, %c0_334, %c0_335] : memref<26x26x128xf32, #tpu.memory_space<vmem>>, vector<1x26x128xf32>
    %398 = vector.shape_cast %397 : vector<1x26x128xf32> to vector<26x128xf32>
    %c23_336 = arith.constant 23 : index
    %c0_337 = arith.constant 0 : index
    %c0_338 = arith.constant 0 : index
    %399 = vector.load %arg11[%c23_336, %c0_337, %c0_338] : memref<26x26x128xf32, #tpu.memory_space<vmem>>, vector<1x26x128xf32>
    %400 = vector.shape_cast %399 : vector<1x26x128xf32> to vector<26x128xf32>
    %401 = arith.maximumf %398, %400 : vector<26x128xf32>
    %cst_339 = arith.constant dense<0.000000e+00> : vector<13x128xf32>
    %402 = tpu.matmul %268, %401, %cst_339 {dimension_numbers = #tpu.dot_dimension_numbers<[1], [0], [0], [1], [0, 0, 1, 1], [], []>} : vector<13x26xf32>, vector<26x128xf32>, vector<13x128xf32> -> vector<13x128xf32>
    %cst_340 = arith.constant dense<0.000000e+00> : vector<13x128xf32>
    %403 = tpu.matmul %275, %401, %cst_340 {dimension_numbers = #tpu.dot_dimension_numbers<[1], [0], [0], [1], [0, 0, 1, 1], [], []>} : vector<13x26xf32>, vector<26x128xf32>, vector<13x128xf32> -> vector<13x128xf32>
    %404 = arith.maximumf %402, %403 : vector<13x128xf32>
    %c11_341 = arith.constant 11 : index
    %c0_342 = arith.constant 0 : index
    %c0_343 = arith.constant 0 : index
    %405 = vector.load %arg12[%c11_341, %c0_342, %c0_343] : memref<13x13x128xf32, #tpu.memory_space<vmem>>, vector<1x13x128xf32>
    %406 = vector.shape_cast %405 : vector<1x13x128xf32> to vector<13x128xf32>
    %407 = vector.shape_cast %404 : vector<13x128xf32> to vector<1x13x128xf32>
    tpu.vector_store %arg12[%c11_341, %c0_342, %c0_343], %407 {strides = array<i32>} : memref<13x13x128xf32, #tpu.memory_space<vmem>>, vector<1x13x128xf32>,
    %c24_344 = arith.constant 24 : index
    %c0_345 = arith.constant 0 : index
    %c0_346 = arith.constant 0 : index
    %408 = vector.load %arg11[%c24_344, %c0_345, %c0_346] : memref<26x26x128xf32, #tpu.memory_space<vmem>>, vector<1x26x128xf32>
    %409 = vector.shape_cast %408 : vector<1x26x128xf32> to vector<26x128xf32>
    %c25_347 = arith.constant 25 : index
    %c0_348 = arith.constant 0 : index
    %c0_349 = arith.constant 0 : index
    %410 = vector.load %arg11[%c25_347, %c0_348, %c0_349] : memref<26x26x128xf32, #tpu.memory_space<vmem>>, vector<1x26x128xf32>
    %411 = vector.shape_cast %410 : vector<1x26x128xf32> to vector<26x128xf32>
    %412 = arith.maximumf %409, %411 : vector<26x128xf32>
    %cst_350 = arith.constant dense<0.000000e+00> : vector<13x128xf32>
    %413 = tpu.matmul %268, %412, %cst_350 {dimension_numbers = #tpu.dot_dimension_numbers<[1], [0], [0], [1], [0, 0, 1, 1], [], []>} : vector<13x26xf32>, vector<26x128xf32>, vector<13x128xf32> -> vector<13x128xf32>
    %cst_351 = arith.constant dense<0.000000e+00> : vector<13x128xf32>
    %414 = tpu.matmul %275, %412, %cst_351 {dimension_numbers = #tpu.dot_dimension_numbers<[1], [0], [0], [1], [0, 0, 1, 1], [], []>} : vector<13x26xf32>, vector<26x128xf32>, vector<13x128xf32> -> vector<13x128xf32>
    %415 = arith.maximumf %413, %414 : vector<13x128xf32>
    %c12_352 = arith.constant 12 : index
    %c0_353 = arith.constant 0 : index
    %c0_354 = arith.constant 0 : index
    %416 = vector.load %arg12[%c12_352, %c0_353, %c0_354] : memref<13x13x128xf32, #tpu.memory_space<vmem>>, vector<1x13x128xf32>
    %417 = vector.shape_cast %416 : vector<1x13x128xf32> to vector<13x128xf32>
    %418 = vector.shape_cast %415 : vector<13x128xf32> to vector<1x13x128xf32>
    tpu.vector_store %arg12[%c12_352, %c0_353, %c0_354], %418 {strides = array<i32>} : memref<13x13x128xf32, #tpu.memory_space<vmem>>, vector<1x13x128xf32>,
    %c0_355 = arith.constant 0 : index
    %c0_356 = arith.constant 0 : index
    %419 = vector.load %arg4[%c0_355, %c0_356] : memref<1152x128xf32, #tpu.memory_space<vmem>>, vector<1152x128xf32>
    %c0_357 = arith.constant 0 : index
    %c0_358 = arith.constant 0 : index
    %420 = vector.load %arg5[%c0_357, %c0_358] : memref<1x128xf32, #tpu.memory_space<vmem>>, vector<1x128xf32>
    %421 = tpu.iota {dimensions = array<i32: 1>} : vector<5x11xi32>
    %422 = tpu.iota {dimensions = array<i32: 0>} : vector<5x11xi32>
    %c2_i32_359 = arith.constant 2 : i32
    %423 = vector.broadcast %c2_i32_359 : i32 to vector<5x11xi32>
    %424 = arith.muli %423, %422 : vector<5x11xi32>
    %425 = arith.cmpi eq, %421, %424 : vector<5x11xi32>
    %426 = arith.extui %425 : vector<5x11xi1> to vector<5x11xi32>
    %427 = arith.sitofp %426 : vector<5x11xi32> to vector<5x11xf32>
    %c2_i32_360 = arith.constant 2 : i32
    %428 = vector.broadcast %c2_i32_360 : i32 to vector<5x11xi32>
    %429 = arith.muli %428, %422 : vector<5x11xi32>
    %c1_i32_361 = arith.constant 1 : i32
    %430 = vector.broadcast %c1_i32_361 : i32 to vector<5x11xi32>
    %431 = arith.addi %429, %430 : vector<5x11xi32>
    %432 = arith.cmpi eq, %421, %431 : vector<5x11xi32>
    %433 = arith.extui %432 : vector<5x11xi1> to vector<5x11xi32>
    %434 = arith.sitofp %433 : vector<5x11xi32> to vector<5x11xf32>
    %c0_362 = arith.constant 0 : index
    %c0_363 = arith.constant 0 : index
    %c0_364 = arith.constant 0 : index
    %435 = vector.load %arg12[%c0_362, %c0_363, %c0_364] : memref<13x13x128xf32, #tpu.memory_space<vmem>>, vector<1x11x128xf32>
    %436 = vector.shape_cast %435 : vector<1x11x128xf32> to vector<11x128xf32>
    %c0_365 = arith.constant 0 : index
    %c1_366 = arith.constant 1 : index
    %c0_367 = arith.constant 0 : index
    %437 = vector.load %arg12[%c0_365, %c1_366, %c0_367] : memref<13x13x128xf32, #tpu.memory_space<vmem>>, vector<1x11x128xf32>
    %438 = vector.shape_cast %437 : vector<1x11x128xf32> to vector<11x128xf32>
    %c0_368 = arith.constant 0 : index
    %c2_369 = arith.constant 2 : index
    %c0_370 = arith.constant 0 : index
    %439 = vector.load %arg12[%c0_368, %c2_369, %c0_370] : memref<13x13x128xf32, #tpu.memory_space<vmem>>, vector<1x11x128xf32>
    %440 = vector.shape_cast %439 : vector<1x11x128xf32> to vector<11x128xf32>
    %c1_371 = arith.constant 1 : index
    %c0_372 = arith.constant 0 : index
    %c0_373 = arith.constant 0 : index
    %441 = vector.load %arg12[%c1_371, %c0_372, %c0_373] : memref<13x13x128xf32, #tpu.memory_space<vmem>>, vector<1x11x128xf32>
    %442 = vector.shape_cast %441 : vector<1x11x128xf32> to vector<11x128xf32>
    %c1_374 = arith.constant 1 : index
    %c1_375 = arith.constant 1 : index
    %c0_376 = arith.constant 0 : index
    %443 = vector.load %arg12[%c1_374, %c1_375, %c0_376] : memref<13x13x128xf32, #tpu.memory_space<vmem>>, vector<1x11x128xf32>
    %444 = vector.shape_cast %443 : vector<1x11x128xf32> to vector<11x128xf32>
    %c1_377 = arith.constant 1 : index
    %c2_378 = arith.constant 2 : index
    %c0_379 = arith.constant 0 : index
    %445 = vector.load %arg12[%c1_377, %c2_378, %c0_379] : memref<13x13x128xf32, #tpu.memory_space<vmem>>, vector<1x11x128xf32>
    %446 = vector.shape_cast %445 : vector<1x11x128xf32> to vector<11x128xf32>
    %c2_380 = arith.constant 2 : index
    %c0_381 = arith.constant 0 : index
    %c0_382 = arith.constant 0 : index
    %447 = vector.load %arg12[%c2_380, %c0_381, %c0_382] : memref<13x13x128xf32, #tpu.memory_space<vmem>>, vector<1x11x128xf32>
    %448 = vector.shape_cast %447 : vector<1x11x128xf32> to vector<11x128xf32>
    %c2_383 = arith.constant 2 : index
    %c1_384 = arith.constant 1 : index
    %c0_385 = arith.constant 0 : index
    %449 = vector.load %arg12[%c2_383, %c1_384, %c0_385] : memref<13x13x128xf32, #tpu.memory_space<vmem>>, vector<1x11x128xf32>
    %450 = vector.shape_cast %449 : vector<1x11x128xf32> to vector<11x128xf32>
    %c2_386 = arith.constant 2 : index
    %c2_387 = arith.constant 2 : index
    %c0_388 = arith.constant 0 : index
    %451 = vector.load %arg12[%c2_386, %c2_387, %c0_388] : memref<13x13x128xf32, #tpu.memory_space<vmem>>, vector<1x11x128xf32>
    %452 = vector.shape_cast %451 : vector<1x11x128xf32> to vector<11x128xf32>
    %453 = tpu.concatenate %436, %438, %440, %442, %444, %446, %448, %450, %452 in 1 : vector<11x128xf32>, vector<11x128xf32>, vector<11x128xf32>, vector<11x128xf32>, vector<11x128xf32>, vector<11x128xf32>, vector<11x128xf32>, vector<11x128xf32>, vector<11x128xf32> -> vector<11x1152xf32>
    %cst_389 = arith.constant dense<0.000000e+00> : vector<11x128xf32>
    %454 = tpu.matmul %453, %419, %cst_389 {dimension_numbers = #tpu.dot_dimension_numbers<[1], [0], [0], [1], [0, 0, 1, 1], [], []>} : vector<11x1152xf32>, vector<1152x128xf32>, vector<11x128xf32> -> vector<11x128xf32>
    %455 = vector.broadcast %420 : vector<1x128xf32> to vector<11x128xf32>
    %456 = arith.addf %454, %455 : vector<11x128xf32>
    %cst_390 = arith.constant 0.000000e+00 : f32
    %457 = vector.broadcast %cst_390 : f32 to vector<11x128xf32>
    %458 = arith.maximumf %456, %457 : vector<11x128xf32>
    %c1_391 = arith.constant 1 : index
    %c0_392 = arith.constant 0 : index
    %c0_393 = arith.constant 0 : index
    %459 = vector.load %arg12[%c1_391, %c0_392, %c0_393] : memref<13x13x128xf32, #tpu.memory_space<vmem>>, vector<1x11x128xf32>
    %460 = vector.shape_cast %459 : vector<1x11x128xf32> to vector<11x128xf32>
    %c1_394 = arith.constant 1 : index
    %c1_395 = arith.constant 1 : index
    %c0_396 = arith.constant 0 : index
    %461 = vector.load %arg12[%c1_394, %c1_395, %c0_396] : memref<13x13x128xf32, #tpu.memory_space<vmem>>, vector<1x11x128xf32>
    %462 = vector.shape_cast %461 : vector<1x11x128xf32> to vector<11x128xf32>
    %c1_397 = arith.constant 1 : index
    %c2_398 = arith.constant 2 : index
    %c0_399 = arith.constant 0 : index
    %463 = vector.load %arg12[%c1_397, %c2_398, %c0_399] : memref<13x13x128xf32, #tpu.memory_space<vmem>>, vector<1x11x128xf32>
    %464 = vector.shape_cast %463 : vector<1x11x128xf32> to vector<11x128xf32>
    %c2_400 = arith.constant 2 : index
    %c0_401 = arith.constant 0 : index
    %c0_402 = arith.constant 0 : index
    %465 = vector.load %arg12[%c2_400, %c0_401, %c0_402] : memref<13x13x128xf32, #tpu.memory_space<vmem>>, vector<1x11x128xf32>
    %466 = vector.shape_cast %465 : vector<1x11x128xf32> to vector<11x128xf32>
    %c2_403 = arith.constant 2 : index
    %c1_404 = arith.constant 1 : index
    %c0_405 = arith.constant 0 : index
    %467 = vector.load %arg12[%c2_403, %c1_404, %c0_405] : memref<13x13x128xf32, #tpu.memory_space<vmem>>, vector<1x11x128xf32>
    %468 = vector.shape_cast %467 : vector<1x11x128xf32> to vector<11x128xf32>
    %c2_406 = arith.constant 2 : index
    %c2_407 = arith.constant 2 : index
    %c0_408 = arith.constant 0 : index
    %469 = vector.load %arg12[%c2_406, %c2_407, %c0_408] : memref<13x13x128xf32, #tpu.memory_space<vmem>>, vector<1x11x128xf32>
    %470 = vector.shape_cast %469 : vector<1x11x128xf32> to vector<11x128xf32>
    %c3_409 = arith.constant 3 : index
    %c0_410 = arith.constant 0 : index
    %c0_411 = arith.constant 0 : index
    %471 = vector.load %arg12[%c3_409, %c0_410, %c0_411] : memref<13x13x128xf32, #tpu.memory_space<vmem>>, vector<1x11x128xf32>
    %472 = vector.shape_cast %471 : vector<1x11x128xf32> to vector<11x128xf32>
    %c3_412 = arith.constant 3 : index
    %c1_413 = arith.constant 1 : index
    %c0_414 = arith.constant 0 : index
    %473 = vector.load %arg12[%c3_412, %c1_413, %c0_414] : memref<13x13x128xf32, #tpu.memory_space<vmem>>, vector<1x11x128xf32>
    %474 = vector.shape_cast %473 : vector<1x11x128xf32> to vector<11x128xf32>
    %c3_415 = arith.constant 3 : index
    %c2_416 = arith.constant 2 : index
    %c0_417 = arith.constant 0 : index
    %475 = vector.load %arg12[%c3_415, %c2_416, %c0_417] : memref<13x13x128xf32, #tpu.memory_space<vmem>>, vector<1x11x128xf32>
    %476 = vector.shape_cast %475 : vector<1x11x128xf32> to vector<11x128xf32>
    %477 = tpu.concatenate %460, %462, %464, %466, %468, %470, %472, %474, %476 in 1 : vector<11x128xf32>, vector<11x128xf32>, vector<11x128xf32>, vector<11x128xf32>, vector<11x128xf32>, vector<11x128xf32>, vector<11x128xf32>, vector<11x128xf32>, vector<11x128xf32> -> vector<11x1152xf32>
    %cst_418 = arith.constant dense<0.000000e+00> : vector<11x128xf32>
    %478 = tpu.matmul %477, %419, %cst_418 {dimension_numbers = #tpu.dot_dimension_numbers<[1], [0], [0], [1], [0, 0, 1, 1], [], []>} : vector<11x1152xf32>, vector<1152x128xf32>, vector<11x128xf32> -> vector<11x128xf32>
    %479 = vector.broadcast %420 : vector<1x128xf32> to vector<11x128xf32>
    %480 = arith.addf %478, %479 : vector<11x128xf32>
    %cst_419 = arith.constant 0.000000e+00 : f32
    %481 = vector.broadcast %cst_419 : f32 to vector<11x128xf32>
    %482 = arith.maximumf %480, %481 : vector<11x128xf32>
    %483 = arith.maximumf %458, %482 : vector<11x128xf32>
    %cst_420 = arith.constant dense<0.000000e+00> : vector<5x128xf32>
    %484 = tpu.matmul %427, %483, %cst_420 {dimension_numbers = #tpu.dot_dimension_numbers<[1], [0], [0], [1], [0, 0, 1, 1], [], []>} : vector<5x11xf32>, vector<11x128xf32>, vector<5x128xf32> -> vector<5x128xf32>
    %cst_421 = arith.constant dense<0.000000e+00> : vector<5x128xf32>
    %485 = tpu.matmul %434, %483, %cst_421 {dimension_numbers = #tpu.dot_dimension_numbers<[1], [0], [0], [1], [0, 0, 1, 1], [], []>} : vector<5x11xf32>, vector<11x128xf32>, vector<5x128xf32> -> vector<5x128xf32>
    %486 = arith.maximumf %484, %485 : vector<5x128xf32>
    %c0_422 = arith.constant 0 : index
    %c0_423 = arith.constant 0 : index
    %c0_424 = arith.constant 0 : index
    %487 = vector.load %arg13[%c0_422, %c0_423, %c0_424] : memref<5x5x128xf32, #tpu.memory_space<vmem>>, vector<1x5x128xf32>
    %488 = vector.shape_cast %487 : vector<1x5x128xf32> to vector<5x128xf32>
    %489 = vector.shape_cast %486 : vector<5x128xf32> to vector<1x5x128xf32>
    tpu.vector_store %arg13[%c0_422, %c0_423, %c0_424], %489 {strides = array<i32>} : memref<5x5x128xf32, #tpu.memory_space<vmem>>, vector<1x5x128xf32>,
    %c2_425 = arith.constant 2 : index
    %c0_426 = arith.constant 0 : index
    %c0_427 = arith.constant 0 : index
    %490 = vector.load %arg12[%c2_425, %c0_426, %c0_427] : memref<13x13x128xf32, #tpu.memory_space<vmem>>, vector<1x11x128xf32>
    %491 = vector.shape_cast %490 : vector<1x11x128xf32> to vector<11x128xf32>
    %c2_428 = arith.constant 2 : index
    %c1_429 = arith.constant 1 : index
    %c0_430 = arith.constant 0 : index
    %492 = vector.load %arg12[%c2_428, %c1_429, %c0_430] : memref<13x13x128xf32, #tpu.memory_space<vmem>>, vector<1x11x128xf32>
    %493 = vector.shape_cast %492 : vector<1x11x128xf32> to vector<11x128xf32>
    %c2_431 = arith.constant 2 : index
    %c2_432 = arith.constant 2 : index
    %c0_433 = arith.constant 0 : index
    %494 = vector.load %arg12[%c2_431, %c2_432, %c0_433] : memref<13x13x128xf32, #tpu.memory_space<vmem>>, vector<1x11x128xf32>
    %495 = vector.shape_cast %494 : vector<1x11x128xf32> to vector<11x128xf32>
    %c3_434 = arith.constant 3 : index
    %c0_435 = arith.constant 0 : index
    %c0_436 = arith.constant 0 : index
    %496 = vector.load %arg12[%c3_434, %c0_435, %c0_436] : memref<13x13x128xf32, #tpu.memory_space<vmem>>, vector<1x11x128xf32>
    %497 = vector.shape_cast %496 : vector<1x11x128xf32> to vector<11x128xf32>
    %c3_437 = arith.constant 3 : index
    %c1_438 = arith.constant 1 : index
    %c0_439 = arith.constant 0 : index
    %498 = vector.load %arg12[%c3_437, %c1_438, %c0_439] : memref<13x13x128xf32, #tpu.memory_space<vmem>>, vector<1x11x128xf32>
    %499 = vector.shape_cast %498 : vector<1x11x128xf32> to vector<11x128xf32>
    %c3_440 = arith.constant 3 : index
    %c2_441 = arith.constant 2 : index
    %c0_442 = arith.constant 0 : index
    %500 = vector.load %arg12[%c3_440, %c2_441, %c0_442] : memref<13x13x128xf32, #tpu.memory_space<vmem>>, vector<1x11x128xf32>
    %501 = vector.shape_cast %500 : vector<1x11x128xf32> to vector<11x128xf32>
    %c4_443 = arith.constant 4 : index
    %c0_444 = arith.constant 0 : index
    %c0_445 = arith.constant 0 : index
    %502 = vector.load %arg12[%c4_443, %c0_444, %c0_445] : memref<13x13x128xf32, #tpu.memory_space<vmem>>, vector<1x11x128xf32>
    %503 = vector.shape_cast %502 : vector<1x11x128xf32> to vector<11x128xf32>
    %c4_446 = arith.constant 4 : index
    %c1_447 = arith.constant 1 : index
    %c0_448 = arith.constant 0 : index
    %504 = vector.load %arg12[%c4_446, %c1_447, %c0_448] : memref<13x13x128xf32, #tpu.memory_space<vmem>>, vector<1x11x128xf32>
    %505 = vector.shape_cast %504 : vector<1x11x128xf32> to vector<11x128xf32>
    %c4_449 = arith.constant 4 : index
    %c2_450 = arith.constant 2 : index
    %c0_451 = arith.constant 0 : index
    %506 = vector.load %arg12[%c4_449, %c2_450, %c0_451] : memref<13x13x128xf32, #tpu.memory_space<vmem>>, vector<1x11x128xf32>
    %507 = vector.shape_cast %506 : vector<1x11x128xf32> to vector<11x128xf32>
    %508 = tpu.concatenate %491, %493, %495, %497, %499, %501, %503, %505, %507 in 1 : vector<11x128xf32>, vector<11x128xf32>, vector<11x128xf32>, vector<11x128xf32>, vector<11x128xf32>, vector<11x128xf32>, vector<11x128xf32>, vector<11x128xf32>, vector<11x128xf32> -> vector<11x1152xf32>
    %cst_452 = arith.constant dense<0.000000e+00> : vector<11x128xf32>
    %509 = tpu.matmul %508, %419, %cst_452 {dimension_numbers = #tpu.dot_dimension_numbers<[1], [0], [0], [1], [0, 0, 1, 1], [], []>} : vector<11x1152xf32>, vector<1152x128xf32>, vector<11x128xf32> -> vector<11x128xf32>
    %510 = vector.broadcast %420 : vector<1x128xf32> to vector<11x128xf32>
    %511 = arith.addf %509, %510 : vector<11x128xf32>
    %cst_453 = arith.constant 0.000000e+00 : f32
    %512 = vector.broadcast %cst_453 : f32 to vector<11x128xf32>
    %513 = arith.maximumf %511, %512 : vector<11x128xf32>
    %c3_454 = arith.constant 3 : index
    %c0_455 = arith.constant 0 : index
    %c0_456 = arith.constant 0 : index
    %514 = vector.load %arg12[%c3_454, %c0_455, %c0_456] : memref<13x13x128xf32, #tpu.memory_space<vmem>>, vector<1x11x128xf32>
    %515 = vector.shape_cast %514 : vector<1x11x128xf32> to vector<11x128xf32>
    %c3_457 = arith.constant 3 : index
    %c1_458 = arith.constant 1 : index
    %c0_459 = arith.constant 0 : index
    %516 = vector.load %arg12[%c3_457, %c1_458, %c0_459] : memref<13x13x128xf32, #tpu.memory_space<vmem>>, vector<1x11x128xf32>
    %517 = vector.shape_cast %516 : vector<1x11x128xf32> to vector<11x128xf32>
    %c3_460 = arith.constant 3 : index
    %c2_461 = arith.constant 2 : index
    %c0_462 = arith.constant 0 : index
    %518 = vector.load %arg12[%c3_460, %c2_461, %c0_462] : memref<13x13x128xf32, #tpu.memory_space<vmem>>, vector<1x11x128xf32>
    %519 = vector.shape_cast %518 : vector<1x11x128xf32> to vector<11x128xf32>
    %c4_463 = arith.constant 4 : index
    %c0_464 = arith.constant 0 : index
    %c0_465 = arith.constant 0 : index
    %520 = vector.load %arg12[%c4_463, %c0_464, %c0_465] : memref<13x13x128xf32, #tpu.memory_space<vmem>>, vector<1x11x128xf32>
    %521 = vector.shape_cast %520 : vector<1x11x128xf32> to vector<11x128xf32>
    %c4_466 = arith.constant 4 : index
    %c1_467 = arith.constant 1 : index
    %c0_468 = arith.constant 0 : index
    %522 = vector.load %arg12[%c4_466, %c1_467, %c0_468] : memref<13x13x128xf32, #tpu.memory_space<vmem>>, vector<1x11x128xf32>
    %523 = vector.shape_cast %522 : vector<1x11x128xf32> to vector<11x128xf32>
    %c4_469 = arith.constant 4 : index
    %c2_470 = arith.constant 2 : index
    %c0_471 = arith.constant 0 : index
    %524 = vector.load %arg12[%c4_469, %c2_470, %c0_471] : memref<13x13x128xf32, #tpu.memory_space<vmem>>, vector<1x11x128xf32>
    %525 = vector.shape_cast %524 : vector<1x11x128xf32> to vector<11x128xf32>
    %c5_472 = arith.constant 5 : index
    %c0_473 = arith.constant 0 : index
    %c0_474 = arith.constant 0 : index
    %526 = vector.load %arg12[%c5_472, %c0_473, %c0_474] : memref<13x13x128xf32, #tpu.memory_space<vmem>>, vector<1x11x128xf32>
    %527 = vector.shape_cast %526 : vector<1x11x128xf32> to vector<11x128xf32>
    %c5_475 = arith.constant 5 : index
    %c1_476 = arith.constant 1 : index
    %c0_477 = arith.constant 0 : index
    %528 = vector.load %arg12[%c5_475, %c1_476, %c0_477] : memref<13x13x128xf32, #tpu.memory_space<vmem>>, vector<1x11x128xf32>
    %529 = vector.shape_cast %528 : vector<1x11x128xf32> to vector<11x128xf32>
    %c5_478 = arith.constant 5 : index
    %c2_479 = arith.constant 2 : index
    %c0_480 = arith.constant 0 : index
    %530 = vector.load %arg12[%c5_478, %c2_479, %c0_480] : memref<13x13x128xf32, #tpu.memory_space<vmem>>, vector<1x11x128xf32>
    %531 = vector.shape_cast %530 : vector<1x11x128xf32> to vector<11x128xf32>
    %532 = tpu.concatenate %515, %517, %519, %521, %523, %525, %527, %529, %531 in 1 : vector<11x128xf32>, vector<11x128xf32>, vector<11x128xf32>, vector<11x128xf32>, vector<11x128xf32>, vector<11x128xf32>, vector<11x128xf32>, vector<11x128xf32>, vector<11x128xf32> -> vector<11x1152xf32>
    %cst_481 = arith.constant dense<0.000000e+00> : vector<11x128xf32>
    %533 = tpu.matmul %532, %419, %cst_481 {dimension_numbers = #tpu.dot_dimension_numbers<[1], [0], [0], [1], [0, 0, 1, 1], [], []>} : vector<11x1152xf32>, vector<1152x128xf32>, vector<11x128xf32> -> vector<11x128xf32>
    %534 = vector.broadcast %420 : vector<1x128xf32> to vector<11x128xf32>
    %535 = arith.addf %533, %534 : vector<11x128xf32>
    %cst_482 = arith.constant 0.000000e+00 : f32
    %536 = vector.broadcast %cst_482 : f32 to vector<11x128xf32>
    %537 = arith.maximumf %535, %536 : vector<11x128xf32>
    %538 = arith.maximumf %513, %537 : vector<11x128xf32>
    %cst_483 = arith.constant dense<0.000000e+00> : vector<5x128xf32>
    %539 = tpu.matmul %427, %538, %cst_483 {dimension_numbers = #tpu.dot_dimension_numbers<[1], [0], [0], [1], [0, 0, 1, 1], [], []>} : vector<5x11xf32>, vector<11x128xf32>, vector<5x128xf32> -> vector<5x128xf32>
    %cst_484 = arith.constant dense<0.000000e+00> : vector<5x128xf32>
    %540 = tpu.matmul %434, %538, %cst_484 {dimension_numbers = #tpu.dot_dimension_numbers<[1], [0], [0], [1], [0, 0, 1, 1], [], []>} : vector<5x11xf32>, vector<11x128xf32>, vector<5x128xf32> -> vector<5x128xf32>
    %541 = arith.maximumf %539, %540 : vector<5x128xf32>
    %c1_485 = arith.constant 1 : index
    %c0_486 = arith.constant 0 : index
    %c0_487 = arith.constant 0 : index
    %542 = vector.load %arg13[%c1_485, %c0_486, %c0_487] : memref<5x5x128xf32, #tpu.memory_space<vmem>>, vector<1x5x128xf32>
    %543 = vector.shape_cast %542 : vector<1x5x128xf32> to vector<5x128xf32>
    %544 = vector.shape_cast %541 : vector<5x128xf32> to vector<1x5x128xf32>
    tpu.vector_store %arg13[%c1_485, %c0_486, %c0_487], %544 {strides = array<i32>} : memref<5x5x128xf32, #tpu.memory_space<vmem>>, vector<1x5x128xf32>,
    %c4_488 = arith.constant 4 : index
    %c0_489 = arith.constant 0 : index
    %c0_490 = arith.constant 0 : index
    %545 = vector.load %arg12[%c4_488, %c0_489, %c0_490] : memref<13x13x128xf32, #tpu.memory_space<vmem>>, vector<1x11x128xf32>
    %546 = vector.shape_cast %545 : vector<1x11x128xf32> to vector<11x128xf32>
    %c4_491 = arith.constant 4 : index
    %c1_492 = arith.constant 1 : index
    %c0_493 = arith.constant 0 : index
    %547 = vector.load %arg12[%c4_491, %c1_492, %c0_493] : memref<13x13x128xf32, #tpu.memory_space<vmem>>, vector<1x11x128xf32>
    %548 = vector.shape_cast %547 : vector<1x11x128xf32> to vector<11x128xf32>
    %c4_494 = arith.constant 4 : index
    %c2_495 = arith.constant 2 : index
    %c0_496 = arith.constant 0 : index
    %549 = vector.load %arg12[%c4_494, %c2_495, %c0_496] : memref<13x13x128xf32, #tpu.memory_space<vmem>>, vector<1x11x128xf32>
    %550 = vector.shape_cast %549 : vector<1x11x128xf32> to vector<11x128xf32>
    %c5_497 = arith.constant 5 : index
    %c0_498 = arith.constant 0 : index
    %c0_499 = arith.constant 0 : index
    %551 = vector.load %arg12[%c5_497, %c0_498, %c0_499] : memref<13x13x128xf32, #tpu.memory_space<vmem>>, vector<1x11x128xf32>
    %552 = vector.shape_cast %551 : vector<1x11x128xf32> to vector<11x128xf32>
    %c5_500 = arith.constant 5 : index
    %c1_501 = arith.constant 1 : index
    %c0_502 = arith.constant 0 : index
    %553 = vector.load %arg12[%c5_500, %c1_501, %c0_502] : memref<13x13x128xf32, #tpu.memory_space<vmem>>, vector<1x11x128xf32>
    %554 = vector.shape_cast %553 : vector<1x11x128xf32> to vector<11x128xf32>
    %c5_503 = arith.constant 5 : index
    %c2_504 = arith.constant 2 : index
    %c0_505 = arith.constant 0 : index
    %555 = vector.load %arg12[%c5_503, %c2_504, %c0_505] : memref<13x13x128xf32, #tpu.memory_space<vmem>>, vector<1x11x128xf32>
    %556 = vector.shape_cast %555 : vector<1x11x128xf32> to vector<11x128xf32>
    %c6_506 = arith.constant 6 : index
    %c0_507 = arith.constant 0 : index
    %c0_508 = arith.constant 0 : index
    %557 = vector.load %arg12[%c6_506, %c0_507, %c0_508] : memref<13x13x128xf32, #tpu.memory_space<vmem>>, vector<1x11x128xf32>
    %558 = vector.shape_cast %557 : vector<1x11x128xf32> to vector<11x128xf32>
    %c6_509 = arith.constant 6 : index
    %c1_510 = arith.constant 1 : index
    %c0_511 = arith.constant 0 : index
    %559 = vector.load %arg12[%c6_509, %c1_510, %c0_511] : memref<13x13x128xf32, #tpu.memory_space<vmem>>, vector<1x11x128xf32>
    %560 = vector.shape_cast %559 : vector<1x11x128xf32> to vector<11x128xf32>
    %c6_512 = arith.constant 6 : index
    %c2_513 = arith.constant 2 : index
    %c0_514 = arith.constant 0 : index
    %561 = vector.load %arg12[%c6_512, %c2_513, %c0_514] : memref<13x13x128xf32, #tpu.memory_space<vmem>>, vector<1x11x128xf32>
    %562 = vector.shape_cast %561 : vector<1x11x128xf32> to vector<11x128xf32>
    %563 = tpu.concatenate %546, %548, %550, %552, %554, %556, %558, %560, %562 in 1 : vector<11x128xf32>, vector<11x128xf32>, vector<11x128xf32>, vector<11x128xf32>, vector<11x128xf32>, vector<11x128xf32>, vector<11x128xf32>, vector<11x128xf32>, vector<11x128xf32> -> vector<11x1152xf32>
    %cst_515 = arith.constant dense<0.000000e+00> : vector<11x128xf32>
    %564 = tpu.matmul %563, %419, %cst_515 {dimension_numbers = #tpu.dot_dimension_numbers<[1], [0], [0], [1], [0, 0, 1, 1], [], []>} : vector<11x1152xf32>, vector<1152x128xf32>, vector<11x128xf32> -> vector<11x128xf32>
    %565 = vector.broadcast %420 : vector<1x128xf32> to vector<11x128xf32>
    %566 = arith.addf %564, %565 : vector<11x128xf32>
    %cst_516 = arith.constant 0.000000e+00 : f32
    %567 = vector.broadcast %cst_516 : f32 to vector<11x128xf32>
    %568 = arith.maximumf %566, %567 : vector<11x128xf32>
    %c5_517 = arith.constant 5 : index
    %c0_518 = arith.constant 0 : index
    %c0_519 = arith.constant 0 : index
    %569 = vector.load %arg12[%c5_517, %c0_518, %c0_519] : memref<13x13x128xf32, #tpu.memory_space<vmem>>, vector<1x11x128xf32>
    %570 = vector.shape_cast %569 : vector<1x11x128xf32> to vector<11x128xf32>
    %c5_520 = arith.constant 5 : index
    %c1_521 = arith.constant 1 : index
    %c0_522 = arith.constant 0 : index
    %571 = vector.load %arg12[%c5_520, %c1_521, %c0_522] : memref<13x13x128xf32, #tpu.memory_space<vmem>>, vector<1x11x128xf32>
    %572 = vector.shape_cast %571 : vector<1x11x128xf32> to vector<11x128xf32>
    %c5_523 = arith.constant 5 : index
    %c2_524 = arith.constant 2 : index
    %c0_525 = arith.constant 0 : index
    %573 = vector.load %arg12[%c5_523, %c2_524, %c0_525] : memref<13x13x128xf32, #tpu.memory_space<vmem>>, vector<1x11x128xf32>
    %574 = vector.shape_cast %573 : vector<1x11x128xf32> to vector<11x128xf32>
    %c6_526 = arith.constant 6 : index
    %c0_527 = arith.constant 0 : index
    %c0_528 = arith.constant 0 : index
    %575 = vector.load %arg12[%c6_526, %c0_527, %c0_528] : memref<13x13x128xf32, #tpu.memory_space<vmem>>, vector<1x11x128xf32>
    %576 = vector.shape_cast %575 : vector<1x11x128xf32> to vector<11x128xf32>
    %c6_529 = arith.constant 6 : index
    %c1_530 = arith.constant 1 : index
    %c0_531 = arith.constant 0 : index
    %577 = vector.load %arg12[%c6_529, %c1_530, %c0_531] : memref<13x13x128xf32, #tpu.memory_space<vmem>>, vector<1x11x128xf32>
    %578 = vector.shape_cast %577 : vector<1x11x128xf32> to vector<11x128xf32>
    %c6_532 = arith.constant 6 : index
    %c2_533 = arith.constant 2 : index
    %c0_534 = arith.constant 0 : index
    %579 = vector.load %arg12[%c6_532, %c2_533, %c0_534] : memref<13x13x128xf32, #tpu.memory_space<vmem>>, vector<1x11x128xf32>
    %580 = vector.shape_cast %579 : vector<1x11x128xf32> to vector<11x128xf32>
    %c7_535 = arith.constant 7 : index
    %c0_536 = arith.constant 0 : index
    %c0_537 = arith.constant 0 : index
    %581 = vector.load %arg12[%c7_535, %c0_536, %c0_537] : memref<13x13x128xf32, #tpu.memory_space<vmem>>, vector<1x11x128xf32>
    %582 = vector.shape_cast %581 : vector<1x11x128xf32> to vector<11x128xf32>
    %c7_538 = arith.constant 7 : index
    %c1_539 = arith.constant 1 : index
    %c0_540 = arith.constant 0 : index
    %583 = vector.load %arg12[%c7_538, %c1_539, %c0_540] : memref<13x13x128xf32, #tpu.memory_space<vmem>>, vector<1x11x128xf32>
    %584 = vector.shape_cast %583 : vector<1x11x128xf32> to vector<11x128xf32>
    %c7_541 = arith.constant 7 : index
    %c2_542 = arith.constant 2 : index
    %c0_543 = arith.constant 0 : index
    %585 = vector.load %arg12[%c7_541, %c2_542, %c0_543] : memref<13x13x128xf32, #tpu.memory_space<vmem>>, vector<1x11x128xf32>
    %586 = vector.shape_cast %585 : vector<1x11x128xf32> to vector<11x128xf32>
    %587 = tpu.concatenate %570, %572, %574, %576, %578, %580, %582, %584, %586 in 1 : vector<11x128xf32>, vector<11x128xf32>, vector<11x128xf32>, vector<11x128xf32>, vector<11x128xf32>, vector<11x128xf32>, vector<11x128xf32>, vector<11x128xf32>, vector<11x128xf32> -> vector<11x1152xf32>
    %cst_544 = arith.constant dense<0.000000e+00> : vector<11x128xf32>
    %588 = tpu.matmul %587, %419, %cst_544 {dimension_numbers = #tpu.dot_dimension_numbers<[1], [0], [0], [1], [0, 0, 1, 1], [], []>} : vector<11x1152xf32>, vector<1152x128xf32>, vector<11x128xf32> -> vector<11x128xf32>
    %589 = vector.broadcast %420 : vector<1x128xf32> to vector<11x128xf32>
    %590 = arith.addf %588, %589 : vector<11x128xf32>
    %cst_545 = arith.constant 0.000000e+00 : f32
    %591 = vector.broadcast %cst_545 : f32 to vector<11x128xf32>
    %592 = arith.maximumf %590, %591 : vector<11x128xf32>
    %593 = arith.maximumf %568, %592 : vector<11x128xf32>
    %cst_546 = arith.constant dense<0.000000e+00> : vector<5x128xf32>
    %594 = tpu.matmul %427, %593, %cst_546 {dimension_numbers = #tpu.dot_dimension_numbers<[1], [0], [0], [1], [0, 0, 1, 1], [], []>} : vector<5x11xf32>, vector<11x128xf32>, vector<5x128xf32> -> vector<5x128xf32>
    %cst_547 = arith.constant dense<0.000000e+00> : vector<5x128xf32>
    %595 = tpu.matmul %434, %593, %cst_547 {dimension_numbers = #tpu.dot_dimension_numbers<[1], [0], [0], [1], [0, 0, 1, 1], [], []>} : vector<5x11xf32>, vector<11x128xf32>, vector<5x128xf32> -> vector<5x128xf32>
    %596 = arith.maximumf %594, %595 : vector<5x128xf32>
    %c2_548 = arith.constant 2 : index
    %c0_549 = arith.constant 0 : index
    %c0_550 = arith.constant 0 : index
    %597 = vector.load %arg13[%c2_548, %c0_549, %c0_550] : memref<5x5x128xf32, #tpu.memory_space<vmem>>, vector<1x5x128xf32>
    %598 = vector.shape_cast %597 : vector<1x5x128xf32> to vector<5x128xf32>
    %599 = vector.shape_cast %596 : vector<5x128xf32> to vector<1x5x128xf32>
    tpu.vector_store %arg13[%c2_548, %c0_549, %c0_550], %599 {strides = array<i32>} : memref<5x5x128xf32, #tpu.memory_space<vmem>>, vector<1x5x128xf32>,
    %c6_551 = arith.constant 6 : index
    %c0_552 = arith.constant 0 : index
    %c0_553 = arith.constant 0 : index
    %600 = vector.load %arg12[%c6_551, %c0_552, %c0_553] : memref<13x13x128xf32, #tpu.memory_space<vmem>>, vector<1x11x128xf32>
    %601 = vector.shape_cast %600 : vector<1x11x128xf32> to vector<11x128xf32>
    %c6_554 = arith.constant 6 : index
    %c1_555 = arith.constant 1 : index
    %c0_556 = arith.constant 0 : index
    %602 = vector.load %arg12[%c6_554, %c1_555, %c0_556] : memref<13x13x128xf32, #tpu.memory_space<vmem>>, vector<1x11x128xf32>
    %603 = vector.shape_cast %602 : vector<1x11x128xf32> to vector<11x128xf32>
    %c6_557 = arith.constant 6 : index
    %c2_558 = arith.constant 2 : index
    %c0_559 = arith.constant 0 : index
    %604 = vector.load %arg12[%c6_557, %c2_558, %c0_559] : memref<13x13x128xf32, #tpu.memory_space<vmem>>, vector<1x11x128xf32>
    %605 = vector.shape_cast %604 : vector<1x11x128xf32> to vector<11x128xf32>
    %c7_560 = arith.constant 7 : index
    %c0_561 = arith.constant 0 : index
    %c0_562 = arith.constant 0 : index
    %606 = vector.load %arg12[%c7_560, %c0_561, %c0_562] : memref<13x13x128xf32, #tpu.memory_space<vmem>>, vector<1x11x128xf32>
    %607 = vector.shape_cast %606 : vector<1x11x128xf32> to vector<11x128xf32>
    %c7_563 = arith.constant 7 : index
    %c1_564 = arith.constant 1 : index
    %c0_565 = arith.constant 0 : index
    %608 = vector.load %arg12[%c7_563, %c1_564, %c0_565] : memref<13x13x128xf32, #tpu.memory_space<vmem>>, vector<1x11x128xf32>
    %609 = vector.shape_cast %608 : vector<1x11x128xf32> to vector<11x128xf32>
    %c7_566 = arith.constant 7 : index
    %c2_567 = arith.constant 2 : index
    %c0_568 = arith.constant 0 : index
    %610 = vector.load %arg12[%c7_566, %c2_567, %c0_568] : memref<13x13x128xf32, #tpu.memory_space<vmem>>, vector<1x11x128xf32>
    %611 = vector.shape_cast %610 : vector<1x11x128xf32> to vector<11x128xf32>
    %c8_569 = arith.constant 8 : index
    %c0_570 = arith.constant 0 : index
    %c0_571 = arith.constant 0 : index
    %612 = vector.load %arg12[%c8_569, %c0_570, %c0_571] : memref<13x13x128xf32, #tpu.memory_space<vmem>>, vector<1x11x128xf32>
    %613 = vector.shape_cast %612 : vector<1x11x128xf32> to vector<11x128xf32>
    %c8_572 = arith.constant 8 : index
    %c1_573 = arith.constant 1 : index
    %c0_574 = arith.constant 0 : index
    %614 = vector.load %arg12[%c8_572, %c1_573, %c0_574] : memref<13x13x128xf32, #tpu.memory_space<vmem>>, vector<1x11x128xf32>
    %615 = vector.shape_cast %614 : vector<1x11x128xf32> to vector<11x128xf32>
    %c8_575 = arith.constant 8 : index
    %c2_576 = arith.constant 2 : index
    %c0_577 = arith.constant 0 : index
    %616 = vector.load %arg12[%c8_575, %c2_576, %c0_577] : memref<13x13x128xf32, #tpu.memory_space<vmem>>, vector<1x11x128xf32>
    %617 = vector.shape_cast %616 : vector<1x11x128xf32> to vector<11x128xf32>
    %618 = tpu.concatenate %601, %603, %605, %607, %609, %611, %613, %615, %617 in 1 : vector<11x128xf32>, vector<11x128xf32>, vector<11x128xf32>, vector<11x128xf32>, vector<11x128xf32>, vector<11x128xf32>, vector<11x128xf32>, vector<11x128xf32>, vector<11x128xf32> -> vector<11x1152xf32>
    %cst_578 = arith.constant dense<0.000000e+00> : vector<11x128xf32>
    %619 = tpu.matmul %618, %419, %cst_578 {dimension_numbers = #tpu.dot_dimension_numbers<[1], [0], [0], [1], [0, 0, 1, 1], [], []>} : vector<11x1152xf32>, vector<1152x128xf32>, vector<11x128xf32> -> vector<11x128xf32>
    %620 = vector.broadcast %420 : vector<1x128xf32> to vector<11x128xf32>
    %621 = arith.addf %619, %620 : vector<11x128xf32>
    %cst_579 = arith.constant 0.000000e+00 : f32
    %622 = vector.broadcast %cst_579 : f32 to vector<11x128xf32>
    %623 = arith.maximumf %621, %622 : vector<11x128xf32>
    %c7_580 = arith.constant 7 : index
    %c0_581 = arith.constant 0 : index
    %c0_582 = arith.constant 0 : index
    %624 = vector.load %arg12[%c7_580, %c0_581, %c0_582] : memref<13x13x128xf32, #tpu.memory_space<vmem>>, vector<1x11x128xf32>
    %625 = vector.shape_cast %624 : vector<1x11x128xf32> to vector<11x128xf32>
    %c7_583 = arith.constant 7 : index
    %c1_584 = arith.constant 1 : index
    %c0_585 = arith.constant 0 : index
    %626 = vector.load %arg12[%c7_583, %c1_584, %c0_585] : memref<13x13x128xf32, #tpu.memory_space<vmem>>, vector<1x11x128xf32>
    %627 = vector.shape_cast %626 : vector<1x11x128xf32> to vector<11x128xf32>
    %c7_586 = arith.constant 7 : index
    %c2_587 = arith.constant 2 : index
    %c0_588 = arith.constant 0 : index
    %628 = vector.load %arg12[%c7_586, %c2_587, %c0_588] : memref<13x13x128xf32, #tpu.memory_space<vmem>>, vector<1x11x128xf32>
    %629 = vector.shape_cast %628 : vector<1x11x128xf32> to vector<11x128xf32>
    %c8_589 = arith.constant 8 : index
    %c0_590 = arith.constant 0 : index
    %c0_591 = arith.constant 0 : index
    %630 = vector.load %arg12[%c8_589, %c0_590, %c0_591] : memref<13x13x128xf32, #tpu.memory_space<vmem>>, vector<1x11x128xf32>
    %631 = vector.shape_cast %630 : vector<1x11x128xf32> to vector<11x128xf32>
    %c8_592 = arith.constant 8 : index
    %c1_593 = arith.constant 1 : index
    %c0_594 = arith.constant 0 : index
    %632 = vector.load %arg12[%c8_592, %c1_593, %c0_594] : memref<13x13x128xf32, #tpu.memory_space<vmem>>, vector<1x11x128xf32>
    %633 = vector.shape_cast %632 : vector<1x11x128xf32> to vector<11x128xf32>
    %c8_595 = arith.constant 8 : index
    %c2_596 = arith.constant 2 : index
    %c0_597 = arith.constant 0 : index
    %634 = vector.load %arg12[%c8_595, %c2_596, %c0_597] : memref<13x13x128xf32, #tpu.memory_space<vmem>>, vector<1x11x128xf32>
    %635 = vector.shape_cast %634 : vector<1x11x128xf32> to vector<11x128xf32>
    %c9_598 = arith.constant 9 : index
    %c0_599 = arith.constant 0 : index
    %c0_600 = arith.constant 0 : index
    %636 = vector.load %arg12[%c9_598, %c0_599, %c0_600] : memref<13x13x128xf32, #tpu.memory_space<vmem>>, vector<1x11x128xf32>
    %637 = vector.shape_cast %636 : vector<1x11x128xf32> to vector<11x128xf32>
    %c9_601 = arith.constant 9 : index
    %c1_602 = arith.constant 1 : index
    %c0_603 = arith.constant 0 : index
    %638 = vector.load %arg12[%c9_601, %c1_602, %c0_603] : memref<13x13x128xf32, #tpu.memory_space<vmem>>, vector<1x11x128xf32>
    %639 = vector.shape_cast %638 : vector<1x11x128xf32> to vector<11x128xf32>
    %c9_604 = arith.constant 9 : index
    %c2_605 = arith.constant 2 : index
    %c0_606 = arith.constant 0 : index
    %640 = vector.load %arg12[%c9_604, %c2_605, %c0_606] : memref<13x13x128xf32, #tpu.memory_space<vmem>>, vector<1x11x128xf32>
    %641 = vector.shape_cast %640 : vector<1x11x128xf32> to vector<11x128xf32>
    %642 = tpu.concatenate %625, %627, %629, %631, %633, %635, %637, %639, %641 in 1 : vector<11x128xf32>, vector<11x128xf32>, vector<11x128xf32>, vector<11x128xf32>, vector<11x128xf32>, vector<11x128xf32>, vector<11x128xf32>, vector<11x128xf32>, vector<11x128xf32> -> vector<11x1152xf32>
    %cst_607 = arith.constant dense<0.000000e+00> : vector<11x128xf32>
    %643 = tpu.matmul %642, %419, %cst_607 {dimension_numbers = #tpu.dot_dimension_numbers<[1], [0], [0], [1], [0, 0, 1, 1], [], []>} : vector<11x1152xf32>, vector<1152x128xf32>, vector<11x128xf32> -> vector<11x128xf32>
    %644 = vector.broadcast %420 : vector<1x128xf32> to vector<11x128xf32>
    %645 = arith.addf %643, %644 : vector<11x128xf32>
    %cst_608 = arith.constant 0.000000e+00 : f32
    %646 = vector.broadcast %cst_608 : f32 to vector<11x128xf32>
    %647 = arith.maximumf %645, %646 : vector<11x128xf32>
    %648 = arith.maximumf %623, %647 : vector<11x128xf32>
    %cst_609 = arith.constant dense<0.000000e+00> : vector<5x128xf32>
    %649 = tpu.matmul %427, %648, %cst_609 {dimension_numbers = #tpu.dot_dimension_numbers<[1], [0], [0], [1], [0, 0, 1, 1], [], []>} : vector<5x11xf32>, vector<11x128xf32>, vector<5x128xf32> -> vector<5x128xf32>
    %cst_610 = arith.constant dense<0.000000e+00> : vector<5x128xf32>
    %650 = tpu.matmul %434, %648, %cst_610 {dimension_numbers = #tpu.dot_dimension_numbers<[1], [0], [0], [1], [0, 0, 1, 1], [], []>} : vector<5x11xf32>, vector<11x128xf32>, vector<5x128xf32> -> vector<5x128xf32>
    %651 = arith.maximumf %649, %650 : vector<5x128xf32>
    %c3_611 = arith.constant 3 : index
    %c0_612 = arith.constant 0 : index
    %c0_613 = arith.constant 0 : index
    %652 = vector.load %arg13[%c3_611, %c0_612, %c0_613] : memref<5x5x128xf32, #tpu.memory_space<vmem>>, vector<1x5x128xf32>
    %653 = vector.shape_cast %652 : vector<1x5x128xf32> to vector<5x128xf32>
    %654 = vector.shape_cast %651 : vector<5x128xf32> to vector<1x5x128xf32>
    tpu.vector_store %arg13[%c3_611, %c0_612, %c0_613], %654 {strides = array<i32>} : memref<5x5x128xf32, #tpu.memory_space<vmem>>, vector<1x5x128xf32>,
    %c8_614 = arith.constant 8 : index
    %c0_615 = arith.constant 0 : index
    %c0_616 = arith.constant 0 : index
    %655 = vector.load %arg12[%c8_614, %c0_615, %c0_616] : memref<13x13x128xf32, #tpu.memory_space<vmem>>, vector<1x11x128xf32>
    %656 = vector.shape_cast %655 : vector<1x11x128xf32> to vector<11x128xf32>
    %c8_617 = arith.constant 8 : index
    %c1_618 = arith.constant 1 : index
    %c0_619 = arith.constant 0 : index
    %657 = vector.load %arg12[%c8_617, %c1_618, %c0_619] : memref<13x13x128xf32, #tpu.memory_space<vmem>>, vector<1x11x128xf32>
    %658 = vector.shape_cast %657 : vector<1x11x128xf32> to vector<11x128xf32>
    %c8_620 = arith.constant 8 : index
    %c2_621 = arith.constant 2 : index
    %c0_622 = arith.constant 0 : index
    %659 = vector.load %arg12[%c8_620, %c2_621, %c0_622] : memref<13x13x128xf32, #tpu.memory_space<vmem>>, vector<1x11x128xf32>
    %660 = vector.shape_cast %659 : vector<1x11x128xf32> to vector<11x128xf32>
    %c9_623 = arith.constant 9 : index
    %c0_624 = arith.constant 0 : index
    %c0_625 = arith.constant 0 : index
    %661 = vector.load %arg12[%c9_623, %c0_624, %c0_625] : memref<13x13x128xf32, #tpu.memory_space<vmem>>, vector<1x11x128xf32>
    %662 = vector.shape_cast %661 : vector<1x11x128xf32> to vector<11x128xf32>
    %c9_626 = arith.constant 9 : index
    %c1_627 = arith.constant 1 : index
    %c0_628 = arith.constant 0 : index
    %663 = vector.load %arg12[%c9_626, %c1_627, %c0_628] : memref<13x13x128xf32, #tpu.memory_space<vmem>>, vector<1x11x128xf32>
    %664 = vector.shape_cast %663 : vector<1x11x128xf32> to vector<11x128xf32>
    %c9_629 = arith.constant 9 : index
    %c2_630 = arith.constant 2 : index
    %c0_631 = arith.constant 0 : index
    %665 = vector.load %arg12[%c9_629, %c2_630, %c0_631] : memref<13x13x128xf32, #tpu.memory_space<vmem>>, vector<1x11x128xf32>
    %666 = vector.shape_cast %665 : vector<1x11x128xf32> to vector<11x128xf32>
    %c10_632 = arith.constant 10 : index
    %c0_633 = arith.constant 0 : index
    %c0_634 = arith.constant 0 : index
    %667 = vector.load %arg12[%c10_632, %c0_633, %c0_634] : memref<13x13x128xf32, #tpu.memory_space<vmem>>, vector<1x11x128xf32>
    %668 = vector.shape_cast %667 : vector<1x11x128xf32> to vector<11x128xf32>
    %c10_635 = arith.constant 10 : index
    %c1_636 = arith.constant 1 : index
    %c0_637 = arith.constant 0 : index
    %669 = vector.load %arg12[%c10_635, %c1_636, %c0_637] : memref<13x13x128xf32, #tpu.memory_space<vmem>>, vector<1x11x128xf32>
    %670 = vector.shape_cast %669 : vector<1x11x128xf32> to vector<11x128xf32>
    %c10_638 = arith.constant 10 : index
    %c2_639 = arith.constant 2 : index
    %c0_640 = arith.constant 0 : index
    %671 = vector.load %arg12[%c10_638, %c2_639, %c0_640] : memref<13x13x128xf32, #tpu.memory_space<vmem>>, vector<1x11x128xf32>
    %672 = vector.shape_cast %671 : vector<1x11x128xf32> to vector<11x128xf32>
    %673 = tpu.concatenate %656, %658, %660, %662, %664, %666, %668, %670, %672 in 1 : vector<11x128xf32>, vector<11x128xf32>, vector<11x128xf32>, vector<11x128xf32>, vector<11x128xf32>, vector<11x128xf32>, vector<11x128xf32>, vector<11x128xf32>, vector<11x128xf32> -> vector<11x1152xf32>
    %cst_641 = arith.constant dense<0.000000e+00> : vector<11x128xf32>
    %674 = tpu.matmul %673, %419, %cst_641 {dimension_numbers = #tpu.dot_dimension_numbers<[1], [0], [0], [1], [0, 0, 1, 1], [], []>} : vector<11x1152xf32>, vector<1152x128xf32>, vector<11x128xf32> -> vector<11x128xf32>
    %675 = vector.broadcast %420 : vector<1x128xf32> to vector<11x128xf32>
    %676 = arith.addf %674, %675 : vector<11x128xf32>
    %cst_642 = arith.constant 0.000000e+00 : f32
    %677 = vector.broadcast %cst_642 : f32 to vector<11x128xf32>
    %678 = arith.maximumf %676, %677 : vector<11x128xf32>
    %c9_643 = arith.constant 9 : index
    %c0_644 = arith.constant 0 : index
    %c0_645 = arith.constant 0 : index
    %679 = vector.load %arg12[%c9_643, %c0_644, %c0_645] : memref<13x13x128xf32, #tpu.memory_space<vmem>>, vector<1x11x128xf32>
    %680 = vector.shape_cast %679 : vector<1x11x128xf32> to vector<11x128xf32>
    %c9_646 = arith.constant 9 : index
    %c1_647 = arith.constant 1 : index
    %c0_648 = arith.constant 0 : index
    %681 = vector.load %arg12[%c9_646, %c1_647, %c0_648] : memref<13x13x128xf32, #tpu.memory_space<vmem>>, vector<1x11x128xf32>
    %682 = vector.shape_cast %681 : vector<1x11x128xf32> to vector<11x128xf32>
    %c9_649 = arith.constant 9 : index
    %c2_650 = arith.constant 2 : index
    %c0_651 = arith.constant 0 : index
    %683 = vector.load %arg12[%c9_649, %c2_650, %c0_651] : memref<13x13x128xf32, #tpu.memory_space<vmem>>, vector<1x11x128xf32>
    %684 = vector.shape_cast %683 : vector<1x11x128xf32> to vector<11x128xf32>
    %c10_652 = arith.constant 10 : index
    %c0_653 = arith.constant 0 : index
    %c0_654 = arith.constant 0 : index
    %685 = vector.load %arg12[%c10_652, %c0_653, %c0_654] : memref<13x13x128xf32, #tpu.memory_space<vmem>>, vector<1x11x128xf32>
    %686 = vector.shape_cast %685 : vector<1x11x128xf32> to vector<11x128xf32>
    %c10_655 = arith.constant 10 : index
    %c1_656 = arith.constant 1 : index
    %c0_657 = arith.constant 0 : index
    %687 = vector.load %arg12[%c10_655, %c1_656, %c0_657] : memref<13x13x128xf32, #tpu.memory_space<vmem>>, vector<1x11x128xf32>
    %688 = vector.shape_cast %687 : vector<1x11x128xf32> to vector<11x128xf32>
    %c10_658 = arith.constant 10 : index
    %c2_659 = arith.constant 2 : index
    %c0_660 = arith.constant 0 : index
    %689 = vector.load %arg12[%c10_658, %c2_659, %c0_660] : memref<13x13x128xf32, #tpu.memory_space<vmem>>, vector<1x11x128xf32>
    %690 = vector.shape_cast %689 : vector<1x11x128xf32> to vector<11x128xf32>
    %c11_661 = arith.constant 11 : index
    %c0_662 = arith.constant 0 : index
    %c0_663 = arith.constant 0 : index
    %691 = vector.load %arg12[%c11_661, %c0_662, %c0_663] : memref<13x13x128xf32, #tpu.memory_space<vmem>>, vector<1x11x128xf32>
    %692 = vector.shape_cast %691 : vector<1x11x128xf32> to vector<11x128xf32>
    %c11_664 = arith.constant 11 : index
    %c1_665 = arith.constant 1 : index
    %c0_666 = arith.constant 0 : index
    %693 = vector.load %arg12[%c11_664, %c1_665, %c0_666] : memref<13x13x128xf32, #tpu.memory_space<vmem>>, vector<1x11x128xf32>
    %694 = vector.shape_cast %693 : vector<1x11x128xf32> to vector<11x128xf32>
    %c11_667 = arith.constant 11 : index
    %c2_668 = arith.constant 2 : index
    %c0_669 = arith.constant 0 : index
    %695 = vector.load %arg12[%c11_667, %c2_668, %c0_669] : memref<13x13x128xf32, #tpu.memory_space<vmem>>, vector<1x11x128xf32>
    %696 = vector.shape_cast %695 : vector<1x11x128xf32> to vector<11x128xf32>
    %697 = tpu.concatenate %680, %682, %684, %686, %688, %690, %692, %694, %696 in 1 : vector<11x128xf32>, vector<11x128xf32>, vector<11x128xf32>, vector<11x128xf32>, vector<11x128xf32>, vector<11x128xf32>, vector<11x128xf32>, vector<11x128xf32>, vector<11x128xf32> -> vector<11x1152xf32>
    %cst_670 = arith.constant dense<0.000000e+00> : vector<11x128xf32>
    %698 = tpu.matmul %697, %419, %cst_670 {dimension_numbers = #tpu.dot_dimension_numbers<[1], [0], [0], [1], [0, 0, 1, 1], [], []>} : vector<11x1152xf32>, vector<1152x128xf32>, vector<11x128xf32> -> vector<11x128xf32>
    %699 = vector.broadcast %420 : vector<1x128xf32> to vector<11x128xf32>
    %700 = arith.addf %698, %699 : vector<11x128xf32>
    %cst_671 = arith.constant 0.000000e+00 : f32
    %701 = vector.broadcast %cst_671 : f32 to vector<11x128xf32>
    %702 = arith.maximumf %700, %701 : vector<11x128xf32>
    %703 = arith.maximumf %678, %702 : vector<11x128xf32>
    %cst_672 = arith.constant dense<0.000000e+00> : vector<5x128xf32>
    %704 = tpu.matmul %427, %703, %cst_672 {dimension_numbers = #tpu.dot_dimension_numbers<[1], [0], [0], [1], [0, 0, 1, 1], [], []>} : vector<5x11xf32>, vector<11x128xf32>, vector<5x128xf32> -> vector<5x128xf32>
    %cst_673 = arith.constant dense<0.000000e+00> : vector<5x128xf32>
    %705 = tpu.matmul %434, %703, %cst_673 {dimension_numbers = #tpu.dot_dimension_numbers<[1], [0], [0], [1], [0, 0, 1, 1], [], []>} : vector<5x11xf32>, vector<11x128xf32>, vector<5x128xf32> -> vector<5x128xf32>
    %706 = arith.maximumf %704, %705 : vector<5x128xf32>
    %c4_674 = arith.constant 4 : index
    %c0_675 = arith.constant 0 : index
    %c0_676 = arith.constant 0 : index
    %707 = vector.load %arg13[%c4_674, %c0_675, %c0_676] : memref<5x5x128xf32, #tpu.memory_space<vmem>>, vector<1x5x128xf32>
    %708 = vector.shape_cast %707 : vector<1x5x128xf32> to vector<5x128xf32>
    %709 = vector.shape_cast %706 : vector<5x128xf32> to vector<1x5x128xf32>
    tpu.vector_store %arg13[%c4_674, %c0_675, %c0_676], %709 {strides = array<i32>} : memref<5x5x128xf32, #tpu.memory_space<vmem>>, vector<1x5x128xf32>,
    %c0_677 = arith.constant 0 : index
    %c0_678 = arith.constant 0 : index
    %c0_679 = arith.constant 0 : index
    %710 = vector.load %arg13[%c0_677, %c0_678, %c0_679] : memref<5x5x128xf32, #tpu.memory_space<vmem>>, vector<1x1x128xf32>
    %711 = vector.shape_cast %710 : vector<1x1x128xf32> to vector<1x128xf32>
    %c0_680 = arith.constant 0 : index
    %c1_681 = arith.constant 1 : index
    %c0_682 = arith.constant 0 : index
    %712 = vector.load %arg13[%c0_680, %c1_681, %c0_682] : memref<5x5x128xf32, #tpu.memory_space<vmem>>, vector<1x1x128xf32>
    %713 = vector.shape_cast %712 : vector<1x1x128xf32> to vector<1x128xf32>
    %c0_683 = arith.constant 0 : index
    %c2_684 = arith.constant 2 : index
    %c0_685 = arith.constant 0 : index
    %714 = vector.load %arg13[%c0_683, %c2_684, %c0_685] : memref<5x5x128xf32, #tpu.memory_space<vmem>>, vector<1x1x128xf32>
    %715 = vector.shape_cast %714 : vector<1x1x128xf32> to vector<1x128xf32>
    %c0_686 = arith.constant 0 : index
    %c3_687 = arith.constant 3 : index
    %c0_688 = arith.constant 0 : index
    %716 = vector.load %arg13[%c0_686, %c3_687, %c0_688] : memref<5x5x128xf32, #tpu.memory_space<vmem>>, vector<1x1x128xf32>
    %717 = vector.shape_cast %716 : vector<1x1x128xf32> to vector<1x128xf32>
    %c0_689 = arith.constant 0 : index
    %c4_690 = arith.constant 4 : index
    %c0_691 = arith.constant 0 : index
    %718 = vector.load %arg13[%c0_689, %c4_690, %c0_691] : memref<5x5x128xf32, #tpu.memory_space<vmem>>, vector<1x1x128xf32>
    %719 = vector.shape_cast %718 : vector<1x1x128xf32> to vector<1x128xf32>
    %c1_692 = arith.constant 1 : index
    %c0_693 = arith.constant 0 : index
    %c0_694 = arith.constant 0 : index
    %720 = vector.load %arg13[%c1_692, %c0_693, %c0_694] : memref<5x5x128xf32, #tpu.memory_space<vmem>>, vector<1x1x128xf32>
    %721 = vector.shape_cast %720 : vector<1x1x128xf32> to vector<1x128xf32>
    %c1_695 = arith.constant 1 : index
    %c1_696 = arith.constant 1 : index
    %c0_697 = arith.constant 0 : index
    %722 = vector.load %arg13[%c1_695, %c1_696, %c0_697] : memref<5x5x128xf32, #tpu.memory_space<vmem>>, vector<1x1x128xf32>
    %723 = vector.shape_cast %722 : vector<1x1x128xf32> to vector<1x128xf32>
    %c1_698 = arith.constant 1 : index
    %c2_699 = arith.constant 2 : index
    %c0_700 = arith.constant 0 : index
    %724 = vector.load %arg13[%c1_698, %c2_699, %c0_700] : memref<5x5x128xf32, #tpu.memory_space<vmem>>, vector<1x1x128xf32>
    %725 = vector.shape_cast %724 : vector<1x1x128xf32> to vector<1x128xf32>
    %c1_701 = arith.constant 1 : index
    %c3_702 = arith.constant 3 : index
    %c0_703 = arith.constant 0 : index
    %726 = vector.load %arg13[%c1_701, %c3_702, %c0_703] : memref<5x5x128xf32, #tpu.memory_space<vmem>>, vector<1x1x128xf32>
    %727 = vector.shape_cast %726 : vector<1x1x128xf32> to vector<1x128xf32>
    %c1_704 = arith.constant 1 : index
    %c4_705 = arith.constant 4 : index
    %c0_706 = arith.constant 0 : index
    %728 = vector.load %arg13[%c1_704, %c4_705, %c0_706] : memref<5x5x128xf32, #tpu.memory_space<vmem>>, vector<1x1x128xf32>
    %729 = vector.shape_cast %728 : vector<1x1x128xf32> to vector<1x128xf32>
    %c2_707 = arith.constant 2 : index
    %c0_708 = arith.constant 0 : index
    %c0_709 = arith.constant 0 : index
    %730 = vector.load %arg13[%c2_707, %c0_708, %c0_709] : memref<5x5x128xf32, #tpu.memory_space<vmem>>, vector<1x1x128xf32>
    %731 = vector.shape_cast %730 : vector<1x1x128xf32> to vector<1x128xf32>
    %c2_710 = arith.constant 2 : index
    %c1_711 = arith.constant 1 : index
    %c0_712 = arith.constant 0 : index
    %732 = vector.load %arg13[%c2_710, %c1_711, %c0_712] : memref<5x5x128xf32, #tpu.memory_space<vmem>>, vector<1x1x128xf32>
    %733 = vector.shape_cast %732 : vector<1x1x128xf32> to vector<1x128xf32>
    %c2_713 = arith.constant 2 : index
    %c2_714 = arith.constant 2 : index
    %c0_715 = arith.constant 0 : index
    %734 = vector.load %arg13[%c2_713, %c2_714, %c0_715] : memref<5x5x128xf32, #tpu.memory_space<vmem>>, vector<1x1x128xf32>
    %735 = vector.shape_cast %734 : vector<1x1x128xf32> to vector<1x128xf32>
    %c2_716 = arith.constant 2 : index
    %c3_717 = arith.constant 3 : index
    %c0_718 = arith.constant 0 : index
    %736 = vector.load %arg13[%c2_716, %c3_717, %c0_718] : memref<5x5x128xf32, #tpu.memory_space<vmem>>, vector<1x1x128xf32>
    %737 = vector.shape_cast %736 : vector<1x1x128xf32> to vector<1x128xf32>
    %c2_719 = arith.constant 2 : index
    %c4_720 = arith.constant 4 : index
    %c0_721 = arith.constant 0 : index
    %738 = vector.load %arg13[%c2_719, %c4_720, %c0_721] : memref<5x5x128xf32, #tpu.memory_space<vmem>>, vector<1x1x128xf32>
    %739 = vector.shape_cast %738 : vector<1x1x128xf32> to vector<1x128xf32>
    %c3_722 = arith.constant 3 : index
    %c0_723 = arith.constant 0 : index
    %c0_724 = arith.constant 0 : index
    %740 = vector.load %arg13[%c3_722, %c0_723, %c0_724] : memref<5x5x128xf32, #tpu.memory_space<vmem>>, vector<1x1x128xf32>
    %741 = vector.shape_cast %740 : vector<1x1x128xf32> to vector<1x128xf32>
    %c3_725 = arith.constant 3 : index
    %c1_726 = arith.constant 1 : index
    %c0_727 = arith.constant 0 : index
    %742 = vector.load %arg13[%c3_725, %c1_726, %c0_727] : memref<5x5x128xf32, #tpu.memory_space<vmem>>, vector<1x1x128xf32>
    %743 = vector.shape_cast %742 : vector<1x1x128xf32> to vector<1x128xf32>
    %c3_728 = arith.constant 3 : index
    %c2_729 = arith.constant 2 : index
    %c0_730 = arith.constant 0 : index
    %744 = vector.load %arg13[%c3_728, %c2_729, %c0_730] : memref<5x5x128xf32, #tpu.memory_space<vmem>>, vector<1x1x128xf32>
    %745 = vector.shape_cast %744 : vector<1x1x128xf32> to vector<1x128xf32>
    %c3_731 = arith.constant 3 : index
    %c3_732 = arith.constant 3 : index
    %c0_733 = arith.constant 0 : index
    %746 = vector.load %arg13[%c3_731, %c3_732, %c0_733] : memref<5x5x128xf32, #tpu.memory_space<vmem>>, vector<1x1x128xf32>
    %747 = vector.shape_cast %746 : vector<1x1x128xf32> to vector<1x128xf32>
    %c3_734 = arith.constant 3 : index
    %c4_735 = arith.constant 4 : index
    %c0_736 = arith.constant 0 : index
    %748 = vector.load %arg13[%c3_734, %c4_735, %c0_736] : memref<5x5x128xf32, #tpu.memory_space<vmem>>, vector<1x1x128xf32>
    %749 = vector.shape_cast %748 : vector<1x1x128xf32> to vector<1x128xf32>
    %c4_737 = arith.constant 4 : index
    %c0_738 = arith.constant 0 : index
    %c0_739 = arith.constant 0 : index
    %750 = vector.load %arg13[%c4_737, %c0_738, %c0_739] : memref<5x5x128xf32, #tpu.memory_space<vmem>>, vector<1x1x128xf32>
    %751 = vector.shape_cast %750 : vector<1x1x128xf32> to vector<1x128xf32>
    %c4_740 = arith.constant 4 : index
    %c1_741 = arith.constant 1 : index
    %c0_742 = arith.constant 0 : index
    %752 = vector.load %arg13[%c4_740, %c1_741, %c0_742] : memref<5x5x128xf32, #tpu.memory_space<vmem>>, vector<1x1x128xf32>
    %753 = vector.shape_cast %752 : vector<1x1x128xf32> to vector<1x128xf32>
    %c4_743 = arith.constant 4 : index
    %c2_744 = arith.constant 2 : index
    %c0_745 = arith.constant 0 : index
    %754 = vector.load %arg13[%c4_743, %c2_744, %c0_745] : memref<5x5x128xf32, #tpu.memory_space<vmem>>, vector<1x1x128xf32>
    %755 = vector.shape_cast %754 : vector<1x1x128xf32> to vector<1x128xf32>
    %c4_746 = arith.constant 4 : index
    %c3_747 = arith.constant 3 : index
    %c0_748 = arith.constant 0 : index
    %756 = vector.load %arg13[%c4_746, %c3_747, %c0_748] : memref<5x5x128xf32, #tpu.memory_space<vmem>>, vector<1x1x128xf32>
    %757 = vector.shape_cast %756 : vector<1x1x128xf32> to vector<1x128xf32>
    %c4_749 = arith.constant 4 : index
    %c4_750 = arith.constant 4 : index
    %c0_751 = arith.constant 0 : index
    %758 = vector.load %arg13[%c4_749, %c4_750, %c0_751] : memref<5x5x128xf32, #tpu.memory_space<vmem>>, vector<1x1x128xf32>
    %759 = vector.shape_cast %758 : vector<1x1x128xf32> to vector<1x128xf32>
    %760 = tpu.concatenate %711, %713, %715, %717, %719, %721, %723, %725, %727, %729, %731, %733, %735, %737, %739, %741 in 1 : vector<1x128xf32>, vector<1x128xf32>, vector<1x128xf32>, vector<1x128xf32>, vector<1x128xf32>, vector<1x128xf32>, vector<1x128xf32>, vector<1x128xf32>, vector<1x128xf32>, vector<1x128xf32>, vector<1x128xf32>, vector<1x128xf32>, vector<1x128xf32>, vector<1x128xf32>, vector<1x128xf32>, vector<1x128xf32> -> vector<1x2048xf32>
    %761 = tpu.concatenate %743, %745, %747, %749, %751, %753, %755, %757, %759 in 1 : vector<1x128xf32>, vector<1x128xf32>, vector<1x128xf32>, vector<1x128xf32>, vector<1x128xf32>, vector<1x128xf32>, vector<1x128xf32>, vector<1x128xf32>, vector<1x128xf32> -> vector<1x1152xf32>
    %762 = tpu.concatenate %760, %761 in 1 : vector<1x2048xf32>, vector<1x1152xf32> -> vector<1x3200xf32>
    %c0_752 = arith.constant 0 : index
    %c0_753 = arith.constant 0 : index
    %763 = vector.load %arg6[%c0_752, %c0_753] : memref<3200x128xf32, #tpu.memory_space<vmem>>, vector<3200x128xf32>
    %cst_754 = arith.constant dense<0.000000e+00> : vector<1x128xf32>
    %764 = tpu.matmul %762, %763, %cst_754 {dimension_numbers = #tpu.dot_dimension_numbers<[1], [0], [0], [1], [0, 0, 1, 1], [], []>} : vector<1x3200xf32>, vector<3200x128xf32>, vector<1x128xf32> -> vector<1x128xf32>
    %c0_755 = arith.constant 0 : index
    %c0_756 = arith.constant 0 : index
    %765 = vector.load %arg7[%c0_755, %c0_756] : memref<1x128xf32, #tpu.memory_space<vmem>>, vector<1x128xf32>
    %766 = arith.addf %764, %765 : vector<1x128xf32>
    %cst_757 = arith.constant 0.000000e+00 : f32
    %767 = vector.broadcast %cst_757 : f32 to vector<1x128xf32>
    %768 = arith.maximumf %766, %767 : vector<1x128xf32>
    %c0_758 = arith.constant 0 : index
    %c0_759 = arith.constant 0 : index
    %769 = vector.load %arg8[%c0_758, %c0_759] : memref<128x128xf32, #tpu.memory_space<vmem>>, vector<128x128xf32>
    %cst_760 = arith.constant dense<0.000000e+00> : vector<1x128xf32>
    %770 = tpu.matmul %768, %769, %cst_760 {dimension_numbers = #tpu.dot_dimension_numbers<[1], [0], [0], [1], [0, 0, 1, 1], [], []>} : vector<1x128xf32>, vector<128x128xf32>, vector<1x128xf32> -> vector<1x128xf32>
    %c0_761 = arith.constant 0 : index
    %c0_762 = arith.constant 0 : index
    %771 = vector.load %arg9[%c0_761, %c0_762] : memref<1x128xf32, #tpu.memory_space<vmem>>, vector<1x128xf32>
    %772 = arith.addf %770, %771 : vector<1x128xf32>
    %c0_763 = arith.constant 0 : index
    %c0_764 = arith.constant 0 : index
    %c0_765 = arith.constant 0 : index
    %773 = vector.load %arg10[%c0_763, %c0_764, %c0_765] : memref<1x1x128xf32, #tpu.memory_space<vmem>>, vector<1x1x128xf32>
    %774 = vector.shape_cast %773 : vector<1x1x128xf32> to vector<1x128xf32>
    %775 = vector.shape_cast %772 : vector<1x128xf32> to vector<1x1x128xf32>
    tpu.vector_store %arg10[%c0_763, %c0_764, %c0_765], %775 {strides = array<i32>} : memref<1x1x128xf32, #tpu.memory_space<vmem>>, vector<1x1x128xf32>,
    return
  }
  func.func @transform_0(%arg0: i32) -> (i32, i32, i32, i32) {
    %c0_i32 = arith.constant 0 : i32
    %c0_i32_0 = arith.constant 0 : i32
    %c0_i32_1 = arith.constant 0 : i32
    %c0_i32_2 = arith.constant 0 : i32
    return %arg0, %c0_i32, %c0_i32_0, %c0_i32_1 : i32, i32, i32, i32
  }
  func.func @transform_1(%arg0: i32) -> (i32, i32) {
    %c0_i32 = arith.constant 0 : i32
    %c0_i32_0 = arith.constant 0 : i32
    %c0_i32_1 = arith.constant 0 : i32
    return %c0_i32, %c0_i32_0 : i32, i32
  }
  func.func @transform_2(%arg0: i32) -> (i32, i32) {
    %c0_i32 = arith.constant 0 : i32
    %c0_i32_0 = arith.constant 0 : i32
    %c0_i32_1 = arith.constant 0 : i32
    return %c0_i32, %c0_i32_0 : i32, i32
  }
  func.func @transform_3(%arg0: i32) -> (i32, i32) {
    %c0_i32 = arith.constant 0 : i32
    %c0_i32_0 = arith.constant 0 : i32
    %c0_i32_1 = arith.constant 0 : i32
    return %c0_i32, %c0_i32_0 : i32, i32
  }
  func.func @transform_4(%arg0: i32) -> (i32, i32) {
    %c0_i32 = arith.constant 0 : i32
    %c0_i32_0 = arith.constant 0 : i32
    %c0_i32_1 = arith.constant 0 : i32
    return %c0_i32, %c0_i32_0 : i32, i32
  }
  func.func @transform_5(%arg0: i32) -> (i32, i32) {
    %c0_i32 = arith.constant 0 : i32
    %c0_i32_0 = arith.constant 0 : i32
    %c0_i32_1 = arith.constant 0 : i32
    return %c0_i32, %c0_i32_0 : i32, i32
  }
  func.func @transform_6(%arg0: i32) -> (i32, i32) {
    %c0_i32 = arith.constant 0 : i32
    %c0_i32_0 = arith.constant 0 : i32
    %c0_i32_1 = arith.constant 0 : i32
    return %c0_i32, %c0_i32_0 : i32, i32
  }
  func.func @transform_7(%arg0: i32) -> (i32, i32) {
    %c0_i32 = arith.constant 0 : i32
    %c0_i32_0 = arith.constant 0 : i32
    %c0_i32_1 = arith.constant 0 : i32
    return %c0_i32, %c0_i32_0 : i32, i32
  }
  func.func @transform_8(%arg0: i32) -> (i32, i32) {
    %c0_i32 = arith.constant 0 : i32
    %c0_i32_0 = arith.constant 0 : i32
    %c0_i32_1 = arith.constant 0 : i32
    return %c0_i32, %c0_i32_0 : i32, i32
  }
  func.func @transform_9(%arg0: i32) -> (i32, i32, i32) {
    %c0_i32 = arith.constant 0 : i32
    %c0_i32_0 = arith.constant 0 : i32
    %c0_i32_1 = arith.constant 0 : i32
    return %arg0, %c0_i32, %c0_i32_0 : i32, i32, i32
  }
}

</mosaic_0001>

<bundles_post_ra>
// kernel: cnn_forward.1
= control target key start
LH: loop header
LB: loop body
LE: loop exit
PB: predicated region body
PF: predicated region fallthrough
CT: control target
= control target key end

     0   :  { %14 = vsyncpa [#allocation6], 0  ;;  %s21905_s0 = inlined_call_operand.vmem [shape: f32[2,26,26,16], index: 0, kind: input, shape index: {}]   ;;  %s21906_s1 = inlined_call_operand.vmem [shape: f32[16,128], index: 1, kind: input, shape index: {}]   ;;  %s21907_s2 = inlined_call_operand.vmem [shape: f32[1,128], index: 2, kind: input, shape index: {}]   ;;  %s21908_s3 = inlined_call_operand.vmem [shape: f32[1152,128], index: 3, kind: input, shape index: {}]   ;;  %s21909_s4 = inlined_call_operand.vmem [shape: f32[1,128], index: 4, kind: input, shape index: {}]   ;;  %s21910_s5 = inlined_call_operand.vmem [shape: f32[3200,128], index: 5, kind: input, shape index: {}]   ;;  %s21911_s6 = inlined_call_operand.vmem [shape: f32[1,128], index: 6, kind: input, shape index: {}]   ;;  %s21912_s7 = inlined_call_operand.vmem [shape: f32[128,128], index: 7, kind: input, shape index: {}]   ;;  %s21913_s8 = inlined_call_operand.vmem [shape: f32[1,128], index: 8, kind: input, shape index: {}]   ;;  %s21914_s9 = inlined_call_operand.hbm [shape: f32[2,1,128], index: 9, kind: output, shape index: {}]  }
   0x1   :  { %16 = vsyncpa [#allocation6 + $0x1], 0  ;;  %s18198_s30 = smov 0   ;;  %s18200_s10 = smov 0  }
   0x2   :  { %s18202_s11 = smov 0   ;;  %s18204_s12 = smov 0  }
   0x3 LB: > { %s18219_s13 = sadd.s32 4294967295, %s18141_s12   ;;  %s11747_s14 = sadd.s32 4294967294, %s18141_s12   ;;  %s18141_s12 = sphi %s18204_s12, %s22487_s12   ;;  %s18137_s11 = sphi %s18202_s11, %s22486_s11   ;;  %s18133_s10 = sphi %s18200_s10, %s22485_s10   ;;  %s18129_s30 = sphi %s18198_s30, %s22484_s30  }
   0x4   : > { %s18223_s15 = sadd.s32 1, %s18141_s12   ;;  %s223_s16 = sadd.s32 1, %s18137_s11 }
   0x5   : > { %s220_s17 = ssub.s32 %s18141_s12, %s18223_s15  ;;  %p233_p0 = scmp.ne.s32.totalorder %s18137_s11, %s18133_s10 }
   0x6   : > { %p221_p1 = scmp.eq.s32.totalorder %s220_s17, 0  ;;  %p234_p2 = scmp.eq.s32.totalorder %s18219_s13, 1 }
   0x7   : > { %p239_p3 = scmp.ne.s32.totalorder %s18133_s10, %s18129_s30  ;;  %p240_p4 = scmp.eq.s32.totalorder %s11747_s14, 1 }
   0x8   : > { %s18234_s18 = scalar_select %p221_p1, %s18137_s11, %s223_s16  }
   0x9   : > { %p18236_p5 = por %p234_p2, %p233_p0  ;;  %p18240_p6 = por %p240_p4, %p239_p3 }
   0xa   : > { %p11750_p7 = scmp.ge.s32.totalorder %s18141_s12, 1  ;;  %p290_p8 = scmp.lt.s32.totalorder %s18141_s12, 3 }
   0xc   : > { %p291_p9 = pnand %p11750_p7, %p290_p8 }
   0xe   : > { %294 = sbr.rel (%p291_p9) target bundleno = 3126 (0xc36), region = 56 }
  0x15   : > { %v330_v0 = vld [vmem:[%s21906_s1] sm:$0xff]  ;;  %v331_v1 = vld [vmem:[%s21906_s1 + $0x8] sm:$0xff]  ;;  %p325_p10 = scmp.lt.s32.totalorder %s18219_s13, 1  ;;  %vm343_vm0 = vcmask 130048   ;;  %vm3257_vm2 = vcmask 211968   ;;  %vm3264_vm6 = vcmask 1041408  }
  0x16   : > { %v18253_v2 = vpack.c.bf16 %v331_v1, %v330_v0  ;;  %vm18144_vm7 = vmmov 1   ;;  %vm18146_vm9 = vmmov 0   ;;  %vm6402_vm10 = vcmask 1042432   ;;  %s323_s22 = sand.u32 1, %s18133_s10  }
  0x17   : > { %s326_s25 = scalar_select %p325_p10, %s18219_s13, 1  ;;  %vm18566_vm8 = vmpackc.low %vm3264_vm6, %vm18144_vm7  ;;  %vm6399_vm12 = vcmask 89088  }
  0x18   : > { %15596 = vmatprep.subr.bf16.mxu0 %v18253_v2  ;;  %15600 = vmatprep.subr.bf16.mxu1 %v18253_v2  ;;  %vm19692_vm11 = vmpackc.low %vm6402_vm10, %vm18144_vm7  ;;  %s11680_s16 = scalar_lea.sflag [#allocation6], %s323_s22 }
  0x19   : > { %15598 = vmatpush3.bf16.msra.mxu0 %v18253_v2  ;;  %15602 = vmatpush3.bf16.msra.mxu1 %v18253_v2  ;;  %s18031_s26 = smul.u32 832, %s326_s25  ;;  %s12060_s25 = sshll.u32 %s18219_s13, 4 }
  0x1a   : > { %15604 = vmatprep.subr.bf16.mxu0 %v18253_v2  ;;  %15608 = vmatprep.subr.bf16.mxu1 %v18253_v2  ;;  %s21863_s14 = scalar_lea.hbm %s21914_s9, %s12060_s25  ;;  %s18147_s13 = smov [#allocation5]  }
  0x1b   : > { %s18265_s29 = scalar_lea.vmem %s21905_s0, %s18031_s26  ;;  %s324_s26 = scalar_lea.vmem [#allocation5], %s323_s22 }
  0x1c   : > { %v333_v3 = vld [vmem:[%s18265_s29] sm:$0xff]  ;;  %v334_v5 = vld [vmem:[%s18265_s29 + $0x8] sm:$0xff]  ;;  %v335_v7 = vld [vmem:[%s18265_s29 + $0x10] sm:$0xff]  ;;  %s11692_s27 = sshll.u32 %s324_s26, 4  ;;  %s18083_s21 = sshll.u32 %s18147_s13, 4  ;;  %s21865_s27 = int_to_ptr.vmem [resolvable:$true] %s11692_s27  ;;  %s18084_s21 = int_to_ptr.vmem [resolvable:$false] %s18083_s21 }
  0x1d   : > { %v11757_v4 = vld [vmem:[%s18265_s29 + $0x20] sm:$0xff]  ;;  %14563 = vmatprep.mubr.msk.f32.mxu0 %vm343_vm0, %v333_v3  ;;  %v11758_v6 = vld [vmem:[%s18265_s29 + $0x28] sm:$0xff]  ;;  %v11759_v8 = vld [vmem:[%s18265_s29 + $0x30] sm:$0xff]  ;;  %s18079_s17 = scalar_lea.vmem %s21865_s27, 16  ;;  %s18085_s23 = scalar_lea.vmem %s18084_s21, 32 }
  0x1e   : > { %14573 = vmatprep.mubr.msk.f32.mxu1 %vm343_vm0, %v11757_v4  ;;  %14564 = vmatmul.mubr.msk.f32.vlgmr.msra.gmra.mrb[0].mxu0 %vm343_vm0, %v334_v5  ;;  %v336_v9 = vld [vmem:[%s18265_s29 + $0x18] sm:$0x3]  ;;  %v11765_v11 = vld [vmem:[%s18265_s29 + $0x40] sm:$0xff]  ;;  %v11766_v13 = vld [vmem:[%s18265_s29 + $0x48] sm:$0xff]  ;;  %p18080_p11 = scmp.ne.s32.totalorder %s21865_s27, %s18079_s17  ;;  %p18086_p0 = scmp.lt.s32.totalorder %s21865_s27, %s18084_s21 }
  0x1f   : > { %14574 = vmatmul.mubr.msk.f32.vlgmr.msra.gmra.mrb[0].mxu1 %vm343_vm0, %v11758_v6  ;;  %14566 = vmatprep.mubr.msk.f32.mxu0 %vm343_vm0, %v335_v7  ;;  %v11760_v10 = vld [vmem:[%s18265_s29 + $0x38] sm:$0x3]  ;;  %v11773_v12 = vld [vmem:[%s18265_s29 + $0x60] sm:$0xff]  ;;  %v11774_v14 = vld [vmem:[%s18265_s29 + $0x68] sm:$0xff]  ;;  %p18087_p1 = scmp.lt.s32.totalorder %s18085_s23, %s18079_s17 }
  0x20   : > { %14576 = vmatprep.mubr.msk.f32.mxu1 %vm343_vm0, %v11759_v8  ;;  %15606 = vmatpush3.bf16.msra.mxu0 %v18253_v2  ;;  %v11767_v15 = vld [vmem:[%s18265_s29 + $0x50] sm:$0xff]  ;;  %v11768_v17 = vld [vmem:[%s18265_s29 + $0x58] sm:$0x3]  ;;  %v11781_v19 = vld [vmem:[%s18265_s29 + $0x80] sm:$0xff]  ;;  %p18081_p12 = pnand %p18080_p11, %p18236_p5 }
  0x21   : > { %15610 = vmatpush3.bf16.msra.mxu1 %v18253_v2  ;;  %15612 = vmatprep.subr.bf16.mxu0 %v18253_v2  ;;  %v11775_v16 = vld [vmem:[%s18265_s29 + $0x70] sm:$0xff]  ;;  %v11776_v18 = vld [vmem:[%s18265_s29 + $0x78] sm:$0x3]  ;;  %v11789_v20 = vld [vmem:[%s18265_s29 + $0xa0] sm:$0xff]  ;;  %p18088_p2 = por %p18087_p1, %p18086_p0 }
  0x22   : > { %15616 = vmatprep.subr.bf16.mxu1 %v18253_v2  ;;  %14567 = vmatmul.mubr.msk.f32.gmra.mrb[2].mxu0 %vm343_vm0, %v336_v9  ;;  %v11782_v21 = vld [vmem:[%s18265_s29 + $0x88] sm:$0xff]  ;;  %v11783_v23 = vld [vmem:[%s18265_s29 + $0x90] sm:$0xff]  ;;  %v11784_v25 = vld [vmem:[%s18265_s29 + $0x98] sm:$0x3]  ;;  %p18082_p13 = pneg %p18081_p12 }
  0x23   : > { %14577 = vmatmul.mubr.msk.f32.gmra.mrb[2].mxu1 %vm343_vm0, %v11760_v10  ;;  %14583 = vmatprep.mubr.msk.f32.mxu0 %vm343_vm0, %v11765_v11  ;;  %v11790_v22 = vld [vmem:[%s18265_s29 + $0xa8] sm:$0xff]  ;;  %v11791_v24 = vld [vmem:[%s18265_s29 + $0xb0] sm:$0xff]  ;;  %v11792_v26 = vld [vmem:[%s18265_s29 + $0xb8] sm:$0x3] }
  0x24   : > { %14593 = vmatprep.mubr.msk.f32.mxu1 %vm343_vm0, %v11773_v12  ;;  %v11797_v27 = vld [vmem:[%s18265_s29 + $0xc0] sm:$0xff]  ;;  %v11798_v29 = vld [vmem:[%s18265_s29 + $0xc8] sm:$0xff]  ;;  %v11799_v31 = vld [vmem:[%s18265_s29 + $0xd0] sm:$0xff]  ;;  %p18089_p3 = pnand %p18088_p2, %p18082_p13 }
  0x25   : > { %v11805_v28 = vld [vmem:[%s18265_s29 + $0xe0] sm:$0xff]  ;;  %v11806_v30 = vld [vmem:[%s18265_s29 + $0xe8] sm:$0xff]  ;;  %v11807_v32 = vld [vmem:[%s18265_s29 + $0xf0] sm:$0xff] }
  0x26   : > { %14584 = vmatmul.mubr.msk.f32.vlgmr.msra.gmra.mrb[4].mxu0 %vm343_vm0, %v11766_v13  ;;  %v11800_v33 = vld [vmem:[%s18265_s29 + $0xd8] sm:$0x3]  ;;  %v11813_v35 = vld [vmem:[%s18265_s29 + $0x100] sm:$0xff]  ;;  %v11814_v37 = vld [vmem:[%s18265_s29 + $0x108] sm:$0xff] }
  0x27   : > { %14594 = vmatmul.mubr.msk.f32.vlgmr.msra.gmra.mrb[4].mxu1 %vm343_vm0, %v11774_v14  ;;  %14586 = vmatprep.mubr.msk.f32.mxu0 %vm343_vm0, %v11767_v15  ;;  %v11808_v34 = vld [vmem:[%s18265_s29 + $0xf8] sm:$0x3]  ;;  %v11821_v36 = vld [vmem:[%s18265_s29 + $0x120] sm:$0xff]  ;;  %v11822_v38 = vld [vmem:[%s18265_s29 + $0x128] sm:$0xff] }
  0x28   : > { %14596 = vmatprep.mubr.msk.f32.mxu1 %vm343_vm0, %v11775_v16  ;;  %15614 = vmatpush3.bf16.msra.mxu0 %v18253_v2  ;;  %v11815_v39 = vld [vmem:[%s18265_s29 + $0x110] sm:$0xff]  ;;  %v11816_v41 = vld [vmem:[%s18265_s29 + $0x118] sm:$0x3]  ;;  %v11829_v43 = vld [vmem:[%s18265_s29 + $0x140] sm:$0xff] }
  0x29   : > { %15618 = vmatpush3.bf16.msra.mxu1 %v18253_v2  ;;  %15620 = vmatprep.subr.bf16.mxu0 %v18253_v2  ;;  %v11823_v40 = vld [vmem:[%s18265_s29 + $0x130] sm:$0xff]  ;;  %v11824_v42 = vld [vmem:[%s18265_s29 + $0x138] sm:$0x3]  ;;  %v11837_v44 = vld [vmem:[%s18265_s29 + $0x160] sm:$0xff] }
  0x2a   : > { %15624 = vmatprep.subr.bf16.mxu1 %v18253_v2  ;;  %14587 = vmatmul.mubr.msk.f32.gmra.mrb[6].mxu0 %vm343_vm0, %v11768_v17  ;;  %v11830_v45 = vld [vmem:[%s18265_s29 + $0x148] sm:$0xff]  ;;  %v11831_v47 = vld [vmem:[%s18265_s29 + $0x150] sm:$0xff]  ;;  %v11832_v49 = vld [vmem:[%s18265_s29 + $0x158] sm:$0x3] }
  0x2b   : > { %14597 = vmatmul.mubr.msk.f32.gmra.mrb[6].mxu1 %vm343_vm0, %v11776_v18  ;;  %14603 = vmatprep.mubr.msk.f32.mxu0 %vm343_vm0, %v11781_v19  ;;  %v11838_v46 = vld [vmem:[%s18265_s29 + $0x168] sm:$0xff]  ;;  %v11839_v48 = vld [vmem:[%s18265_s29 + $0x170] sm:$0xff]  ;;  %v11840_v50 = vld [vmem:[%s18265_s29 + $0x178] sm:$0x3] }
  0x2c   : > { %14613 = vmatprep.mubr.msk.f32.mxu1 %vm343_vm0, %v11789_v20  ;;  %v11845_v51 = vld [vmem:[%s18265_s29 + $0x180] sm:$0xff]  ;;  %v11846_v53 = vld [vmem:[%s18265_s29 + $0x188] sm:$0xff]  ;;  %v11847_v55 = vld [vmem:[%s18265_s29 + $0x190] sm:$0xff] }
  0x2d   : > { %v11853_v52 = vld [vmem:[%s18265_s29 + $0x1a0] sm:$0xff]  ;;  %v11854_v54 = vld [vmem:[%s18265_s29 + $0x1a8] sm:$0xff]  ;;  %v11855_v56 = vld [vmem:[%s18265_s29 + $0x1b0] sm:$0xff] }
  0x2e   : > { %14604 = vmatmul.mubr.msk.f32.vlgmr.msra.gmra.mrb[8].mxu0 %vm343_vm0, %v11782_v21  ;;  %v11848_v57 = vld [vmem:[%s18265_s29 + $0x198] sm:$0x3]  ;;  %v11861_v59 = vld [vmem:[%s18265_s29 + $0x1c0] sm:$0xff]  ;;  %v11862_v61 = vld [vmem:[%s18265_s29 + $0x1c8] sm:$0xff] }
  0x2f   : > { %14614 = vmatmul.mubr.msk.f32.vlgmr.msra.gmra.mrb[8].mxu1 %vm343_vm0, %v11790_v22  ;;  %14606 = vmatprep.mubr.msk.f32.mxu0 %vm343_vm0, %v11783_v23  ;;  %v11856_v58 = vld [vmem:[%s18265_s29 + $0x1b8] sm:$0x3]  ;;  %v11869_v60 = vld [vmem:[%s18265_s29 + $0x1e0] sm:$0xff]  ;;  %v11870_v62 = vld [vmem:[%s18265_s29 + $0x1e8] sm:$0xff] }
  0x30   : > { %14616 = vmatprep.mubr.msk.f32.mxu1 %vm343_vm0, %v11791_v24  ;;  %15622 = vmatpush3.bf16.msra.mxu0 %v18253_v2  ;;  %v11863_v63 = vld [vmem:[%s18265_s29 + $0x1d0] sm:$0xff]  ;;  %v11864_v1 = vld [vmem:[%s18265_s29 + $0x1d8] sm:$0x3]  ;;  %v11877_v4 = vld [vmem:[%s18265_s29 + $0x200] sm:$0xff] }
  0x31   : > { %15626 = vmatpush3.bf16.msra.mxu1 %v18253_v2  ;;  %15628 = vmatprep.subr.bf16.mxu0 %v18253_v2  ;;  %v11871_v0 = vld [vmem:[%s18265_s29 + $0x1f0] sm:$0xff]  ;;  %v11872_v3 = vld [vmem:[%s18265_s29 + $0x1f8] sm:$0x3]  ;;  %v11885_v5 = vld [vmem:[%s18265_s29 + $0x220] sm:$0xff] }
  0x32   : > { %15632 = vmatprep.subr.bf16.mxu1 %v18253_v2  ;;  %14607 = vmatmul.mubr.msk.f32.gmra.mrb[10].mxu0 %vm343_vm0, %v11784_v25  ;;  %v11878_v6 = vld [vmem:[%s18265_s29 + $0x208] sm:$0xff]  ;;  %v11879_v8 = vld [vmem:[%s18265_s29 + $0x210] sm:$0xff]  ;;  %v11880_v10 = vld [vmem:[%s18265_s29 + $0x218] sm:$0x3] }
  0x33   : > { %14617 = vmatmul.mubr.msk.f32.gmra.mrb[10].mxu1 %vm343_vm0, %v11792_v26  ;;  %14623 = vmatprep.mubr.msk.f32.mxu0 %vm343_vm0, %v11797_v27  ;;  %v11886_v7 = vld [vmem:[%s18265_s29 + $0x228] sm:$0xff]  ;;  %v11887_v9 = vld [vmem:[%s18265_s29 + $0x230] sm:$0xff]  ;;  %v11888_v11 = vld [vmem:[%s18265_s29 + $0x238] sm:$0x3] }
  0x34   : > { %14633 = vmatprep.mubr.msk.f32.mxu1 %vm343_vm0, %v11805_v28  ;;  %v11893_v12 = vld [vmem:[%s18265_s29 + $0x240] sm:$0xff]  ;;  %v11894_v14 = vld [vmem:[%s18265_s29 + $0x248] sm:$0xff]  ;;  %v11895_v16 = vld [vmem:[%s18265_s29 + $0x250] sm:$0xff] }
  0x35   : > { %v11901_v13 = vld [vmem:[%s18265_s29 + $0x260] sm:$0xff]  ;;  %v11902_v15 = vld [vmem:[%s18265_s29 + $0x268] sm:$0xff]  ;;  %v11903_v17 = vld [vmem:[%s18265_s29 + $0x270] sm:$0xff] }
  0x36   : > { %14624 = vmatmul.mubr.msk.f32.vlgmr.msra.gmra.mrb[12].mxu0 %vm343_vm0, %v11798_v29  ;;  %v11896_v18 = vld [vmem:[%s18265_s29 + $0x258] sm:$0x3]  ;;  %v11909_v20 = vld [vmem:[%s18265_s29 + $0x280] sm:$0xff]  ;;  %v11910_v22 = vld [vmem:[%s18265_s29 + $0x288] sm:$0xff] }
  0x37   : > { %14634 = vmatmul.mubr.msk.f32.vlgmr.msra.gmra.mrb[12].mxu1 %vm343_vm0, %v11806_v30  ;;  %14626 = vmatprep.mubr.msk.f32.mxu0 %vm343_vm0, %v11799_v31  ;;  %v11904_v19 = vld [vmem:[%s18265_s29 + $0x278] sm:$0x3]  ;;  %v11917_v21 = vld [vmem:[%s18265_s29 + $0x2a0] sm:$0xff]  ;;  %v11918_v23 = vld [vmem:[%s18265_s29 + $0x2a8] sm:$0xff] }
  0x38   : > { %14636 = vmatprep.mubr.msk.f32.mxu1 %vm343_vm0, %v11807_v32  ;;  %15630 = vmatpush3.bf16.msra.mxu0 %v18253_v2  ;;  %v11911_v24 = vld [vmem:[%s18265_s29 + $0x290] sm:$0xff]  ;;  %v11912_v26 = vld [vmem:[%s18265_s29 + $0x298] sm:$0x3]  ;;  %v11925_v28 = vld [vmem:[%s18265_s29 + $0x2c0] sm:$0xff] }
  0x39   : > { %15634 = vmatpush3.bf16.msra.mxu1 %v18253_v2  ;;  %15636 = vmatprep.subr.bf16.mxu0 %v18253_v2  ;;  %v11919_v25 = vld [vmem:[%s18265_s29 + $0x2b0] sm:$0xff]  ;;  %v11920_v27 = vld [vmem:[%s18265_s29 + $0x2b8] sm:$0x3]  ;;  %v11933_v29 = vld [vmem:[%s18265_s29 + $0x2e0] sm:$0xff] }
  0x3a   : > { %15640 = vmatprep.subr.bf16.mxu1 %v18253_v2  ;;  %14627 = vmatmul.mubr.msk.f32.gmra.mrb[14].mxu0 %vm343_vm0, %v11800_v33  ;;  %v11926_v30 = vld [vmem:[%s18265_s29 + $0x2c8] sm:$0xff]  ;;  %v11927_v32 = vld [vmem:[%s18265_s29 + $0x2d0] sm:$0xff] }
  0x3b   : > { %14637 = vmatmul.mubr.msk.f32.gmra.mrb[14].mxu1 %vm343_vm0, %v11808_v34  ;;  %14643 = vmatprep.mubr.msk.f32.mxu0 %vm343_vm0, %v11813_v35  ;;  %v11934_v31 = vld [vmem:[%s18265_s29 + $0x2e8] sm:$0xff]  ;;  %v11935_v33 = vld [vmem:[%s18265_s29 + $0x2f0] sm:$0xff]  ;;  %v11928_v34 = vld [vmem:[%s18265_s29 + $0x2d8] sm:$0x3] }
  0x3c   : > { %14653 = vmatprep.mubr.msk.f32.mxu1 %vm343_vm0, %v11821_v36  ;;  %v11936_v35 = vld [vmem:[%s18265_s29 + $0x2f8] sm:$0x3]  ;;  %v11941_v36 = vld [vmem:[%s18265_s29 + $0x300] sm:$0xff] }
  0x3e   : > { %14644 = vmatmul.mubr.msk.f32.vlgmr.msra.gmra.mrb[16].mxu0 %vm343_vm0, %v11814_v37  ;;  %v11949_v37 = vld [vmem:[%s18265_s29 + $0x320] sm:$0xff] }
  0x3f   : > { %14654 = vmatmul.mubr.msk.f32.vlgmr.msra.gmra.mrb[16].mxu1 %vm343_vm0, %v11822_v38  ;;  %14646 = vmatprep.mubr.msk.f32.mxu0 %vm343_vm0, %v11815_v39  ;;  %v11942_v38 = vld [vmem:[%s18265_s29 + $0x308] sm:$0xff] }
  0x40   : > { %14656 = vmatprep.mubr.msk.f32.mxu1 %vm343_vm0, %v11823_v40  ;;  %15638 = vmatpush3.bf16.msra.mxu0 %v18253_v2  ;;  %v11950_v39 = vld [vmem:[%s18265_s29 + $0x328] sm:$0xff]  ;;  %v11943_v40 = vld [vmem:[%s18265_s29 + $0x310] sm:$0xff] }
  0x41   : > { %15642 = vmatpush3.bf16.msra.mxu1 %v18253_v2  ;;  %15644 = vmatprep.subr.bf16.mxu0 %v18253_v2 }
  0x42   : > { %15648 = vmatprep.subr.bf16.mxu1 %v18253_v2  ;;  %14647 = vmatmul.mubr.msk.f32.gmra.mrb[18].mxu0 %vm343_vm0, %v11816_v41  ;;  %v11951_v41 = vld [vmem:[%s18265_s29 + $0x330] sm:$0xff] }
  0x43   : > { %14657 = vmatmul.mubr.msk.f32.gmra.mrb[18].mxu1 %vm343_vm0, %v11824_v42  ;;  %14663 = vmatprep.mubr.msk.f32.mxu0 %vm343_vm0, %v11829_v43  ;;  %v11944_v42 = vld [vmem:[%s18265_s29 + $0x318] sm:$0x3] }
  0x44   : > { %14673 = vmatprep.mubr.msk.f32.mxu1 %vm343_vm0, %v11837_v44  ;;  %v11952_v43 = vld [vmem:[%s18265_s29 + $0x338] sm:$0x3] }
  0x46   : > { %14664 = vmatmul.mubr.msk.f32.vlgmr.msra.gmra.mrb[20].mxu0 %vm343_vm0, %v11830_v45 }
  0x47   : > { %14674 = vmatmul.mubr.msk.f32.vlgmr.msra.gmra.mrb[20].mxu1 %vm343_vm0, %v11838_v46  ;;  %14666 = vmatprep.mubr.msk.f32.mxu0 %vm343_vm0, %v11831_v47 }
  0x48   : > { %14676 = vmatprep.mubr.msk.f32.mxu1 %vm343_vm0, %v11839_v48  ;;  %15646 = vmatpush3.bf16.msra.mxu0 %v18253_v2 }
  0x49   : > { %15650 = vmatpush3.bf16.msra.mxu1 %v18253_v2  ;;  %15652 = vmatprep.subr.bf16.mxu0 %v18253_v2 }
  0x4a   : > { %15656 = vmatprep.subr.bf16.mxu1 %v18253_v2  ;;  %14667 = vmatmul.mubr.msk.f32.gmra.mrb[22].mxu0 %vm343_vm0, %v11832_v49 }
  0x4b   : > { %14677 = vmatmul.mubr.msk.f32.gmra.mrb[22].mxu1 %vm343_vm0, %v11840_v50  ;;  %14683 = vmatprep.mubr.msk.f32.mxu0 %vm343_vm0, %v11845_v51  ;;  %v21915_v51 = vmov 0.0  }
  0x4c   : > { %14693 = vmatprep.mubr.msk.f32.mxu1 %vm343_vm0, %v11853_v52 }
  0x4e   : > { %14684 = vmatmul.mubr.msk.f32.vlgmr.msra.gmra.mrb[24].mxu0 %vm343_vm0, %v11846_v53 }
  0x4f   : > { %14694 = vmatmul.mubr.msk.f32.vlgmr.msra.gmra.mrb[24].mxu1 %vm343_vm0, %v11854_v54  ;;  %14686 = vmatprep.mubr.msk.f32.mxu0 %vm343_vm0, %v11847_v55  ;;  %v18547_v55 = vld [vmem:[%s21907_s2] ss:$0 sm:$0xff] }
  0x50   : > { %14696 = vmatprep.mubr.msk.f32.mxu1 %vm343_vm0, %v11855_v56  ;;  %15654 = vmatpush3.bf16.msra.mxu0 %v18253_v2 }
  0x51   : > { %15658 = vmatpush3.bf16.msra.mxu1 %v18253_v2  ;;  %15660 = vmatprep.subr.bf16.mxu0 %v18253_v2 }
  0x52   : > { %15664 = vmatprep.subr.bf16.mxu1 %v18253_v2  ;;  %14687 = vmatmul.mubr.msk.f32.gmra.mrb[26].mxu0 %vm343_vm0, %v11848_v57 }
  0x53   : > { %14697 = vmatmul.mubr.msk.f32.gmra.mrb[26].mxu1 %vm343_vm0, %v11856_v58  ;;  %14703 = vmatprep.mubr.msk.f32.mxu0 %vm343_vm0, %v11861_v59 }
  0x54   : > { %14713 = vmatprep.mubr.msk.f32.mxu1 %vm343_vm0, %v11869_v60 }
  0x56   : > { %14704 = vmatmul.mubr.msk.f32.vlgmr.msra.gmra.mrb[28].mxu0 %vm343_vm0, %v11862_v61 }
  0x57   : > { %14714 = vmatmul.mubr.msk.f32.vlgmr.msra.gmra.mrb[28].mxu1 %vm343_vm0, %v11870_v62  ;;  %14706 = vmatprep.mubr.msk.f32.mxu0 %vm343_vm0, %v11863_v63 }
  0x58   : > { %14716 = vmatprep.mubr.msk.f32.mxu1 %vm343_vm0, %v11871_v0  ;;  %15662 = vmatpush3.bf16.msra.mxu0 %v18253_v2 }
  0x59   : > { %15666 = vmatpush3.bf16.msra.mxu1 %v18253_v2  ;;  %15668 = vmatprep.subr.bf16.mxu0 %v18253_v2 }
  0x5a   : > { %15672 = vmatprep.subr.bf16.mxu1 %v18253_v2  ;;  %14707 = vmatmul.mubr.msk.f32.gmra.mrb[30].mxu0 %vm343_vm0, %v11864_v1 }
  0x5b   : > { %14717 = vmatmul.mubr.msk.f32.gmra.mrb[30].mxu1 %vm343_vm0, %v11872_v3  ;;  %14723 = vmatprep.mubr.msk.f32.mxu0 %vm343_vm0, %v11877_v4 }
  0x5c   : > { %14733 = vmatprep.mubr.msk.f32.mxu1 %vm343_vm0, %v11885_v5 }
  0x5e   : > { %14724 = vmatmul.mubr.msk.f32.vlgmr.msra.gmra.mrb[32].mxu0 %vm343_vm0, %v11878_v6 }
  0x5f   : > { %14734 = vmatmul.mubr.msk.f32.vlgmr.msra.gmra.mrb[32].mxu1 %vm343_vm0, %v11886_v7  ;;  %14726 = vmatprep.mubr.msk.f32.mxu0 %vm343_vm0, %v11879_v8 }
  0x60   : > { %14736 = vmatprep.mubr.msk.f32.mxu1 %vm343_vm0, %v11887_v9  ;;  %15670 = vmatpush3.bf16.msra.mxu0 %v18253_v2 }
  0x61   : > { %15674 = vmatpush3.bf16.msra.mxu1 %v18253_v2  ;;  %15676 = vmatprep.subr.bf16.mxu0 %v18253_v2 }
  0x62   : > { %15680 = vmatprep.subr.bf16.mxu1 %v18253_v2  ;;  %14727 = vmatmul.mubr.msk.f32.gmra.mrb[34].mxu0 %vm343_vm0, %v11880_v10 }
  0x63   : > { %14737 = vmatmul.mubr.msk.f32.gmra.mrb[34].mxu1 %vm343_vm0, %v11888_v11  ;;  %14743 = vmatprep.mubr.msk.f32.mxu0 %vm343_vm0, %v11893_v12 }
  0x64   : > { %14753 = vmatprep.mubr.msk.f32.mxu1 %vm343_vm0, %v11901_v13 }
  0x66   : > { %14744 = vmatmul.mubr.msk.f32.vlgmr.msra.gmra.mrb[36].mxu0 %vm343_vm0, %v11894_v14 }
  0x67   : > { %14754 = vmatmul.mubr.msk.f32.vlgmr.msra.gmra.mrb[36].mxu1 %vm343_vm0, %v11902_v15  ;;  %14746 = vmatprep.mubr.msk.f32.mxu0 %vm343_vm0, %v11895_v16 }
  0x68   : > { %14756 = vmatprep.mubr.msk.f32.mxu1 %vm343_vm0, %v11903_v17  ;;  %15678 = vmatpush3.bf16.msra.mxu0 %v18253_v2 }
  0x69   : > { %15682 = vmatpush3.bf16.msra.mxu1 %v18253_v2  ;;  %15684 = vmatprep.subr.bf16.mxu0 %v18253_v2 }
  0x6a   : > { %15688 = vmatprep.subr.bf16.mxu1 %v18253_v2  ;;  %14747 = vmatmul.mubr.msk.f32.gmra.mrb[38].mxu0 %vm343_vm0, %v11896_v18 }
  0x6b   : > { %14757 = vmatmul.mubr.msk.f32.gmra.mrb[38].mxu1 %vm343_vm0, %v11904_v19  ;;  %14763 = vmatprep.mubr.msk.f32.mxu0 %vm343_vm0, %v11909_v20 }
  0x6c   : > { %14773 = vmatprep.mubr.msk.f32.mxu1 %vm343_vm0, %v11917_v21 }
  0x6e   : > { %14764 = vmatmul.mubr.msk.f32.vlgmr.msra.gmra.mrb[40].mxu0 %vm343_vm0, %v11910_v22 }
  0x6f   : > { %14774 = vmatmul.mubr.msk.f32.vlgmr.msra.gmra.mrb[40].mxu1 %vm343_vm0, %v11918_v23  ;;  %14766 = vmatprep.mubr.msk.f32.mxu0 %vm343_vm0, %v11911_v24 }
  0x70   : > { %14776 = vmatprep.mubr.msk.f32.mxu1 %vm343_vm0, %v11919_v25  ;;  %15686 = vmatpush3.bf16.msra.mxu0 %v18253_v2 }
  0x71   : > { %15690 = vmatpush3.bf16.msra.mxu1 %v18253_v2  ;;  %15692 = vmatprep.subr.bf16.mxu0 %v18253_v2 }
  0x72   : > { %15696 = vmatprep.subr.bf16.mxu1 %v18253_v2  ;;  %14767 = vmatmul.mubr.msk.f32.gmra.mrb[42].mxu0 %vm343_vm0, %v11912_v26 }
  0x73   : > { %14777 = vmatmul.mubr.msk.f32.gmra.mrb[42].mxu1 %vm343_vm0, %v11920_v27  ;;  %14783 = vmatprep.mubr.msk.f32.mxu0 %vm343_vm0, %v11925_v28 }
  0x74   : > { %14793 = vmatprep.mubr.msk.f32.mxu1 %vm343_vm0, %v11933_v29 }
  0x76   : > { %14784 = vmatmul.mubr.msk.f32.vlgmr.msra.gmra.mrb[44].mxu0 %vm343_vm0, %v11926_v30 }
  0x77   : > { %14794 = vmatmul.mubr.msk.f32.vlgmr.msra.gmra.mrb[44].mxu1 %vm343_vm0, %v11934_v31  ;;  %14786 = vmatprep.mubr.msk.f32.mxu0 %vm343_vm0, %v11927_v32 }
  0x78   : > { %14796 = vmatprep.mubr.msk.f32.mxu1 %vm343_vm0, %v11935_v33  ;;  %15694 = vmatpush3.bf16.msra.mxu0 %v18253_v2 }
  0x79   : > { %15698 = vmatpush3.bf16.msra.mxu1 %v18253_v2  ;;  %v3224_v2 = vlaneseq }
  0x7a   : > { %14787 = vmatmul.mubr.msk.f32.gmra.mrb[46].mxu0 %vm343_vm0, %v11928_v34 }
  0x7b   : > { %14797 = vmatmul.mubr.msk.f32.gmra.mrb[46].mxu1 %vm343_vm0, %v11936_v35  ;;  %14803 = vmatprep.mubr.msk.f32.mxu0 %vm343_vm0, %v11941_v36  ;;  %v3227_v44 = vshrl.u32 %v3224_v2, 7  ;;  %v18521_v48 = vand.u32 127, %v3224_v2 }
  0x7c   : > { %14813 = vmatprep.mubr.msk.f32.mxu1 %vm343_vm0, %v11949_v37 }
  0x7d   : > { %v3228_v45 = vadd.s32 8, %v3227_v44  ;;  %v3229_v46 = vmul.u32 2, %v3227_v44 }
  0x7e   : > { %14804 = vmatmul.mubr.msk.f32.vlgmr.msra.gmra.mrb[48].mxu0 %vm343_vm0, %v11942_v38 }
  0x7f   : > { %14814 = vmatmul.mubr.msk.f32.vlgmr.msra.gmra.mrb[48].mxu1 %vm343_vm0, %v11950_v39  ;;  %14806 = vmatprep.mubr.msk.f32.mxu0 %vm343_vm0, %v11943_v40  ;;  %v3230_v47 = vmul.u32 2, %v3228_v45  ;;  %v3237_v49 = vadd.s32 1, %v3229_v46  ;;  %vm3231_vm1 = vcmp.eq.s32.totalorder %v18521_v48, %v3229_v46 }
  0x80   : > { %14816 = vmatprep.mubr.msk.f32.mxu1 %vm343_vm0, %v11951_v41  ;;  %v18528_v52 = vsel %vm3231_vm1, 1.0, %v21915_v51 }
  0x81   : > { %v18523_v50 = vadd.s32 1, %v3230_v47  ;;  %vm3239_vm3 = vcmp.eq.s32.totalorder %v18521_v48, %v3237_v49  ;;  %22141 = vst [vmem:[#allocation8_spill] sm:$0xff] %v18528_v52  ;;  %vm18534_vm4 = vcmp.eq.s32.totalorder %v18521_v48, %v3230_v47 }
  0x82   : > { %14807 = vmatmul.mubr.msk.f32.gmra.mrb[50].mxu0 %vm343_vm0, %v11944_v42  ;;  %v18531_v53 = vsel %vm3239_vm3, 1.0, %v21915_v51 }
  0x83   : > { %14817 = vmatmul.mubr.msk.f32.gmra.mrb[50].mxu1 %vm343_vm0, %v11952_v43  ;;  %22142 = vst [vmem:[#allocation9_spill] sm:$0xff] %v18531_v53  ;;  %vm3240_vm5 = vcmp.eq.s32.totalorder %v18521_v48, %v18523_v50  ;;  %14827 = vmatprep.mubr.msk.f32.mxu0 %vm3257_vm2, %v18528_v52 }
  0x84   : > { %14838 = vmatprep.mubr.msk.f32.mxu1 %vm3257_vm2, %v18531_v53 }
  0xf1   : > { %v14565_v56 = vpop.f32.mrb[0].mxu0 }
  0xf2   : > { %v14575_v57 = vpop.f32.mrb[0].mxu1  ;;  %v428_v58 = vadd.f32 %v14565_v56, %v18547_v55  ;;  %v422_v60 = vpop.f32.mrb[1].mxu0 }
  0xf3   : > { %v538_v59 = vadd.f32 %v14575_v57, %v18547_v55  ;;  %v532_v61 = vpop.f32.mrb[1].mxu1  ;;  %v423_v62 = vadd.f32 %v18547_v55, %v422_v60 }
  0xf4   : > { %v533_v63 = vadd.f32 %v18547_v55, %v532_v61  ;;  %v442_v0 = vmax.f32 %v428_v58, 0.0 }
  0xf5   : > { %v552_v1 = vmax.f32 %v538_v59, 0.0  ;;  %v441_v3 = vmax.f32 %v423_v62, 0.0  ;;  %v14568_v5 = vpop.f32.mrb[2].mxu0  ;;  %v5488_v59 = vld [vmem:[%s21908_s3 + $0xa0] sm:$0xff] }
  0xf6   : > { %v551_v4 = vmax.f32 %v533_v63, 0.0  ;;  %v14578_v6 = vpop.f32.mrb[2].mxu1  ;;  %v438_v7 = vadd.f32 %v14568_v5, %v18547_v55  ;;  %v432_v9 = vpop.f32.mrb[3].mxu0  ;;  %v18577_v5 = vsel %vm18534_vm4, 1.0, %v21915_v51 }
  0xf7   : > { %v548_v8 = vadd.f32 %v14578_v6, %v18547_v55  ;;  %v542_v10 = vpop.f32.mrb[3].mxu1  ;;  %v3254_v11 = vmax.f32 %v442_v0, %v552_v1  ;;  %v433_v12 = vadd.f32 %v18547_v55, %v432_v9 }
  0xf8   : > { %v543_v13 = vadd.f32 %v18547_v55, %v542_v10  ;;  %v3253_v14 = vmax.f32 %v441_v3, %v551_v4  ;;  %v444_v15 = vmax.f32 %v438_v7, 0.0 }
  0xf9   : > { %v554_v16 = vmax.f32 %v548_v8, 0.0  ;;  %v443_v17 = vmax.f32 %v433_v12, 0.0  ;;  %v14585_v19 = vpop.f32.mrb[4].mxu0 }
  0xfa   : > { %v553_v18 = vmax.f32 %v543_v13, 0.0  ;;  %v14595_v20 = vpop.f32.mrb[4].mxu1  ;;  %v15699_v21 = vpack.c.bf16 %v3254_v11, %v3253_v14  ;;  %448 = vst [vmem:[#allocation2 + $0x18] sm:$0x3] %v444_v15  ;;  %v649_v22 = vadd.f32 %v14585_v19, %v18547_v55  ;;  %v643_v24 = vpop.f32.mrb[5].mxu0  ;;  %v18593_v15 = vsel %vm3240_vm5, 1.0, %v21915_v51 }
  0xfb   : > { %559 = vst [vmem:[#allocation2 + $0x38] sm:$0x3] %v554_v16  ;;  %v760_v23 = vadd.f32 %v14595_v20, %v18547_v55  ;;  %v754_v25 = vpop.f32.mrb[5].mxu1  ;;  %v644_v26 = vadd.f32 %v18547_v55, %v643_v24 }
  0xfc   : > { %v755_v27 = vadd.f32 %v18547_v55, %v754_v25  ;;  %15700 = vmatprep.subr.bf16.mxu0 %v15699_v21  ;;  %15710 = vmatprep.subr.bf16.mxu1 %v15699_v21  ;;  %v3255_v28 = vmax.f32 %v443_v17, %v553_v18  ;;  %v663_v29 = vmax.f32 %v649_v22, 0.0 }
  0xfd   : > { %v774_v30 = vmax.f32 %v760_v23, 0.0  ;;  %15702 = vmatpush3.bf16.msra.mxu0 %v15699_v21  ;;  %15712 = vmatpush3.bf16.msra.mxu1 %v15699_v21  ;;  %v662_v31 = vmax.f32 %v644_v26, 0.0  ;;  %v14588_v33 = vpop.f32.mrb[6].mxu0 }
  0xfe   : > { %v773_v32 = vmax.f32 %v755_v27, 0.0  ;;  %v14598_v34 = vpop.f32.mrb[6].mxu1  ;;  %v659_v35 = vadd.f32 %v14588_v33, %v18547_v55  ;;  %v653_v37 = vpop.f32.mrb[7].mxu0 }
  0xff   : > { %v770_v36 = vadd.f32 %v14598_v34, %v18547_v55  ;;  %v764_v38 = vpop.f32.mrb[7].mxu1  ;;  %v3437_v39 = vmax.f32 %v663_v29, %v774_v30  ;;  %v654_v40 = vadd.f32 %v18547_v55, %v653_v37 }
 0x100   : > { %v765_v41 = vadd.f32 %v18547_v55, %v764_v38  ;;  %v3436_v2 = vmax.f32 %v662_v31, %v773_v32  ;;  %v665_v42 = vmax.f32 %v659_v35, 0.0 }
 0x101   : > { %v776_v43 = vmax.f32 %v770_v36, 0.0  ;;  %v664_v44 = vmax.f32 %v654_v40, 0.0  ;;  %v3248_v46 = vld [vmem:[#allocation2 + $0x18] sm:$0x3]  ;;  %v14605_v57 = vpop.f32.mrb[8].mxu0 }
 0x102   : > { %v775_v45 = vmax.f32 %v765_v41, 0.0  ;;  %v3252_v47 = vld [vmem:[#allocation2 + $0x38] sm:$0x3]  ;;  %v15719_v49 = vpack.c.bf16 %v3437_v39, %v3436_v2  ;;  %670 = vst [vmem:[#allocation2 + $0x58] sm:$0x3] %v665_v42  ;;  %v14615_v58 = vpop.f32.mrb[8].mxu1  ;;  %v871_v61 = vadd.f32 %v14605_v57, %v18547_v55 }
 0x103   : > { %781 = vst [vmem:[#allocation2 + $0x78] sm:$0x3] %v776_v43  ;;  %v3256_v56 = vmax.f32 %v3248_v46, %v3252_v47  ;;  %v982_v62 = vadd.f32 %v14615_v58, %v18547_v55  ;;  %v865_v63 = vpop.f32.mrb[9].mxu0  ;;  %v976_v0 = vpop.f32.mrb[9].mxu1 }
 0x104   : > { %v3438_v60 = vmax.f32 %v664_v44, %v775_v45  ;;  %v866_v3 = vadd.f32 %v18547_v55, %v865_v63  ;;  %v977_v4 = vadd.f32 %v18547_v55, %v976_v0  ;;  %v885_v6 = vmax.f32 %v871_v61, 0.0 }
 0x105   : > { %v15703_v1 = vpack.c.bf16 %v3256_v56, %v3255_v28  ;;  %v996_v7 = vmax.f32 %v982_v62, 0.0  ;;  %v14608_v8 = vpop.f32.mrb[10].mxu0 }
 0x106   : > { %v14618_v9 = vpop.f32.mrb[10].mxu1  ;;  %v884_v10 = vmax.f32 %v866_v3, 0.0  ;;  %v995_v11 = vmax.f32 %v977_v4, 0.0  ;;  %v881_v12 = vadd.f32 %v14608_v8, %v18547_v55  ;;  %v875_v14 = vpop.f32.mrb[11].mxu0 }
 0x107   : > { %15705 = vmatprep.subr.msk.bf16.mxu0 %vm18566_vm8, %v15703_v1  ;;  %15715 = vmatprep.subr.msk.bf16.mxu1 %vm18566_vm8, %v15703_v1  ;;  %v992_v13 = vadd.f32 %v14618_v9, %v18547_v55  ;;  %v986_v54 = vpop.f32.mrb[11].mxu1  ;;  %v876_v16 = vadd.f32 %v18547_v55, %v875_v14  ;;  %v3607_v18 = vmax.f32 %v885_v6, %v996_v7 }
 0x108   : > { %15708 = vmatpush3.bf16.msk.msra.mxu0 %vm18566_vm8, %v15703_v1  ;;  %15718 = vmatpush3.bf16.msk.msra.mxu1 %vm18566_vm8, %v15703_v1  ;;  %v987_v17 = vadd.f32 %v18547_v55, %v986_v54  ;;  %v887_v19 = vmax.f32 %v881_v12, 0.0  ;;  %v3606_v21 = vmax.f32 %v884_v10, %v995_v11 }
 0x109   : > { %15720 = vmatprep.subr.bf16.mxu0 %v15719_v49  ;;  %15730 = vmatprep.subr.bf16.mxu1 %v15719_v49  ;;  %v998_v20 = vmax.f32 %v992_v13, 0.0  ;;  %v3431_v22 = vld [vmem:[#allocation2 + $0x58] sm:$0x3]  ;;  %v886_v24 = vmax.f32 %v876_v16, 0.0  ;;  %v14625_v26 = vpop.f32.mrb[12].mxu0 }
 0x10a   : > { %v3435_v23 = vld [vmem:[#allocation2 + $0x78] sm:$0x3]  ;;  %v997_v25 = vmax.f32 %v987_v17, 0.0  ;;  %892 = vst [vmem:[#allocation2 + $0x98] sm:$0x3] %v887_v19  ;;  %v15739_v50 = vpack.c.bf16 %v3607_v18, %v3606_v21  ;;  %v14635_v27 = vpop.f32.mrb[12].mxu1  ;;  %v1093_v29 = vadd.f32 %v14625_v26, %v18547_v55 }
 0x10b   : > { %14828 = vmatmul.mubr.msk.f32.vlgmr.msra.gmra.mrb[52].mxu0 %vm3257_vm2, %v18577_v5  ;;  %14839 = vmatmul.mubr.msk.f32.vlgmr.msra.gmra.mrb[52].mxu1 %vm3257_vm2, %v18593_v15  ;;  %v3439_v48 = vmax.f32 %v3431_v22, %v3435_v23  ;;  %1003 = vst [vmem:[#allocation2 + $0xb8] sm:$0x3] %v998_v20  ;;  %v1204_v30 = vadd.f32 %v14635_v27, %v18547_v55  ;;  %v1087_v31 = vpop.f32.mrb[13].mxu0  ;;  %v1198_v32 = vpop.f32.mrb[13].mxu1 }
 0x10c   : > { %15722 = vmatpush3.bf16.msra.mxu0 %v15719_v49  ;;  %15732 = vmatpush3.bf16.msra.mxu1 %v15719_v49  ;;  %v3608_v28 = vmax.f32 %v886_v24, %v997_v25  ;;  %v1088_v34 = vadd.f32 %v18547_v55, %v1087_v31  ;;  %v1199_v35 = vadd.f32 %v18547_v55, %v1198_v32  ;;  %v1107_v36 = vmax.f32 %v1093_v29, 0.0 }
 0x10d   : > { %v15723_v33 = vpack.c.bf16 %v3439_v48, %v3438_v60  ;;  %14849 = vmatprep.mubr.msk.f32.mxu0 %vm3257_vm2, %v18528_v52  ;;  %14860 = vmatprep.mubr.msk.f32.mxu1 %vm3257_vm2, %v18531_v53  ;;  %v1218_v37 = vmax.f32 %v1204_v30, 0.0  ;;  %v14628_v38 = vpop.f32.mrb[14].mxu0 }
 0x10e   : > { %v14638_v39 = vpop.f32.mrb[14].mxu1  ;;  %v1106_v40 = vmax.f32 %v1088_v34, 0.0  ;;  %v1217_v41 = vmax.f32 %v1199_v35, 0.0  ;;  %v1103_v2 = vadd.f32 %v14628_v38, %v18547_v55  ;;  %v1097_v43 = vpop.f32.mrb[15].mxu0 }
 0x10f   : > { %15725 = vmatprep.subr.msk.bf16.mxu0 %vm18566_vm8, %v15723_v33  ;;  %15735 = vmatprep.subr.msk.bf16.mxu1 %vm18566_vm8, %v15723_v33  ;;  %v1214_v42 = vadd.f32 %v14638_v39, %v18547_v55  ;;  %v1208_v44 = vpop.f32.mrb[15].mxu1  ;;  %v1098_v45 = vadd.f32 %v18547_v55, %v1097_v43  ;;  %v3777_v47 = vmax.f32 %v1107_v36, %v1218_v37 }
 0x110   : > { %15728 = vmatpush3.bf16.msk.msra.mxu0 %vm18566_vm8, %v15723_v33  ;;  %15738 = vmatpush3.bf16.msk.msra.mxu1 %vm18566_vm8, %v15723_v33  ;;  %v1209_v46 = vadd.f32 %v18547_v55, %v1208_v44  ;;  %v1109_v49 = vmax.f32 %v1103_v2, 0.0  ;;  %v3776_v57 = vmax.f32 %v1106_v40, %v1217_v41 }
 0x111   : > { %15740 = vmatprep.subr.bf16.mxu0 %v15739_v50  ;;  %15750 = vmatprep.subr.bf16.mxu1 %v15739_v50  ;;  %v1220_v56 = vmax.f32 %v1214_v42, 0.0  ;;  %v3601_v58 = vld [vmem:[#allocation2 + $0x98] sm:$0x3]  ;;  %v1108_v61 = vmax.f32 %v1098_v45, 0.0  ;;  %v14645_v0 = vpop.f32.mrb[16].mxu0 }
 0x112   : > { %v3605_v60 = vld [vmem:[#allocation2 + $0xb8] sm:$0x3]  ;;  %v1219_v62 = vmax.f32 %v1209_v46, 0.0  ;;  %1114 = vst [vmem:[#allocation2 + $0xd8] sm:$0x3] %v1109_v49  ;;  %v14655_v1 = vpop.f32.mrb[16].mxu1  ;;  %v15759_v3 = vpack.c.bf16 %v3777_v47, %v3776_v57  ;;  %v1315_v4 = vadd.f32 %v14645_v0, %v18547_v55 }
 0x113   : > { %14850 = vmatmul.mubr.msk.f32.vlgmr.msra.gmra.mrb[54].mxu0 %vm3257_vm2, %v18577_v5  ;;  %14861 = vmatmul.mubr.msk.f32.vlgmr.msra.gmra.mrb[54].mxu1 %vm3257_vm2, %v18593_v15  ;;  %v3609_v63 = vmax.f32 %v3601_v58, %v3605_v60  ;;  %1225 = vst [vmem:[#allocation2 + $0xf8] sm:$0x3] %v1220_v56  ;;  %v1426_v6 = vadd.f32 %v14655_v1, %v18547_v55  ;;  %v1309_v7 = vpop.f32.mrb[17].mxu0  ;;  %v1420_v8 = vpop.f32.mrb[17].mxu1 }
 0x114   : > { %15742 = vmatpush3.bf16.msra.mxu0 %v15739_v50  ;;  %15752 = vmatpush3.bf16.msra.mxu1 %v15739_v50  ;;  %v3778_v9 = vmax.f32 %v1108_v61, %v1219_v62  ;;  %v1310_v11 = vadd.f32 %v18547_v55, %v1309_v7  ;;  %v1421_v12 = vadd.f32 %v18547_v55, %v1420_v8  ;;  %v1329_v13 = vmax.f32 %v1315_v4, 0.0 }
 0x115   : > { %v15743_v10 = vpack.c.bf16 %v3609_v63, %v3608_v28  ;;  %14871 = vmatprep.mubr.msk.f32.mxu0 %vm3257_vm2, %v18528_v52  ;;  %14882 = vmatprep.mubr.msk.f32.mxu1 %vm3257_vm2, %v18531_v53  ;;  %v1440_v14 = vmax.f32 %v1426_v6, 0.0  ;;  %v14648_v54 = vpop.f32.mrb[18].mxu0 }
 0x116   : > { %v14658_v16 = vpop.f32.mrb[18].mxu1  ;;  %v1328_v17 = vmax.f32 %v1310_v11, 0.0  ;;  %v1439_v18 = vmax.f32 %v1421_v12, 0.0  ;;  %v1325_v19 = vadd.f32 %v14648_v54, %v18547_v55  ;;  %v1319_v21 = vpop.f32.mrb[19].mxu0 }
 0x117   : > { %15745 = vmatprep.subr.msk.bf16.mxu0 %vm18566_vm8, %v15743_v10  ;;  %15755 = vmatprep.subr.msk.bf16.mxu1 %vm18566_vm8, %v15743_v10  ;;  %v1436_v20 = vadd.f32 %v14658_v16, %v18547_v55  ;;  %v1430_v22 = vpop.f32.mrb[19].mxu1  ;;  %v1320_v23 = vadd.f32 %v18547_v55, %v1319_v21  ;;  %v3947_v25 = vmax.f32 %v1329_v13, %v1440_v14 }
 0x118   : > { %15748 = vmatpush3.bf16.msk.msra.mxu0 %vm18566_vm8, %v15743_v10  ;;  %15758 = vmatpush3.bf16.msk.msra.mxu1 %vm18566_vm8, %v15743_v10  ;;  %v1431_v24 = vadd.f32 %v18547_v55, %v1430_v22  ;;  %v1331_v48 = vmax.f32 %v1325_v19, 0.0  ;;  %v3946_v26 = vmax.f32 %v1328_v17, %v1439_v18 }
 0x119   : > { %v1442_v50 = vmax.f32 %v1436_v20, 0.0  ;;  %15760 = vmatprep.subr.bf16.mxu0 %v15759_v3  ;;  %15770 = vmatprep.subr.bf16.mxu1 %v15759_v3  ;;  %v1330_v27 = vmax.f32 %v1320_v23, 0.0  ;;  %v14665_v29 = vpop.f32.mrb[20].mxu0  ;;  %v3771_v31 = vld [vmem:[#allocation2 + $0xd8] sm:$0x3] }
 0x11a   : > { %v1441_v28 = vmax.f32 %v1431_v24, 0.0  ;;  %v14675_v30 = vpop.f32.mrb[20].mxu1  ;;  %1336 = vst [vmem:[#allocation2 + $0x118] sm:$0x3] %v1331_v48  ;;  %v1537_v32 = vadd.f32 %v14665_v29, %v18547_v55  ;;  %v1531_v34 = vpop.f32.mrb[21].mxu0  ;;  %v15779_v37 = vpack.c.bf16 %v3947_v25, %v3946_v26 }
 0x11b   : > { %14872 = vmatmul.mubr.msk.f32.vlgmr.msra.gmra.mrb[56].mxu0 %vm3257_vm2, %v18577_v5  ;;  %14883 = vmatmul.mubr.msk.f32.vlgmr.msra.gmra.mrb[56].mxu1 %vm3257_vm2, %v18593_v15  ;;  %1447 = vst [vmem:[#allocation2 + $0x138] sm:$0x3] %v1442_v50  ;;  %v1648_v33 = vadd.f32 %v14675_v30, %v18547_v55  ;;  %v1642_v35 = vpop.f32.mrb[21].mxu1  ;;  %v3775_v36 = vld [vmem:[#allocation2 + $0xf8] sm:$0x3]  ;;  %v1532_v38 = vadd.f32 %v18547_v55, %v1531_v34 }
 0x11c   : > { %v1643_v39 = vadd.f32 %v18547_v55, %v1642_v35  ;;  %15762 = vmatpush3.bf16.msra.mxu0 %v15759_v3  ;;  %15772 = vmatpush3.bf16.msra.mxu1 %v15759_v3  ;;  %v3779_v40 = vmax.f32 %v3771_v31, %v3775_v36  ;;  %v1551_v41 = vmax.f32 %v1537_v32, 0.0  ;;  %v3948_v42 = vmax.f32 %v1330_v27, %v1441_v28 }
 0x11d   : > { %v1662_v2 = vmax.f32 %v1648_v33, 0.0  ;;  %14893 = vmatprep.mubr.msk.f32.mxu0 %vm3257_vm2, %v18528_v52  ;;  %14904 = vmatprep.mubr.msk.f32.mxu1 %vm3257_vm2, %v18531_v53  ;;  %v1550_v43 = vmax.f32 %v1532_v38, 0.0  ;;  %v14668_v45 = vpop.f32.mrb[22].mxu0 }
 0x11e   : > { %v1661_v44 = vmax.f32 %v1643_v39, 0.0  ;;  %v14678_v46 = vpop.f32.mrb[22].mxu1  ;;  %v15763_v47 = vpack.c.bf16 %v3779_v40, %v3778_v9  ;;  %v1547_v49 = vadd.f32 %v14668_v45, %v18547_v55  ;;  %v1541_v57 = vpop.f32.mrb[23].mxu0 }
 0x11f   : > { %v1658_v56 = vadd.f32 %v14678_v46, %v18547_v55  ;;  %v1652_v58 = vpop.f32.mrb[23].mxu1  ;;  %v4117_v60 = vmax.f32 %v1551_v41, %v1662_v2  ;;  %v1542_v61 = vadd.f32 %v18547_v55, %v1541_v57 }
 0x120   : > { %v1653_v62 = vadd.f32 %v18547_v55, %v1652_v58  ;;  %15765 = vmatprep.subr.msk.bf16.mxu0 %vm18566_vm8, %v15763_v47  ;;  %15775 = vmatprep.subr.msk.bf16.mxu1 %vm18566_vm8, %v15763_v47  ;;  %v4116_v63 = vmax.f32 %v1550_v43, %v1661_v44  ;;  %v1553_v0 = vmax.f32 %v1547_v49, 0.0 }
 0x121   : > { %v1664_v1 = vmax.f32 %v1658_v56, 0.0  ;;  %15768 = vmatpush3.bf16.msk.msra.mxu0 %vm18566_vm8, %v15763_v47  ;;  %15778 = vmatpush3.bf16.msk.msra.mxu1 %vm18566_vm8, %v15763_v47  ;;  %v1552_v3 = vmax.f32 %v1542_v61, 0.0  ;;  %v14685_v6 = vpop.f32.mrb[24].mxu0  ;;  %v3941_v8 = vld [vmem:[#allocation2 + $0x118] sm:$0x3] }
 0x122   : > { %v1663_v4 = vmax.f32 %v1653_v62, 0.0  ;;  %v14695_v7 = vpop.f32.mrb[24].mxu1  ;;  %15780 = vmatprep.subr.bf16.mxu0 %v15779_v37  ;;  %15790 = vmatprep.subr.bf16.mxu1 %v15779_v37  ;;  %v15799_v9 = vpack.c.bf16 %v4117_v60, %v4116_v63  ;;  %1558 = vst [vmem:[#allocation2 + $0x158] sm:$0x3] %v1553_v0  ;;  %v1759_v10 = vadd.f32 %v14685_v6, %v18547_v55  ;;  %v1753_v12 = vpop.f32.mrb[25].mxu0 }
 0x123   : > { %1669 = vst [vmem:[#allocation2 + $0x178] sm:$0x3] %v1664_v1  ;;  %v1870_v11 = vadd.f32 %v14695_v7, %v18547_v55  ;;  %v1864_v13 = vpop.f32.mrb[25].mxu1  ;;  %v3945_v14 = vld [vmem:[#allocation2 + $0x138] sm:$0x3]  ;;  %v1754_v54 = vadd.f32 %v18547_v55, %v1753_v12 }
 0x124   : > { %v1865_v16 = vadd.f32 %v18547_v55, %v1864_v13  ;;  %14894 = vmatmul.mubr.msk.f32.vlgmr.msra.gmra.mrb[58].mxu0 %vm3257_vm2, %v18577_v5  ;;  %14905 = vmatmul.mubr.msk.f32.vlgmr.msra.gmra.mrb[58].mxu1 %vm3257_vm2, %v18593_v15  ;;  %v3949_v17 = vmax.f32 %v3941_v8, %v3945_v14  ;;  %v1773_v18 = vmax.f32 %v1759_v10, 0.0  ;;  %v4118_v20 = vmax.f32 %v1552_v3, %v1663_v4 }
 0x125   : > { %v1884_v19 = vmax.f32 %v1870_v11, 0.0  ;;  %15782 = vmatpush3.bf16.msra.mxu0 %v15779_v37  ;;  %15792 = vmatpush3.bf16.msra.mxu1 %v15779_v37  ;;  %v1772_v21 = vmax.f32 %v1754_v54, 0.0  ;;  %v14688_v23 = vpop.f32.mrb[26].mxu0 }
 0x126   : > { %v1883_v22 = vmax.f32 %v1865_v16, 0.0  ;;  %v14698_v24 = vpop.f32.mrb[26].mxu1  ;;  %v15783_v25 = vpack.c.bf16 %v3949_v17, %v3948_v42  ;;  %14915 = vmatprep.mubr.msk.f32.mxu0 %vm3257_vm2, %v18528_v52  ;;  %14926 = vmatprep.mubr.msk.f32.mxu1 %vm3257_vm2, %v18531_v53  ;;  %v1769_v48 = vadd.f32 %v14688_v23, %v18547_v55  ;;  %v1763_v26 = vpop.f32.mrb[27].mxu0 }
 0x127   : > { %v1880_v50 = vadd.f32 %v14698_v24, %v18547_v55  ;;  %v1874_v27 = vpop.f32.mrb[27].mxu1  ;;  %v4287_v28 = vmax.f32 %v1773_v18, %v1884_v19  ;;  %v1764_v29 = vadd.f32 %v18547_v55, %v1763_v26 }
 0x128   : > { %v1875_v30 = vadd.f32 %v18547_v55, %v1874_v27  ;;  %15785 = vmatprep.subr.msk.bf16.mxu0 %vm18566_vm8, %v15783_v25  ;;  %15795 = vmatprep.subr.msk.bf16.mxu1 %vm18566_vm8, %v15783_v25  ;;  %v4286_v31 = vmax.f32 %v1772_v21, %v1883_v22  ;;  %v1775_v32 = vmax.f32 %v1769_v48, 0.0 }
 0x129   : > { %v1886_v33 = vmax.f32 %v1880_v50, 0.0  ;;  %15788 = vmatpush3.bf16.msk.msra.mxu0 %vm18566_vm8, %v15783_v25  ;;  %15798 = vmatpush3.bf16.msk.msra.mxu1 %vm18566_vm8, %v15783_v25  ;;  %v1774_v34 = vmax.f32 %v1764_v29, 0.0  ;;  %v14705_v36 = vpop.f32.mrb[28].mxu0  ;;  %v4111_v38 = vld [vmem:[#allocation2 + $0x158] sm:$0x3] }
 0x12a   : > { %v1885_v35 = vmax.f32 %v1875_v30, 0.0  ;;  %v14715_v37 = vpop.f32.mrb[28].mxu1  ;;  %15800 = vmatprep.subr.bf16.mxu0 %v15799_v9  ;;  %15810 = vmatprep.subr.bf16.mxu1 %v15799_v9  ;;  %v15819_v39 = vpack.c.bf16 %v4287_v28, %v4286_v31  ;;  %1780 = vst [vmem:[#allocation2 + $0x198] sm:$0x3] %v1775_v32  ;;  %v1981_v40 = vadd.f32 %v14705_v36, %v18547_v55  ;;  %v1975_v2 = vpop.f32.mrb[29].mxu0 }
 0x12b   : > { %1891 = vst [vmem:[#allocation2 + $0x1b8] sm:$0x3] %v1886_v33  ;;  %v2092_v41 = vadd.f32 %v14715_v37, %v18547_v55  ;;  %v2086_v42 = vpop.f32.mrb[29].mxu1  ;;  %v4115_v43 = vld [vmem:[#allocation2 + $0x178] sm:$0x3]  ;;  %v1976_v44 = vadd.f32 %v18547_v55, %v1975_v2 }
 0x12c   : > { %v2087_v45 = vadd.f32 %v18547_v55, %v2086_v42  ;;  %14916 = vmatmul.mubr.msk.f32.vlgmr.msra.gmra.mrb[60].mxu0 %vm3257_vm2, %v18577_v5  ;;  %14927 = vmatmul.mubr.msk.f32.vlgmr.msra.gmra.mrb[60].mxu1 %vm3257_vm2, %v18593_v15  ;;  %v4119_v46 = vmax.f32 %v4111_v38, %v4115_v43  ;;  %v1995_v47 = vmax.f32 %v1981_v40, 0.0  ;;  %v4288_v56 = vmax.f32 %v1774_v34, %v1885_v35 }
 0x12d   : > { %v2106_v49 = vmax.f32 %v2092_v41, 0.0  ;;  %15802 = vmatpush3.bf16.msra.mxu0 %v15799_v9  ;;  %15812 = vmatpush3.bf16.msra.mxu1 %v15799_v9  ;;  %v1994_v57 = vmax.f32 %v1976_v44, 0.0  ;;  %v14708_v60 = vpop.f32.mrb[30].mxu0 }
 0x12e   : > { %v2105_v58 = vmax.f32 %v2087_v45, 0.0  ;;  %v14718_v61 = vpop.f32.mrb[30].mxu1  ;;  %v15803_v62 = vpack.c.bf16 %v4119_v46, %v4118_v20  ;;  %14937 = vmatprep.mubr.msk.f32.mxu0 %vm3257_vm2, %v18528_v52  ;;  %14948 = vmatprep.mubr.msk.f32.mxu1 %vm3257_vm2, %v18531_v53  ;;  %v1991_v63 = vadd.f32 %v14708_v60, %v18547_v55  ;;  %v1985_v1 = vpop.f32.mrb[31].mxu0 }
 0x12f   : > { %v2102_v0 = vadd.f32 %v14718_v61, %v18547_v55  ;;  %v2096_v3 = vpop.f32.mrb[31].mxu1  ;;  %v4457_v4 = vmax.f32 %v1995_v47, %v2106_v49  ;;  %v1986_v6 = vadd.f32 %v18547_v55, %v1985_v1 }
 0x130   : > { %v2097_v7 = vadd.f32 %v18547_v55, %v2096_v3  ;;  %15805 = vmatprep.subr.msk.bf16.mxu0 %vm18566_vm8, %v15803_v62  ;;  %15815 = vmatprep.subr.msk.bf16.mxu1 %vm18566_vm8, %v15803_v62  ;;  %v4456_v8 = vmax.f32 %v1994_v57, %v2105_v58  ;;  %v1997_v9 = vmax.f32 %v1991_v63, 0.0 }
 0x131   : > { %v2108_v10 = vmax.f32 %v2102_v0, 0.0  ;;  %15808 = vmatpush3.bf16.msk.msra.mxu0 %vm18566_vm8, %v15803_v62  ;;  %15818 = vmatpush3.bf16.msk.msra.mxu1 %vm18566_vm8, %v15803_v62  ;;  %v1996_v11 = vmax.f32 %v1986_v6, 0.0  ;;  %v14725_v13 = vpop.f32.mrb[32].mxu0  ;;  %v4281_v54 = vld [vmem:[#allocation2 + $0x198] sm:$0x3] }
 0x132   : > { %v2107_v12 = vmax.f32 %v2097_v7, 0.0  ;;  %v14735_v14 = vpop.f32.mrb[32].mxu1  ;;  %15820 = vmatprep.subr.bf16.mxu0 %v15819_v39  ;;  %15830 = vmatprep.subr.bf16.mxu1 %v15819_v39  ;;  %v15839_v16 = vpack.c.bf16 %v4457_v4, %v4456_v8  ;;  %2002 = vst [vmem:[#allocation2 + $0x1d8] sm:$0x3] %v1997_v9  ;;  %v2203_v17 = vadd.f32 %v14725_v13, %v18547_v55  ;;  %v2197_v19 = vpop.f32.mrb[33].mxu0 }
 0x133   : > { %2113 = vst [vmem:[#allocation2 + $0x1f8] sm:$0x3] %v2108_v10  ;;  %v2314_v18 = vadd.f32 %v14735_v14, %v18547_v55  ;;  %v2308_v20 = vpop.f32.mrb[33].mxu1  ;;  %v4285_v21 = vld [vmem:[#allocation2 + $0x1b8] sm:$0x3]  ;;  %v2198_v22 = vadd.f32 %v18547_v55, %v2197_v19 }
 0x134   : > { %v2309_v23 = vadd.f32 %v18547_v55, %v2308_v20  ;;  %14938 = vmatmul.mubr.msk.f32.vlgmr.msra.gmra.mrb[62].mxu0 %vm3257_vm2, %v18577_v5  ;;  %14949 = vmatmul.mubr.msk.f32.vlgmr.msra.gmra.mrb[62].mxu1 %vm3257_vm2, %v18593_v15  ;;  %v4289_v24 = vmax.f32 %v4281_v54, %v4285_v21  ;;  %v2217_v25 = vmax.f32 %v2203_v17, 0.0  ;;  %v4458_v50 = vmax.f32 %v1996_v11, %v2107_v12 }
 0x135   : > { %v2328_v48 = vmax.f32 %v2314_v18, 0.0  ;;  %15822 = vmatpush3.bf16.msra.mxu0 %v15819_v39  ;;  %15832 = vmatpush3.bf16.msra.mxu1 %v15819_v39  ;;  %v2216_v26 = vmax.f32 %v2198_v22, 0.0  ;;  %v14728_v28 = vpop.f32.mrb[34].mxu0 }
 0x136   : > { %v2327_v27 = vmax.f32 %v2309_v23, 0.0  ;;  %v14738_v29 = vpop.f32.mrb[34].mxu1  ;;  %v15823_v30 = vpack.c.bf16 %v4289_v24, %v4288_v56  ;;  %14959 = vmatprep.mubr.msk.f32.mxu0 %vm3257_vm2, %v18528_v52  ;;  %14970 = vmatprep.mubr.msk.f32.mxu1 %vm3257_vm2, %v18531_v53  ;;  %v2213_v31 = vadd.f32 %v14728_v28, %v18547_v55  ;;  %v2207_v33 = vpop.f32.mrb[35].mxu0 }
 0x137   : > { %v2324_v32 = vadd.f32 %v14738_v29, %v18547_v55  ;;  %v2318_v34 = vpop.f32.mrb[35].mxu1  ;;  %v4627_v35 = vmax.f32 %v2217_v25, %v2328_v48  ;;  %v2208_v36 = vadd.f32 %v18547_v55, %v2207_v33 }
 0x138   : > { %v2319_v37 = vadd.f32 %v18547_v55, %v2318_v34  ;;  %15825 = vmatprep.subr.msk.bf16.mxu0 %vm18566_vm8, %v15823_v30  ;;  %15835 = vmatprep.subr.msk.bf16.mxu1 %vm18566_vm8, %v15823_v30  ;;  %v4626_v38 = vmax.f32 %v2216_v26, %v2327_v27  ;;  %v2219_v39 = vmax.f32 %v2213_v31, 0.0 }
 0x139   : > { %v2330_v40 = vmax.f32 %v2324_v32, 0.0  ;;  %15828 = vmatpush3.bf16.msk.msra.mxu0 %vm18566_vm8, %v15823_v30  ;;  %15838 = vmatpush3.bf16.msk.msra.mxu1 %vm18566_vm8, %v15823_v30  ;;  %v2218_v41 = vmax.f32 %v2208_v36, 0.0  ;;  %v14745_v42 = vpop.f32.mrb[36].mxu0  ;;  %v4451_v44 = vld [vmem:[#allocation2 + $0x1d8] sm:$0x3] }
 0x13a   : > { %v2329_v2 = vmax.f32 %v2319_v37, 0.0  ;;  %v14755_v43 = vpop.f32.mrb[36].mxu1  ;;  %15840 = vmatprep.subr.bf16.mxu0 %v15839_v16  ;;  %15850 = vmatprep.subr.bf16.mxu1 %v15839_v16  ;;  %v15859_v45 = vpack.c.bf16 %v4627_v35, %v4626_v38  ;;  %2224 = vst [vmem:[#allocation2 + $0x218] sm:$0x3] %v2219_v39  ;;  %v2425_v46 = vadd.f32 %v14745_v42, %v18547_v55  ;;  %v2419_v49 = vpop.f32.mrb[37].mxu0 }
 0x13b   : > { %2335 = vst [vmem:[#allocation2 + $0x238] sm:$0x3] %v2330_v40  ;;  %v2536_v47 = vadd.f32 %v14755_v43, %v18547_v55  ;;  %v2530_v56 = vpop.f32.mrb[37].mxu1  ;;  %v4455_v57 = vld [vmem:[#allocation2 + $0x1f8] sm:$0x3]  ;;  %v2420_v58 = vadd.f32 %v18547_v55, %v2419_v49 }
 0x13c   : > { %v2531_v60 = vadd.f32 %v18547_v55, %v2530_v56  ;;  %14960 = vmatmul.mubr.msk.f32.vlgmr.msra.gmra.mrb[64].mxu0 %vm3257_vm2, %v18577_v5  ;;  %14971 = vmatmul.mubr.msk.f32.vlgmr.msra.gmra.mrb[64].mxu1 %vm3257_vm2, %v18593_v15  ;;  %v4459_v61 = vmax.f32 %v4451_v44, %v4455_v57  ;;  %v2439_v62 = vmax.f32 %v2425_v46, 0.0  ;;  %v4628_v0 = vmax.f32 %v2218_v41, %v2329_v2 }
 0x13d   : > { %v2550_v63 = vmax.f32 %v2536_v47, 0.0  ;;  %15842 = vmatpush3.bf16.msra.mxu0 %v15839_v16  ;;  %15852 = vmatpush3.bf16.msra.mxu1 %v15839_v16  ;;  %v2438_v1 = vmax.f32 %v2420_v58, 0.0  ;;  %v14748_v4 = vpop.f32.mrb[38].mxu0 }
 0x13e   : > { %v2549_v3 = vmax.f32 %v2531_v60, 0.0  ;;  %v14758_v6 = vpop.f32.mrb[38].mxu1  ;;  %v15843_v7 = vpack.c.bf16 %v4459_v61, %v4458_v50  ;;  %14981 = vmatprep.mubr.msk.f32.mxu0 %vm3257_vm2, %v18528_v52  ;;  %14992 = vmatprep.mubr.msk.f32.mxu1 %vm3257_vm2, %v18531_v53  ;;  %v2435_v8 = vadd.f32 %v14748_v4, %v18547_v55  ;;  %v2429_v10 = vpop.f32.mrb[39].mxu0 }
 0x13f   : > { %v2546_v9 = vadd.f32 %v14758_v6, %v18547_v55  ;;  %v2540_v11 = vpop.f32.mrb[39].mxu1  ;;  %v4797_v12 = vmax.f32 %v2439_v62, %v2550_v63  ;;  %v2430_v13 = vadd.f32 %v18547_v55, %v2429_v10 }
 0x140   : > { %v2541_v14 = vadd.f32 %v18547_v55, %v2540_v11  ;;  %15845 = vmatprep.subr.msk.bf16.mxu0 %vm18566_vm8, %v15843_v7  ;;  %15855 = vmatprep.subr.msk.bf16.mxu1 %vm18566_vm8, %v15843_v7  ;;  %v4796_v54 = vmax.f32 %v2438_v1, %v2549_v3  ;;  %v2441_v16 = vmax.f32 %v2435_v8, 0.0 }
 0x141   : > { %v2552_v17 = vmax.f32 %v2546_v9, 0.0  ;;  %15848 = vmatpush3.bf16.msk.msra.mxu0 %vm18566_vm8, %v15843_v7  ;;  %15858 = vmatpush3.bf16.msk.msra.mxu1 %vm18566_vm8, %v15843_v7  ;;  %v2440_v18 = vmax.f32 %v2430_v13, 0.0  ;;  %v14765_v20 = vpop.f32.mrb[40].mxu0  ;;  %v4621_v22 = vld [vmem:[#allocation2 + $0x218] sm:$0x3] }
 0x142   : > { %v2551_v19 = vmax.f32 %v2541_v14, 0.0  ;;  %v14775_v21 = vpop.f32.mrb[40].mxu1  ;;  %15860 = vmatprep.subr.bf16.mxu0 %v15859_v45  ;;  %15870 = vmatprep.subr.bf16.mxu1 %v15859_v45  ;;  %v15879_v23 = vpack.c.bf16 %v4797_v12, %v4796_v54  ;;  %2446 = vst [vmem:[#allocation2 + $0x258] sm:$0x3] %v2441_v16  ;;  %v2647_v24 = vadd.f32 %v14765_v20, %v18547_v55  ;;  %v2641_v48 = vpop.f32.mrb[41].mxu0 }
 0x143   : > { %2557 = vst [vmem:[#allocation2 + $0x278] sm:$0x3] %v2552_v17  ;;  %v2758_v25 = vadd.f32 %v14775_v21, %v18547_v55  ;;  %v2752_v50 = vpop.f32.mrb[41].mxu1  ;;  %v4625_v26 = vld [vmem:[#allocation2 + $0x238] sm:$0x3]  ;;  %v2642_v27 = vadd.f32 %v18547_v55, %v2641_v48 }
 0x144   : > { %v2753_v28 = vadd.f32 %v18547_v55, %v2752_v50  ;;  %14982 = vmatmul.mubr.msk.f32.vlgmr.msra.gmra.mrb[66].mxu0 %vm3257_vm2, %v18577_v5  ;;  %14993 = vmatmul.mubr.msk.f32.vlgmr.msra.gmra.mrb[66].mxu1 %vm3257_vm2, %v18593_v15  ;;  %v4629_v29 = vmax.f32 %v4621_v22, %v4625_v26  ;;  %v2661_v30 = vmax.f32 %v2647_v24, 0.0  ;;  %v4798_v32 = vmax.f32 %v2440_v18, %v2551_v19  ;;  %v18780_v55 = vld [vmem:[%s21907_s2] ss:$0 sm:$0xff] }
 0x145   : > { %v2772_v31 = vmax.f32 %v2758_v25, 0.0  ;;  %15862 = vmatpush3.bf16.msra.mxu0 %v15859_v45  ;;  %15872 = vmatpush3.bf16.msra.mxu1 %v15859_v45  ;;  %v2660_v33 = vmax.f32 %v2642_v27, 0.0  ;;  %v14768_v35 = vpop.f32.mrb[42].mxu0 }
 0x146   : > { %v2771_v34 = vmax.f32 %v2753_v28, 0.0  ;;  %v14778_v36 = vpop.f32.mrb[42].mxu1  ;;  %v15863_v37 = vpack.c.bf16 %v4629_v29, %v4628_v0  ;;  %15003 = vmatprep.mubr.msk.f32.mxu0 %vm3257_vm2, %v18528_v52  ;;  %15014 = vmatprep.mubr.msk.f32.mxu1 %vm3257_vm2, %v18531_v53  ;;  %v2657_v38 = vadd.f32 %v18780_v55, %v14768_v35  ;;  %v2651_v40 = vpop.f32.mrb[43].mxu0 }
 0x147   : > { %v2768_v39 = vadd.f32 %v18780_v55, %v14778_v36  ;;  %v2762_v41 = vpop.f32.mrb[43].mxu1  ;;  %v4967_v2 = vmax.f32 %v2661_v30, %v2772_v31  ;;  %v2652_v42 = vadd.f32 %v18780_v55, %v2651_v40 }
 0x148   : > { %v2763_v43 = vadd.f32 %v18780_v55, %v2762_v41  ;;  %15865 = vmatprep.subr.msk.bf16.mxu0 %vm18566_vm8, %v15863_v37  ;;  %15875 = vmatprep.subr.msk.bf16.mxu1 %vm18566_vm8, %v15863_v37  ;;  %v4966_v44 = vmax.f32 %v2660_v33, %v2771_v34  ;;  %v2663_v45 = vmax.f32 %v2657_v38, 0.0 }
 0x149   : > { %v2774_v46 = vmax.f32 %v2768_v39, 0.0  ;;  %15868 = vmatpush3.bf16.msk.msra.mxu0 %vm18566_vm8, %v15863_v37  ;;  %15878 = vmatpush3.bf16.msk.msra.mxu1 %vm18566_vm8, %v15863_v37  ;;  %v2662_v47 = vmax.f32 %v2652_v42, 0.0  ;;  %v14785_v56 = vpop.f32.mrb[44].mxu0  ;;  %v4791_v58 = vld [vmem:[#allocation2 + $0x258] sm:$0x3] }
 0x14a   : > { %v2773_v49 = vmax.f32 %v2763_v43, 0.0  ;;  %v14795_v57 = vpop.f32.mrb[44].mxu1  ;;  %15880 = vmatprep.subr.bf16.mxu0 %v15879_v23  ;;  %15890 = vmatprep.subr.bf16.mxu1 %v15879_v23  ;;  %v15899_v60 = vpack.c.bf16 %v4967_v2, %v4966_v44  ;;  %2668 = vst [vmem:[#allocation2 + $0x298] sm:$0x3] %v2663_v45  ;;  %v2869_v61 = vadd.f32 %v18780_v55, %v14785_v56  ;;  %v2863_v63 = vpop.f32.mrb[45].mxu0 }
 0x14b   : > { %2779 = vst [vmem:[#allocation2 + $0x2b8] sm:$0x3] %v2774_v46  ;;  %v2980_v62 = vadd.f32 %v18780_v55, %v14795_v57  ;;  %v2974_v0 = vpop.f32.mrb[45].mxu1  ;;  %v4795_v1 = vld [vmem:[#allocation2 + $0x278] sm:$0x3]  ;;  %v2864_v3 = vadd.f32 %v18780_v55, %v2863_v63 }
 0x14c   : > { %v2975_v4 = vadd.f32 %v18780_v55, %v2974_v0  ;;  %15004 = vmatmul.mubr.msk.f32.vlgmr.msra.gmra.mrb[68].mxu0 %vm3257_vm2, %v18577_v5  ;;  %15015 = vmatmul.mubr.msk.f32.vlgmr.msra.gmra.mrb[68].mxu1 %vm3257_vm2, %v18593_v15  ;;  %v4799_v6 = vmax.f32 %v4791_v58, %v4795_v1  ;;  %v2883_v7 = vmax.f32 %v2869_v61, 0.0  ;;  %v4968_v9 = vmax.f32 %v2662_v47, %v2773_v49 }
 0x14d   : > { %v2994_v8 = vmax.f32 %v2980_v62, 0.0  ;;  %15882 = vmatpush3.bf16.msra.mxu0 %v15879_v23  ;;  %15892 = vmatpush3.bf16.msra.mxu1 %v15879_v23  ;;  %v2882_v10 = vmax.f32 %v2864_v3, 0.0  ;;  %v14788_v12 = vpop.f32.mrb[46].mxu0 }
 0x14e   : > { %v2993_v11 = vmax.f32 %v2975_v4, 0.0  ;;  %v14798_v13 = vpop.f32.mrb[46].mxu1  ;;  %v15883_v14 = vpack.c.bf16 %v4799_v6, %v4798_v32  ;;  %15025 = vmatprep.mubr.msk.f32.mxu0 %vm3257_vm2, %v18528_v52  ;;  %15036 = vmatprep.mubr.msk.f32.mxu1 %vm3257_vm2, %v18531_v53  ;;  %v2879_v54 = vadd.f32 %v18780_v55, %v14788_v12  ;;  %v2873_v17 = vpop.f32.mrb[47].mxu0  ;;  %v5516_v12 = vld [vmem:[%s21908_s3 + $0x180] sm:$0xff] }
 0x14f   : > { %v2990_v16 = vadd.f32 %v18780_v55, %v14798_v13  ;;  %v2984_v18 = vpop.f32.mrb[47].mxu1  ;;  %v5137_v19 = vmax.f32 %v2883_v7, %v2994_v8  ;;  %v2874_v20 = vadd.f32 %v18780_v55, %v2873_v17  ;;  %v5517_v13 = vld [vmem:[%s21908_s3 + $0x188] sm:$0xff] }
 0x150   : > { %v2985_v21 = vadd.f32 %v18780_v55, %v2984_v18  ;;  %15885 = vmatprep.subr.msk.bf16.mxu0 %vm18566_vm8, %v15883_v14  ;;  %15895 = vmatprep.subr.msk.bf16.mxu1 %vm18566_vm8, %v15883_v14  ;;  %v5136_v22 = vmax.f32 %v2882_v10, %v2993_v11  ;;  %v2885_v23 = vmax.f32 %v2879_v54, 0.0  ;;  %v5485_v11 = vld [vmem:[%s21908_s3 + $0x88] sm:$0xff]  ;;  %v5468_v54 = vld [vmem:[%s21908_s3] sm:$0xff]  ;;  %v5486_v18 = vld [vmem:[%s21908_s3 + $0x90] sm:$0xff] }
 0x151   : > { %v2996_v24 = vmax.f32 %v2990_v16, 0.0  ;;  %15888 = vmatpush3.bf16.msk.msra.mxu0 %vm18566_vm8, %v15883_v14  ;;  %15898 = vmatpush3.bf16.msk.msra.mxu1 %vm18566_vm8, %v15883_v14  ;;  %v2884_v25 = vmax.f32 %v2874_v20, 0.0  ;;  %v14805_v50 = vpop.f32.mrb[48].mxu0  ;;  %v4961_v27 = vld [vmem:[#allocation2 + $0x298] sm:$0x3]  ;;  %v5469_v16 = vld [vmem:[%s21908_s3 + $0x8] sm:$0xff] }
 0x152   : > { %v2995_v48 = vmax.f32 %v2985_v21, 0.0  ;;  %v14815_v26 = vpop.f32.mrb[48].mxu1  ;;  %15900 = vmatprep.subr.bf16.mxu0 %v15899_v60  ;;  %15910 = vmatprep.subr.bf16.mxu1 %v15899_v60  ;;  %v15919_v28 = vpack.c.bf16 %v5137_v19, %v5136_v22  ;;  %2890 = vst [vmem:[#allocation2 + $0x2d8] sm:$0x3] %v2885_v23  ;;  %v3091_v29 = vadd.f32 %v18780_v55, %v14805_v50  ;;  %v3085_v31 = vpop.f32.mrb[49].mxu0  ;;  %v5500_v20 = vld [vmem:[%s21908_s3 + $0x100] sm:$0xff] }
 0x153   : > { %3001 = vst [vmem:[#allocation2 + $0x2f8] sm:$0x3] %v2996_v24  ;;  %v3202_v30 = vadd.f32 %v18780_v55, %v14815_v26  ;;  %v3196_v32 = vpop.f32.mrb[49].mxu1  ;;  %v4965_v33 = vld [vmem:[#allocation2 + $0x2b8] sm:$0x3]  ;;  %v3086_v34 = vadd.f32 %v18780_v55, %v3085_v31  ;;  %v18889_v19 = vpack.c.bf16 %v5517_v13, %v5516_v12  ;;  %v5501_v21 = vld [vmem:[%s21908_s3 + $0x108] sm:$0xff] }
 0x154   : > { %v3197_v35 = vadd.f32 %v18780_v55, %v3196_v32  ;;  %15026 = vmatmul.mubr.msk.f32.vlgmr.msra.gmra.mrb[70].mxu0 %vm3257_vm2, %v18577_v5  ;;  %15037 = vmatmul.mubr.msk.f32.vlgmr.msra.gmra.mrb[70].mxu1 %vm3257_vm2, %v18593_v15  ;;  %v4969_v36 = vmax.f32 %v4961_v27, %v4965_v33  ;;  %v3105_v37 = vmax.f32 %v3091_v29, 0.0  ;;  %v5138_v39 = vmax.f32 %v2884_v25, %v2995_v48  ;;  %v5487_v22 = vld [vmem:[%s21908_s3 + $0x98] sm:$0xff]  ;;  %v5518_v23 = vld [vmem:[%s21908_s3 + $0x190] sm:$0xff]  ;;  %v5489_v31 = vld [vmem:[%s21908_s3 + $0xa8] sm:$0xff] }
 0x155   : > { %v3216_v38 = vmax.f32 %v3202_v30, 0.0  ;;  %15902 = vmatpush3.bf16.msra.mxu0 %v15899_v60  ;;  %15912 = vmatpush3.bf16.msra.mxu1 %v15899_v60  ;;  %v3104_v40 = vmax.f32 %v3086_v34, 0.0  ;;  %v14808_v2 = vpop.f32.mrb[50].mxu0  ;;  %v5519_v24 = vld [vmem:[%s21908_s3 + $0x198] sm:$0xff]  ;;  %v18914_v25 = vpack.c.bf16 %v5469_v16, %v5468_v54  ;;  %v5470_v48 = vld [vmem:[%s21908_s3 + $0x10] sm:$0xff]  ;;  %v18922_v26 = vpack.c.bf16 %v5501_v21, %v5500_v20  ;;  %v5520_v32 = vld [vmem:[%s21908_s3 + $0x1a0] sm:$0xff] }
 0x156   : > { %v3215_v41 = vmax.f32 %v3197_v35, 0.0  ;;  %v14818_v42 = vpop.f32.mrb[50].mxu1  ;;  %v15903_v43 = vpack.c.bf16 %v4969_v36, %v4968_v9  ;;  %15047 = vmatprep.mubr.msk.f32.mxu0 %vm3257_vm2, %v18528_v52  ;;  %15058 = vmatprep.mubr.msk.f32.mxu1 %vm3257_vm2, %v18531_v53  ;;  %v3101_v44 = vadd.f32 %v18780_v55, %v14808_v2  ;;  %v3095_v46 = vpop.f32.mrb[51].mxu0  ;;  %v5484_v9 = vld [vmem:[%s21908_s3 + $0x80] sm:$0xff]  ;;  %v5471_v50 = vld [vmem:[%s21908_s3 + $0x18] sm:$0xff]  ;;  %v18925_v27 = vpack.c.bf16 %v5487_v22, %v5486_v18  ;;  %v5502_v29 = vld [vmem:[%s21908_s3 + $0x110] sm:$0xff] }
 0x157   : > { %v3212_v45 = vadd.f32 %v18780_v55, %v14818_v42  ;;  %v3206_v47 = vpop.f32.mrb[51].mxu1  ;;  %v5307_v49 = vmax.f32 %v3105_v37, %v3216_v38  ;;  %v3096_v56 = vadd.f32 %v18780_v55, %v3095_v46  ;;  %v18884_v17 = vpack.c.bf16 %v5485_v11, %v5484_v9  ;;  %22148 = vst [vmem:[#allocation11_spill] sm:$0xff] %v18914_v25  ;;  %v5503_v30 = vld [vmem:[%s21908_s3 + $0x118] sm:$0xff]  ;;  %v5521_v33 = vld [vmem:[%s21908_s3 + $0x1a8] sm:$0xff]  ;;  %v5472_v35 = vld [vmem:[%s21908_s3 + $0x20] sm:$0xff] }
 0x158   : > { %v3207_v57 = vadd.f32 %v18780_v55, %v3206_v47  ;;  %15905 = vmatprep.subr.msk.bf16.mxu0 %vm18566_vm8, %v15903_v43  ;;  %15915 = vmatprep.subr.msk.bf16.mxu1 %vm18566_vm8, %v15903_v43  ;;  %v5306_v58 = vmax.f32 %v3104_v40, %v3215_v41  ;;  %v3107_v60 = vmax.f32 %v3101_v44, 0.0  ;;  %22149 = vst [vmem:[#allocation12_spill] sm:$0xff] %v18925_v27  ;;  %v5473_v36 = vld [vmem:[%s21908_s3 + $0x28] sm:$0xff]  ;;  %v5491_v41 = vld [vmem:[%s21908_s3 + $0xb8] sm:$0xff]  ;;  %v5522_v2 = vld [vmem:[%s21908_s3 + $0x1b0] sm:$0xff] }
 0x159   : > { %v3218_v61 = vmax.f32 %v3212_v45, 0.0  ;;  %15908 = vmatpush3.bf16.msk.msra.mxu0 %vm18566_vm8, %v15903_v43  ;;  %15918 = vmatpush3.bf16.msk.msra.mxu1 %vm18566_vm8, %v15903_v43  ;;  %v3106_v62 = vmax.f32 %v3096_v56, 0.0  ;;  %v5131_v55 = vld [vmem:[#allocation2 + $0x2d8] sm:$0x3]  ;;  %22147 = vst [vmem:[#allocation10_spill] sm:$0xff] %v18884_v17  ;;  %v18953_v34 = vpack.c.bf16 %v5471_v50, %v5470_v48  ;;  %v18962_v37 = vpack.c.bf16 %v5503_v30, %v5502_v29  ;;  %v5505_v40 = vld [vmem:[%s21908_s3 + $0x128] sm:$0xff] }
 0x15a   : > { %v3217_v63 = vmax.f32 %v3207_v57, 0.0  ;;  %15920 = vmatprep.subr.bf16.mxu0 %v15919_v28  ;;  %15930 = vmatprep.subr.bf16.mxu1 %v15919_v28  ;;  %v5135_v0 = vld [vmem:[#allocation2 + $0x2f8] sm:$0x3]  ;;  %v15939_v1 = vpack.c.bf16 %v5307_v49, %v5306_v58  ;;  %3112 = vst [vmem:[#allocation2 + $0x318] sm:$0x3] %v3107_v60  ;;  %v18971_v38 = vpack.c.bf16 %v5521_v33, %v5520_v32  ;;  %v5474_v44 = vld [vmem:[%s21908_s3 + $0x30] sm:$0xff] }
 0x15b   : > { %3223 = vst [vmem:[#allocation2 + $0x338] sm:$0x3] %v3218_v61  ;;  %v5139_v3 = vmax.f32 %v5131_v55, %v5135_v0  ;;  %22150 = vst [vmem:[#allocation13_spill] sm:$0xff] %v18953_v34  ;;  %v5523_v42 = vld [vmem:[%s21908_s3 + $0x1b8] sm:$0xff]  ;;  %v18989_v43 = vpack.c.bf16 %v5473_v36, %v5472_v35  ;;  %v5492_v49 = vld [vmem:[%s21908_s3 + $0xc0] sm:$0xff] }
 0x15c   : > { %15048 = vmatmul.mubr.msk.f32.vlgmr.msra.gmra.mrb[72].mxu0 %vm3257_vm2, %v18577_v5  ;;  %15059 = vmatmul.mubr.msk.f32.vlgmr.msra.gmra.mrb[72].mxu1 %vm3257_vm2, %v18593_v15  ;;  %v5308_v4 = vmax.f32 %v3106_v62, %v3217_v63  ;;  %v5475_v45 = vld [vmem:[%s21908_s3 + $0x38] sm:$0xff]  ;;  %v19007_v56 = vpack.c.bf16 %v5523_v42, %v5522_v2  ;;  %v5506_v57 = vld [vmem:[%s21908_s3 + $0x130] sm:$0xff]  ;;  %v5493_v60 = vld [vmem:[%s21908_s3 + $0xc8] sm:$0xff] }
 0x15d   : > { %15922 = vmatpush3.bf16.msra.mxu0 %v15919_v28  ;;  %15932 = vmatpush3.bf16.msra.mxu1 %v15919_v28  ;;  %v15923_v6 = vpack.c.bf16 %v5139_v3, %v5138_v39  ;;  %v18931_v28 = vpack.c.bf16 %v5519_v24, %v5518_v23  ;;  %v5504_v39 = vld [vmem:[%s21908_s3 + $0x120] sm:$0xff]  ;;  %v5507_v58 = vld [vmem:[%s21908_s3 + $0x138] sm:$0xff]  ;;  %v5525_v62 = vld [vmem:[%s21908_s3 + $0x1c8] sm:$0xff]  ;;  %v19025_v63 = vpack.c.bf16 %v5475_v45, %v5474_v44 }
 0x15e   : > { %15069 = vmatprep.mubr.msk.f32.mxu0 %vm3257_vm2, %v18528_v52  ;;  %15080 = vmatprep.mubr.msk.f32.mxu1 %vm3257_vm2, %v18531_v53  ;;  %v18998_v46 = vpack.c.bf16 %v5505_v40, %v5504_v39  ;;  %v5524_v61 = vld [vmem:[%s21908_s3 + $0x1c0] sm:$0xff]  ;;  %v5477_v0 = vld [vmem:[%s21908_s3 + $0x48] sm:$0xff]  ;;  %v19037_v3 = vpack.c.bf16 %v5493_v60, %v5492_v49  ;;  %v5495_v9 = vld [vmem:[%s21908_s3 + $0xd8] sm:$0xff] }
 0x15f   : > { %15925 = vmatprep.subr.msk.bf16.mxu0 %vm18566_vm8, %v15923_v6  ;;  %15935 = vmatprep.subr.msk.bf16.mxu1 %vm18566_vm8, %v15923_v6  ;;  %v5476_v55 = vld [vmem:[%s21908_s3 + $0x40] sm:$0xff]  ;;  %v5527_v11 = vld [vmem:[%s21908_s3 + $0x1d8] sm:$0xff]  ;;  %v5478_v13 = vld [vmem:[%s21908_s3 + $0x50] sm:$0xff] }
 0x160   : > { %22153 = vst [vmem:[#allocation16_spill] sm:$0xff] %v19037_v3  ;;  %v19061_v12 = vpack.c.bf16 %v5477_v0, %v5476_v55  ;;  %v5496_v18 = vld [vmem:[%s21908_s3 + $0xe0] sm:$0xff]  ;;  %v5510_v21 = vld [vmem:[%s21908_s3 + $0x150] sm:$0xff]  ;;  %v5511_v22 = vld [vmem:[%s21908_s3 + $0x158] sm:$0xff] }
 0x161   : > { %15928 = vmatpush3.bf16.msk.msra.mxu0 %vm18566_vm8, %v15923_v6  ;;  %15938 = vmatpush3.bf16.msk.msra.mxu1 %vm18566_vm8, %v15923_v6  ;;  %v5301_v7 = vld [vmem:[#allocation2 + $0x318] sm:$0x3]  ;;  %v19043_v6 = vpack.c.bf16 %v5525_v62, %v5524_v61  ;;  %v5497_v23 = vld [vmem:[%s21908_s3 + $0xe8] sm:$0xff]  ;;  %v5528_v24 = vld [vmem:[%s21908_s3 + $0x1e0] sm:$0xff]  ;;  %v19106_v30 = vpack.c.bf16 %v5511_v22, %v5510_v21 }
 0x162   : > { %15940 = vmatprep.subr.bf16.mxu0 %v15939_v1  ;;  %15950 = vmatprep.subr.bf16.mxu1 %v15939_v1  ;;  %v5305_v8 = vld [vmem:[#allocation2 + $0x338] sm:$0x3]  ;;  %22154 = vst [vmem:[#allocation17_spill] sm:$0xff] %v19061_v12  ;;  %v5529_v48 = vld [vmem:[%s21908_s3 + $0x1e8] sm:$0xff]  ;;  %v5498_v32 = vld [vmem:[%s21908_s3 + $0xf0] sm:$0xff] }
 0x163   : > { %v5309_v10 = vmax.f32 %v5301_v7, %v5305_v8  ;;  %v5508_v7 = vld [vmem:[%s21908_s3 + $0x140] sm:$0xff]  ;;  %v5509_v8 = vld [vmem:[%s21908_s3 + $0x148] sm:$0xff]  ;;  %v19115_v33 = vpack.c.bf16 %v5529_v48, %v5528_v24  ;;  %v5530_v39 = vld [vmem:[%s21908_s3 + $0x1f0] sm:$0xff] }
 0x164   : > { %15070 = vmatmul.mubr.msk.f32.vlgmr.msra.gmra.mrb[74].mxu0 %vm3257_vm2, %v18577_v5  ;;  %15081 = vmatmul.mubr.msk.f32.vlgmr.msra.gmra.mrb[74].mxu1 %vm3257_vm2, %v18593_v15  ;;  %v19070_v54 = vpack.c.bf16 %v5509_v8, %v5508_v7  ;;  %v5481_v29 = vld [vmem:[%s21908_s3 + $0x68] sm:$0xff]  ;;  %v5512_v35 = vld [vmem:[%s21908_s3 + $0x160] sm:$0xff]  ;;  %v5531_v40 = vld [vmem:[%s21908_s3 + $0x1f8] sm:$0xff] }
 0x165   : > { %15942 = vmatpush3.bf16.msra.mxu0 %v15939_v1  ;;  %15952 = vmatpush3.bf16.msra.mxu1 %v15939_v1  ;;  %v15943_v14 = vpack.c.bf16 %v5309_v10, %v5308_v4  ;;  %v19034_v1 = vpack.c.bf16 %v5507_v58, %v5506_v57  ;;  %v5494_v4 = vld [vmem:[%s21908_s3 + $0xd0] sm:$0xff]  ;;  %v5513_v36 = vld [vmem:[%s21908_s3 + $0x168] sm:$0xff]  ;;  %v5483_v42 = vld [vmem:[%s21908_s3 + $0x78] sm:$0xff]  ;;  %v19151_v57 = vpack.c.bf16 %v5531_v40, %v5530_v39 }
 0x166   : > { %15091 = vmatprep.mubr.msk.f32.mxu0 %vm3257_vm2, %v18528_v52  ;;  %15102 = vmatprep.mubr.msk.f32.mxu1 %vm3257_vm2, %v18531_v53  ;;  %v5526_v10 = vld [vmem:[%s21908_s3 + $0x1d0] sm:$0xff]  ;;  %v19073_v16 = vpack.c.bf16 %v5495_v9, %v5494_v4  ;;  %v19142_v44 = vpack.c.bf16 %v5513_v36, %v5512_v35  ;;  %v5548_v49 = vld [vmem:[%s21908_s3 + $0x280] sm:$0xff]  ;;  %v5515_v60 = vld [vmem:[%s21908_s3 + $0x178] sm:$0xff] }
 0x167   : > { %15945 = vmatprep.subr.msk.bf16.mxu0 %vm18566_vm8, %v15943_v14  ;;  %15955 = vmatprep.subr.msk.bf16.mxu1 %vm18566_vm8, %v15943_v14  ;;  %v19079_v20 = vpack.c.bf16 %v5527_v11, %v5526_v10  ;;  %v5482_v2 = vld [vmem:[%s21908_s3 + $0x70] sm:$0xff]  ;;  %v5549_v61 = vld [vmem:[%s21908_s3 + $0x288] sm:$0xff]  ;;  %v5580_v62 = vld [vmem:[%s21908_s3 + $0x380] sm:$0xff] }
 0x168   : > { %22155 = vst [vmem:[#allocation18_spill] sm:$0xff] %v19073_v16  ;;  %v5514_v58 = vld [vmem:[%s21908_s3 + $0x170] sm:$0xff]  ;;  %v5581_v55 = vld [vmem:[%s21908_s3 + $0x388] sm:$0xff]  ;;  %v19169_v0 = vpack.c.bf16 %v5483_v42, %v5482_v2  ;;  %v19175_v7 = vpack.c.bf16 %v5549_v61, %v5548_v49  ;;  %v5532_v21 = vld [vmem:[%s21908_s3 + $0x200] sm:$0xff] }
 0x169   : > { %15948 = vmatpush3.bf16.msk.msra.mxu0 %vm18566_vm8, %v15943_v14  ;;  %15958 = vmatpush3.bf16.msk.msra.mxu1 %vm18566_vm8, %v15943_v14  ;;  %v5479_v14 = vld [vmem:[%s21908_s3 + $0x58] sm:$0xff]  ;;  %v19172_v4 = vpack.c.bf16 %v5515_v60, %v5514_v58  ;;  %v19178_v8 = vpack.c.bf16 %v5581_v55, %v5580_v62  ;;  %v5533_v22 = vld [vmem:[%s21908_s3 + $0x208] sm:$0xff]  ;;  %v5582_v39 = vld [vmem:[%s21908_s3 + $0x390] sm:$0xff] }
 0x16a   : > { %15960 = vmatprep.subr.bf16.mxu0 %v18884_v17  ;;  %15992 = vmatprep.subr.bf16.mxu1 %v18889_v19  ;;  %v19097_v50 = vpack.c.bf16 %v5479_v14, %v5478_v13  ;;  %v5583_v40 = vld [vmem:[%s21908_s3 + $0x398] sm:$0xff]  ;;  %v19210_v42 = vpack.c.bf16 %v5533_v22, %v5532_v21  ;;  %v5534_v49 = vld [vmem:[%s21908_s3 + $0x210] sm:$0xff]  ;;  %v5536_v21 = vld [vmem:[%s21908_s3 + $0x220] sm:$0xff] }
 0x16b   : > { %22156 = vst [vmem:[#allocation19_spill] sm:$0xff] %v19172_v4  ;;  %22157 = vst [vmem:[#allocation20_spill] sm:$0xff] %v19178_v8  ;;  %v5535_v61 = vld [vmem:[%s21908_s3 + $0x218] sm:$0xff]  ;;  %v5566_v22 = vld [vmem:[%s21908_s3 + $0x310] sm:$0xff] }
 0x16c   : > { %15092 = vmatmul.mubr.msk.f32.vlgmr.msra.gmra.mrb[76].mxu0 %vm3257_vm2, %v18577_v5  ;;  %15103 = vmatmul.mubr.msk.f32.vlgmr.msra.gmra.mrb[76].mxu1 %vm3257_vm2, %v18593_v15  ;;  %v18965_v5 = vpack.c.bf16 %v5489_v31, %v5488_v59  ;;  %v5490_v15 = vld [vmem:[%s21908_s3 + $0xb0] sm:$0xff]  ;;  %v5480_v59 = vld [vmem:[%s21908_s3 + $0x60] sm:$0xff]  ;;  %v19109_v31 = vpack.c.bf16 %v5497_v23, %v5496_v18 }
 0x16d   : > { %15962 = vmatpush3.bf16.msra.mxu0 %v18914_v25  ;;  %15994 = vmatpush3.bf16.msra.mxu1 %v18922_v26  ;;  %v19001_v47 = vpack.c.bf16 %v5491_v41, %v5490_v15  ;;  %v5499_v15 = vld [vmem:[%s21908_s3 + $0xf8] sm:$0xff]  ;;  %v19133_v41 = vpack.c.bf16 %v5481_v29, %v5480_v59  ;;  %v5564_v23 = vld [vmem:[%s21908_s3 + $0x300] sm:$0xff]  ;;  %v5550_v59 = vld [vmem:[%s21908_s3 + $0x290] sm:$0xff] }
 0x16e   : > { %15964 = vmatprep.subr.bf16.mxu0 %v18925_v27  ;;  %22151 = vst [vmem:[#allocation14_spill] sm:$0xff] %v18965_v5  ;;  %15996 = vmatprep.subr.bf16.mxu1 %v18931_v28  ;;  %v19145_v45 = vpack.c.bf16 %v5499_v15, %v5498_v32  ;;  %v5551_v29 = vld [vmem:[%s21908_s3 + $0x298] sm:$0xff]  ;;  %v5565_v32 = vld [vmem:[%s21908_s3 + $0x308] sm:$0xff] }
 0x16f   : > { %22152 = vst [vmem:[#allocation15_spill] sm:$0xff] %v19001_v47  ;;  %v19215_v60 = vpack.c.bf16 %v5551_v29, %v5550_v59  ;;  %v19220_v55 = vpack.c.bf16 %v5565_v32, %v5564_v23  ;;  %v5567_v23 = vld [vmem:[%s21908_s3 + $0x318] sm:$0xff]  ;;  %v5585_v59 = vld [vmem:[%s21908_s3 + $0x3a8] sm:$0xff]  ;;  %v5554_v32 = vld [vmem:[%s21908_s3 + $0x2b0] sm:$0xff] }
 0x171   : > { %15966 = vmatpush3.bf16.msra.mxu0 %v18953_v34  ;;  %15998 = vmatpush3.bf16.msra.mxu1 %v18962_v37  ;;  %22158 = vst [vmem:[#allocation21_spill] sm:$0xff] %v19220_v55 }
 0x172   : > { %15968 = vmatprep.subr.bf16.mxu0 %v18965_v5  ;;  %16000 = vmatprep.subr.bf16.mxu1 %v18971_v38 }
 0x175   : > { %15970 = vmatpush3.bf16.msra.mxu0 %v18989_v43  ;;  %16002 = vmatpush3.bf16.msra.mxu1 %v18998_v46 }
 0x176   : > { %15972 = vmatprep.subr.bf16.mxu0 %v19001_v47  ;;  %16004 = vmatprep.subr.bf16.mxu1 %v19007_v56 }
 0x179   : > { %15974 = vmatpush3.bf16.msra.mxu0 %v19025_v63  ;;  %16006 = vmatpush3.bf16.msra.mxu1 %v19034_v1 }
 0x17a   : > { %15976 = vmatprep.subr.bf16.mxu0 %v19037_v3  ;;  %16008 = vmatprep.subr.bf16.mxu1 %v19043_v6 }
 0x17d   : > { %15978 = vmatpush3.bf16.msra.mxu0 %v19061_v12  ;;  %16010 = vmatpush3.bf16.msra.mxu1 %v19070_v54 }
 0x17e   : > { %15980 = vmatprep.subr.bf16.mxu0 %v19073_v16  ;;  %16012 = vmatprep.subr.bf16.mxu1 %v19079_v20 }
 0x181   : > { %15982 = vmatpush3.bf16.msra.mxu0 %v19097_v50  ;;  %16014 = vmatpush3.bf16.msra.mxu1 %v19106_v30 }
 0x182   : > { %15984 = vmatprep.subr.bf16.mxu0 %v19109_v31  ;;  %16016 = vmatprep.subr.bf16.mxu1 %v19115_v33 }
 0x185   : > { %15986 = vmatpush3.bf16.msra.mxu0 %v19133_v41  ;;  %16018 = vmatpush3.bf16.msra.mxu1 %v19142_v44 }
 0x186   : > { %15988 = vmatprep.subr.bf16.mxu0 %v19145_v45  ;;  %16020 = vmatprep.subr.bf16.mxu1 %v19151_v57 }
 0x189   : > { %15990 = vmatpush3.bf16.msra.mxu0 %v19169_v0  ;;  %16022 = vmatpush3.bf16.msra.mxu1 %v19172_v4 }
 0x18a   : > { %16024 = vmatprep.subr.bf16.mxu0 %v19175_v7  ;;  %16056 = vmatprep.subr.bf16.mxu1 %v19178_v8  ;;  %v5544_v8 = vld [vmem:[%s21908_s3 + $0x260] sm:$0xff] }
 0x1de   : > { %v14829_v9 = vpop.f32.mrb[52].mxu0  ;;  %v14840_v10 = vpop.f32.mrb[52].mxu1 }
 0x1df   : > { %v3425_v11 = vmax.f32 %v14829_v9, %v14840_v10  ;;  %v3334_v13 = vpop.f32.mrb[53].mxu0  ;;  %v3415_v14 = vpop.f32.mrb[53].mxu1  ;;  %v5552_v9 = vld [vmem:[%s21908_s3 + $0x2a0] sm:$0xff]  ;;  %v5553_v10 = vld [vmem:[%s21908_s3 + $0x2a8] sm:$0xff] }
 0x1e0   : > { %v3424_v18 = vmax.f32 %v3334_v13, %v3415_v14  ;;  %v19233_v14 = vpack.c.bf16 %v5535_v61, %v5534_v49  ;;  %v19270_v49 = vpack.c.bf16 %v5567_v23, %v5566_v22  ;;  %v5569_v22 = vld [vmem:[%s21908_s3 + $0x328] sm:$0xff]  ;;  %v5586_v23 = vld [vmem:[%s21908_s3 + $0x3b0] sm:$0xff] }
 0x1e1   : > { %3427 = vst [vmem:[#allocation3 + $0x8] sm:$0x1f] %v3425_v11  ;;  %v19230_v11 = vpack.c.bf16 %v5583_v40, %v5582_v39  ;;  %v5538_v39 = vld [vmem:[%s21908_s3 + $0x230] sm:$0xff]  ;;  %v5539_v40 = vld [vmem:[%s21908_s3 + $0x238] sm:$0xff] }
 0x1e2   : > { %3426 = vst [vmem:[#allocation3] sm:$0xff] %v3424_v18  ;;  %22160 = vst [vmem:[#allocation23_spill] sm:$0xff] %v19233_v14 }
 0x1e3   : > { %22159 = vst [vmem:[#allocation22_spill] sm:$0xff] %v19230_v11  ;;  %22162 = vst [vmem:[#allocation25_spill] sm:$0xff] %v19270_v49 }
 0x1e6   : > { %v14851_v24 = vpop.f32.mrb[54].mxu0  ;;  %v14862_v48 = vpop.f32.mrb[54].mxu1 }
 0x1e7   : > { %v3594_v35 = vmax.f32 %v14851_v24, %v14862_v48  ;;  %v3509_v36 = vpop.f32.mrb[55].mxu0  ;;  %v3584_v15 = vpop.f32.mrb[55].mxu1  ;;  %v5537_v24 = vld [vmem:[%s21908_s3 + $0x228] sm:$0xff]  ;;  %v5584_v48 = vld [vmem:[%s21908_s3 + $0x3a0] sm:$0xff] }
 0x1e8   : > { %v19208_v2 = vmax.f32 %v3509_v36, %v3584_v15  ;;  %v5616_v13 = vld [vmem:[#allocation3 + $0x9] sm:$0x7] }
 0x1e9   : > { %3597 = vst [vmem:[#allocation3 + $0x18] sm:$0x1f] %v3594_v35  ;;  %v5615_v58 = vld [vmem:[#allocation3 + $0x1] sm:$0xff]  ;;  %v5555_v35 = vld [vmem:[%s21908_s3 + $0x2b8] sm:$0xff] }
 0x1ea   : > { %v5617_v62 = vld [vmem:[#allocation3 + $0x2] sm:$0xff]  ;;  %3596 = vst [vmem:[#allocation3 + $0x10] sm:$0xff] %v19208_v2  ;;  %5701 = vmatprep.mubr.f32.mxu0 %v5615_v58  ;;  %5776 = vmatprep.mubr.f32.mxu1 %v19208_v2 }
 0x1eb   : > { %5702 = vmatmul.mubr.f32.vlgmr.msra.gmra.mrb[78].mxu0 %v3424_v18  ;;  %5777 = vmatmul.mubr.f32.vlgmr.msra.gmra.mrb[78].mxu1 %v5617_v62  ;;  %v19245_v18 = vpack.c.bf16 %v5553_v10, %v5552_v9  ;;  %v5614_v29 = vld [vmem:[#allocation3 + $0x8] sm:$0x7]  ;;  %v5568_v58 = vld [vmem:[%s21908_s3 + $0x320] sm:$0xff]  ;;  %v19276_v10 = vpack.c.bf16 %v5537_v24, %v5536_v21  ;;  %v19294_v21 = vpack.c.bf16 %v5555_v35, %v5554_v32 }
 0x1ec   : > { %16026 = vmatpush3.bf16.msra.mxu0 %v19210_v42  ;;  %5706 = vmatprep.mubr.f32.mxu0 %v5616_v13  ;;  %v5618_v24 = vld [vmem:[#allocation3 + $0xa] sm:$0x7]  ;;  %v19308_v32 = vpack.c.bf16 %v5569_v22, %v5568_v58  ;;  %v19311_v35 = vpack.c.bf16 %v5539_v40, %v5538_v39  ;;  %v5571_v58 = vld [vmem:[%s21908_s3 + $0x338] sm:$0xff]  ;;  %v5588_v22 = vld [vmem:[%s21908_s3 + $0x3c0] sm:$0xff] }
 0x1ed   : > { %16028 = vmatprep.subr.bf16.mxu0 %v19215_v60  ;;  %22161 = vst [vmem:[#allocation24_spill] sm:$0xff] %v19245_v18  ;;  %16058 = vmatpush3.bf16.msra.mxu1 %v19220_v55  ;;  %22163 = vst [vmem:[#allocation26_spill] sm:$0xff] %v19276_v10  ;;  %v5541_v40 = vld [vmem:[%s21908_s3 + $0x248] sm:$0xff] }
 0x1ee   : > { %16060 = vmatprep.subr.bf16.mxu1 %v19230_v11  ;;  %v14873_v36 = vpop.f32.mrb[56].mxu0  ;;  %v14884_v15 = vpop.f32.mrb[56].mxu1  ;;  %22166 = vst [vmem:[#allocation29_spill] sm:$0xff] %v19294_v21  ;;  %22167 = vst [vmem:[#allocation30_spill] sm:$0xff] %v19308_v32 }
 0x1ef   : > { %5707 = vmatmul.mubr.f32.gmra.mrb[80].mxu0 %v5614_v29  ;;  %v3764_v61 = vmax.f32 %v14873_v36, %v14884_v15  ;;  %v3679_v62 = vpop.f32.mrb[57].mxu0  ;;  %v3754_v9 = vpop.f32.mrb[57].mxu1  ;;  %v19280_v29 = vpack.c.bf16 %v5585_v59, %v5584_v48  ;;  %v5587_v48 = vld [vmem:[%s21908_s3 + $0x3b8] sm:$0xff]  ;;  %v5556_v59 = vld [vmem:[%s21908_s3 + $0x2c0] sm:$0xff]  ;;  %v5557_v15 = vld [vmem:[%s21908_s3 + $0x2c8] sm:$0xff]  ;;  %22168 = vst [vmem:[#allocation31_spill] sm:$0xff] %v19311_v35 }
 0x1f0   : > { %16030 = vmatpush3.bf16.msra.mxu0 %v19233_v14  ;;  %v19278_v13 = vld [vmem:[#allocation3 + $0x18] sm:$0x7]  ;;  %v19288_v51 = vmax.f32 %v3679_v62, %v3754_v9  ;;  %v19317_v62 = vpack.c.bf16 %v5587_v48, %v5586_v23  ;;  %v5570_v9 = vld [vmem:[%s21908_s3 + $0x330] sm:$0xff]  ;;  %v19326_v39 = vpack.c.bf16 %v5557_v15, %v5556_v59  ;;  %v5589_v23 = vld [vmem:[%s21908_s3 + $0x3c8] sm:$0xff] }
 0x1f1   : > { %22164 = vst [vmem:[#allocation27_spill] sm:$0xff] %v19280_v29  ;;  %16032 = vmatprep.subr.bf16.mxu0 %v19245_v18  ;;  %v19291_v36 = vld [vmem:[#allocation3 + $0x12] sm:$0xff]  ;;  %5781 = vmatprep.mubr.f32.mxu1 %v19278_v13  ;;  %3767 = vst [vmem:[#allocation3 + $0x28] sm:$0x1f] %v3764_v61  ;;  %v5540_v61 = vld [vmem:[%s21908_s3 + $0x240] sm:$0xff]  ;;  %v19344_v59 = vpack.c.bf16 %v5571_v58, %v5570_v9  ;;  %v19359_v58 = vpack.c.bf16 %v5589_v23, %v5588_v22 }
 0x1f2   : > { %22165 = vst [vmem:[#allocation28_spill] sm:$0xff] %v19291_v36  ;;  %5851 = vmatprep.mubr.f32.mxu0 %v19291_v36  ;;  %5782 = vmatmul.mubr.f32.gmra.mrb[80].mxu1 %v5618_v24  ;;  %3766 = vst [vmem:[#allocation3 + $0x20] sm:$0xff] %v19288_v51  ;;  %v5558_v24 = vld [vmem:[%s21908_s3 + $0x2d0] sm:$0xff]  ;;  %v5559_v48 = vld [vmem:[%s21908_s3 + $0x2d8] sm:$0xff] }
 0x1f3   : > { %16062 = vmatpush3.bf16.msra.mxu1 %v19270_v49  ;;  %22169 = vst [vmem:[#allocation32_spill] sm:$0xff] %v19317_v62  ;;  %22170 = vst [vmem:[#allocation33_spill] sm:$0xff] %v19326_v39  ;;  %v5572_v15 = vld [vmem:[%s21908_s3 + $0x340] sm:$0xff]  ;;  %v5542_v49 = vld [vmem:[%s21908_s3 + $0x250] sm:$0xff] }
 0x1f4   : > { %16034 = vmatpush3.bf16.msra.mxu0 %v19276_v10  ;;  %16064 = vmatprep.subr.bf16.mxu1 %v19280_v29  ;;  %22171 = vst [vmem:[#allocation34_spill] sm:$0xff] %v19344_v59  ;;  %v19350_v29 = vpack.c.bf16 %v5541_v40, %v5540_v61  ;;  %v5543_v9 = vld [vmem:[%s21908_s3 + $0x258] sm:$0xff]  ;;  %22173 = vst [vmem:[#allocation36_spill] sm:$0xff] %v19359_v58  ;;  %v19365_v61 = vpack.c.bf16 %v5559_v48, %v5558_v24  ;;  %v5590_v40 = vld [vmem:[%s21908_s3 + $0x3d0] sm:$0xff] }
 0x1f5   : > { %16036 = vmatprep.subr.bf16.mxu0 %v19294_v21  ;;  %v19388_v36 = vpack.c.bf16 %v5543_v9, %v5542_v49  ;;  %v5593_v9 = vld [vmem:[%s21908_s3 + $0x3e8] sm:$0xff] }
 0x1f6   : > { %22172 = vst [vmem:[#allocation35_spill] sm:$0xff] %v19350_v29  ;;  %22174 = vst [vmem:[#allocation37_spill] sm:$0xff] %v19365_v61 }
 0x1f7   : > { %16066 = vmatpush3.bf16.msra.mxu1 %v19308_v32  ;;  %v14895_v53 = vpop.f32.mrb[58].mxu0  ;;  %v14906_v52 = vpop.f32.mrb[58].mxu1  ;;  %v5573_v32 = vld [vmem:[%s21908_s3 + $0x348] sm:$0xff]  ;;  %22178 = vst [vmem:[#allocation41_spill] sm:$0xff] %v19388_v36 }
 0x1f8   : > { %16038 = vmatpush3.bf16.msra.mxu0 %v19311_v35  ;;  %16068 = vmatprep.subr.bf16.mxu1 %v19317_v62  ;;  %v3934_v11 = vmax.f32 %v14895_v53, %v14906_v52  ;;  %v5591_v62 = vld [vmem:[%s21908_s3 + $0x3d8] sm:$0xff]  ;;  %v3849_v22 = vpop.f32.mrb[59].mxu0  ;;  %v3924_v23 = vpop.f32.mrb[59].mxu1  ;;  %v5560_v52 = vld [vmem:[%s21908_s3 + $0x2e0] sm:$0xff]  ;;  %v5561_v53 = vld [vmem:[%s21908_s3 + $0x2e8] sm:$0xff]  ;;  %v19385_v48 = vpack.c.bf16 %v5573_v32, %v5572_v15 }
 0x1f9   : > { %16040 = vmatprep.subr.bf16.mxu0 %v19326_v39  ;;  %v19373_v55 = vld [vmem:[#allocation3 + $0x21] sm:$0xff]  ;;  %v19382_v24 = vmax.f32 %v3849_v22, %v3924_v23  ;;  %v19394_v4 = vpack.c.bf16 %v5591_v62, %v5590_v40  ;;  %v5575_v32 = vld [vmem:[%s21908_s3 + $0x358] sm:$0xff]  ;;  %v19404_v49 = vpack.c.bf16 %v5561_v53, %v5560_v52  ;;  %v5562_v40 = vld [vmem:[%s21908_s3 + $0x2f0] sm:$0xff] }
 0x1fa   : > { %22175 = vst [vmem:[#allocation38_spill] sm:$0xff] %v19373_v55  ;;  %5926 = vmatprep.mubr.f32.mxu1 %v19373_v55  ;;  %3937 = vst [vmem:[#allocation3 + $0x38] sm:$0x1f] %v3934_v11  ;;  %v5574_v11 = vld [vmem:[%s21908_s3 + $0x350] sm:$0xff]  ;;  %v5545_v15 = vld [vmem:[%s21908_s3 + $0x268] sm:$0xff] }
 0x1fb   : > { %22176 = vst [vmem:[#allocation39_spill] sm:$0xff] %v19382_v24  ;;  %16070 = vmatpush3.bf16.msra.mxu1 %v19344_v59  ;;  %22177 = vst [vmem:[#allocation40_spill] sm:$0xff] %v19385_v48  ;;  %v5592_v62 = vld [vmem:[%s21908_s3 + $0x3e0] sm:$0xff]  ;;  %v5563_v22 = vld [vmem:[%s21908_s3 + $0x2f8] sm:$0xff]  ;;  %v19422_v23 = vpack.c.bf16 %v5575_v32, %v5574_v11 }
 0x1fc   : > { %16042 = vmatpush3.bf16.msra.mxu0 %v19350_v29  ;;  %16072 = vmatprep.subr.bf16.mxu1 %v19359_v58  ;;  %22179 = vst [vmem:[#allocation42_spill] sm:$0xff] %v19394_v4  ;;  %3936 = vst [vmem:[#allocation3 + $0x30] sm:$0xff] %v19382_v24  ;;  %v19425_v24 = vpack.c.bf16 %v5545_v15, %v5544_v8  ;;  %v5546_v58 = vld [vmem:[%s21908_s3 + $0x270] sm:$0xff]  ;;  %v19431_v59 = vpack.c.bf16 %v5593_v9, %v5592_v62  ;;  %v5577_v11 = vld [vmem:[%s21908_s3 + $0x368] sm:$0xff] }
 0x1fd   : > { %16044 = vmatprep.subr.bf16.mxu0 %v19365_v61  ;;  %22180 = vst [vmem:[#allocation43_spill] sm:$0xff] %v19404_v49  ;;  %22181 = vst [vmem:[#allocation44_spill] sm:$0xff] %v19422_v23  ;;  %v19440_v15 = vpack.c.bf16 %v5563_v22, %v5562_v40  ;;  %v5547_v62 = vld [vmem:[%s21908_s3 + $0x278] sm:$0xff]  ;;  %v5594_v9 = vld [vmem:[%s21908_s3 + $0x3f0] sm:$0xff] }
 0x1fe   : > { %22182 = vst [vmem:[#allocation45_spill] sm:$0xff] %v19425_v24  ;;  %22183 = vst [vmem:[#allocation46_spill] sm:$0xff] %v19431_v59  ;;  %v5597_v40 = vld [vmem:[%s21908_s3 + $0x408] sm:$0xff] }
 0x1ff   : > { %16074 = vmatpush3.bf16.msra.mxu1 %v19385_v48  ;;  %v14917_v52 = vpop.f32.mrb[60].mxu0  ;;  %v14928_v53 = vpop.f32.mrb[60].mxu1  ;;  %v5576_v48 = vld [vmem:[%s21908_s3 + $0x360] sm:$0xff]  ;;  %22184 = vst [vmem:[#allocation47_spill] sm:$0xff] %v19440_v15 }
 0x200   : > { %16046 = vmatpush3.bf16.msra.mxu0 %v19388_v36  ;;  %16076 = vmatprep.subr.bf16.mxu1 %v19394_v4  ;;  %v4104_v32 = vmax.f32 %v14917_v52, %v14928_v53  ;;  %v4019_v55 = vpop.f32.mrb[61].mxu0  ;;  %v4094_v8 = vpop.f32.mrb[61].mxu1  ;;  %v5595_v4 = vld [vmem:[%s21908_s3 + $0x3f8] sm:$0xff]  ;;  %v5596_v52 = vld [vmem:[%s21908_s3 + $0x400] sm:$0xff]  ;;  %v19460_v22 = vpack.c.bf16 %v5577_v11, %v5576_v48  ;;  %v19464_v53 = vpack.c.bf16 %v5547_v62, %v5546_v58  ;;  %v5598_v58 = vld [vmem:[%s21908_s3 + $0x410] sm:$0xff] }
 0x201   : > { %16048 = vmatprep.subr.bf16.mxu0 %v19404_v49  ;;  %v19451_v36 = vmax.f32 %v4019_v55, %v4094_v8  ;;  %v19467_v55 = vpack.c.bf16 %v5595_v4, %v5594_v9  ;;  %v5578_v8 = vld [vmem:[%s21908_s3 + $0x370] sm:$0xff]  ;;  %v19476_v48 = vpack.c.bf16 %v5597_v40, %v5596_v52  ;;  %v5599_v4 = vld [vmem:[%s21908_s3 + $0x418] sm:$0xff] }
 0x202   : > { %4107 = vst [vmem:[#allocation3 + $0x48] sm:$0x1f] %v4104_v32  ;;  %22186 = vst [vmem:[#allocation49_spill] sm:$0xff] %v19460_v22  ;;  %v5579_v32 = vld [vmem:[%s21908_s3 + $0x378] sm:$0xff] }
 0x203   : > { %22185 = vst [vmem:[#allocation48_spill] sm:$0xff] %v19451_v36  ;;  %16078 = vmatpush3.bf16.msra.mxu1 %v19422_v23  ;;  %4106 = vst [vmem:[#allocation3 + $0x40] sm:$0xff] %v19451_v36  ;;  %v19485_v11 = vpack.c.bf16 %v5579_v32, %v5578_v8  ;;  %v5600_v8 = vld [vmem:[%s21908_s3 + $0x420] sm:$0xff]  ;;  %v5601_v32 = vld [vmem:[%s21908_s3 + $0x428] sm:$0xff] }
 0x204   : > { %16050 = vmatpush3.bf16.msra.mxu0 %v19425_v24  ;;  %22187 = vst [vmem:[#allocation50_spill] sm:$0xff] %v19464_v53  ;;  %16080 = vmatprep.subr.bf16.mxu1 %v19431_v59  ;;  %22188 = vst [vmem:[#allocation51_spill] sm:$0xff] %v19467_v55  ;;  %v19490_v59 = vpack.c.bf16 %v5599_v4, %v5598_v58  ;;  %v19509_v58 = vld [vmem:[#allocation3 + $0x22] sm:$0xff]  ;;  %v19511_v4 = vpack.c.bf16 %v5601_v32, %v5600_v8 }
 0x205   : > { %16052 = vmatprep.subr.bf16.mxu0 %v19440_v15  ;;  %22189 = vst [vmem:[#allocation52_spill] sm:$0xff] %v19476_v48  ;;  %22190 = vst [vmem:[#allocation53_spill] sm:$0xff] %v19485_v11  ;;  %v5621_v15 = vld [vmem:[#allocation3 + $0x11] sm:$0xff]  ;;  %v19525_v8 = vld [vmem:[#allocation3 + $0x28] sm:$0x7] }
 0x206   : > { %22191 = vst [vmem:[#allocation54_spill] sm:$0xff] %v19490_v59  ;;  %22194 = vst [vmem:[#allocation57_spill] sm:$0xff] %v19511_v4 }
 0x207   : > { %16082 = vmatpush3.bf16.msra.mxu1 %v19460_v22  ;;  %v14939_v62 = vpop.f32.mrb[62].mxu0  ;;  %v14950_v9 = vpop.f32.mrb[62].mxu1 }
 0x208   : > { %16054 = vmatpush3.bf16.msra.mxu0 %v19464_v53  ;;  %16084 = vmatprep.subr.bf16.mxu1 %v19467_v55  ;;  %v4274_v52 = vmax.f32 %v14939_v62, %v14950_v9  ;;  %v4189_v40 = vpop.f32.mrb[63].mxu0  ;;  %v4264_v36 = vpop.f32.mrb[63].mxu1  ;;  %v19500_v62 = vld [vmem:[#allocation3 + $0x1a] sm:$0x7] }
 0x209   : > { %16088 = vmatprep.subr.bf16.mxu0 %v19476_v48  ;;  %v19492_v23 = vmax.f32 %v4189_v40, %v4264_v36  ;;  %v19506_v36 = vld [vmem:[#allocation3 + $0x29] sm:$0x7]  ;;  %v19514_v9 = vld [vmem:[#allocation3 + $0x19] sm:$0x7] }
 0x20a   : > { %4277 = vst [vmem:[#allocation3 + $0x58] sm:$0x1f] %v4274_v52  ;;  %22193 = vst [vmem:[#allocation56_spill] sm:$0xff] %v19506_v36  ;;  %v5602_v52 = vld [vmem:[%s21908_s3 + $0x430] sm:$0xff]  ;;  %v5603_v40 = vld [vmem:[%s21908_s3 + $0x438] sm:$0xff] }
 0x20b   : > { %22192 = vst [vmem:[#allocation55_spill] sm:$0xff] %v19492_v23  ;;  %5852 = vmatmul.mubr.f32.vlgmr.msra.gmra.mrb[82].mxu0 %v5621_v15  ;;  %16086 = vmatpush3.bf16.msra.mxu1 %v19485_v11  ;;  %4276 = vst [vmem:[#allocation3 + $0x50] sm:$0xff] %v19492_v23  ;;  %v19531_v22 = vpack.c.bf16 %v5603_v40, %v5602_v52 }
 0x20c   : > { %5856 = vmatprep.mubr.f32.mxu0 %v19500_v62  ;;  %16090 = vmatpush3.bf16.msra.mxu0 %v19476_v48 }
 0x20d   : > { %16092 = vmatprep.subr.bf16.mxu0 %v19490_v59  ;;  %16120 = vmatprep.subr.bf16.mxu1 %v18884_v17  ;;  %22195 = vst [vmem:[#allocation58_spill] sm:$0xff] %v19531_v22 }
 0x20e   : > { %5927 = vmatmul.mubr.f32.vlgmr.msra.gmra.mrb[82].mxu1 %v19288_v51 }
 0x20f   : > { %5857 = vmatmul.mubr.f32.gmra.mrb[84].mxu0 %v19514_v9  ;;  %5931 = vmatprep.mubr.f32.mxu1 %v19506_v36  ;;  %v14961_v32 = vpop.f32.mrb[64].mxu0  ;;  %v14972_v23 = vpop.f32.mrb[64].mxu1  ;;  %v5604_v36 = vld [vmem:[%s21908_s3 + $0x440] sm:$0xff] }
 0x210   : > { %16094 = vmatpush3.bf16.msra.mxu0 %v19490_v59  ;;  %15137 = vmatprep.mubr.f32.mxu0 %v19509_v58  ;;  %v4444_v17 = vmax.f32 %v14961_v32, %v14972_v23  ;;  %v4359_v11 = vpop.f32.mrb[65].mxu0  ;;  %v4434_v55 = vpop.f32.mrb[65].mxu1  ;;  %v5605_v23 = vld [vmem:[%s21908_s3 + $0x448] sm:$0xff] }
 0x211   : > { %16096 = vmatprep.subr.bf16.mxu0 %v19511_v4  ;;  %16122 = vmatpush3.bf16.msra.mxu1 %v18914_v25  ;;  %v4443_v48 = vmax.f32 %v4359_v11, %v4434_v55  ;;  %v19544_v55 = vpack.c.bf16 %v5605_v23, %v5604_v36  ;;  %v5606_v11 = vld [vmem:[%s21908_s3 + $0x450] sm:$0xff] }
 0x212   : > { %5932 = vmatmul.mubr.f32.gmra.mrb[84].mxu1 %v19525_v8  ;;  %16124 = vmatprep.subr.bf16.mxu1 %v18925_v27  ;;  %4447 = vst [vmem:[#allocation3 + $0x68] sm:$0x1f] %v4444_v17  ;;  %v5607_v17 = vld [vmem:[%s21908_s3 + $0x458] sm:$0xff] }
 0x213   : > { %6084 = vmatprep.mubr.f32.mxu1 %v5621_v15  ;;  %4446 = vst [vmem:[#allocation3 + $0x60] sm:$0xff] %v4443_v48  ;;  %22196 = vst [vmem:[#allocation59_spill] sm:$0xff] %v19544_v55  ;;  %v19556_v36 = vpack.c.bf16 %v5607_v17, %v5606_v11  ;;  %v5610_v17 = vld [vmem:[%s21908_s3 + $0x470] sm:$0xff] }
 0x214   : > { %16098 = vmatpush3.bf16.msra.mxu0 %v19511_v4 }
 0x215   : > { %16100 = vmatprep.subr.bf16.mxu0 %v19531_v22  ;;  %16126 = vmatpush3.bf16.msra.mxu1 %v18953_v34  ;;  %22197 = vst [vmem:[#allocation60_spill] sm:$0xff] %v19556_v36  ;;  %v5609_v34 = vld [vmem:[%s21908_s3 + $0x468] sm:$0xff] }
 0x216   : > { %16128 = vmatprep.subr.bf16.mxu1 %v18965_v5  ;;  %v5608_v5 = vld [vmem:[%s21908_s3 + $0x460] sm:$0xff] }
 0x217   : > { %v14983_v15 = vpop.f32.mrb[66].mxu0  ;;  %v14994_v48 = vpop.f32.mrb[66].mxu1  ;;  %v19568_v11 = vpack.c.bf16 %v5609_v34, %v5608_v5 }
 0x218   : > { %16102 = vmatpush3.bf16.msra.mxu0 %v19531_v22  ;;  %v4614_v52 = vmax.f32 %v14983_v15, %v14994_v48  ;;  %v4529_v40 = vpop.f32.mrb[67].mxu0  ;;  %v4604_v32 = vpop.f32.mrb[67].mxu1  ;;  %v5611_v15 = vld [vmem:[%s21908_s3 + $0x478] sm:$0xff] }
 0x219   : > { %16104 = vmatprep.subr.bf16.mxu0 %v19544_v55  ;;  %16130 = vmatpush3.bf16.msra.mxu1 %v18989_v43  ;;  %v4613_v23 = vmax.f32 %v4529_v40, %v4604_v32  ;;  %22198 = vst [vmem:[#allocation61_spill] sm:$0xff] %v19568_v11  ;;  %v19580_v34 = vpack.c.bf16 %v5611_v15, %v5610_v17 }
 0x21a   : > { %16132 = vmatprep.subr.bf16.mxu1 %v19001_v47  ;;  %4617 = vst [vmem:[#allocation3 + $0x78] sm:$0x1f] %v4614_v52 }
 0x21b   : > { %4616 = vst [vmem:[#allocation3 + $0x70] sm:$0xff] %v4613_v23  ;;  %22199 = vst [vmem:[#allocation62_spill] sm:$0xff] %v19580_v34 }
 0x21c   : > { %16106 = vmatpush3.bf16.msra.mxu0 %v19544_v55 }
 0x21d   : > { %16108 = vmatprep.subr.bf16.mxu0 %v19556_v36  ;;  %16134 = vmatpush3.bf16.msra.mxu1 %v19025_v63 }
 0x21e   : > { %16136 = vmatprep.subr.bf16.mxu1 %v19037_v3 }
 0x21f   : > { %v15005_v48 = vpop.f32.mrb[68].mxu0  ;;  %v15016_v52 = vpop.f32.mrb[68].mxu1 }
 0x220   : > { %16110 = vmatpush3.bf16.msra.mxu0 %v19556_v36  ;;  %v4784_v40 = vmax.f32 %v15005_v48, %v15016_v52  ;;  %v4699_v32 = vpop.f32.mrb[69].mxu0  ;;  %v4774_v23 = vpop.f32.mrb[69].mxu1 }
 0x221   : > { %16112 = vmatprep.subr.bf16.mxu0 %v19568_v11  ;;  %16138 = vmatpush3.bf16.msra.mxu1 %v19061_v12  ;;  %v4783_v5 = vmax.f32 %v4699_v32, %v4774_v23  ;;  %v19590_v32 = vld [vmem:[#allocation3 + $0x2a] sm:$0x7] }
 0x222   : > { %16140 = vmatprep.subr.bf16.mxu1 %v19073_v16  ;;  %4787 = vst [vmem:[#allocation3 + $0x88] sm:$0x1f] %v4784_v40 }
 0x223   : > { %4786 = vst [vmem:[#allocation3 + $0x80] sm:$0xff] %v4783_v5 }
 0x224   : > { %16114 = vmatpush3.bf16.msra.mxu0 %v19568_v11 }
 0x225   : > { %16116 = vmatprep.subr.bf16.mxu0 %v19580_v34  ;;  %16142 = vmatpush3.bf16.msra.mxu1 %v19097_v50 }
 0x226   : > { %16144 = vmatprep.subr.bf16.mxu1 %v19109_v31 }
 0x227   : > { %v15027_v48 = vpop.f32.mrb[70].mxu0  ;;  %v15038_v52 = vpop.f32.mrb[70].mxu1 }
 0x228   : > { %16118 = vmatpush3.bf16.msra.mxu0 %v19580_v34  ;;  %v4954_v12 = vmax.f32 %v15027_v48, %v15038_v52  ;;  %v4869_v17 = vpop.f32.mrb[71].mxu0  ;;  %v4944_v15 = vpop.f32.mrb[71].mxu1 }
 0x229   : > { %16152 = vmatprep.subr.bf16.mxu0 %v18889_v19  ;;  %16146 = vmatpush3.bf16.msra.mxu1 %v19133_v41  ;;  %v4953_v40 = vmax.f32 %v4869_v17, %v4944_v15 }
 0x22a   : > { %16148 = vmatprep.subr.bf16.mxu1 %v19145_v45  ;;  %4957 = vst [vmem:[#allocation3 + $0x98] sm:$0x1f] %v4954_v12 }
 0x22b   : > { %15138 = vmatmul.mubr.f32.vlgmr.msra.gmra.mrb[86].mxu0 %v19590_v32  ;;  %4956 = vst [vmem:[#allocation3 + $0x90] sm:$0xff] %v4953_v40 }
 0x22c   : > { %16154 = vmatpush3.bf16.msra.mxu0 %v18922_v26  ;;  %6159 = vmatprep.mubr.f32.mxu0 %v19288_v51 }
 0x22d   : > { %16156 = vmatprep.subr.bf16.mxu0 %v18931_v28  ;;  %16150 = vmatpush3.bf16.msra.mxu1 %v19169_v0 }
 0x22e   : > { %16184 = vmatprep.subr.bf16.mxu1 %v19175_v7 }
 0x22f   : > { %v15049_v23 = vpop.f32.mrb[72].mxu0  ;;  %v15060_v5 = vpop.f32.mrb[72].mxu1 }
 0x230   : > { %16158 = vmatpush3.bf16.msra.mxu0 %v18962_v37  ;;  %6085 = vmatmul.mubr.f32.vlgmr.msra.gmra.mrb[86].mxu1 %v19208_v2  ;;  %v5124_v12 = vmax.f32 %v15049_v23, %v15060_v5  ;;  %v5039_v48 = vpop.f32.mrb[73].mxu0  ;;  %v5114_v52 = vpop.f32.mrb[73].mxu1 }
 0x231   : > { %16160 = vmatprep.subr.bf16.mxu0 %v18971_v38  ;;  %6089 = vmatprep.mubr.f32.mxu1 %v19514_v9  ;;  %v5123_v17 = vmax.f32 %v5039_v48, %v5114_v52 }
 0x232   : > { %16186 = vmatpush3.bf16.msra.mxu1 %v19210_v42  ;;  %5127 = vst [vmem:[#allocation3 + $0xa8] sm:$0x1f] %v5124_v12 }
 0x233   : > { %16188 = vmatprep.subr.bf16.mxu1 %v19215_v60  ;;  %5126 = vst [vmem:[#allocation3 + $0xa0] sm:$0xff] %v5123_v17  ;;  %v22200_v17 = vld [vmem:[#allocation41_spill] sm:$0xff] }
 0x234   : > { %16162 = vmatpush3.bf16.msra.mxu0 %v18998_v46  ;;  %6090 = vmatmul.mubr.f32.gmra.mrb[88].mxu1 %v19278_v13 }
 0x235   : > { %16164 = vmatprep.subr.bf16.mxu0 %v19007_v56  ;;  %6234 = vmatprep.mubr.f32.mxu1 %v19509_v58 }
 0x236   : > { %16190 = vmatpush3.bf16.msra.mxu1 %v19233_v14 }
 0x237   : > { %16192 = vmatprep.subr.bf16.mxu1 %v19245_v18  ;;  %v15071_v2 = vpop.f32.mrb[74].mxu0  ;;  %v15082_v9 = vpop.f32.mrb[74].mxu1 }
 0x238   : > { %16166 = vmatpush3.bf16.msra.mxu0 %v19034_v1  ;;  %v5294_v15 = vmax.f32 %v15071_v2, %v15082_v9  ;;  %v5209_v40 = vpop.f32.mrb[75].mxu0  ;;  %v5284_v23 = vpop.f32.mrb[75].mxu1  ;;  %v22201_v2 = vld [vmem:[#allocation19_spill] sm:$0xff]  ;;  %v22202_v9 = vld [vmem:[#allocation20_spill] sm:$0xff] }
 0x239   : > { %16168 = vmatprep.subr.bf16.mxu0 %v19043_v6  ;;  %v5293_v5 = vmax.f32 %v5209_v40, %v5284_v23  ;;  %v22204_v40 = vld [vmem:[#allocation47_spill] sm:$0xff]  ;;  %v22205_v23 = vld [vmem:[#allocation21_spill] sm:$0xff] }
 0x23a   : > { %16194 = vmatpush3.bf16.msra.mxu1 %v19276_v10  ;;  %5297 = vst [vmem:[#allocation3 + $0xb8] sm:$0x1f] %v5294_v15  ;;  %v22203_v15 = vld [vmem:[#allocation28_spill] sm:$0xff] }
 0x23b   : > { %16196 = vmatprep.subr.bf16.mxu1 %v19294_v21  ;;  %5296 = vst [vmem:[#allocation3 + $0xb0] sm:$0xff] %v5293_v5  ;;  %v22206_v5 = vld [vmem:[#allocation22_spill] sm:$0xff] }
 0x23c   : > { %16170 = vmatpush3.bf16.msra.mxu0 %v19070_v54 }
 0x23d   : > { %16172 = vmatprep.subr.bf16.mxu0 %v19079_v20 }
 0x23e   : > { %16198 = vmatpush3.bf16.msra.mxu1 %v19311_v35 }
 0x23f   : > { %16200 = vmatprep.subr.bf16.mxu1 %v19326_v39  ;;  %v15093_v13 = vpop.f32.mrb[76].mxu0  ;;  %v15104_v12 = vpop.f32.mrb[76].mxu1 }
 0x240   : > { %16174 = vmatpush3.bf16.msra.mxu0 %v19106_v30  ;;  %v5379_v48 = vpop.f32.mrb[77].mxu0  ;;  %v5454_v52 = vpop.f32.mrb[77].mxu1  ;;  %v19635_v13 = vld [vmem:[#allocation3 + $0x31] sm:$0xff]  ;;  %v22208_v12 = vld [vmem:[#allocation52_spill] sm:$0xff] }
 0x241   : > { %16176 = vmatprep.subr.bf16.mxu0 %v19115_v33  ;;  %22207 = vst [vmem:[#allocation19_spill] sm:$0xff] %v19635_v13  ;;  %v22209_v48 = vld [vmem:[#allocation25_spill] sm:$0xff]  ;;  %v22210_v52 = vld [vmem:[#allocation38_spill] sm:$0xff] }
 0x242   : > { %16202 = vmatpush3.bf16.msra.mxu1 %v19350_v29 }
 0x243   : > { %16204 = vmatprep.subr.bf16.mxu1 %v19365_v61 }
 0x244   : > { %16178 = vmatpush3.bf16.msra.mxu0 %v19142_v44 }
 0x245   : > { %16180 = vmatprep.subr.bf16.mxu0 %v19151_v57 }
 0x246   : > { %16206 = vmatpush3.bf16.msra.mxu1 %v22200_v17  ;;  %v22224_v17 = vld [vmem:[#allocation53_spill] sm:$0xff] }
 0x247   : > { %16208 = vmatprep.subr.bf16.mxu1 %v19404_v49  ;;  %v22222_v49 = vld [vmem:[#allocation49_spill] sm:$0xff] }
 0x248   : > { %16182 = vmatpush3.bf16.msra.mxu0 %v22201_v2 }
 0x249   : > { %16216 = vmatprep.subr.bf16.mxu0 %v22202_v9 }
 0x24a   : > { %16210 = vmatpush3.bf16.msra.mxu1 %v19425_v24  ;;  %v22219_v24 = vld [vmem:[#allocation42_spill] sm:$0xff] }
 0x24b   : > { %6160 = vmatmul.mubr.f32.vlgmr.msra.gmra.mrb[88].mxu0 %v22203_v15  ;;  %16212 = vmatprep.subr.bf16.mxu1 %v22204_v40  ;;  %v22211_v15 = vld [vmem:[#allocation27_spill] sm:$0xff]  ;;  %v22215_v40 = vld [vmem:[#allocation32_spill] sm:$0xff] }
 0x24c   : > { %6164 = vmatprep.mubr.f32.mxu0 %v19525_v8  ;;  %16218 = vmatpush3.bf16.msra.mxu0 %v22205_v23  ;;  %v19647_v8 = vld [vmem:[#allocation3 + $0x32] sm:$0xff] }
 0x24d   : > { %16220 = vmatprep.subr.bf16.mxu0 %v22206_v5  ;;  %22212 = vst [vmem:[#allocation20_spill] sm:$0xff] %v19647_v8 }
 0x24e   : > { %16214 = vmatpush3.bf16.msra.mxu1 %v19464_v53  ;;  %v22213_v53 = vld [vmem:[#allocation30_spill] sm:$0xff] }
 0x24f   : > { %6165 = vmatmul.mubr.f32.gmra.mrb[90].mxu0 %v19500_v62  ;;  %16248 = vmatprep.subr.bf16.mxu1 %v22208_v12  ;;  %v22214_v62 = vld [vmem:[#allocation56_spill] sm:$0xff] }
 0x250   : > { %16222 = vmatpush3.bf16.msra.mxu0 %v22209_v48  ;;  %6309 = vmatprep.mubr.f32.mxu0 %v19635_v13  ;;  %v22216_v13 = vld [vmem:[#allocation34_spill] sm:$0xff] }
 0x251   : > { %6235 = vmatmul.mubr.f32.vlgmr.msra.gmra.mrb[90].mxu1 %v22210_v52  ;;  %16224 = vmatprep.subr.bf16.mxu0 %v22211_v15 }
 0x252   : > { %6239 = vmatprep.mubr.f32.mxu1 %v19590_v32  ;;  %16250 = vmatpush3.bf16.msra.mxu1 %v22208_v12  ;;  %v22217_v32 = vld [vmem:[#allocation36_spill] sm:$0xff] }
 0x253   : > { %16252 = vmatprep.subr.bf16.mxu1 %v19490_v59  ;;  %v22218_v12 = vld [vmem:[#allocation40_spill] sm:$0xff] }
 0x254   : > { %16226 = vmatpush3.bf16.msra.mxu0 %v22213_v53 }
 0x255   : > { %6240 = vmatmul.mubr.f32.gmra.mrb[92].mxu1 %v22214_v62  ;;  %16228 = vmatprep.subr.bf16.mxu0 %v22215_v40  ;;  %v22220_v62 = vld [vmem:[#allocation44_spill] sm:$0xff]  ;;  %v22009_v40 = vmov 0.0|0.0  }
 0x256   : > { %16254 = vmatpush3.bf16.msra.mxu1 %v19490_v59  ;;  %15172 = vmatprep.mubr.f32.mxu1 %v19647_v8  ;;  %v22221_v59 = vld [vmem:[#allocation46_spill] sm:$0xff] }
 0x257   : > { %16256 = vmatprep.subr.bf16.mxu1 %v19511_v4 }
 0x258   : > { %16230 = vmatpush3.bf16.msra.mxu0 %v22216_v13 }
 0x259   : > { %16232 = vmatprep.subr.bf16.mxu0 %v22217_v32 }
 0x25a   : > { %16258 = vmatpush3.bf16.msra.mxu1 %v19511_v4  ;;  %v22223_v4 = vld [vmem:[#allocation51_spill] sm:$0xff] }
 0x25b   : > { %16260 = vmatprep.subr.bf16.mxu1 %v19531_v22 }
 0x25c   : > { %16234 = vmatpush3.bf16.msra.mxu0 %v22218_v12 }
 0x25d   : > { %16236 = vmatprep.subr.bf16.mxu0 %v22219_v24 }
 0x25e   : > { %16262 = vmatpush3.bf16.msra.mxu1 %v19531_v22  ;;  %v22225_v22 = vld [vmem:[#allocation39_spill] sm:$0xff] }
 0x25f   : > { %16264 = vmatprep.subr.bf16.mxu1 %v19544_v55 }
 0x260   : > { %16238 = vmatpush3.bf16.msra.mxu0 %v22220_v62  ;;  %v6017_v62 = vld [vmem:[#allocation3 + $0x39] sm:$0x7] }
 0x261   : > { %16240 = vmatprep.subr.bf16.mxu0 %v22221_v59 }
 0x262   : > { %16266 = vmatpush3.bf16.msra.mxu1 %v19544_v55  ;;  %v6015_v55 = vld [vmem:[#allocation3 + $0x38] sm:$0x7] }
 0x263   : > { %16268 = vmatprep.subr.bf16.mxu1 %v19556_v36 }
 0x264   : > { %16242 = vmatpush3.bf16.msra.mxu0 %v22222_v49  ;;  %v6019_v49 = vld [vmem:[#allocation3 + $0x3a] sm:$0x7] }
 0x265   : > { %16244 = vmatprep.subr.bf16.mxu0 %v22223_v4 }
 0x266   : > { %16270 = vmatpush3.bf16.msra.mxu1 %v19556_v36 }
 0x267   : > { %16272 = vmatprep.subr.bf16.mxu1 %v19568_v11 }
 0x268   : > { %16246 = vmatpush3.bf16.msra.mxu0 %v22224_v17  ;;  %v19679_v17 = vld [vmem:[%s21909_s4] ss:$0 sm:$0xff] }
 0x269   : > { %22226 = vst [vmem:[#allocation28_spill] sm:$0xff] %v19679_v17  ;;  %16283 = vmatprep.subr.bf16.mxu0 %v22009_v40 }
 0x26a   : > { %16274 = vmatpush3.bf16.msra.mxu1 %v19568_v11 }
 0x26b   : > { %6310 = vmatmul.mubr.f32.vlgmr.msra.gmra.mrb[92].mxu0 %v22225_v22  ;;  %16276 = vmatprep.subr.bf16.mxu1 %v19580_v34 }
 0x26c   : > { %6314 = vmatprep.mubr.f32.mxu0 %v6017_v62 }
 0x26e   : > { %16278 = vmatpush3.bf16.msra.mxu1 %v19580_v34 }
 0x26f   : > { %6315 = vmatmul.mubr.f32.gmra.mrb[94].mxu0 %v6015_v55  ;;  %16279 = vmatprep.subr.bf16.mxu1 %v22009_v40 }
 0x271   : > { %15173 = vmatmul.mubr.f32.vlgmr.msra.gmra.mrb[94].mxu1 %v6019_v49 }
 0x2be   : > { %v12407_v4 = vpop.f32.mrb[78].mxu0  ;;  %v12445_v36 = vpop.f32.mrb[78].mxu1 }
 0x2bf   : > { %v12408_v11 = vpop.f32.mrb[79].mxu0  ;;  %v12446_v59 = vpop.f32.mrb[79].mxu1 }
 0x2c0   : > { %v12409_v24 = vadd.f32 %v12408_v11, %v12407_v4  ;;  %v12447_v61 = vadd.f32 %v12446_v59, %v12445_v36  ;;  %v22227_v4 = vmov 0.0  }
 0x2c1   : > { %15179 = vmatprep.mubr.msk.f32.mxu1 %vm18146_vm9, %v22227_v4  ;;  %15186 = vmatprep.mubr.msk.f32.mxu0 %vm18146_vm9, %v22227_v4 }
 0x2c2   : > { %v5704_v12 = vadd.f32 %v12409_v24, %v19679_v17  ;;  %v12410_v62 = vpop.f32.mrb[80].mxu0 }
 0x2c3   : > { %v12411_v29 = vpop.f32.mrb[81].mxu0 }
 0x2c4   : > { %v12412_v32 = vadd.f32 %v12411_v29, %v12410_v62  ;;  %v5779_v34 = vadd.f32 %v12447_v61, %v5704_v12 }
 0x2c5   : > { %v12448_v55 = vpop.f32.mrb[80].mxu1 }
 0x2c6   : > { %v5709_v49 = vadd.f32 %v12412_v32, %v19679_v17  ;;  %v12449_v39 = vpop.f32.mrb[81].mxu1 }
 0x2c7   : > { %v12450_v13 = vadd.f32 %v12449_v39, %v12448_v55 }
 0x2c9   : > { %v5784_v35 = vadd.f32 %v12450_v13, %v5709_v49 }
 0x2de   : > { %v12483_v29 = vpop.f32.mrb[82].mxu0 }
 0x2df   : > { %v12484_v59 = vpop.f32.mrb[83].mxu0 }
 0x2e0   : > { %v12485_v61 = vadd.f32 %v12484_v59, %v12483_v29 }
 0x2e1   : > { %v12521_v24 = vpop.f32.mrb[82].mxu1 }
 0x2e2   : > { %v5854_v36 = vadd.f32 %v12485_v61, %v5779_v34  ;;  %v12486_v11 = vpop.f32.mrb[84].mxu0  ;;  %v12522_v39 = vpop.f32.mrb[83].mxu1 }
 0x2e3   : > { %v12487_v13 = vpop.f32.mrb[85].mxu0  ;;  %v12523_v12 = vadd.f32 %v12522_v39, %v12521_v24 }
 0x2e4   : > { %v12488_v32 = vadd.f32 %v12487_v13, %v12486_v11 }
 0x2e5   : > { %v12524_v62 = vpop.f32.mrb[84].mxu1  ;;  %v5929_v55 = vadd.f32 %v12523_v12, %v5854_v36 }
 0x2e6   : > { %v5859_v49 = vadd.f32 %v12488_v32, %v5784_v35  ;;  %v12525_v40 = vpop.f32.mrb[85].mxu1 }
 0x2e7   : > { %v12526_v21 = vadd.f32 %v12525_v40, %v12524_v62 }
 0x2e9   : > { %v5934_v53 = vadd.f32 %v12526_v21, %v5859_v49 }
 0x2fe   : > { %v15139_v10 = vpop.f32.mrb[86].mxu0 }
 0x2ff   : > { %v6009_v15 = vadd.f32 %v15139_v10, %v5934_v53  ;;  %v6003_v18 = vpop.f32.mrb[87].mxu0 }
 0x300   : > { %v6004_v4 = vadd.f32 %v6003_v18, %v5929_v55 }
 0x303   : > { %v12577_v48 = vpop.f32.mrb[86].mxu1 }
 0x304   : > { %v12578_v14 = vpop.f32.mrb[87].mxu1 }
 0x305   : > { %v12579_v29 = vadd.f32 %v12578_v14, %v12577_v48 }
 0x307   : > { %v12580_v59 = vpop.f32.mrb[88].mxu1  ;;  %v6087_v24 = vadd.f32 %v12579_v29, %v19679_v17 }
 0x308   : > { %v12581_v34 = vpop.f32.mrb[89].mxu1 }
 0x309   : > { %v12582_v61 = vadd.f32 %v12581_v34, %v12580_v59 }
 0x30b   : > { %v6092_v21 = vadd.f32 %v12582_v61, %v19679_v17 }
 0x31e   : > { %v12615_v8 = vpop.f32.mrb[88].mxu0 }
 0x31f   : > { %v12616_v5 = vpop.f32.mrb[89].mxu0 }
 0x320   : > { %v12617_v11 = vadd.f32 %v12616_v5, %v12615_v8 }
 0x322   : > { %v6162_v36 = vadd.f32 %v12617_v11, %v6087_v24  ;;  %v12618_v35 = vpop.f32.mrb[90].mxu0 }
 0x323   : > { %v12619_v39 = vpop.f32.mrb[91].mxu0 }
 0x324   : > { %v12620_v40 = vadd.f32 %v12619_v39, %v12618_v35  ;;  %v12653_v10 = vpop.f32.mrb[90].mxu1  ;;  %v6012_v39 = vmax.f32 %v6004_v4, 0.0  ;;  %v22231_v4 = vld [vmem:[#allocation10_spill] sm:$0xff] }
 0x325   : > { %v12654_v53 = vpop.f32.mrb[91].mxu1 }
 0x326   : > { %v6167_v18 = vadd.f32 %v12620_v40, %v6092_v21  ;;  %v12655_v13 = vadd.f32 %v12654_v53, %v12653_v10  ;;  %v6013_v40 = vmax.f32 %v6009_v15, 0.0  ;;  %v22233_v15 = vld [vmem:[#allocation9_spill] sm:$0xff] }
 0x328   : > { %v6237_v12 = vadd.f32 %v12655_v13, %v6162_v36  ;;  %v12656_v14 = vpop.f32.mrb[92].mxu1 }
 0x329   : > { %v12657_v48 = vpop.f32.mrb[93].mxu1 }
 0x32a   : > { %v12658_v32 = vadd.f32 %v12657_v48, %v12656_v14  ;;  %v22235_v14 = vld [vmem:[#allocation14_spill] sm:$0xff] }
 0x32b   : > { %v6553_v48 = vld [vmem:[#allocation3 + $0x29] sm:$0x7] }
 0x32c   : > { %v6242_v62 = vadd.f32 %v12658_v32, %v6167_v18  ;;  %v22228_v18 = vmov 0  ;;  %v19742_v32 = vld [vmem:[#allocation3 + $0x38] sm:$0x7] }
 0x32d   : > { %v22229_v18 = vsel %vm19692_vm11, 4294967295, %v22228_v18 }
 0x32e   : > { %22230 = vst [vmem:[#allocation21_spill] sm:$0xff] %v22229_v18  ;;  %v22260_v18 = vld [vmem:[#allocation49_spill] sm:$0xff] }
 0x33e   : > { %v12691_v55 = vpop.f32.mrb[92].mxu0 }
 0x33f   : > { %v12692_v49 = vpop.f32.mrb[93].mxu0 }
 0x340   : > { %v12693_v59 = vadd.f32 %v12692_v49, %v12691_v55  ;;  %v6555_v55 = vld [vmem:[#allocation3 + $0x2a] sm:$0x7] }
 0x341   : > { %v22237_v49 = vld [vmem:[#allocation22_spill] sm:$0xff] }
 0x342   : > { %v12694_v29 = vpop.f32.mrb[94].mxu0  ;;  %v6312_v5 = vadd.f32 %v12693_v59, %v6237_v12  ;;  %v22234_v12 = vld [vmem:[#allocation13_spill] sm:$0xff]  ;;  %v22239_v59 = vld [vmem:[#allocation23_spill] sm:$0xff] }
 0x343   : > { %v12695_v8 = vpop.f32.mrb[95].mxu0 }
 0x344   : > { %v12696_v34 = vadd.f32 %v12695_v8, %v12694_v29  ;;  %v15174_v24 = vpop.f32.mrb[94].mxu1  ;;  %v22240_v29 = vld [vmem:[#allocation25_spill] sm:$0xff]  ;;  %v22242_v8 = vld [vmem:[#allocation27_spill] sm:$0xff] }
 0x345   : > { %v6386_v11 = vpop.f32.mrb[95].mxu1 }
 0x346   : > { %v6317_v61 = vadd.f32 %v12696_v34, %v6242_v62  ;;  %v6387_v35 = vadd.f32 %v6386_v11, %v6312_v5  ;;  %v6551_v62 = vld [vmem:[#allocation3 + $0x28] sm:$0x7]  ;;  %v22241_v5 = vld [vmem:[#allocation24_spill] sm:$0xff] }
 0x347   : > { %v22243_v34 = vld [vmem:[#allocation26_spill] sm:$0xff]  ;;  %v22245_v11 = vld [vmem:[#allocation29_spill] sm:$0xff] }
 0x348   : > { %v6392_v17 = vadd.f32 %v15174_v24, %v6317_v61  ;;  %v6395_v21 = vmax.f32 %v6387_v35, 0.0  ;;  %v22244_v24 = vld [vmem:[#allocation30_spill] sm:$0xff]  ;;  %v22246_v61 = vld [vmem:[#allocation32_spill] sm:$0xff]  ;;  %v22247_v35 = vld [vmem:[#allocation31_spill] sm:$0xff] }
 0x34a   : > { %v6396_v36 = vmax.f32 %v6392_v17, 0.0  ;;  %v6397_v10 = vmax.f32 %v6012_v39, %v6395_v21  ;;  %v22232_v17 = vld [vmem:[#allocation8_spill] sm:$0xff]  ;;  %v22248_v39 = vld [vmem:[#allocation34_spill] sm:$0xff]  ;;  %v22249_v21 = vld [vmem:[#allocation33_spill] sm:$0xff] }
 0x34c   : > { %v6398_v53 = vmax.f32 %v6013_v40, %v6396_v36  ;;  %v22250_v40 = vld [vmem:[#allocation36_spill] sm:$0xff]  ;;  %v22251_v36 = vld [vmem:[#allocation35_spill] sm:$0xff] }
 0x34e   : > { %v16280_v13 = vpack.c.bf16 %v6398_v53, %v6397_v10  ;;  %v22252_v10 = vld [vmem:[#allocation40_spill] sm:$0xff]  ;;  %v22253_v53 = vld [vmem:[#allocation37_spill] sm:$0xff] }
 0x350   : > { %16282 = vmatpush3.bf16.msk.msra.mxu1 %vm19692_vm11, %v16280_v13  ;;  %16286 = vmatpush3.bf16.msk.msra.mxu0 %vm19692_vm11, %v16280_v13  ;;  %v22254_v13 = vld [vmem:[#allocation42_spill] sm:$0xff] }
 0x351   : > { %16288 = vmatprep.subr.bf16.mxu1 %v22231_v4  ;;  %16320 = vmatprep.subr.bf16.mxu0 %v18889_v19 }
 0x353   : > { %15180 = vmatmul.mubr.msk.f32.vlgmr.msra.gmra.mrb[96].mxu1 %vm6399_vm12, %v22232_v17  ;;  %15187 = vmatmul.mubr.msk.f32.vlgmr.msra.gmra.mrb[96].mxu0 %vm6399_vm12, %v22233_v15  ;;  %v22258_v15 = vld [vmem:[#allocation46_spill] sm:$0xff]  ;;  %v22259_v17 = vld [vmem:[#allocation45_spill] sm:$0xff] }
 0x354   : > { %16290 = vmatpush3.bf16.msra.mxu1 %v18914_v25  ;;  %6632 = vmatprep.mubr.f32.mxu1 %v22210_v52  ;;  %v22236_v52 = vld [vmem:[#allocation17_spill] sm:$0xff] }
 0x355   : > { %16322 = vmatpush3.bf16.msra.mxu0 %v18922_v26  ;;  %6707 = vmatprep.mubr.f32.mxu0 %v22225_v22 }
 0x356   : > { %16292 = vmatprep.subr.bf16.mxu1 %v18925_v27  ;;  %16324 = vmatprep.subr.bf16.mxu0 %v18931_v28 }
 0x358   : > { %16294 = vmatpush3.bf16.msra.mxu1 %v22234_v12 }
 0x359   : > { %16326 = vmatpush3.bf16.msra.mxu0 %v18962_v37  ;;  %16296 = vmatprep.subr.bf16.mxu1 %v22235_v14 }
 0x35a   : > { %16328 = vmatprep.subr.bf16.mxu0 %v18971_v38 }
 0x35c   : > { %16298 = vmatpush3.bf16.msra.mxu1 %v18989_v43 }
 0x35d   : > { %16330 = vmatpush3.bf16.msra.mxu0 %v18998_v46  ;;  %16300 = vmatprep.subr.bf16.mxu1 %v19001_v47 }
 0x35e   : > { %16332 = vmatprep.subr.bf16.mxu0 %v19007_v56 }
 0x360   : > { %16302 = vmatpush3.bf16.msra.mxu1 %v19025_v63 }
 0x361   : > { %16334 = vmatpush3.bf16.msra.mxu0 %v19034_v1  ;;  %16304 = vmatprep.subr.bf16.mxu1 %v19037_v3 }
 0x362   : > { %16336 = vmatprep.subr.bf16.mxu0 %v19043_v6 }
 0x364   : > { %16306 = vmatpush3.bf16.msra.mxu1 %v22236_v52 }
 0x365   : > { %16338 = vmatpush3.bf16.msra.mxu0 %v19070_v54  ;;  %16308 = vmatprep.subr.bf16.mxu1 %v19073_v16 }
 0x366   : > { %16340 = vmatprep.subr.bf16.mxu0 %v19079_v20 }
 0x368   : > { %16310 = vmatpush3.bf16.msra.mxu1 %v19097_v50 }
 0x369   : > { %16342 = vmatpush3.bf16.msra.mxu0 %v19106_v30  ;;  %16312 = vmatprep.subr.bf16.mxu1 %v19109_v31 }
 0x36a   : > { %16344 = vmatprep.subr.bf16.mxu0 %v19115_v33 }
 0x36c   : > { %16314 = vmatpush3.bf16.msra.mxu1 %v19133_v41 }
 0x36d   : > { %16346 = vmatpush3.bf16.msra.mxu0 %v19142_v44  ;;  %16316 = vmatprep.subr.bf16.mxu1 %v19145_v45 }
 0x36e   : > { %16348 = vmatprep.subr.bf16.mxu0 %v19151_v57 }
 0x370   : > { %16318 = vmatpush3.bf16.msra.mxu1 %v19169_v0 }
 0x371   : > { %16350 = vmatpush3.bf16.msra.mxu0 %v22201_v2  ;;  %16352 = vmatprep.subr.bf16.mxu1 %v19175_v7 }
 0x372   : > { %16384 = vmatprep.subr.bf16.mxu0 %v22202_v9 }
 0x373   : > { %6633 = vmatmul.mubr.f32.vlgmr.msra.gmra.mrb[98].mxu1 %v19288_v51  ;;  %v22238_v51 = vld [vmem:[#allocation20_spill] sm:$0xff] }
 0x374   : > { %6708 = vmatmul.mubr.f32.vlgmr.msra.gmra.mrb[98].mxu0 %v19509_v58  ;;  %6637 = vmatprep.mubr.f32.mxu1 %v6553_v48  ;;  %v19750_v58 = vld [vmem:[#allocation3 + $0x41] sm:$0xff] }
 0x375   : > { %6712 = vmatprep.mubr.f32.mxu0 %v19742_v32  ;;  %16354 = vmatpush3.bf16.msra.mxu1 %v19210_v42  ;;  %v22255_v48 = vld [vmem:[#allocation41_spill] sm:$0xff] }
 0x376   : > { %16386 = vmatpush3.bf16.msra.mxu0 %v22205_v23  ;;  %16356 = vmatprep.subr.bf16.mxu1 %v19215_v60 }
 0x377   : > { %6638 = vmatmul.mubr.f32.gmra.mrb[100].mxu1 %v6551_v62  ;;  %16388 = vmatprep.subr.bf16.mxu0 %v22237_v49  ;;  %v22256_v62 = vld [vmem:[#allocation44_spill] sm:$0xff] }
 0x378   : > { %6713 = vmatmul.mubr.f32.gmra.mrb[100].mxu0 %v6555_v55  ;;  %6782 = vmatprep.mubr.f32.mxu1 %v22238_v51  ;;  %v22257_v55 = vld [vmem:[#allocation43_spill] sm:$0xff] }
 0x379   : > { %16358 = vmatpush3.bf16.msra.mxu1 %v22239_v59  ;;  %6857 = vmatprep.mubr.f32.mxu0 %v19750_v58 }
 0x37a   : > { %16390 = vmatpush3.bf16.msra.mxu0 %v22240_v29  ;;  %16360 = vmatprep.subr.bf16.mxu1 %v22241_v5 }
 0x37b   : > { %16392 = vmatprep.subr.bf16.mxu0 %v22242_v8  ;;  %v19795_v8 = vld [vmem:[#allocation3 + $0x42] sm:$0xff] }
 0x37d   : > { %16362 = vmatpush3.bf16.msra.mxu1 %v22243_v34 }
 0x37e   : > { %16394 = vmatpush3.bf16.msra.mxu0 %v22244_v24  ;;  %16364 = vmatprep.subr.bf16.mxu1 %v22245_v11  ;;  %v19782_v24 = vld [vmem:[#allocation3 + $0x3a] sm:$0x7] }
 0x37f   : > { %16396 = vmatprep.subr.bf16.mxu0 %v22246_v61  ;;  %v22264_v61 = vld [vmem:[#allocation53_spill] sm:$0xff] }
 0x381   : > { %16366 = vmatpush3.bf16.msra.mxu1 %v22247_v35 }
 0x382   : > { %16398 = vmatpush3.bf16.msra.mxu0 %v22248_v39  ;;  %16368 = vmatprep.subr.bf16.mxu1 %v22249_v21  ;;  %v22262_v39 = vld [vmem:[#allocation51_spill] sm:$0xff] }
 0x383   : > { %16400 = vmatprep.subr.bf16.mxu0 %v22250_v40  ;;  %v22261_v40 = vld [vmem:[#allocation47_spill] sm:$0xff] }
 0x385   : > { %16370 = vmatpush3.bf16.msra.mxu1 %v22251_v36 }
 0x386   : > { %16402 = vmatpush3.bf16.msra.mxu0 %v22252_v10  ;;  %16372 = vmatprep.subr.bf16.mxu1 %v22253_v53  ;;  %v22263_v10 = vld [vmem:[#allocation50_spill] sm:$0xff] }
 0x387   : > { %16404 = vmatprep.subr.bf16.mxu0 %v22254_v13  ;;  %v22265_v13 = vld [vmem:[#allocation52_spill] sm:$0xff] }
 0x389   : > { %16374 = vmatpush3.bf16.msra.mxu1 %v22255_v48 }
 0x38a   : > { %16406 = vmatpush3.bf16.msra.mxu0 %v22256_v62  ;;  %16376 = vmatprep.subr.bf16.mxu1 %v22257_v55  ;;  %v22266_v62 = vld [vmem:[#allocation19_spill] sm:$0xff] }
 0x38b   : > { %16408 = vmatprep.subr.bf16.mxu0 %v22258_v15  ;;  %v22267_v15 = vld [vmem:[#allocation48_spill] sm:$0xff] }
 0x38d   : > { %16378 = vmatpush3.bf16.msra.mxu1 %v22259_v17 }
 0x38e   : > { %16410 = vmatpush3.bf16.msra.mxu0 %v22260_v18  ;;  %16380 = vmatprep.subr.bf16.mxu1 %v22261_v40  ;;  %v19786_v18 = vld [vmem:[#allocation3 + $0x49] sm:$0x7] }
 0x38f   : > { %16412 = vmatprep.subr.bf16.mxu0 %v22262_v39  ;;  %22268 = vst [vmem:[#allocation38_spill] sm:$0xff] %v19786_v18  ;;  %v22269_v39 = vld [vmem:[#allocation54_spill] sm:$0xff] }
 0x391   : > { %16382 = vmatpush3.bf16.msra.mxu1 %v22263_v10 }
 0x392   : > { %16414 = vmatpush3.bf16.msra.mxu0 %v22264_v61  ;;  %16416 = vmatprep.subr.bf16.mxu1 %v22265_v13  ;;  %v6559_v61 = vld [vmem:[#allocation3 + $0x39] sm:$0x7] }
 0x393   : > { %16448 = vmatprep.subr.bf16.mxu0 %v22231_v4  ;;  %v19792_v4 = vld [vmem:[#allocation3 + $0x48] sm:$0x7] }
 0x394   : > { %6783 = vmatmul.mubr.f32.vlgmr.msra.gmra.mrb[102].mxu1 %v22266_v62 }
 0x395   : > { %6858 = vmatmul.mubr.f32.vlgmr.msra.gmra.mrb[102].mxu0 %v22267_v15  ;;  %6787 = vmatprep.mubr.f32.mxu1 %v19782_v24 }
 0x396   : > { %6862 = vmatprep.mubr.f32.mxu0 %v19786_v18  ;;  %16418 = vmatpush3.bf16.msra.mxu1 %v22265_v13  ;;  %v22272_v18 = vld [vmem:[#allocation59_spill] sm:$0xff] }
 0x397   : > { %16450 = vmatpush3.bf16.msra.mxu0 %v18914_v25  ;;  %16420 = vmatprep.subr.bf16.mxu1 %v22269_v39  ;;  %v22270_v25 = vld [vmem:[#allocation57_spill] sm:$0xff] }
 0x398   : > { %6788 = vmatmul.mubr.f32.gmra.mrb[104].mxu1 %v6559_v61  ;;  %16452 = vmatprep.subr.bf16.mxu0 %v18925_v27  ;;  %v22271_v27 = vld [vmem:[#allocation58_spill] sm:$0xff] }
 0x399   : > { %6863 = vmatmul.mubr.f32.gmra.mrb[104].mxu0 %v19792_v4  ;;  %15221 = vmatprep.mubr.f32.mxu1 %v19795_v8 }
 0x39a   : > { %16422 = vmatpush3.bf16.msra.mxu1 %v22269_v39  ;;  %7015 = vmatprep.mubr.f32.mxu0 %v22266_v62  ;;  %v22273_v62 = vld [vmem:[#allocation60_spill] sm:$0xff] }
 0x39b   : > { %16454 = vmatpush3.bf16.msra.mxu0 %v22234_v12  ;;  %16424 = vmatprep.subr.bf16.mxu1 %v22270_v25 }
 0x39c   : > { %16456 = vmatprep.subr.bf16.mxu0 %v22235_v14 }
 0x39e   : > { %16426 = vmatpush3.bf16.msra.mxu1 %v22270_v25 }
 0x39f   : > { %16458 = vmatpush3.bf16.msra.mxu0 %v18989_v43  ;;  %16428 = vmatprep.subr.bf16.mxu1 %v22271_v27 }
 0x3a0   : > { %16460 = vmatprep.subr.bf16.mxu0 %v19001_v47  ;;  %v22274_v47 = vld [vmem:[#allocation61_spill] sm:$0xff] }
 0x3a2   : > { %16430 = vmatpush3.bf16.msra.mxu1 %v22271_v27 }
 0x3a3   : > { %16462 = vmatpush3.bf16.msra.mxu0 %v19025_v63  ;;  %16432 = vmatprep.subr.bf16.mxu1 %v22272_v18 }
 0x3a4   : > { %16464 = vmatprep.subr.bf16.mxu0 %v19037_v3  ;;  %v22275_v3 = vld [vmem:[#allocation62_spill] sm:$0xff] }
 0x3a6   : > { %16434 = vmatpush3.bf16.msra.mxu1 %v22272_v18 }
 0x3a7   : > { %16466 = vmatpush3.bf16.msra.mxu0 %v22236_v52  ;;  %16436 = vmatprep.subr.bf16.mxu1 %v22273_v62 }
 0x3a8   : > { %16468 = vmatprep.subr.bf16.mxu0 %v19073_v16  ;;  %v6567_v16 = vld [vmem:[#allocation3 + $0x4a] sm:$0x7] }
 0x3aa   : > { %16438 = vmatpush3.bf16.msra.mxu1 %v22273_v62 }
 0x3ab   : > { %16470 = vmatpush3.bf16.msra.mxu0 %v19097_v50  ;;  %16440 = vmatprep.subr.bf16.mxu1 %v22274_v47 }
 0x3ac   : > { %16472 = vmatprep.subr.bf16.mxu0 %v19109_v31 }
 0x3ae   : > { %16442 = vmatpush3.bf16.msra.mxu1 %v22274_v47 }
 0x3af   : > { %16474 = vmatpush3.bf16.msra.mxu0 %v19133_v41  ;;  %16444 = vmatprep.subr.bf16.mxu1 %v22275_v3 }
 0x3b0   : > { %16476 = vmatprep.subr.bf16.mxu0 %v19145_v45 }
 0x3b2   : > { %16446 = vmatpush3.bf16.msra.mxu1 %v22275_v3 }
 0x3b3   : > { %16478 = vmatpush3.bf16.msra.mxu0 %v19169_v0  ;;  %16480 = vmatprep.subr.bf16.mxu1 %v18889_v19 }
 0x3b4   : > { %16512 = vmatprep.subr.bf16.mxu0 %v19175_v7 }
 0x3b5   : > { %15222 = vmatmul.mubr.f32.vlgmr.msra.gmra.mrb[106].mxu1 %v6567_v16 }
 0x3b6   : > { %7016 = vmatmul.mubr.f32.vlgmr.msra.gmra.mrb[106].mxu0 %v22225_v22  ;;  %16482 = vmatpush3.bf16.msra.mxu1 %v18922_v26  ;;  %v19872_v22 = vld [vmem:[#allocation3 + $0x51] sm:$0xff] }
 0x3b7   : > { %7020 = vmatprep.mubr.f32.mxu0 %v6559_v61  ;;  %7090 = vmatprep.mubr.f32.mxu1 %v22267_v15  ;;  %22276 = vst [vmem:[#allocation56_spill] sm:$0xff] %v19872_v22  ;;  %v19877_v15 = vld [vmem:[#allocation3 + $0x52] sm:$0xff]  ;;  %v22282_v61 = vld [vmem:[#allocation36_spill] sm:$0xff] }
 0x3b8   : > { %16514 = vmatpush3.bf16.msra.mxu0 %v19210_v42  ;;  %16484 = vmatprep.subr.bf16.mxu1 %v18931_v28 }
 0x3b9   : > { %16516 = vmatprep.subr.bf16.mxu0 %v19215_v60 }
 0x3ba   : > { %7021 = vmatmul.mubr.f32.gmra.mrb[108].mxu0 %v19742_v32  ;;  %16486 = vmatpush3.bf16.msra.mxu1 %v18962_v37  ;;  %v22278_v32 = vld [vmem:[#allocation27_spill] sm:$0xff] }
 0x3bb   : > { %7165 = vmatprep.mubr.f32.mxu0 %v19795_v8  ;;  %16488 = vmatprep.subr.bf16.mxu1 %v18971_v38 }
 0x3bc   : > { %16518 = vmatpush3.bf16.msra.mxu0 %v22239_v59 }
 0x3bd   : > { %16520 = vmatprep.subr.bf16.mxu0 %v22241_v5 }
 0x3be   : > { %16490 = vmatpush3.bf16.msra.mxu1 %v18998_v46 }
 0x3bf   : > { %16492 = vmatprep.subr.bf16.mxu1 %v19007_v56 }
 0x3c0   : > { %16522 = vmatpush3.bf16.msra.mxu0 %v22243_v34 }
 0x3c1   : > { %16524 = vmatprep.subr.bf16.mxu0 %v22245_v11 }
 0x3c2   : > { %16494 = vmatpush3.bf16.msra.mxu1 %v19034_v1 }
 0x3c3   : > { %16496 = vmatprep.subr.bf16.mxu1 %v19043_v6 }
 0x3c4   : > { %16526 = vmatpush3.bf16.msra.mxu0 %v22247_v35 }
 0x3c5   : > { %16528 = vmatprep.subr.bf16.mxu0 %v22249_v21 }
 0x3c6   : > { %16498 = vmatpush3.bf16.msra.mxu1 %v19070_v54 }
 0x3c7   : > { %16500 = vmatprep.subr.bf16.mxu1 %v19079_v20 }
 0x3c8   : > { %16530 = vmatpush3.bf16.msra.mxu0 %v22251_v36 }
 0x3c9   : > { %16532 = vmatprep.subr.bf16.mxu0 %v22253_v53 }
 0x3ca   : > { %16502 = vmatpush3.bf16.msra.mxu1 %v19106_v30 }
 0x3cb   : > { %16504 = vmatprep.subr.bf16.mxu1 %v19115_v33 }
 0x3cc   : > { %16534 = vmatpush3.bf16.msra.mxu0 %v22255_v48 }
 0x3cd   : > { %16536 = vmatprep.subr.bf16.mxu0 %v22257_v55 }
 0x3ce   : > { %16506 = vmatpush3.bf16.msra.mxu1 %v19142_v44 }
 0x3cf   : > { %16508 = vmatprep.subr.bf16.mxu1 %v19151_v57 }
 0x3d0   : > { %16538 = vmatpush3.bf16.msra.mxu0 %v22259_v17  ;;  %v6948_v17 = vld [vmem:[#allocation3 + $0x59] sm:$0x7] }
 0x3d1   : > { %16540 = vmatprep.subr.bf16.mxu0 %v22261_v40  ;;  %v22291_v40 = vld [vmem:[#allocation55_spill] sm:$0xff] }
 0x3d2   : > { %16510 = vmatpush3.bf16.msra.mxu1 %v22201_v2 }
 0x3d3   : > { %16544 = vmatprep.subr.bf16.mxu1 %v22202_v9 }
 0x3d4   : > { %16542 = vmatpush3.bf16.msra.mxu0 %v22263_v10  ;;  %v22289_v10 = vld [vmem:[#allocation53_spill] sm:$0xff] }
 0x3d5   : > { %7091 = vmatmul.mubr.f32.vlgmr.msra.gmra.mrb[108].mxu1 %v22238_v51  ;;  %16576 = vmatprep.subr.bf16.mxu0 %v22265_v13  ;;  %v22280_v51 = vld [vmem:[#allocation32_spill] sm:$0xff] }
 0x3d6   : > { %7095 = vmatprep.mubr.f32.mxu1 %v19792_v4  ;;  %16546 = vmatpush3.bf16.msra.mxu1 %v22205_v23  ;;  %v22277_v4 = vld [vmem:[#allocation38_spill] sm:$0xff] }
 0x3d7   : > { %7166 = vmatmul.mubr.f32.vlgmr.msra.gmra.mrb[110].mxu0 %v19750_v58  ;;  %16548 = vmatprep.subr.bf16.mxu1 %v22237_v49 }
 0x3d8   : > { %7170 = vmatprep.mubr.f32.mxu0 %v6567_v16  ;;  %16578 = vmatpush3.bf16.msra.mxu0 %v22265_v13  ;;  %v22279_v16 = vld [vmem:[#allocation30_spill] sm:$0xff]  ;;  %v22287_v13 = vld [vmem:[#allocation49_spill] sm:$0xff] }
 0x3d9   : > { %7096 = vmatmul.mubr.f32.gmra.mrb[110].mxu1 %v19782_v24  ;;  %16580 = vmatprep.subr.bf16.mxu0 %v22269_v39  ;;  %v22281_v24 = vld [vmem:[#allocation34_spill] sm:$0xff] }
 0x3da   : > { %16550 = vmatpush3.bf16.msra.mxu1 %v22240_v29  ;;  %7240 = vmatprep.mubr.f32.mxu1 %v19872_v22  ;;  %v22285_v22 = vld [vmem:[#allocation44_spill] sm:$0xff] }
 0x3db   : > { %7171 = vmatmul.mubr.f32.gmra.mrb[112].mxu0 %v22277_v4  ;;  %16552 = vmatprep.subr.bf16.mxu1 %v22278_v32  ;;  %v22283_v4 = vld [vmem:[#allocation40_spill] sm:$0xff] }
 0x3dc   : > { %16582 = vmatpush3.bf16.msra.mxu0 %v22269_v39  ;;  %15256 = vmatprep.mubr.f32.mxu0 %v19877_v15  ;;  %v22284_v39 = vld [vmem:[#allocation42_spill] sm:$0xff] }
 0x3dd   : > { %16584 = vmatprep.subr.bf16.mxu0 %v22270_v25 }
 0x3de   : > { %16554 = vmatpush3.bf16.msra.mxu1 %v22279_v16 }
 0x3df   : > { %16556 = vmatprep.subr.bf16.mxu1 %v22280_v51 }
 0x3e0   : > { %16586 = vmatpush3.bf16.msra.mxu0 %v22270_v25  ;;  %v22286_v25 = vld [vmem:[#allocation46_spill] sm:$0xff] }
 0x3e1   : > { %16588 = vmatprep.subr.bf16.mxu0 %v22271_v27 }
 0x3e2   : > { %16558 = vmatpush3.bf16.msra.mxu1 %v22281_v24 }
 0x3e3   : > { %16560 = vmatprep.subr.bf16.mxu1 %v22282_v61 }
 0x3e4   : > { %16590 = vmatpush3.bf16.msra.mxu0 %v22271_v27  ;;  %v22288_v27 = vld [vmem:[#allocation51_spill] sm:$0xff] }
 0x3e5   : > { %16592 = vmatprep.subr.bf16.mxu0 %v22272_v18 }
 0x3e6   : > { %16562 = vmatpush3.bf16.msra.mxu1 %v22283_v4 }
 0x3e7   : > { %16564 = vmatprep.subr.bf16.mxu1 %v22284_v39  ;;  %v22293_v39 = vld [vmem:[#allocation28_spill] sm:$0xff] }
 0x3e8   : > { %16594 = vmatpush3.bf16.msra.mxu0 %v22272_v18  ;;  %v22290_v18 = vmov 0.0|0.0  }
 0x3e9   : > { %16596 = vmatprep.subr.bf16.mxu0 %v22273_v62 }
 0x3ea   : > { %16566 = vmatpush3.bf16.msra.mxu1 %v22285_v22 }
 0x3eb   : > { %16568 = vmatprep.subr.bf16.mxu1 %v22286_v25 }
 0x3ec   : > { %16598 = vmatpush3.bf16.msra.mxu0 %v22273_v62  ;;  %v6950_v62 = vld [vmem:[#allocation3 + $0x5a] sm:$0x7] }
 0x3ed   : > { %16600 = vmatprep.subr.bf16.mxu0 %v22274_v47 }
 0x3ee   : > { %16570 = vmatpush3.bf16.msra.mxu1 %v22287_v13  ;;  %v6946_v13 = vld [vmem:[#allocation3 + $0x58] sm:$0x7] }
 0x3ef   : > { %16572 = vmatprep.subr.bf16.mxu1 %v22288_v27  ;;  %v22292_v27 = vmov 0.0  }
 0x3f0   : > { %16602 = vmatpush3.bf16.msra.mxu0 %v22274_v47 }
 0x3f1   : > { %16604 = vmatprep.subr.bf16.mxu0 %v22275_v3 }
 0x3f2   : > { %16574 = vmatpush3.bf16.msra.mxu1 %v22289_v10 }
 0x3f3   : > { %16611 = vmatprep.subr.bf16.mxu1 %v22290_v18 }
 0x3f4   : > { %16606 = vmatpush3.bf16.msra.mxu0 %v22275_v3 }
 0x3f5   : > { %7241 = vmatmul.mubr.f32.vlgmr.msra.gmra.mrb[112].mxu1 %v22291_v40  ;;  %16607 = vmatprep.subr.bf16.mxu0 %v22290_v18 }
 0x3f6   : > { %7245 = vmatprep.mubr.f32.mxu1 %v6948_v17 }
 0x3f7   : > { %15257 = vmatmul.mubr.f32.vlgmr.msra.gmra.mrb[114].mxu0 %v6950_v62 }
 0x3f8   : > { %15263 = vmatprep.mubr.msk.f32.mxu0 %vm18146_vm9, %v22292_v27 }
 0x3f9   : > { %7246 = vmatmul.mubr.f32.gmra.mrb[114].mxu1 %v6946_v13 }
 0x3fa   : > { %15270 = vmatprep.mubr.msk.f32.mxu1 %vm18146_vm9, %v22292_v27 }
 0x426   : > { %v6472_v47 = vpop.f32.mrb[96].mxu1  ;;  %v6544_v10 = vpop.f32.mrb[96].mxu0 }
 0x427   : > { %v15181_v25 = vpop.f32.mrb[97].mxu1  ;;  %v6548_v3 = vmax.f32 %v6472_v47, %v6544_v10  ;;  %v15188_v55 = vpop.f32.mrb[97].mxu0 }
 0x429   : > { %6549 = vst [vmem:[#allocation4] sm:$0x1f] %v6548_v3 }
 0x446   : > { %v12753_v40 = vpop.f32.mrb[98].mxu1 }
 0x447   : > { %v12791_v22 = vpop.f32.mrb[98].mxu0  ;;  %v12754_v18 = vpop.f32.mrb[99].mxu1 }
 0x448   : > { %v12755_v48 = vadd.f32 %v12754_v18, %v12753_v40  ;;  %v12792_v17 = vpop.f32.mrb[99].mxu0 }
 0x449   : > { %v12793_v62 = vadd.f32 %v12792_v17, %v12791_v22 }
 0x44a   : > { %v6635_v53 = vadd.f32 %v12755_v48, %v22293_v39  ;;  %v12756_v4 = vpop.f32.mrb[100].mxu1 }
 0x44b   : > { %v12794_v36 = vpop.f32.mrb[100].mxu0  ;;  %v12757_v13 = vpop.f32.mrb[101].mxu1 }
 0x44c   : > { %v6710_v61 = vadd.f32 %v12793_v62, %v6635_v53  ;;  %v12758_v21 = vadd.f32 %v12757_v13, %v12756_v4  ;;  %v12795_v27 = vpop.f32.mrb[101].mxu0 }
 0x44d   : > { %v12796_v24 = vadd.f32 %v12795_v27, %v12794_v36 }
 0x44e   : > { %v6640_v25 = vadd.f32 %v12758_v21, %v22293_v39 }
 0x450   : > { %v6715_v47 = vadd.f32 %v12796_v24, %v6640_v25 }
 0x467   : > { %v12829_v10 = vpop.f32.mrb[102].mxu1 }
 0x468   : > { %v12867_v3 = vpop.f32.mrb[102].mxu0  ;;  %v12830_v55 = vpop.f32.mrb[103].mxu1 }
 0x469   : > { %v12831_v35 = vadd.f32 %v12830_v55, %v12829_v10  ;;  %v12868_v51 = vpop.f32.mrb[103].mxu0 }
 0x46a   : > { %v12869_v18 = vadd.f32 %v12868_v51, %v12867_v3 }
 0x46b   : > { %v6785_v40 = vadd.f32 %v12831_v35, %v6710_v61  ;;  %v12832_v22 = vpop.f32.mrb[104].mxu1 }
 0x46c   : > { %v12870_v17 = vpop.f32.mrb[104].mxu0  ;;  %v12833_v48 = vpop.f32.mrb[105].mxu1 }
 0x46d   : > { %v12834_v11 = vadd.f32 %v12833_v48, %v12832_v22  ;;  %v12871_v16 = vpop.f32.mrb[105].mxu0  ;;  %v6860_v34 = vadd.f32 %v12869_v18, %v6785_v40 }
 0x46e   : > { %v12872_v53 = vadd.f32 %v12871_v16, %v12870_v17 }
 0x46f   : > { %v6790_v4 = vadd.f32 %v12834_v11, %v6715_v47 }
 0x471   : > { %v6865_v62 = vadd.f32 %v12872_v53, %v6790_v4 }
 0x488   : > { %v15223_v27 = vpop.f32.mrb[106].mxu1 }
 0x489   : > { %v6940_v36 = vadd.f32 %v15223_v27, %v6865_v62  ;;  %v12923_v21 = vpop.f32.mrb[106].mxu0  ;;  %v6934_v24 = vpop.f32.mrb[107].mxu1 }
 0x48a   : > { %v6935_v13 = vadd.f32 %v6934_v24, %v6860_v34  ;;  %v12924_v25 = vpop.f32.mrb[107].mxu0 }
 0x48b   : > { %v12925_v32 = vadd.f32 %v12924_v25, %v12923_v21 }
 0x48d   : > { %v12926_v10 = vpop.f32.mrb[108].mxu0  ;;  %v7018_v3 = vadd.f32 %v12925_v32, %v22293_v39 }
 0x48e   : > { %v12927_v55 = vpop.f32.mrb[109].mxu0 }
 0x48f   : > { %v12928_v51 = vadd.f32 %v12927_v55, %v12926_v10 }
 0x491   : > { %v7023_v17 = vadd.f32 %v12928_v51, %v22293_v39 }
 0x4a8   : > { %v12961_v35 = vpop.f32.mrb[108].mxu1 }
 0x4a9   : > { %v12962_v61 = vpop.f32.mrb[109].mxu1 }
 0x4aa   : > { %v12999_v22 = vpop.f32.mrb[110].mxu0  ;;  %v12963_v48 = vadd.f32 %v12962_v61, %v12961_v35 }
 0x4ab   : > { %v13000_v18 = vpop.f32.mrb[111].mxu0 }
 0x4ac   : > { %v7093_v16 = vadd.f32 %v12963_v48, %v7018_v3  ;;  %v13001_v11 = vadd.f32 %v13000_v18, %v12999_v22  ;;  %v12964_v47 = vpop.f32.mrb[110].mxu1  ;;  %v6943_v18 = vmax.f32 %v6935_v13, 0.0  ;;  %v22297_v13 = vld [vmem:[#allocation9_spill] sm:$0xff] }
 0x4ad   : > { %v12965_v40 = vpop.f32.mrb[111].mxu1 }
 0x4ae   : > { %v7168_v53 = vadd.f32 %v13001_v11, %v7093_v16  ;;  %v13002_v34 = vpop.f32.mrb[112].mxu0  ;;  %v12966_v4 = vadd.f32 %v12965_v40, %v12964_v47  ;;  %v6944_v11 = vmax.f32 %v6940_v36, 0.0  ;;  %v19929_v36 = vld [vmem:[#allocation3 + $0x50] sm:$0xff] }
 0x4af   : > { %v13003_v62 = vpop.f32.mrb[113].mxu0 }
 0x4b0   : > { %v7098_v27 = vadd.f32 %v12966_v4, %v7023_v17  ;;  %v13004_v21 = vadd.f32 %v13003_v62, %v13002_v34  ;;  %v22299_v4 = vld [vmem:[#allocation12_spill] sm:$0xff]  ;;  %v22323_v34 = vld [vmem:[#allocation49_spill] sm:$0xff] }
 0x4b1   : > { %v22301_v62 = vld [vmem:[#allocation16_spill] sm:$0xff] }
 0x4b2   : > { %v7173_v24 = vadd.f32 %v13004_v21, %v7098_v27  ;;  %v22302_v27 = vld [vmem:[#allocation18_spill] sm:$0xff]  ;;  %v7476_v21 = vld [vmem:[#allocation3 + $0x40] sm:$0xff] }
 0x4c8   : > { %v13037_v25 = vpop.f32.mrb[112].mxu1 }
 0x4c9   : > { %v13038_v10 = vpop.f32.mrb[113].mxu1 }
 0x4ca   : > { %v15258_v55 = vpop.f32.mrb[114].mxu0  ;;  %v13039_v32 = vadd.f32 %v13038_v10, %v13037_v25  ;;  %v19963_v25 = vld [vmem:[#allocation3 + $0x58] sm:$0x7]  ;;  %v7477_v10 = vld [vmem:[#allocation3 + $0x48] sm:$0x7] }
 0x4cb   : > { %v7317_v5 = vpop.f32.mrb[115].mxu0 }
 0x4cc   : > { %v7243_v35 = vadd.f32 %v13039_v32, %v7168_v53  ;;  %v13040_v61 = vpop.f32.mrb[114].mxu1  ;;  %v22295_v53 = vld [vmem:[#allocation10_spill] sm:$0xff]  ;;  %v22303_v32 = vld [vmem:[#allocation25_spill] sm:$0xff] }
 0x4cd   : > { %v13041_v3 = vpop.f32.mrb[115].mxu1 }
 0x4ce   : > { %v7318_v22 = vadd.f32 %v7317_v5, %v7243_v35  ;;  %v13042_v48 = vadd.f32 %v13041_v3, %v13040_v61  ;;  %v22296_v5 = vld [vmem:[#allocation8_spill] sm:$0xff]  ;;  %v22305_v61 = vld [vmem:[#allocation27_spill] sm:$0xff]  ;;  %v22306_v3 = vld [vmem:[#allocation26_spill] sm:$0xff] }
 0x4cf   : > { %v22304_v35 = vld [vmem:[#allocation24_spill] sm:$0xff] }
 0x4d0   : > { %v7326_v29 = vmax.f32 %v7318_v22, 0.0  ;;  %v7248_v39 = vadd.f32 %v13042_v48, %v7173_v24  ;;  %v7479_v24 = vld [vmem:[#allocation3 + $0x49] sm:$0x7] }
 0x4d1   : > { %v22307_v22 = vld [vmem:[#allocation30_spill] sm:$0xff]  ;;  %v22308_v48 = vld [vmem:[#allocation29_spill] sm:$0xff] }
 0x4d2   : > { %v7328_v51 = vmax.f32 %v6943_v18, %v7326_v29  ;;  %v7323_v16 = vadd.f32 %v15258_v55, %v7248_v39  ;;  %v22298_v29 = vld [vmem:[#allocation11_spill] sm:$0xff]  ;;  %v7481_v55 = vld [vmem:[#allocation3 + $0x4a] sm:$0x7]  ;;  %v22309_v18 = vld [vmem:[#allocation32_spill] sm:$0xff] }
 0x4d3   : > { %v22310_v39 = vld [vmem:[#allocation31_spill] sm:$0xff] }
 0x4d4   : > { %v7327_v47 = vmax.f32 %v7323_v16, 0.0  ;;  %v22312_v16 = vld [vmem:[#allocation33_spill] sm:$0xff] }
 0x4d6   : > { %v7329_v40 = vmax.f32 %v6944_v11, %v7327_v47  ;;  %v22313_v11 = vld [vmem:[#allocation36_spill] sm:$0xff]  ;;  %v22314_v47 = vld [vmem:[#allocation35_spill] sm:$0xff] }
 0x4d8   : > { %v16608_v17 = vpack.c.bf16 %v7329_v40, %v7328_v51  ;;  %v22311_v51 = vld [vmem:[#allocation34_spill] sm:$0xff]  ;;  %v22315_v40 = vld [vmem:[#allocation40_spill] sm:$0xff] }
 0x4da   : > { %16610 = vmatpush3.bf16.msk.msra.mxu0 %vm19692_vm11, %v16608_v17  ;;  %16614 = vmatpush3.bf16.msk.msra.mxu1 %vm19692_vm11, %v16608_v17  ;;  %v22316_v17 = vld [vmem:[#allocation37_spill] sm:$0xff] }
 0x4db   : > { %16616 = vmatprep.subr.bf16.mxu0 %v22295_v53  ;;  %16648 = vmatprep.subr.bf16.mxu1 %v18889_v19 }
 0x4dd   : > { %15264 = vmatmul.mubr.msk.f32.vlgmr.msra.gmra.mrb[116].mxu0 %vm6399_vm12, %v22296_v5  ;;  %15271 = vmatmul.mubr.msk.f32.vlgmr.msra.gmra.mrb[116].mxu1 %vm6399_vm12, %v22297_v13  ;;  %v22321_v13 = vld [vmem:[#allocation46_spill] sm:$0xff]  ;;  %v22322_v5 = vld [vmem:[#allocation45_spill] sm:$0xff] }
 0x4de   : > { %16618 = vmatpush3.bf16.msra.mxu0 %v22298_v29  ;;  %7558 = vmatprep.mubr.f32.mxu0 %v19750_v58  ;;  %v22300_v58 = vld [vmem:[#allocation15_spill] sm:$0xff] }
 0x4df   : > { %16650 = vmatpush3.bf16.msra.mxu1 %v18922_v26  ;;  %7633 = vmatprep.mubr.f32.mxu1 %v19929_v36 }
 0x4e0   : > { %16620 = vmatprep.subr.bf16.mxu0 %v22299_v4  ;;  %16652 = vmatprep.subr.bf16.mxu1 %v18931_v28 }
 0x4e2   : > { %16622 = vmatpush3.bf16.msra.mxu0 %v22234_v12 }
 0x4e3   : > { %16654 = vmatpush3.bf16.msra.mxu1 %v18962_v37  ;;  %16624 = vmatprep.subr.bf16.mxu0 %v22235_v14 }
 0x4e4   : > { %16656 = vmatprep.subr.bf16.mxu1 %v18971_v38 }
 0x4e6   : > { %16626 = vmatpush3.bf16.msra.mxu0 %v18989_v43 }
 0x4e7   : > { %16658 = vmatpush3.bf16.msra.mxu1 %v18998_v46  ;;  %16628 = vmatprep.subr.bf16.mxu0 %v22300_v58 }
 0x4e8   : > { %16660 = vmatprep.subr.bf16.mxu1 %v19007_v56 }
 0x4ea   : > { %16630 = vmatpush3.bf16.msra.mxu0 %v19025_v63 }
 0x4eb   : > { %16662 = vmatpush3.bf16.msra.mxu1 %v19034_v1  ;;  %16632 = vmatprep.subr.bf16.mxu0 %v22301_v62 }
 0x4ec   : > { %16664 = vmatprep.subr.bf16.mxu1 %v19043_v6 }
 0x4ee   : > { %16634 = vmatpush3.bf16.msra.mxu0 %v22236_v52 }
 0x4ef   : > { %16666 = vmatpush3.bf16.msra.mxu1 %v19070_v54  ;;  %16636 = vmatprep.subr.bf16.mxu0 %v22302_v27 }
 0x4f0   : > { %16668 = vmatprep.subr.bf16.mxu1 %v19079_v20 }
 0x4f2   : > { %16638 = vmatpush3.bf16.msra.mxu0 %v19097_v50 }
 0x4f3   : > { %16670 = vmatpush3.bf16.msra.mxu1 %v19106_v30  ;;  %16640 = vmatprep.subr.bf16.mxu0 %v19109_v31 }
 0x4f4   : > { %16672 = vmatprep.subr.bf16.mxu1 %v19115_v33 }
 0x4f6   : > { %16642 = vmatpush3.bf16.msra.mxu0 %v19133_v41 }
 0x4f7   : > { %16674 = vmatpush3.bf16.msra.mxu1 %v19142_v44  ;;  %16644 = vmatprep.subr.bf16.mxu0 %v19145_v45 }
 0x4f8   : > { %16676 = vmatprep.subr.bf16.mxu1 %v19151_v57 }
 0x4fa   : > { %16646 = vmatpush3.bf16.msra.mxu0 %v19169_v0 }
 0x4fb   : > { %16678 = vmatpush3.bf16.msra.mxu1 %v22201_v2  ;;  %16680 = vmatprep.subr.bf16.mxu0 %v19175_v7 }
 0x4fc   : > { %16712 = vmatprep.subr.bf16.mxu1 %v22202_v9 }
 0x4fd   : > { %7559 = vmatmul.mubr.f32.vlgmr.msra.gmra.mrb[118].mxu0 %v7476_v21  ;;  %v22317_v21 = vld [vmem:[#allocation42_spill] sm:$0xff] }
 0x4fe   : > { %7634 = vmatmul.mubr.f32.vlgmr.msra.gmra.mrb[118].mxu1 %v19795_v8  ;;  %7563 = vmatprep.mubr.f32.mxu0 %v7479_v24  ;;  %v19971_v8 = vld [vmem:[#allocation3 + $0x61] sm:$0xff] }
 0x4ff   : > { %7638 = vmatprep.mubr.f32.mxu1 %v19963_v25  ;;  %16682 = vmatpush3.bf16.msra.mxu0 %v19210_v42  ;;  %v22318_v24 = vld [vmem:[#allocation41_spill] sm:$0xff] }
 0x500   : > { %16714 = vmatpush3.bf16.msra.mxu1 %v22205_v23  ;;  %16684 = vmatprep.subr.bf16.mxu0 %v19215_v60 }
 0x501   : > { %7564 = vmatmul.mubr.f32.gmra.mrb[120].mxu0 %v7477_v10  ;;  %16716 = vmatprep.subr.bf16.mxu1 %v22237_v49  ;;  %v22319_v10 = vld [vmem:[#allocation44_spill] sm:$0xff] }
 0x502   : > { %7639 = vmatmul.mubr.f32.gmra.mrb[120].mxu1 %v7481_v55  ;;  %7708 = vmatprep.mubr.f32.mxu0 %v19877_v15  ;;  %v22320_v55 = vld [vmem:[#allocation43_spill] sm:$0xff] }
 0x503   : > { %16686 = vmatpush3.bf16.msra.mxu0 %v22239_v59  ;;  %7783 = vmatprep.mubr.f32.mxu1 %v19971_v8 }
 0x504   : > { %16718 = vmatpush3.bf16.msra.mxu1 %v22303_v32  ;;  %16688 = vmatprep.subr.bf16.mxu0 %v22304_v35 }
 0x505   : > { %16720 = vmatprep.subr.bf16.mxu1 %v22305_v61  ;;  %v20018_v61 = vld [vmem:[#allocation3 + $0x62] sm:$0xff] }
 0x507   : > { %16690 = vmatpush3.bf16.msra.mxu0 %v22306_v3 }
 0x508   : > { %16722 = vmatpush3.bf16.msra.mxu1 %v22307_v22  ;;  %16692 = vmatprep.subr.bf16.mxu0 %v22308_v48  ;;  %v20003_v22 = vld [vmem:[#allocation3 + $0x60] sm:$0xff] }
 0x509   : > { %16724 = vmatprep.subr.bf16.mxu1 %v22309_v18  ;;  %v22327_v18 = vld [vmem:[#allocation53_spill] sm:$0xff] }
 0x50b   : > { %16694 = vmatpush3.bf16.msra.mxu0 %v22310_v39 }
 0x50c   : > { %16726 = vmatpush3.bf16.msra.mxu1 %v22311_v51  ;;  %16696 = vmatprep.subr.bf16.mxu0 %v22312_v16  ;;  %v22325_v51 = vld [vmem:[#allocation51_spill] sm:$0xff] }
 0x50d   : > { %16728 = vmatprep.subr.bf16.mxu1 %v22313_v11  ;;  %v22324_v11 = vld [vmem:[#allocation47_spill] sm:$0xff] }
 0x50f   : > { %16698 = vmatpush3.bf16.msra.mxu0 %v22314_v47 }
 0x510   : > { %16730 = vmatpush3.bf16.msra.mxu1 %v22315_v40  ;;  %16700 = vmatprep.subr.bf16.mxu0 %v22316_v17  ;;  %v22326_v40 = vld [vmem:[#allocation50_spill] sm:$0xff] }
 0x511   : > { %16732 = vmatprep.subr.bf16.mxu1 %v22317_v21  ;;  %v22328_v21 = vld [vmem:[#allocation52_spill] sm:$0xff] }
 0x513   : > { %16702 = vmatpush3.bf16.msra.mxu0 %v22318_v24 }
 0x514   : > { %16734 = vmatpush3.bf16.msra.mxu1 %v22319_v10  ;;  %16704 = vmatprep.subr.bf16.mxu0 %v22320_v55  ;;  %v22329_v10 = vld [vmem:[#allocation56_spill] sm:$0xff] }
 0x515   : > { %16736 = vmatprep.subr.bf16.mxu1 %v22321_v13  ;;  %v20005_v13 = vld [vmem:[#allocation3 + $0x5a] sm:$0x7] }
 0x517   : > { %16706 = vmatpush3.bf16.msra.mxu0 %v22322_v5 }
 0x518   : > { %16738 = vmatpush3.bf16.msra.mxu1 %v22323_v34  ;;  %16708 = vmatprep.subr.bf16.mxu0 %v22324_v11  ;;  %v20009_v34 = vld [vmem:[#allocation3 + $0x69] sm:$0x7] }
 0x519   : > { %16740 = vmatprep.subr.bf16.mxu1 %v22325_v51  ;;  %22330 = vst [vmem:[#allocation39_spill] sm:$0xff] %v20009_v34  ;;  %v20015_v51 = vld [vmem:[#allocation3 + $0x68] sm:$0x7] }
 0x51b   : > { %16710 = vmatpush3.bf16.msra.mxu0 %v22326_v40 }
 0x51c   : > { %16742 = vmatpush3.bf16.msra.mxu1 %v22327_v18  ;;  %16744 = vmatprep.subr.bf16.mxu0 %v22328_v21  ;;  %v7485_v18 = vld [vmem:[#allocation3 + $0x59] sm:$0x7] }
 0x51d   : > { %16776 = vmatprep.subr.bf16.mxu1 %v22295_v53  ;;  %v22331_v53 = vld [vmem:[#allocation54_spill] sm:$0xff] }
 0x51e   : > { %7709 = vmatmul.mubr.f32.vlgmr.msra.gmra.mrb[122].mxu0 %v22329_v10 }
 0x51f   : > { %7784 = vmatmul.mubr.f32.vlgmr.msra.gmra.mrb[122].mxu1 %v20003_v22  ;;  %7713 = vmatprep.mubr.f32.mxu0 %v20005_v13 }
 0x520   : > { %7788 = vmatprep.mubr.f32.mxu1 %v20009_v34  ;;  %16746 = vmatpush3.bf16.msra.mxu0 %v22328_v21  ;;  %v22334_v34 = vld [vmem:[#allocation59_spill] sm:$0xff] }
 0x521   : > { %16778 = vmatpush3.bf16.msra.mxu1 %v22298_v29  ;;  %16748 = vmatprep.subr.bf16.mxu0 %v22331_v53  ;;  %v22332_v29 = vld [vmem:[#allocation57_spill] sm:$0xff] }
 0x522   : > { %7714 = vmatmul.mubr.f32.gmra.mrb[124].mxu0 %v7485_v18  ;;  %16780 = vmatprep.subr.bf16.mxu1 %v22299_v4  ;;  %v22333_v4 = vld [vmem:[#allocation58_spill] sm:$0xff] }
 0x523   : > { %7789 = vmatmul.mubr.f32.gmra.mrb[124].mxu1 %v20015_v51  ;;  %15305 = vmatprep.mubr.f32.mxu0 %v20018_v61 }
 0x524   : > { %16750 = vmatpush3.bf16.msra.mxu0 %v22331_v53  ;;  %7941 = vmatprep.mubr.f32.mxu1 %v22329_v10  ;;  %v22335_v10 = vld [vmem:[#allocation60_spill] sm:$0xff] }
 0x525   : > { %16782 = vmatpush3.bf16.msra.mxu1 %v22234_v12  ;;  %16752 = vmatprep.subr.bf16.mxu0 %v22332_v29 }
 0x526   : > { %16784 = vmatprep.subr.bf16.mxu1 %v22235_v14 }
 0x528   : > { %16754 = vmatpush3.bf16.msra.mxu0 %v22332_v29 }
 0x529   : > { %16786 = vmatpush3.bf16.msra.mxu1 %v18989_v43  ;;  %16756 = vmatprep.subr.bf16.mxu0 %v22333_v4 }
 0x52a   : > { %16788 = vmatprep.subr.bf16.mxu1 %v22300_v58  ;;  %v22336_v58 = vld [vmem:[#allocation61_spill] sm:$0xff] }
 0x52c   : > { %16758 = vmatpush3.bf16.msra.mxu0 %v22333_v4 }
 0x52d   : > { %16790 = vmatpush3.bf16.msra.mxu1 %v19025_v63  ;;  %16760 = vmatprep.subr.bf16.mxu0 %v22334_v34 }
 0x52e   : > { %16792 = vmatprep.subr.bf16.mxu1 %v22301_v62  ;;  %v22337_v62 = vld [vmem:[#allocation62_spill] sm:$0xff] }
 0x530   : > { %16762 = vmatpush3.bf16.msra.mxu0 %v22334_v34 }
 0x531   : > { %16794 = vmatpush3.bf16.msra.mxu1 %v22236_v52  ;;  %16764 = vmatprep.subr.bf16.mxu0 %v22335_v10 }
 0x532   : > { %16796 = vmatprep.subr.bf16.mxu1 %v22302_v27  ;;  %v7493_v27 = vld [vmem:[#allocation3 + $0x6a] sm:$0x7] }
 0x534   : > { %16766 = vmatpush3.bf16.msra.mxu0 %v22335_v10 }
 0x535   : > { %16798 = vmatpush3.bf16.msra.mxu1 %v19097_v50  ;;  %16768 = vmatprep.subr.bf16.mxu0 %v22336_v58 }
 0x536   : > { %16800 = vmatprep.subr.bf16.mxu1 %v19109_v31 }
 0x538   : > { %16770 = vmatpush3.bf16.msra.mxu0 %v22336_v58 }
 0x539   : > { %16802 = vmatpush3.bf16.msra.mxu1 %v19133_v41  ;;  %16772 = vmatprep.subr.bf16.mxu0 %v22337_v62 }
 0x53a   : > { %16804 = vmatprep.subr.bf16.mxu1 %v19145_v45 }
 0x53c   : > { %16774 = vmatpush3.bf16.msra.mxu0 %v22337_v62 }
 0x53d   : > { %16806 = vmatpush3.bf16.msra.mxu1 %v19169_v0  ;;  %16808 = vmatprep.subr.bf16.mxu0 %v18889_v19 }
 0x53e   : > { %16840 = vmatprep.subr.bf16.mxu1 %v19175_v7 }
 0x53f   : > { %15306 = vmatmul.mubr.f32.vlgmr.msra.gmra.mrb[126].mxu0 %v7493_v27 }
 0x540   : > { %7942 = vmatmul.mubr.f32.vlgmr.msra.gmra.mrb[126].mxu1 %v19929_v36  ;;  %16810 = vmatpush3.bf16.msra.mxu0 %v18922_v26  ;;  %v20095_v36 = vld [vmem:[#allocation3 + $0x71] sm:$0xff] }
 0x541   : > { %7946 = vmatprep.mubr.f32.mxu1 %v7485_v18  ;;  %8016 = vmatprep.mubr.f32.mxu0 %v20003_v22  ;;  %22338 = vst [vmem:[#allocation13_spill] sm:$0xff] %v20095_v36  ;;  %v22341_v18 = vld [vmem:[#allocation27_spill] sm:$0xff] }
 0x542   : > { %16842 = vmatpush3.bf16.msra.mxu1 %v19210_v42  ;;  %16812 = vmatprep.subr.bf16.mxu0 %v18931_v28 }
 0x543   : > { %16844 = vmatprep.subr.bf16.mxu1 %v19215_v60 }
 0x544   : > { %7947 = vmatmul.mubr.f32.gmra.mrb[128].mxu1 %v19963_v25  ;;  %16814 = vmatpush3.bf16.msra.mxu0 %v18962_v37  ;;  %v20100_v25 = vld [vmem:[#allocation3 + $0x72] sm:$0xff] }
 0x545   : > { %8091 = vmatprep.mubr.f32.mxu1 %v20018_v61  ;;  %16816 = vmatprep.subr.bf16.mxu0 %v18971_v38  ;;  %22340 = vst [vmem:[#allocation14_spill] sm:$0xff] %v20100_v25 }
 0x546   : > { %16846 = vmatpush3.bf16.msra.mxu1 %v22239_v59 }
 0x547   : > { %16848 = vmatprep.subr.bf16.mxu1 %v22304_v35 }
 0x548   : > { %16818 = vmatpush3.bf16.msra.mxu0 %v18998_v46 }
 0x549   : > { %16820 = vmatprep.subr.bf16.mxu0 %v19007_v56 }
 0x54a   : > { %16850 = vmatpush3.bf16.msra.mxu1 %v22306_v3 }
 0x54b   : > { %16852 = vmatprep.subr.bf16.mxu1 %v22308_v48 }
 0x54c   : > { %16822 = vmatpush3.bf16.msra.mxu0 %v19034_v1 }
 0x54d   : > { %16824 = vmatprep.subr.bf16.mxu0 %v19043_v6 }
 0x54e   : > { %16854 = vmatpush3.bf16.msra.mxu1 %v22310_v39 }
 0x54f   : > { %16856 = vmatprep.subr.bf16.mxu1 %v22312_v16 }
 0x550   : > { %16826 = vmatpush3.bf16.msra.mxu0 %v19070_v54 }
 0x551   : > { %16828 = vmatprep.subr.bf16.mxu0 %v19079_v20 }
 0x552   : > { %16858 = vmatpush3.bf16.msra.mxu1 %v22314_v47 }
 0x553   : > { %16860 = vmatprep.subr.bf16.mxu1 %v22316_v17 }
 0x554   : > { %16830 = vmatpush3.bf16.msra.mxu0 %v19106_v30 }
 0x555   : > { %16832 = vmatprep.subr.bf16.mxu0 %v19115_v33 }
 0x556   : > { %16862 = vmatpush3.bf16.msra.mxu1 %v22318_v24 }
 0x557   : > { %16864 = vmatprep.subr.bf16.mxu1 %v22320_v55 }
 0x558   : > { %16834 = vmatpush3.bf16.msra.mxu0 %v19142_v44 }
 0x559   : > { %16836 = vmatprep.subr.bf16.mxu0 %v19151_v57 }
 0x55a   : > { %16866 = vmatpush3.bf16.msra.mxu1 %v22322_v5  ;;  %v20129_v5 = vld [vmem:[#allocation3 + $0x70] sm:$0xff] }
 0x55b   : > { %16868 = vmatprep.subr.bf16.mxu1 %v22324_v11  ;;  %v22352_v11 = vld [vmem:[#allocation53_spill] sm:$0xff] }
 0x55c   : > { %16838 = vmatpush3.bf16.msra.mxu0 %v22201_v2 }
 0x55d   : > { %16872 = vmatprep.subr.bf16.mxu0 %v22202_v9 }
 0x55e   : > { %16870 = vmatpush3.bf16.msra.mxu1 %v22326_v40  ;;  %v22350_v40 = vld [vmem:[#allocation49_spill] sm:$0xff] }
 0x55f   : > { %8017 = vmatmul.mubr.f32.vlgmr.msra.gmra.mrb[128].mxu0 %v19877_v15  ;;  %16904 = vmatprep.subr.bf16.mxu1 %v22328_v21  ;;  %v22339_v15 = vld [vmem:[#allocation39_spill] sm:$0xff] }
 0x560   : > { %8021 = vmatprep.mubr.f32.mxu0 %v20015_v51  ;;  %16874 = vmatpush3.bf16.msra.mxu0 %v22205_v23  ;;  %v22344_v51 = vld [vmem:[#allocation34_spill] sm:$0xff] }
 0x561   : > { %8092 = vmatmul.mubr.f32.vlgmr.msra.gmra.mrb[130].mxu1 %v19971_v8  ;;  %16876 = vmatprep.subr.bf16.mxu0 %v22237_v49 }
 0x562   : > { %8096 = vmatprep.mubr.f32.mxu1 %v7493_v27  ;;  %16906 = vmatpush3.bf16.msra.mxu1 %v22328_v21  ;;  %v22343_v27 = vld [vmem:[#allocation32_spill] sm:$0xff] }
 0x563   : > { %8022 = vmatmul.mubr.f32.gmra.mrb[130].mxu0 %v20005_v13  ;;  %16908 = vmatprep.subr.bf16.mxu1 %v22331_v53  ;;  %v22342_v13 = vld [vmem:[#allocation30_spill] sm:$0xff]  ;;  %v22348_v21 = vld [vmem:[#allocation44_spill] sm:$0xff] }
 0x564   : > { %16878 = vmatpush3.bf16.msra.mxu0 %v22303_v32  ;;  %8166 = vmatprep.mubr.f32.mxu0 %v20095_v36  ;;  %v22347_v36 = vld [vmem:[#allocation42_spill] sm:$0xff] }
 0x565   : > { %8097 = vmatmul.mubr.f32.gmra.mrb[132].mxu1 %v22339_v15  ;;  %16880 = vmatprep.subr.bf16.mxu0 %v22341_v18  ;;  %v22345_v15 = vld [vmem:[#allocation36_spill] sm:$0xff] }
 0x566   : > { %16910 = vmatpush3.bf16.msra.mxu1 %v22331_v53  ;;  %15340 = vmatprep.mubr.f32.mxu1 %v20100_v25  ;;  %v22346_v53 = vld [vmem:[#allocation40_spill] sm:$0xff] }
 0x567   : > { %16912 = vmatprep.subr.bf16.mxu1 %v22332_v29 }
 0x568   : > { %16882 = vmatpush3.bf16.msra.mxu0 %v22342_v13 }
 0x569   : > { %16884 = vmatprep.subr.bf16.mxu0 %v22343_v27 }
 0x56a   : > { %16914 = vmatpush3.bf16.msra.mxu1 %v22332_v29  ;;  %v22349_v29 = vld [vmem:[#allocation46_spill] sm:$0xff] }
 0x56b   : > { %16916 = vmatprep.subr.bf16.mxu1 %v22333_v4 }
 0x56c   : > { %16886 = vmatpush3.bf16.msra.mxu0 %v22344_v51 }
 0x56d   : > { %16888 = vmatprep.subr.bf16.mxu0 %v22345_v15 }
 0x56e   : > { %16918 = vmatpush3.bf16.msra.mxu1 %v22333_v4  ;;  %v22351_v4 = vld [vmem:[#allocation51_spill] sm:$0xff] }
 0x56f   : > { %16920 = vmatprep.subr.bf16.mxu1 %v22334_v34 }
 0x570   : > { %16890 = vmatpush3.bf16.msra.mxu0 %v22346_v53  ;;  %v20140_v53 = vld [vmem:[%s21909_s4] ss:$0 sm:$0xff] }
 0x571   : > { %16892 = vmatprep.subr.bf16.mxu0 %v22347_v36  ;;  %22355 = vst [vmem:[#allocation17_spill] sm:$0xff] %v20140_v53 }
 0x572   : > { %16922 = vmatpush3.bf16.msra.mxu1 %v22334_v34  ;;  %v22353_v34 = vmov 0.0|0.0  }
 0x573   : > { %16924 = vmatprep.subr.bf16.mxu1 %v22335_v10 }
 0x574   : > { %16894 = vmatpush3.bf16.msra.mxu0 %v22348_v21 }
 0x575   : > { %16896 = vmatprep.subr.bf16.mxu0 %v22349_v29 }
 0x576   : > { %16926 = vmatpush3.bf16.msra.mxu1 %v22335_v10  ;;  %v7874_v10 = vld [vmem:[#allocation3 + $0x79] sm:$0x7] }
 0x577   : > { %16928 = vmatprep.subr.bf16.mxu1 %v22336_v58 }
 0x578   : > { %16898 = vmatpush3.bf16.msra.mxu0 %v22350_v40  ;;  %v7876_v40 = vld [vmem:[#allocation3 + $0x7a] sm:$0x7] }
 0x579   : > { %16900 = vmatprep.subr.bf16.mxu0 %v22351_v4  ;;  %v7872_v4 = vld [vmem:[#allocation3 + $0x78] sm:$0x7] }
 0x57a   : > { %16930 = vmatpush3.bf16.msra.mxu1 %v22336_v58  ;;  %v22354_v58 = vmov 0.0  }
 0x57b   : > { %16932 = vmatprep.subr.bf16.mxu1 %v22337_v62 }
 0x57c   : > { %16902 = vmatpush3.bf16.msra.mxu0 %v22352_v11 }
 0x57d   : > { %16939 = vmatprep.subr.bf16.mxu0 %v22353_v34 }
 0x57e   : > { %16934 = vmatpush3.bf16.msra.mxu1 %v22337_v62 }
 0x57f   : > { %8167 = vmatmul.mubr.f32.vlgmr.msra.gmra.mrb[132].mxu0 %v20129_v5  ;;  %16935 = vmatprep.subr.bf16.mxu1 %v22353_v34 }
 0x580   : > { %8171 = vmatprep.mubr.f32.mxu0 %v7874_v10 }
 0x581   : > { %15341 = vmatmul.mubr.f32.vlgmr.msra.gmra.mrb[134].mxu1 %v7876_v40 }
 0x582   : > { %15347 = vmatprep.mubr.msk.f32.mxu1 %vm18146_vm9, %v22354_v58 }
 0x583   : > { %8172 = vmatmul.mubr.f32.gmra.mrb[134].mxu0 %v7872_v4 }
 0x584   : > { %15354 = vmatprep.mubr.msk.f32.mxu0 %vm18146_vm9, %v22354_v58 }
 0x5b0   : > { %v7399_v11 = vpop.f32.mrb[116].mxu0  ;;  %v7469_v62 = vpop.f32.mrb[116].mxu1 }
 0x5b1   : > { %v15265_v29 = vpop.f32.mrb[117].mxu0  ;;  %v7473_v55 = vmax.f32 %v7399_v11, %v7469_v62  ;;  %v15272_v21 = vpop.f32.mrb[117].mxu1 }
 0x5b3   : > { %7475 = vst [vmem:[#allocation4 + $0x8] sm:$0x1f] %v7473_v55 }
 0x5d0   : > { %v13099_v24 = vpop.f32.mrb[118].mxu0 }
 0x5d1   : > { %v13137_v36 = vpop.f32.mrb[118].mxu1  ;;  %v13100_v34 = vpop.f32.mrb[119].mxu0 }
 0x5d2   : > { %v13101_v17 = vadd.f32 %v13100_v34, %v13099_v24  ;;  %v13138_v10 = vpop.f32.mrb[119].mxu1 }
 0x5d3   : > { %v13139_v40 = vadd.f32 %v13138_v10, %v13137_v36 }
 0x5d4   : > { %v7561_v4 = vadd.f32 %v20140_v53, %v13101_v17  ;;  %v13102_v58 = vpop.f32.mrb[120].mxu0 }
 0x5d5   : > { %v13140_v47 = vpop.f32.mrb[120].mxu1  ;;  %v13103_v15 = vpop.f32.mrb[121].mxu0 }
 0x5d6   : > { %v7636_v29 = vadd.f32 %v13139_v40, %v7561_v4  ;;  %v13104_v62 = vadd.f32 %v13103_v15, %v13102_v58  ;;  %v13141_v11 = vpop.f32.mrb[121].mxu1 }
 0x5d7   : > { %v13142_v21 = vadd.f32 %v13141_v11, %v13140_v47 }
 0x5d8   : > { %v7566_v55 = vadd.f32 %v20140_v53, %v13104_v62 }
 0x5da   : > { %v7641_v16 = vadd.f32 %v13142_v21, %v7566_v55 }
 0x5f1   : > { %v13175_v34 = vpop.f32.mrb[122].mxu0 }
 0x5f2   : > { %v13213_v24 = vpop.f32.mrb[122].mxu1  ;;  %v13176_v36 = vpop.f32.mrb[123].mxu0 }
 0x5f3   : > { %v13177_v10 = vadd.f32 %v13176_v36, %v13175_v34  ;;  %v13214_v51 = vpop.f32.mrb[123].mxu1 }
 0x5f4   : > { %v13215_v39 = vadd.f32 %v13214_v51, %v13213_v24 }
 0x5f5   : > { %v7711_v27 = vadd.f32 %v13177_v10, %v7636_v29  ;;  %v13178_v48 = vpop.f32.mrb[124].mxu0 }
 0x5f6   : > { %v13216_v13 = vpop.f32.mrb[124].mxu1  ;;  %v13179_v17 = vpop.f32.mrb[125].mxu0 }
 0x5f7   : > { %v13180_v3 = vadd.f32 %v13179_v17, %v13178_v48  ;;  %v13217_v18 = vpop.f32.mrb[125].mxu1  ;;  %v7786_v35 = vadd.f32 %v13215_v39, %v7711_v27 }
 0x5f8   : > { %v13218_v40 = vadd.f32 %v13217_v18, %v13216_v13 }
 0x5f9   : > { %v7716_v58 = vadd.f32 %v13180_v3, %v7641_v16 }
 0x5fb   : > { %v7791_v15 = vadd.f32 %v13218_v40, %v7716_v58 }
 0x612   : > { %v15307_v47 = vpop.f32.mrb[126].mxu0 }
 0x613   : > { %v7866_v4 = vadd.f32 %v15307_v47, %v7791_v15  ;;  %v13269_v62 = vpop.f32.mrb[126].mxu1  ;;  %v7860_v11 = vpop.f32.mrb[127].mxu0 }
 0x614   : > { %v7861_v21 = vadd.f32 %v7860_v11, %v7786_v35  ;;  %v13270_v55 = vpop.f32.mrb[127].mxu1 }
 0x615   : > { %v13271_v32 = vadd.f32 %v13270_v55, %v13269_v62 }
 0x617   : > { %v13272_v34 = vpop.f32.mrb[128].mxu1  ;;  %v7944_v10 = vadd.f32 %v20140_v53, %v13271_v32 }
 0x618   : > { %v13273_v36 = vpop.f32.mrb[129].mxu1 }
 0x619   : > { %v13274_v51 = vadd.f32 %v13273_v36, %v13272_v34 }
 0x61b   : > { %v7949_v27 = vadd.f32 %v20140_v53, %v13274_v51  ;;  %v22387_v53 = vld [vmem:[#allocation49_spill] sm:$0xff] }
 0x632   : > { %v13307_v29 = vpop.f32.mrb[128].mxu0 }
 0x633   : > { %v13308_v24 = vpop.f32.mrb[129].mxu0 }
 0x634   : > { %v13345_v48 = vpop.f32.mrb[130].mxu1  ;;  %v13309_v17 = vadd.f32 %v13308_v24, %v13307_v29 }
 0x635   : > { %v13346_v39 = vpop.f32.mrb[131].mxu1 }
 0x636   : > { %v8019_v18 = vadd.f32 %v13309_v17, %v7944_v10  ;;  %v13347_v3 = vadd.f32 %v13346_v39, %v13345_v48  ;;  %v13310_v16 = vpop.f32.mrb[130].mxu0  ;;  %v7869_v39 = vmax.f32 %v7861_v21, 0.0  ;;  %v22359_v21 = vld [vmem:[#allocation9_spill] sm:$0xff] }
 0x637   : > { %v13311_v13 = vpop.f32.mrb[131].mxu0 }
 0x638   : > { %v8094_v40 = vadd.f32 %v13347_v3, %v8019_v18  ;;  %v13348_v35 = vpop.f32.mrb[132].mxu1  ;;  %v13312_v58 = vadd.f32 %v13311_v13, %v13310_v16  ;;  %v7870_v16 = vmax.f32 %v7866_v4, 0.0  ;;  %v22361_v4 = vld [vmem:[#allocation12_spill] sm:$0xff] }
 0x639   : > { %v13349_v15 = vpop.f32.mrb[133].mxu1 }
 0x63a   : > { %v8024_v47 = vadd.f32 %v13312_v58, %v7949_v27  ;;  %v13350_v62 = vadd.f32 %v13349_v15, %v13348_v35  ;;  %v22363_v15 = vld [vmem:[#allocation16_spill] sm:$0xff]  ;;  %v22386_v58 = vld [vmem:[#allocation45_spill] sm:$0xff] }
 0x63c   : > { %v8099_v11 = vadd.f32 %v13350_v62, %v8024_v47  ;;  %v22364_v47 = vld [vmem:[#allocation18_spill] sm:$0xff] }
 0x63d   : > { %v8405_v62 = vld [vmem:[#allocation3 + $0x69] sm:$0x7] }
 0x652   : > { %v13383_v55 = vpop.f32.mrb[132].mxu0 }
 0x653   : > { %v13384_v34 = vpop.f32.mrb[133].mxu0 }
 0x654   : > { %v15342_v36 = vpop.f32.mrb[134].mxu1  ;;  %v13385_v32 = vadd.f32 %v13384_v34, %v13383_v55  ;;  %v8403_v55 = vld [vmem:[#allocation3 + $0x68] sm:$0x7] }
 0x655   : > { %v8243_v59 = vpop.f32.mrb[135].mxu1  ;;  %v8407_v34 = vld [vmem:[#allocation3 + $0x6a] sm:$0x7] }
 0x656   : > { %v8169_v29 = vadd.f32 %v13385_v32, %v8094_v40  ;;  %v13386_v24 = vpop.f32.mrb[134].mxu0  ;;  %v22357_v40 = vld [vmem:[#allocation10_spill] sm:$0xff]  ;;  %v22367_v32 = vld [vmem:[#allocation25_spill] sm:$0xff] }
 0x657   : > { %v13387_v10 = vpop.f32.mrb[135].mxu0 }
 0x658   : > { %v8244_v48 = vadd.f32 %v8243_v59, %v8169_v29  ;;  %v13388_v17 = vadd.f32 %v13387_v10, %v13386_v24  ;;  %v22358_v59 = vld [vmem:[#allocation8_spill] sm:$0xff]  ;;  %v22369_v24 = vld [vmem:[#allocation27_spill] sm:$0xff]  ;;  %v22370_v10 = vld [vmem:[#allocation26_spill] sm:$0xff] }
 0x659   : > { %v22368_v29 = vld [vmem:[#allocation24_spill] sm:$0xff] }
 0x65a   : > { %v8252_v25 = vmax.f32 %v8244_v48, 0.0  ;;  %v8174_v51 = vadd.f32 %v13388_v17, %v8099_v11  ;;  %v20192_v11 = vld [vmem:[#allocation3 + $0x78] sm:$0x7]  ;;  %v22371_v48 = vld [vmem:[#allocation30_spill] sm:$0xff]  ;;  %v22372_v17 = vld [vmem:[#allocation29_spill] sm:$0xff] }
 0x65c   : > { %v8254_v18 = vmax.f32 %v7869_v39, %v8252_v25  ;;  %v8249_v3 = vadd.f32 %v15342_v36, %v8174_v51  ;;  %v22360_v25 = vld [vmem:[#allocation11_spill] sm:$0xff]  ;;  %v22373_v39 = vld [vmem:[#allocation32_spill] sm:$0xff] }
 0x65d   : > { %v22366_v36 = vld [vmem:[#allocation23_spill] sm:$0xff] }
 0x65e   : > { %v8253_v13 = vmax.f32 %v8249_v3, 0.0  ;;  %v22374_v51 = vld [vmem:[#allocation31_spill] sm:$0xff]  ;;  %v22376_v3 = vld [vmem:[#allocation33_spill] sm:$0xff] }
 0x660   : > { %v8255_v27 = vmax.f32 %v7870_v16, %v8253_v13  ;;  %v22377_v16 = vld [vmem:[#allocation36_spill] sm:$0xff]  ;;  %v22378_v13 = vld [vmem:[#allocation35_spill] sm:$0xff] }
 0x662   : > { %v16936_v35 = vpack.c.bf16 %v8255_v27, %v8254_v18  ;;  %v22375_v18 = vld [vmem:[#allocation34_spill] sm:$0xff]  ;;  %v22379_v27 = vld [vmem:[#allocation40_spill] sm:$0xff] }
 0x664   : > { %16938 = vmatpush3.bf16.msk.msra.mxu1 %vm19692_vm11, %v16936_v35  ;;  %16942 = vmatpush3.bf16.msk.msra.mxu0 %vm19692_vm11, %v16936_v35  ;;  %v22380_v35 = vld [vmem:[#allocation37_spill] sm:$0xff] }
 0x665   : > { %16944 = vmatprep.subr.bf16.mxu1 %v22357_v40  ;;  %16976 = vmatprep.subr.bf16.mxu0 %v18889_v19 }
 0x667   : > { %15348 = vmatmul.mubr.msk.f32.vlgmr.msra.gmra.mrb[136].mxu1 %vm6399_vm12, %v22358_v59  ;;  %15355 = vmatmul.mubr.msk.f32.vlgmr.msra.gmra.mrb[136].mxu0 %vm6399_vm12, %v22359_v21  ;;  %v22384_v21 = vld [vmem:[#allocation43_spill] sm:$0xff]  ;;  %v22385_v59 = vld [vmem:[#allocation46_spill] sm:$0xff] }
 0x668   : > { %16946 = vmatpush3.bf16.msra.mxu1 %v22360_v25  ;;  %8484 = vmatprep.mubr.f32.mxu1 %v19971_v8  ;;  %v22362_v8 = vld [vmem:[#allocation15_spill] sm:$0xff] }
 0x669   : > { %16978 = vmatpush3.bf16.msra.mxu0 %v18922_v26  ;;  %8559 = vmatprep.mubr.f32.mxu0 %v20129_v5 }
 0x66a   : > { %16948 = vmatprep.subr.bf16.mxu1 %v22361_v4  ;;  %16980 = vmatprep.subr.bf16.mxu0 %v18931_v28 }
 0x66c   : > { %16950 = vmatpush3.bf16.msra.mxu1 %v22234_v12 }
 0x66d   : > { %16982 = vmatpush3.bf16.msra.mxu0 %v18962_v37  ;;  %16952 = vmatprep.subr.bf16.mxu1 %v22235_v14 }
 0x66e   : > { %16984 = vmatprep.subr.bf16.mxu0 %v18971_v38 }
 0x670   : > { %16954 = vmatpush3.bf16.msra.mxu1 %v18989_v43 }
 0x671   : > { %16986 = vmatpush3.bf16.msra.mxu0 %v18998_v46  ;;  %16956 = vmatprep.subr.bf16.mxu1 %v22362_v8 }
 0x672   : > { %16988 = vmatprep.subr.bf16.mxu0 %v19007_v56 }
 0x674   : > { %16958 = vmatpush3.bf16.msra.mxu1 %v19025_v63 }
 0x675   : > { %16990 = vmatpush3.bf16.msra.mxu0 %v19034_v1  ;;  %16960 = vmatprep.subr.bf16.mxu1 %v22363_v15 }
 0x676   : > { %16992 = vmatprep.subr.bf16.mxu0 %v19043_v6 }
 0x678   : > { %16962 = vmatpush3.bf16.msra.mxu1 %v22236_v52 }
 0x679   : > { %16994 = vmatpush3.bf16.msra.mxu0 %v19070_v54  ;;  %16964 = vmatprep.subr.bf16.mxu1 %v22364_v47 }
 0x67a   : > { %16996 = vmatprep.subr.bf16.mxu0 %v19079_v20 }
 0x67c   : > { %16966 = vmatpush3.bf16.msra.mxu1 %v19097_v50 }
 0x67d   : > { %16998 = vmatpush3.bf16.msra.mxu0 %v19106_v30  ;;  %16968 = vmatprep.subr.bf16.mxu1 %v19109_v31 }
 0x67e   : > { %17000 = vmatprep.subr.bf16.mxu0 %v19115_v33 }
 0x680   : > { %16970 = vmatpush3.bf16.msra.mxu1 %v19133_v41 }
 0x681   : > { %17002 = vmatpush3.bf16.msra.mxu0 %v19142_v44  ;;  %16972 = vmatprep.subr.bf16.mxu1 %v19145_v45 }
 0x682   : > { %17004 = vmatprep.subr.bf16.mxu0 %v19151_v57 }
 0x684   : > { %16974 = vmatpush3.bf16.msra.mxu1 %v19169_v0 }
 0x685   : > { %17006 = vmatpush3.bf16.msra.mxu0 %v22201_v2  ;;  %17008 = vmatprep.subr.bf16.mxu1 %v19175_v7 }
 0x686   : > { %17040 = vmatprep.subr.bf16.mxu0 %v22202_v9 }
 0x687   : > { %8485 = vmatmul.mubr.f32.vlgmr.msra.gmra.mrb[138].mxu1 %v20003_v22  ;;  %v22365_v22 = vld [vmem:[#allocation14_spill] sm:$0xff] }
 0x688   : > { %8560 = vmatmul.mubr.f32.vlgmr.msra.gmra.mrb[138].mxu0 %v20018_v61  ;;  %8489 = vmatprep.mubr.f32.mxu1 %v8405_v62  ;;  %v20200_v61 = vld [vmem:[#allocation3 + $0x81] sm:$0xff]  ;;  %v22381_v62 = vld [vmem:[#allocation42_spill] sm:$0xff] }
 0x689   : > { %8564 = vmatprep.mubr.f32.mxu0 %v20192_v11  ;;  %17010 = vmatpush3.bf16.msra.mxu1 %v19210_v42 }
 0x68a   : > { %17042 = vmatpush3.bf16.msra.mxu0 %v22205_v23  ;;  %17012 = vmatprep.subr.bf16.mxu1 %v19215_v60 }
 0x68b   : > { %8490 = vmatmul.mubr.f32.gmra.mrb[140].mxu1 %v8403_v55  ;;  %17044 = vmatprep.subr.bf16.mxu0 %v22237_v49  ;;  %v22382_v55 = vld [vmem:[#allocation41_spill] sm:$0xff] }
 0x68c   : > { %8565 = vmatmul.mubr.f32.gmra.mrb[140].mxu0 %v8407_v34  ;;  %8634 = vmatprep.mubr.f32.mxu1 %v22365_v22  ;;  %v22383_v34 = vld [vmem:[#allocation44_spill] sm:$0xff] }
 0x68d   : > { %17014 = vmatpush3.bf16.msra.mxu1 %v22366_v36  ;;  %8709 = vmatprep.mubr.f32.mxu0 %v20200_v61 }
 0x68e   : > { %17046 = vmatpush3.bf16.msra.mxu0 %v22367_v32  ;;  %17016 = vmatprep.subr.bf16.mxu1 %v22368_v29 }
 0x68f   : > { %17048 = vmatprep.subr.bf16.mxu0 %v22369_v24  ;;  %v20247_v24 = vld [vmem:[#allocation3 + $0x82] sm:$0xff] }
 0x691   : > { %17018 = vmatpush3.bf16.msra.mxu1 %v22370_v10 }
 0x692   : > { %17050 = vmatpush3.bf16.msra.mxu0 %v22371_v48  ;;  %17020 = vmatprep.subr.bf16.mxu1 %v22372_v17  ;;  %v20232_v48 = vld [vmem:[#allocation3 + $0x80] sm:$0xff] }
 0x693   : > { %17052 = vmatprep.subr.bf16.mxu0 %v22373_v39  ;;  %v22391_v39 = vld [vmem:[#allocation53_spill] sm:$0xff] }
 0x695   : > { %17022 = vmatpush3.bf16.msra.mxu1 %v22374_v51 }
 0x696   : > { %17054 = vmatpush3.bf16.msra.mxu0 %v22375_v18  ;;  %17024 = vmatprep.subr.bf16.mxu1 %v22376_v3  ;;  %v22389_v18 = vld [vmem:[#allocation51_spill] sm:$0xff] }
 0x697   : > { %17056 = vmatprep.subr.bf16.mxu0 %v22377_v16  ;;  %v22388_v16 = vld [vmem:[#allocation47_spill] sm:$0xff] }
 0x699   : > { %17026 = vmatpush3.bf16.msra.mxu1 %v22378_v13 }
 0x69a   : > { %17058 = vmatpush3.bf16.msra.mxu0 %v22379_v27  ;;  %17028 = vmatprep.subr.bf16.mxu1 %v22380_v35  ;;  %v22390_v27 = vld [vmem:[#allocation50_spill] sm:$0xff] }
 0x69b   : > { %17060 = vmatprep.subr.bf16.mxu0 %v22381_v62  ;;  %v22392_v62 = vld [vmem:[#allocation52_spill] sm:$0xff] }
 0x69d   : > { %17030 = vmatpush3.bf16.msra.mxu1 %v22382_v55 }
 0x69e   : > { %17062 = vmatpush3.bf16.msra.mxu0 %v22383_v34  ;;  %17032 = vmatprep.subr.bf16.mxu1 %v22384_v21  ;;  %v22393_v34 = vld [vmem:[#allocation13_spill] sm:$0xff] }
 0x69f   : > { %17064 = vmatprep.subr.bf16.mxu0 %v22385_v59  ;;  %v20234_v59 = vld [vmem:[#allocation3 + $0x7a] sm:$0x7] }
 0x6a1   : > { %17034 = vmatpush3.bf16.msra.mxu1 %v22386_v58 }
 0x6a2   : > { %17066 = vmatpush3.bf16.msra.mxu0 %v22387_v53  ;;  %17036 = vmatprep.subr.bf16.mxu1 %v22388_v16  ;;  %v20238_v53 = vld [vmem:[#allocation3 + $0x89] sm:$0x7] }
 0x6a3   : > { %17068 = vmatprep.subr.bf16.mxu0 %v22389_v18  ;;  %22394 = vst [vmem:[#allocation22_spill] sm:$0xff] %v20238_v53  ;;  %v20244_v18 = vld [vmem:[#allocation3 + $0x88] sm:$0x7] }
 0x6a5   : > { %17038 = vmatpush3.bf16.msra.mxu1 %v22390_v27 }
 0x6a6   : > { %17070 = vmatpush3.bf16.msra.mxu0 %v22391_v39  ;;  %17072 = vmatprep.subr.bf16.mxu1 %v22392_v62  ;;  %v8411_v39 = vld [vmem:[#allocation3 + $0x79] sm:$0x7] }
 0x6a7   : > { %17104 = vmatprep.subr.bf16.mxu0 %v22357_v40  ;;  %v22395_v40 = vld [vmem:[#allocation54_spill] sm:$0xff] }
 0x6a8   : > { %8635 = vmatmul.mubr.f32.vlgmr.msra.gmra.mrb[142].mxu1 %v22393_v34 }
 0x6a9   : > { %8710 = vmatmul.mubr.f32.vlgmr.msra.gmra.mrb[142].mxu0 %v20232_v48  ;;  %8639 = vmatprep.mubr.f32.mxu1 %v20234_v59 }
 0x6aa   : > { %8714 = vmatprep.mubr.f32.mxu0 %v20238_v53  ;;  %17074 = vmatpush3.bf16.msra.mxu1 %v22392_v62  ;;  %v22398_v53 = vld [vmem:[#allocation59_spill] sm:$0xff] }
 0x6ab   : > { %17106 = vmatpush3.bf16.msra.mxu0 %v22360_v25  ;;  %17076 = vmatprep.subr.bf16.mxu1 %v22395_v40  ;;  %v22396_v25 = vld [vmem:[#allocation57_spill] sm:$0xff] }
 0x6ac   : > { %8640 = vmatmul.mubr.f32.gmra.mrb[144].mxu1 %v8411_v39  ;;  %17108 = vmatprep.subr.bf16.mxu0 %v22361_v4  ;;  %v22397_v4 = vld [vmem:[#allocation58_spill] sm:$0xff] }
 0x6ad   : > { %8715 = vmatmul.mubr.f32.gmra.mrb[144].mxu0 %v20244_v18  ;;  %15389 = vmatprep.mubr.f32.mxu1 %v20247_v24 }
 0x6ae   : > { %17078 = vmatpush3.bf16.msra.mxu1 %v22395_v40  ;;  %8867 = vmatprep.mubr.f32.mxu0 %v22393_v34  ;;  %v22399_v34 = vld [vmem:[#allocation60_spill] sm:$0xff] }
 0x6af   : > { %17110 = vmatpush3.bf16.msra.mxu0 %v22234_v12  ;;  %17080 = vmatprep.subr.bf16.mxu1 %v22396_v25 }
 0x6b0   : > { %17112 = vmatprep.subr.bf16.mxu0 %v22235_v14 }
 0x6b2   : > { %17082 = vmatpush3.bf16.msra.mxu1 %v22396_v25 }
 0x6b3   : > { %17114 = vmatpush3.bf16.msra.mxu0 %v18989_v43  ;;  %17084 = vmatprep.subr.bf16.mxu1 %v22397_v4 }
 0x6b4   : > { %17116 = vmatprep.subr.bf16.mxu0 %v22362_v8  ;;  %v22400_v8 = vld [vmem:[#allocation61_spill] sm:$0xff] }
 0x6b6   : > { %17086 = vmatpush3.bf16.msra.mxu1 %v22397_v4 }
 0x6b7   : > { %17118 = vmatpush3.bf16.msra.mxu0 %v19025_v63  ;;  %17088 = vmatprep.subr.bf16.mxu1 %v22398_v53 }
 0x6b8   : > { %17120 = vmatprep.subr.bf16.mxu0 %v22363_v15  ;;  %v22401_v15 = vld [vmem:[#allocation62_spill] sm:$0xff] }
 0x6ba   : > { %17090 = vmatpush3.bf16.msra.mxu1 %v22398_v53 }
 0x6bb   : > { %17122 = vmatpush3.bf16.msra.mxu0 %v22236_v52  ;;  %17092 = vmatprep.subr.bf16.mxu1 %v22399_v34 }
 0x6bc   : > { %17124 = vmatprep.subr.bf16.mxu0 %v22364_v47  ;;  %v8419_v47 = vld [vmem:[#allocation3 + $0x8a] sm:$0x7] }
 0x6be   : > { %17094 = vmatpush3.bf16.msra.mxu1 %v22399_v34 }
 0x6bf   : > { %17126 = vmatpush3.bf16.msra.mxu0 %v19097_v50  ;;  %17096 = vmatprep.subr.bf16.mxu1 %v22400_v8 }
 0x6c0   : > { %17128 = vmatprep.subr.bf16.mxu0 %v19109_v31 }
 0x6c2   : > { %17098 = vmatpush3.bf16.msra.mxu1 %v22400_v8 }
 0x6c3   : > { %17130 = vmatpush3.bf16.msra.mxu0 %v19133_v41  ;;  %17100 = vmatprep.subr.bf16.mxu1 %v22401_v15 }
 0x6c4   : > { %17132 = vmatprep.subr.bf16.mxu0 %v19145_v45 }
 0x6c6   : > { %17102 = vmatpush3.bf16.msra.mxu1 %v22401_v15 }
 0x6c7   : > { %17134 = vmatpush3.bf16.msra.mxu0 %v19169_v0  ;;  %17136 = vmatprep.subr.bf16.mxu1 %v18889_v19 }
 0x6c8   : > { %17168 = vmatprep.subr.bf16.mxu0 %v19175_v7 }
 0x6c9   : > { %15390 = vmatmul.mubr.f32.vlgmr.msra.gmra.mrb[146].mxu1 %v8419_v47 }
 0x6ca   : > { %8868 = vmatmul.mubr.f32.vlgmr.msra.gmra.mrb[146].mxu0 %v20129_v5  ;;  %17138 = vmatpush3.bf16.msra.mxu1 %v18922_v26  ;;  %v20324_v5 = vld [vmem:[#allocation3 + $0x91] sm:$0xff] }
 0x6cb   : > { %8872 = vmatprep.mubr.f32.mxu0 %v8411_v39  ;;  %8942 = vmatprep.mubr.f32.mxu1 %v20232_v48  ;;  %22402 = vst [vmem:[#allocation20_spill] sm:$0xff] %v20324_v5  ;;  %v22405_v39 = vld [vmem:[#allocation27_spill] sm:$0xff] }
 0x6cc   : > { %17170 = vmatpush3.bf16.msra.mxu0 %v19210_v42  ;;  %17140 = vmatprep.subr.bf16.mxu1 %v18931_v28 }
 0x6cd   : > { %17172 = vmatprep.subr.bf16.mxu0 %v19215_v60 }
 0x6ce   : > { %8873 = vmatmul.mubr.f32.gmra.mrb[148].mxu0 %v20192_v11  ;;  %17142 = vmatpush3.bf16.msra.mxu1 %v18962_v37  ;;  %v22403_v11 = vld [vmem:[#allocation22_spill] sm:$0xff] }
 0x6cf   : > { %9017 = vmatprep.mubr.f32.mxu0 %v20247_v24  ;;  %17144 = vmatprep.subr.bf16.mxu1 %v18971_v38 }
 0x6d0   : > { %17174 = vmatpush3.bf16.msra.mxu0 %v22366_v36 }
 0x6d1   : > { %17176 = vmatprep.subr.bf16.mxu0 %v22368_v29 }
 0x6d2   : > { %17146 = vmatpush3.bf16.msra.mxu1 %v18998_v46 }
 0x6d3   : > { %17148 = vmatprep.subr.bf16.mxu1 %v19007_v56 }
 0x6d4   : > { %17178 = vmatpush3.bf16.msra.mxu0 %v22370_v10 }
 0x6d5   : > { %17180 = vmatprep.subr.bf16.mxu0 %v22372_v17 }
 0x6d6   : > { %17150 = vmatpush3.bf16.msra.mxu1 %v19034_v1 }
 0x6d7   : > { %17152 = vmatprep.subr.bf16.mxu1 %v19043_v6 }
 0x6d8   : > { %17182 = vmatpush3.bf16.msra.mxu0 %v22374_v51 }
 0x6d9   : > { %17184 = vmatprep.subr.bf16.mxu0 %v22376_v3 }
 0x6da   : > { %17154 = vmatpush3.bf16.msra.mxu1 %v19070_v54 }
 0x6db   : > { %17156 = vmatprep.subr.bf16.mxu1 %v19079_v20 }
 0x6dc   : > { %17186 = vmatpush3.bf16.msra.mxu0 %v22378_v13 }
 0x6dd   : > { %17188 = vmatprep.subr.bf16.mxu0 %v22380_v35 }
 0x6de   : > { %17158 = vmatpush3.bf16.msra.mxu1 %v19106_v30 }
 0x6df   : > { %17160 = vmatprep.subr.bf16.mxu1 %v19115_v33 }
 0x6e0   : > { %17190 = vmatpush3.bf16.msra.mxu0 %v22382_v55 }
 0x6e1   : > { %17192 = vmatprep.subr.bf16.mxu0 %v22384_v21 }
 0x6e2   : > { %17162 = vmatpush3.bf16.msra.mxu1 %v19142_v44 }
 0x6e3   : > { %17164 = vmatprep.subr.bf16.mxu1 %v19151_v57 }
 0x6e4   : > { %17194 = vmatpush3.bf16.msra.mxu0 %v22386_v58  ;;  %v20358_v58 = vld [vmem:[#allocation3 + $0x90] sm:$0xff] }
 0x6e5   : > { %17196 = vmatprep.subr.bf16.mxu0 %v22388_v16  ;;  %v22416_v16 = vld [vmem:[#allocation53_spill] sm:$0xff] }
 0x6e6   : > { %17166 = vmatpush3.bf16.msra.mxu1 %v22201_v2 }
 0x6e7   : > { %17200 = vmatprep.subr.bf16.mxu1 %v22202_v9 }
 0x6e8   : > { %17198 = vmatpush3.bf16.msra.mxu0 %v22390_v27  ;;  %v22414_v27 = vld [vmem:[#allocation49_spill] sm:$0xff] }
 0x6e9   : > { %8943 = vmatmul.mubr.f32.vlgmr.msra.gmra.mrb[148].mxu1 %v22365_v22  ;;  %17232 = vmatprep.subr.bf16.mxu0 %v22392_v62  ;;  %v20329_v22 = vld [vmem:[#allocation3 + $0x92] sm:$0xff] }
 0x6ea   : > { %8947 = vmatprep.mubr.f32.mxu1 %v20244_v18  ;;  %17202 = vmatpush3.bf16.msra.mxu1 %v22205_v23  ;;  %22404 = vst [vmem:[#allocation19_spill] sm:$0xff] %v20329_v22  ;;  %v22408_v18 = vld [vmem:[#allocation34_spill] sm:$0xff] }
 0x6eb   : > { %9018 = vmatmul.mubr.f32.vlgmr.msra.gmra.mrb[150].mxu0 %v20200_v61  ;;  %17204 = vmatprep.subr.bf16.mxu1 %v22237_v49 }
 0x6ec   : > { %9022 = vmatprep.mubr.f32.mxu0 %v8419_v47  ;;  %17234 = vmatpush3.bf16.msra.mxu0 %v22392_v62  ;;  %v22407_v47 = vld [vmem:[#allocation32_spill] sm:$0xff] }
 0x6ed   : > { %8948 = vmatmul.mubr.f32.gmra.mrb[150].mxu1 %v20234_v59  ;;  %17236 = vmatprep.subr.bf16.mxu0 %v22395_v40  ;;  %v22406_v59 = vld [vmem:[#allocation30_spill] sm:$0xff]  ;;  %v22412_v62 = vld [vmem:[#allocation44_spill] sm:$0xff] }
 0x6ee   : > { %17206 = vmatpush3.bf16.msra.mxu1 %v22367_v32  ;;  %9092 = vmatprep.mubr.f32.mxu1 %v20324_v5  ;;  %v22411_v5 = vld [vmem:[#allocation42_spill] sm:$0xff] }
 0x6ef   : > { %9023 = vmatmul.mubr.f32.gmra.mrb[152].mxu0 %v22403_v11  ;;  %17208 = vmatprep.subr.bf16.mxu1 %v22405_v39  ;;  %v22409_v11 = vld [vmem:[#allocation36_spill] sm:$0xff] }
 0x6f0   : > { %17238 = vmatpush3.bf16.msra.mxu0 %v22395_v40  ;;  %15424 = vmatprep.mubr.f32.mxu0 %v20329_v22  ;;  %v22410_v40 = vld [vmem:[#allocation40_spill] sm:$0xff] }
 0x6f1   : > { %17240 = vmatprep.subr.bf16.mxu0 %v22396_v25 }
 0x6f2   : > { %17210 = vmatpush3.bf16.msra.mxu1 %v22406_v59 }
 0x6f3   : > { %17212 = vmatprep.subr.bf16.mxu1 %v22407_v47 }
 0x6f4   : > { %17242 = vmatpush3.bf16.msra.mxu0 %v22396_v25  ;;  %v22413_v25 = vld [vmem:[#allocation46_spill] sm:$0xff] }
 0x6f5   : > { %17244 = vmatprep.subr.bf16.mxu0 %v22397_v4 }
 0x6f6   : > { %17214 = vmatpush3.bf16.msra.mxu1 %v22408_v18 }
 0x6f7   : > { %17216 = vmatprep.subr.bf16.mxu1 %v22409_v11 }
 0x6f8   : > { %17246 = vmatpush3.bf16.msra.mxu0 %v22397_v4  ;;  %v22415_v4 = vld [vmem:[#allocation51_spill] sm:$0xff] }
 0x6f9   : > { %17248 = vmatprep.subr.bf16.mxu0 %v22398_v53 }
 0x6fa   : > { %17218 = vmatpush3.bf16.msra.mxu1 %v22410_v40  ;;  %v22419_v40 = vld [vmem:[#allocation17_spill] sm:$0xff] }
 0x6fb   : > { %17220 = vmatprep.subr.bf16.mxu1 %v22411_v5 }
 0x6fc   : > { %17250 = vmatpush3.bf16.msra.mxu0 %v22398_v53  ;;  %v22417_v53 = vmov 0.0|0.0  }
 0x6fd   : > { %17252 = vmatprep.subr.bf16.mxu0 %v22399_v34 }
 0x6fe   : > { %17222 = vmatpush3.bf16.msra.mxu1 %v22412_v62 }
 0x6ff   : > { %17224 = vmatprep.subr.bf16.mxu1 %v22413_v25 }
 0x700   : > { %17254 = vmatpush3.bf16.msra.mxu0 %v22399_v34  ;;  %v8800_v34 = vld [vmem:[#allocation3 + $0x99] sm:$0x7] }
 0x701   : > { %17256 = vmatprep.subr.bf16.mxu0 %v22400_v8 }
 0x702   : > { %17226 = vmatpush3.bf16.msra.mxu1 %v22414_v27  ;;  %v8802_v27 = vld [vmem:[#allocation3 + $0x9a] sm:$0x7] }
 0x703   : > { %17228 = vmatprep.subr.bf16.mxu1 %v22415_v4  ;;  %v8798_v4 = vld [vmem:[#allocation3 + $0x98] sm:$0x7] }
 0x704   : > { %17258 = vmatpush3.bf16.msra.mxu0 %v22400_v8  ;;  %v22418_v8 = vmov 0.0  }
 0x705   : > { %17260 = vmatprep.subr.bf16.mxu0 %v22401_v15 }
 0x706   : > { %17230 = vmatpush3.bf16.msra.mxu1 %v22416_v16 }
 0x707   : > { %17267 = vmatprep.subr.bf16.mxu1 %v22417_v53 }
 0x708   : > { %17262 = vmatpush3.bf16.msra.mxu0 %v22401_v15 }
 0x709   : > { %9093 = vmatmul.mubr.f32.vlgmr.msra.gmra.mrb[152].mxu1 %v20358_v58  ;;  %17263 = vmatprep.subr.bf16.mxu0 %v22417_v53 }
 0x70a   : > { %9097 = vmatprep.mubr.f32.mxu1 %v8800_v34 }
 0x70b   : > { %15425 = vmatmul.mubr.f32.vlgmr.msra.gmra.mrb[154].mxu0 %v8802_v27 }
 0x70c   : > { %15431 = vmatprep.mubr.msk.f32.mxu0 %vm18146_vm9, %v22418_v8 }
 0x70d   : > { %9098 = vmatmul.mubr.f32.gmra.mrb[154].mxu1 %v8798_v4 }
 0x70e   : > { %15438 = vmatprep.mubr.msk.f32.mxu1 %vm18146_vm9, %v22418_v8 }
 0x73a   : > { %v8325_v16 = vpop.f32.mrb[136].mxu1  ;;  %v8395_v15 = vpop.f32.mrb[136].mxu0 }
 0x73b   : > { %v15349_v25 = vpop.f32.mrb[137].mxu1  ;;  %v8399_v21 = vmax.f32 %v8325_v16, %v8395_v15  ;;  %v15356_v62 = vpop.f32.mrb[137].mxu0 }
 0x73d   : > { %8401 = vst [vmem:[#allocation4 + $0x10] sm:$0x1f] %v8399_v21 }
 0x75a   : > { %v13445_v55 = vpop.f32.mrb[138].mxu1 }
 0x75b   : > { %v13483_v5 = vpop.f32.mrb[138].mxu0  ;;  %v13446_v53 = vpop.f32.mrb[139].mxu1 }
 0x75c   : > { %v13447_v35 = vadd.f32 %v13446_v53, %v13445_v55  ;;  %v13484_v34 = vpop.f32.mrb[139].mxu0 }
 0x75d   : > { %v13485_v27 = vadd.f32 %v13484_v34, %v13483_v5 }
 0x75e   : > { %v8487_v13 = vadd.f32 %v22419_v40, %v13447_v35  ;;  %v13448_v11 = vpop.f32.mrb[140].mxu1 }
 0x75f   : > { %v13486_v3 = vpop.f32.mrb[140].mxu0  ;;  %v13449_v4 = vpop.f32.mrb[141].mxu1 }
 0x760   : > { %v8562_v18 = vadd.f32 %v13485_v27, %v8487_v13  ;;  %v13450_v51 = vadd.f32 %v13449_v4, %v13448_v11  ;;  %v13487_v8 = vpop.f32.mrb[141].mxu0 }
 0x761   : > { %v13488_v47 = vadd.f32 %v13487_v8, %v13486_v3 }
 0x762   : > { %v8492_v25 = vadd.f32 %v22419_v40, %v13450_v51 }
 0x764   : > { %v8567_v15 = vadd.f32 %v13488_v47, %v8492_v25 }
 0x77b   : > { %v13521_v16 = vpop.f32.mrb[142].mxu1 }
 0x77c   : > { %v13559_v21 = vpop.f32.mrb[142].mxu0  ;;  %v13522_v62 = vpop.f32.mrb[143].mxu1 }
 0x77d   : > { %v13523_v17 = vadd.f32 %v13522_v62, %v13521_v16  ;;  %v13560_v59 = vpop.f32.mrb[143].mxu0 }
 0x77e   : > { %v13561_v53 = vadd.f32 %v13560_v59, %v13559_v21 }
 0x77f   : > { %v8637_v55 = vadd.f32 %v13523_v17, %v8562_v18  ;;  %v13524_v5 = vpop.f32.mrb[144].mxu1 }
 0x780   : > { %v13562_v34 = vpop.f32.mrb[144].mxu0  ;;  %v13525_v35 = vpop.f32.mrb[145].mxu1 }
 0x781   : > { %v13526_v10 = vadd.f32 %v13525_v35, %v13524_v5  ;;  %v13563_v39 = vpop.f32.mrb[145].mxu0  ;;  %v8712_v29 = vadd.f32 %v13561_v53, %v8637_v55 }
 0x782   : > { %v13564_v13 = vadd.f32 %v13563_v39, %v13562_v34 }
 0x783   : > { %v8642_v11 = vadd.f32 %v13526_v10, %v8567_v15 }
 0x785   : > { %v8717_v27 = vadd.f32 %v13564_v13, %v8642_v11 }
 0x79c   : > { %v15391_v8 = vpop.f32.mrb[146].mxu1 }
 0x79d   : > { %v8792_v3 = vadd.f32 %v15391_v8, %v8717_v27  ;;  %v13615_v51 = vpop.f32.mrb[146].mxu0  ;;  %v8786_v47 = vpop.f32.mrb[147].mxu1 }
 0x79e   : > { %v8787_v4 = vadd.f32 %v8786_v47, %v8712_v29  ;;  %v13616_v25 = vpop.f32.mrb[147].mxu0 }
 0x79f   : > { %v13617_v32 = vadd.f32 %v13616_v25, %v13615_v51 }
 0x7a1   : > { %v13618_v16 = vpop.f32.mrb[148].mxu0  ;;  %v8870_v21 = vadd.f32 %v22419_v40, %v13617_v32 }
 0x7a2   : > { %v13619_v62 = vpop.f32.mrb[149].mxu0 }
 0x7a3   : > { %v13620_v59 = vadd.f32 %v13619_v62, %v13618_v16 }
 0x7a5   : > { %v8875_v34 = vadd.f32 %v22419_v40, %v13620_v59 }
 0x7bc   : > { %v13653_v17 = vpop.f32.mrb[148].mxu1 }
 0x7bd   : > { %v13654_v18 = vpop.f32.mrb[149].mxu1 }
 0x7be   : > { %v13691_v5 = vpop.f32.mrb[150].mxu0  ;;  %v13655_v35 = vadd.f32 %v13654_v18, %v13653_v17 }
 0x7bf   : > { %v13692_v53 = vpop.f32.mrb[151].mxu0 }
 0x7c0   : > { %v8945_v39 = vadd.f32 %v13655_v35, %v8870_v21  ;;  %v13693_v10 = vadd.f32 %v13692_v53, %v13691_v5  ;;  %v13656_v15 = vpop.f32.mrb[150].mxu1  ;;  %v8795_v53 = vmax.f32 %v8787_v4, 0.0  ;;  %v22423_v4 = vld [vmem:[#allocation9_spill] sm:$0xff] }
 0x7c1   : > { %v13657_v55 = vpop.f32.mrb[151].mxu1 }
 0x7c2   : > { %v9020_v13 = vadd.f32 %v13693_v10, %v8945_v39  ;;  %v13694_v29 = vpop.f32.mrb[152].mxu0  ;;  %v13658_v11 = vadd.f32 %v13657_v55, %v13656_v15  ;;  %v8796_v10 = vmax.f32 %v8792_v3, 0.0  ;;  %v22425_v3 = vld [vmem:[#allocation12_spill] sm:$0xff] }
 0x7c3   : > { %v13695_v27 = vpop.f32.mrb[153].mxu0 }
 0x7c4   : > { %v8950_v8 = vadd.f32 %v13658_v11, %v8875_v34  ;;  %v13696_v51 = vadd.f32 %v13695_v27, %v13694_v29  ;;  %v22427_v11 = vld [vmem:[#allocation16_spill] sm:$0xff]  ;;  %v22428_v27 = vld [vmem:[#allocation18_spill] sm:$0xff]  ;;  %v22451_v29 = vld [vmem:[#allocation49_spill] sm:$0xff] }
 0x7c6   : > { %v9025_v47 = vadd.f32 %v13696_v51, %v8950_v8  ;;  %v9331_v8 = vld [vmem:[#allocation3 + $0x89] sm:$0x7]  ;;  %v20416_v51 = vld [vmem:[#allocation3 + $0x98] sm:$0x7] }
 0x7dc   : > { %v13729_v25 = vpop.f32.mrb[152].mxu1 }
 0x7dd   : > { %v13730_v16 = vpop.f32.mrb[153].mxu1 }
 0x7de   : > { %v15426_v62 = vpop.f32.mrb[154].mxu0  ;;  %v13731_v32 = vadd.f32 %v13730_v16, %v13729_v25  ;;  %v9333_v25 = vld [vmem:[#allocation3 + $0x8a] sm:$0x7]  ;;  %v22430_v16 = vld [vmem:[#allocation23_spill] sm:$0xff] }
 0x7df   : > { %v9169_v36 = vpop.f32.mrb[155].mxu0 }
 0x7e0   : > { %v9095_v17 = vadd.f32 %v13731_v32, %v9020_v13  ;;  %v13732_v18 = vpop.f32.mrb[154].mxu1  ;;  %v22421_v13 = vld [vmem:[#allocation10_spill] sm:$0xff]  ;;  %v22432_v32 = vld [vmem:[#allocation24_spill] sm:$0xff] }
 0x7e1   : > { %v13733_v21 = vpop.f32.mrb[155].mxu1 }
 0x7e2   : > { %v9170_v5 = vadd.f32 %v9169_v36, %v9095_v17  ;;  %v13734_v35 = vadd.f32 %v13733_v21, %v13732_v18  ;;  %v22422_v36 = vld [vmem:[#allocation8_spill] sm:$0xff]  ;;  %v22433_v17 = vld [vmem:[#allocation27_spill] sm:$0xff]  ;;  %v22434_v18 = vld [vmem:[#allocation26_spill] sm:$0xff] }
 0x7e3   : > { %v22435_v21 = vld [vmem:[#allocation30_spill] sm:$0xff] }
 0x7e4   : > { %v9178_v22 = vmax.f32 %v9170_v5, 0.0  ;;  %v9100_v40 = vadd.f32 %v13734_v35, %v9025_v47  ;;  %v9329_v47 = vld [vmem:[#allocation3 + $0x88] sm:$0x7]  ;;  %v22437_v35 = vld [vmem:[#allocation32_spill] sm:$0xff] }
 0x7e5   : > { %v22436_v5 = vld [vmem:[#allocation29_spill] sm:$0xff] }
 0x7e6   : > { %v9180_v59 = vmax.f32 %v8795_v53, %v9178_v22  ;;  %v9175_v39 = vadd.f32 %v15426_v62, %v9100_v40  ;;  %v22424_v22 = vld [vmem:[#allocation11_spill] sm:$0xff]  ;;  %v22431_v62 = vld [vmem:[#allocation25_spill] sm:$0xff]  ;;  %v22439_v40 = vld [vmem:[#allocation34_spill] sm:$0xff] }
 0x7e7   : > { %v22438_v53 = vld [vmem:[#allocation31_spill] sm:$0xff] }
 0x7e8   : > { %v9179_v15 = vmax.f32 %v9175_v39, 0.0  ;;  %v22441_v39 = vld [vmem:[#allocation36_spill] sm:$0xff] }
 0x7ea   : > { %v9181_v55 = vmax.f32 %v8796_v10, %v9179_v15  ;;  %v22442_v10 = vld [vmem:[#allocation35_spill] sm:$0xff]  ;;  %v22443_v15 = vld [vmem:[#allocation40_spill] sm:$0xff] }
 0x7ec   : > { %v17264_v34 = vpack.c.bf16 %v9181_v55, %v9180_v59  ;;  %v22440_v59 = vld [vmem:[#allocation33_spill] sm:$0xff] }
 0x7ed   : > { %v22444_v55 = vld [vmem:[#allocation37_spill] sm:$0xff] }
 0x7ee   : > { %17266 = vmatpush3.bf16.msk.msra.mxu0 %vm19692_vm11, %v17264_v34  ;;  %17270 = vmatpush3.bf16.msk.msra.mxu1 %vm19692_vm11, %v17264_v34  ;;  %v22445_v34 = vld [vmem:[#allocation42_spill] sm:$0xff] }
 0x7ef   : > { %17272 = vmatprep.subr.bf16.mxu0 %v22421_v13  ;;  %17304 = vmatprep.subr.bf16.mxu1 %v18889_v19 }
 0x7f1   : > { %15432 = vmatmul.mubr.msk.f32.vlgmr.msra.gmra.mrb[156].mxu0 %vm6399_vm12, %v22422_v36  ;;  %15439 = vmatmul.mubr.msk.f32.vlgmr.msra.gmra.mrb[156].mxu1 %vm6399_vm12, %v22423_v4  ;;  %v22449_v4 = vld [vmem:[#allocation46_spill] sm:$0xff]  ;;  %v22450_v36 = vld [vmem:[#allocation45_spill] sm:$0xff] }
 0x7f2   : > { %17274 = vmatpush3.bf16.msra.mxu0 %v22424_v22  ;;  %9410 = vmatprep.mubr.f32.mxu0 %v20200_v61  ;;  %v22426_v61 = vld [vmem:[#allocation15_spill] sm:$0xff] }
 0x7f3   : > { %17306 = vmatpush3.bf16.msra.mxu1 %v18922_v26  ;;  %9485 = vmatprep.mubr.f32.mxu1 %v20358_v58 }
 0x7f4   : > { %17276 = vmatprep.subr.bf16.mxu0 %v22425_v3  ;;  %17308 = vmatprep.subr.bf16.mxu1 %v18931_v28 }
 0x7f6   : > { %17278 = vmatpush3.bf16.msra.mxu0 %v22234_v12 }
 0x7f7   : > { %17310 = vmatpush3.bf16.msra.mxu1 %v18962_v37  ;;  %17280 = vmatprep.subr.bf16.mxu0 %v22235_v14 }
 0x7f8   : > { %17312 = vmatprep.subr.bf16.mxu1 %v18971_v38 }
 0x7fa   : > { %17282 = vmatpush3.bf16.msra.mxu0 %v18989_v43 }
 0x7fb   : > { %17314 = vmatpush3.bf16.msra.mxu1 %v18998_v46  ;;  %17284 = vmatprep.subr.bf16.mxu0 %v22426_v61 }
 0x7fc   : > { %17316 = vmatprep.subr.bf16.mxu1 %v19007_v56 }
 0x7fe   : > { %17286 = vmatpush3.bf16.msra.mxu0 %v19025_v63 }
 0x7ff   : > { %17318 = vmatpush3.bf16.msra.mxu1 %v19034_v1  ;;  %17288 = vmatprep.subr.bf16.mxu0 %v22427_v11 }
 0x800   : > { %17320 = vmatprep.subr.bf16.mxu1 %v19043_v6 }
 0x802   : > { %17290 = vmatpush3.bf16.msra.mxu0 %v22236_v52 }
 0x803   : > { %17322 = vmatpush3.bf16.msra.mxu1 %v19070_v54  ;;  %17292 = vmatprep.subr.bf16.mxu0 %v22428_v27 }
 0x804   : > { %17324 = vmatprep.subr.bf16.mxu1 %v19079_v20 }
 0x806   : > { %17294 = vmatpush3.bf16.msra.mxu0 %v19097_v50 }
 0x807   : > { %17326 = vmatpush3.bf16.msra.mxu1 %v19106_v30  ;;  %17296 = vmatprep.subr.bf16.mxu0 %v19109_v31 }
 0x808   : > { %17328 = vmatprep.subr.bf16.mxu1 %v19115_v33 }
 0x80a   : > { %17298 = vmatpush3.bf16.msra.mxu0 %v19133_v41 }
 0x80b   : > { %17330 = vmatpush3.bf16.msra.mxu1 %v19142_v44  ;;  %17300 = vmatprep.subr.bf16.mxu0 %v19145_v45 }
 0x80c   : > { %17332 = vmatprep.subr.bf16.mxu1 %v19151_v57 }
 0x80e   : > { %17302 = vmatpush3.bf16.msra.mxu0 %v19169_v0 }
 0x80f   : > { %17334 = vmatpush3.bf16.msra.mxu1 %v22201_v2  ;;  %17336 = vmatprep.subr.bf16.mxu0 %v19175_v7 }
 0x810   : > { %17368 = vmatprep.subr.bf16.mxu1 %v22202_v9 }
 0x811   : > { %9411 = vmatmul.mubr.f32.vlgmr.msra.gmra.mrb[158].mxu0 %v20232_v48  ;;  %v22429_v48 = vld [vmem:[#allocation19_spill] sm:$0xff] }
 0x812   : > { %9486 = vmatmul.mubr.f32.vlgmr.msra.gmra.mrb[158].mxu1 %v20247_v24  ;;  %9415 = vmatprep.mubr.f32.mxu0 %v9331_v8  ;;  %v20424_v24 = vld [vmem:[#allocation3 + $0xa1] sm:$0xff] }
 0x813   : > { %9490 = vmatprep.mubr.f32.mxu1 %v20416_v51  ;;  %17338 = vmatpush3.bf16.msra.mxu0 %v19210_v42  ;;  %v22446_v8 = vld [vmem:[#allocation41_spill] sm:$0xff] }
 0x814   : > { %17370 = vmatpush3.bf16.msra.mxu1 %v22205_v23  ;;  %17340 = vmatprep.subr.bf16.mxu0 %v19215_v60 }
 0x815   : > { %9416 = vmatmul.mubr.f32.gmra.mrb[160].mxu0 %v9329_v47  ;;  %17372 = vmatprep.subr.bf16.mxu1 %v22237_v49  ;;  %v22447_v47 = vld [vmem:[#allocation44_spill] sm:$0xff] }
 0x816   : > { %9491 = vmatmul.mubr.f32.gmra.mrb[160].mxu1 %v9333_v25  ;;  %9560 = vmatprep.mubr.f32.mxu0 %v22429_v48  ;;  %v22448_v25 = vld [vmem:[#allocation43_spill] sm:$0xff] }
 0x817   : > { %17342 = vmatpush3.bf16.msra.mxu0 %v22430_v16  ;;  %9635 = vmatprep.mubr.f32.mxu1 %v20424_v24 }
 0x818   : > { %17374 = vmatpush3.bf16.msra.mxu1 %v22431_v62  ;;  %17344 = vmatprep.subr.bf16.mxu0 %v22432_v32 }
 0x819   : > { %17376 = vmatprep.subr.bf16.mxu1 %v22433_v17  ;;  %v9344_v17 = vld [vmem:[#allocation3 + $0xa2] sm:$0xff] }
 0x81b   : > { %17346 = vmatpush3.bf16.msra.mxu0 %v22434_v18 }
 0x81c   : > { %17378 = vmatpush3.bf16.msra.mxu1 %v22435_v21  ;;  %17348 = vmatprep.subr.bf16.mxu0 %v22436_v5  ;;  %v9340_v21 = vld [vmem:[#allocation3 + $0xa0] sm:$0xff] }
 0x81d   : > { %17380 = vmatprep.subr.bf16.mxu1 %v22437_v35  ;;  %v22455_v35 = vld [vmem:[#allocation53_spill] sm:$0xff] }
 0x81f   : > { %17350 = vmatpush3.bf16.msra.mxu0 %v22438_v53 }
 0x820   : > { %17382 = vmatpush3.bf16.msra.mxu1 %v22439_v40  ;;  %17352 = vmatprep.subr.bf16.mxu0 %v22440_v59  ;;  %v22453_v40 = vld [vmem:[#allocation51_spill] sm:$0xff] }
 0x821   : > { %17384 = vmatprep.subr.bf16.mxu1 %v22441_v39  ;;  %v22452_v39 = vld [vmem:[#allocation47_spill] sm:$0xff] }
 0x823   : > { %17354 = vmatpush3.bf16.msra.mxu0 %v22442_v10 }
 0x824   : > { %17386 = vmatpush3.bf16.msra.mxu1 %v22443_v15  ;;  %17356 = vmatprep.subr.bf16.mxu0 %v22444_v55  ;;  %v22454_v15 = vld [vmem:[#allocation50_spill] sm:$0xff] }
 0x825   : > { %17388 = vmatprep.subr.bf16.mxu1 %v22445_v34  ;;  %v22456_v34 = vld [vmem:[#allocation52_spill] sm:$0xff] }
 0x827   : > { %17358 = vmatpush3.bf16.msra.mxu0 %v22446_v8 }
 0x828   : > { %17390 = vmatpush3.bf16.msra.mxu1 %v22447_v47  ;;  %17360 = vmatprep.subr.bf16.mxu0 %v22448_v25  ;;  %v22457_v47 = vld [vmem:[#allocation20_spill] sm:$0xff] }
 0x829   : > { %17392 = vmatprep.subr.bf16.mxu1 %v22449_v4  ;;  %v20456_v4 = vld [vmem:[#allocation3 + $0x9a] sm:$0x7] }
 0x82b   : > { %17362 = vmatpush3.bf16.msra.mxu0 %v22450_v36 }
 0x82c   : > { %17394 = vmatpush3.bf16.msra.mxu1 %v22451_v29  ;;  %17364 = vmatprep.subr.bf16.mxu0 %v22452_v39  ;;  %v20459_v29 = vld [vmem:[#allocation3 + $0xa9] sm:$0x7] }
 0x82d   : > { %17396 = vmatprep.subr.bf16.mxu1 %v22453_v40  ;;  %22458 = vst [vmem:[#allocation48_spill] sm:$0xff] %v20459_v29  ;;  %v22459_v40 = vld [vmem:[#allocation54_spill] sm:$0xff] }
 0x82f   : > { %17366 = vmatpush3.bf16.msra.mxu0 %v22454_v15 }
 0x830   : > { %17398 = vmatpush3.bf16.msra.mxu1 %v22455_v35  ;;  %17400 = vmatprep.subr.bf16.mxu0 %v22456_v34  ;;  %v9337_v35 = vld [vmem:[#allocation3 + $0x99] sm:$0x7] }
 0x831   : > { %17432 = vmatprep.subr.bf16.mxu1 %v22421_v13  ;;  %v20465_v13 = vld [vmem:[#allocation3 + $0xa8] sm:$0x7] }
 0x832   : > { %9561 = vmatmul.mubr.f32.vlgmr.msra.gmra.mrb[162].mxu0 %v22457_v47 }
 0x833   : > { %9636 = vmatmul.mubr.f32.vlgmr.msra.gmra.mrb[162].mxu1 %v9340_v21  ;;  %9565 = vmatprep.mubr.f32.mxu0 %v20456_v4 }
 0x834   : > { %9640 = vmatprep.mubr.f32.mxu1 %v20459_v29  ;;  %17402 = vmatpush3.bf16.msra.mxu0 %v22456_v34  ;;  %v22460_v29 = vld [vmem:[#allocation57_spill] sm:$0xff] }
 0x835   : > { %17434 = vmatpush3.bf16.msra.mxu1 %v22424_v22  ;;  %17404 = vmatprep.subr.bf16.mxu0 %v22459_v40  ;;  %v22461_v22 = vld [vmem:[#allocation58_spill] sm:$0xff] }
 0x836   : > { %9566 = vmatmul.mubr.f32.gmra.mrb[164].mxu0 %v9337_v35  ;;  %17436 = vmatprep.subr.bf16.mxu1 %v22425_v3  ;;  %v22462_v3 = vld [vmem:[#allocation59_spill] sm:$0xff] }
 0x837   : > { %9641 = vmatmul.mubr.f32.gmra.mrb[164].mxu1 %v20465_v13  ;;  %15473 = vmatprep.mubr.f32.mxu0 %v9344_v17 }
 0x838   : > { %17406 = vmatpush3.bf16.msra.mxu0 %v22459_v40  ;;  %9793 = vmatprep.mubr.f32.mxu1 %v22457_v47 }
 0x839   : > { %17438 = vmatpush3.bf16.msra.mxu1 %v22234_v12  ;;  %17408 = vmatprep.subr.bf16.mxu0 %v22460_v29  ;;  %v22463_v12 = vld [vmem:[#allocation60_spill] sm:$0xff] }
 0x83a   : > { %17440 = vmatprep.subr.bf16.mxu1 %v22235_v14  ;;  %v9345_v14 = vld [vmem:[#allocation3 + $0xaa] sm:$0x7] }
 0x83c   : > { %17410 = vmatpush3.bf16.msra.mxu0 %v22460_v29 }
 0x83d   : > { %17442 = vmatpush3.bf16.msra.mxu1 %v18989_v43  ;;  %17412 = vmatprep.subr.bf16.mxu0 %v22461_v22  ;;  %v22464_v43 = vld [vmem:[#allocation61_spill] sm:$0xff] }
 0x83e   : > { %17444 = vmatprep.subr.bf16.mxu1 %v22426_v61  ;;  %v18078_v61 = vld [vmem:[%s21909_s4] ss:$0 sm:$0xff] }
 0x840   : > { %17414 = vmatpush3.bf16.msra.mxu0 %v22461_v22 }
 0x841   : > { %17446 = vmatpush3.bf16.msra.mxu1 %v19025_v63  ;;  %17416 = vmatprep.subr.bf16.mxu0 %v22462_v3  ;;  %v22465_v63 = vld [vmem:[#allocation62_spill] sm:$0xff] }
 0x842   : > { %17448 = vmatprep.subr.bf16.mxu1 %v22427_v11 }
 0x844   : > { %17418 = vmatpush3.bf16.msra.mxu0 %v22462_v3 }
 0x845   : > { %17450 = vmatpush3.bf16.msra.mxu1 %v22236_v52  ;;  %17420 = vmatprep.subr.bf16.mxu0 %v22463_v12 }
 0x846   : > { %17452 = vmatprep.subr.bf16.mxu1 %v22428_v27 }
 0x848   : > { %17422 = vmatpush3.bf16.msra.mxu0 %v22463_v12 }
 0x849   : > { %17454 = vmatpush3.bf16.msra.mxu1 %v19097_v50  ;;  %17424 = vmatprep.subr.bf16.mxu0 %v22464_v43  ;;  %v22475_v50 = vld [vmem:[#allocation46_spill] sm:$0xff] }
 0x84a   : > { %17456 = vmatprep.subr.bf16.mxu1 %v19109_v31  ;;  %v22477_v31 = vld [vmem:[#allocation51_spill] sm:$0xff] }
 0x84c   : > { %17426 = vmatpush3.bf16.msra.mxu0 %v22464_v43 }
 0x84d   : > { %17458 = vmatpush3.bf16.msra.mxu1 %v19133_v41  ;;  %17428 = vmatprep.subr.bf16.mxu0 %v22465_v63  ;;  %v22479_v41 = vmov 0.0|0.0  }
 0x84e   : > { %17460 = vmatprep.subr.bf16.mxu1 %v19145_v45  ;;  %v9726_v45 = vld [vmem:[#allocation3 + $0xb9] sm:$0x7] }
 0x850   : > { %17430 = vmatpush3.bf16.msra.mxu0 %v22465_v63 }
 0x851   : > { %17462 = vmatpush3.bf16.msra.mxu1 %v19169_v0  ;;  %17464 = vmatprep.subr.bf16.mxu0 %v18889_v19  ;;  %v9725_v19 = vld [vmem:[#allocation3 + $0xb1] sm:$0xff] }
 0x852   : > { %17496 = vmatprep.subr.bf16.mxu1 %v19175_v7  ;;  %v9724_v0 = vld [vmem:[#allocation3 + $0xb8] sm:$0x7]  ;;  %v22480_v7 = vmov 0.0  }
 0x853   : > { %15474 = vmatmul.mubr.f32.vlgmr.msra.gmra.mrb[166].mxu0 %v9345_v14 }
 0x854   : > { %9794 = vmatmul.mubr.f32.vlgmr.msra.gmra.mrb[166].mxu1 %v20358_v58  ;;  %17466 = vmatpush3.bf16.msra.mxu0 %v18922_v26  ;;  %v22466_v26 = vld [vmem:[#allocation48_spill] sm:$0xff] }
 0x855   : > { %9798 = vmatprep.mubr.f32.mxu1 %v9337_v35  ;;  %9868 = vmatprep.mubr.f32.mxu0 %v9340_v21 }
 0x856   : > { %17498 = vmatpush3.bf16.msra.mxu1 %v19210_v42  ;;  %17468 = vmatprep.subr.bf16.mxu0 %v18931_v28  ;;  %v9727_v28 = vld [vmem:[#allocation3 + $0xb2] sm:$0xff] }
 0x857   : > { %17500 = vmatprep.subr.bf16.mxu1 %v19215_v60 }
 0x858   : > { %9799 = vmatmul.mubr.f32.gmra.mrb[168].mxu1 %v20416_v51  ;;  %17470 = vmatpush3.bf16.msra.mxu0 %v18962_v37  ;;  %v22467_v37 = vld [vmem:[#allocation27_spill] sm:$0xff] }
 0x859   : > { %9943 = vmatprep.mubr.f32.mxu1 %v9344_v17  ;;  %17472 = vmatprep.subr.bf16.mxu0 %v18971_v38  ;;  %v22468_v38 = vld [vmem:[#allocation30_spill] sm:$0xff] }
 0x85a   : > { %17502 = vmatpush3.bf16.msra.mxu1 %v22430_v16 }
 0x85b   : > { %17504 = vmatprep.subr.bf16.mxu1 %v22432_v32 }
 0x85c   : > { %17474 = vmatpush3.bf16.msra.mxu0 %v18998_v46  ;;  %v22469_v46 = vld [vmem:[#allocation32_spill] sm:$0xff] }
 0x85d   : > { %17476 = vmatprep.subr.bf16.mxu0 %v19007_v56  ;;  %v22470_v56 = vld [vmem:[#allocation34_spill] sm:$0xff] }
 0x85e   : > { %17506 = vmatpush3.bf16.msra.mxu1 %v22434_v18 }
 0x85f   : > { %17508 = vmatprep.subr.bf16.mxu1 %v22436_v5 }
 0x860   : > { %17478 = vmatpush3.bf16.msra.mxu0 %v19034_v1  ;;  %v22471_v1 = vld [vmem:[#allocation36_spill] sm:$0xff] }
 0x861   : > { %17480 = vmatprep.subr.bf16.mxu0 %v19043_v6  ;;  %v22472_v6 = vld [vmem:[#allocation40_spill] sm:$0xff] }
 0x862   : > { %17510 = vmatpush3.bf16.msra.mxu1 %v22438_v53 }
 0x863   : > { %17512 = vmatprep.subr.bf16.mxu1 %v22440_v59 }
 0x864   : > { %17482 = vmatpush3.bf16.msra.mxu0 %v19070_v54  ;;  %v22473_v54 = vld [vmem:[#allocation42_spill] sm:$0xff] }
 0x865   : > { %17484 = vmatprep.subr.bf16.mxu0 %v19079_v20  ;;  %v22474_v20 = vld [vmem:[#allocation44_spill] sm:$0xff] }
 0x866   : > { %17514 = vmatpush3.bf16.msra.mxu1 %v22442_v10 }
 0x867   : > { %17516 = vmatprep.subr.bf16.mxu1 %v22444_v55 }
 0x868   : > { %17486 = vmatpush3.bf16.msra.mxu0 %v19106_v30  ;;  %v22476_v30 = vld [vmem:[#allocation49_spill] sm:$0xff] }
 0x869   : > { %17488 = vmatprep.subr.bf16.mxu0 %v19115_v33  ;;  %v22478_v33 = vld [vmem:[#allocation53_spill] sm:$0xff] }
 0x86a   : > { %17518 = vmatpush3.bf16.msra.mxu1 %v22446_v8 }
 0x86b   : > { %17520 = vmatprep.subr.bf16.mxu1 %v22448_v25 }
 0x86c   : > { %17490 = vmatpush3.bf16.msra.mxu0 %v19142_v44  ;;  %v9723_v44 = vld [vmem:[#allocation3 + $0xb0] sm:$0xff] }
 0x86d   : > { %17492 = vmatprep.subr.bf16.mxu0 %v19151_v57  ;;  %v9728_v57 = vld [vmem:[#allocation3 + $0xba] sm:$0x7] }
 0x86e   : > { %17522 = vmatpush3.bf16.msra.mxu1 %v22450_v36 }
 0x86f   : > { %17524 = vmatprep.subr.bf16.mxu1 %v22452_v39 }
 0x870   : > { %17494 = vmatpush3.bf16.msra.mxu0 %v22201_v2 }
 0x871   : > { %17528 = vmatprep.subr.bf16.mxu0 %v22202_v9 }
 0x872   : > { %17526 = vmatpush3.bf16.msra.mxu1 %v22454_v15 }
 0x873   : > { %9869 = vmatmul.mubr.f32.vlgmr.msra.gmra.mrb[168].mxu0 %v22429_v48  ;;  %17560 = vmatprep.subr.bf16.mxu1 %v22456_v34 }
 0x874   : > { %9873 = vmatprep.mubr.f32.mxu0 %v20465_v13  ;;  %17530 = vmatpush3.bf16.msra.mxu0 %v22205_v23 }
 0x875   : > { %9944 = vmatmul.mubr.f32.vlgmr.msra.gmra.mrb[170].mxu1 %v20424_v24  ;;  %17532 = vmatprep.subr.bf16.mxu0 %v22237_v49 }
 0x876   : > { %9948 = vmatprep.mubr.f32.mxu1 %v9345_v14  ;;  %17562 = vmatpush3.bf16.msra.mxu1 %v22456_v34 }
 0x877   : > { %9874 = vmatmul.mubr.f32.gmra.mrb[170].mxu0 %v20456_v4  ;;  %17564 = vmatprep.subr.bf16.mxu1 %v22459_v40 }
 0x878   : > { %17534 = vmatpush3.bf16.msra.mxu0 %v22431_v62  ;;  %10018 = vmatprep.mubr.f32.mxu0 %v9725_v19 }
 0x879   : > { %9949 = vmatmul.mubr.f32.gmra.mrb[172].mxu1 %v22466_v26  ;;  %17536 = vmatprep.subr.bf16.mxu0 %v22467_v37 }
 0x87a   : > { %17566 = vmatpush3.bf16.msra.mxu1 %v22459_v40  ;;  %15508 = vmatprep.mubr.f32.mxu1 %v9727_v28 }
 0x87b   : > { %17568 = vmatprep.subr.bf16.mxu1 %v22460_v29 }
 0x87c   : > { %17538 = vmatpush3.bf16.msra.mxu0 %v22468_v38 }
 0x87d   : > { %17540 = vmatprep.subr.bf16.mxu0 %v22469_v46 }
 0x87e   : > { %17570 = vmatpush3.bf16.msra.mxu1 %v22460_v29 }
 0x87f   : > { %17572 = vmatprep.subr.bf16.mxu1 %v22461_v22 }
 0x880   : > { %17542 = vmatpush3.bf16.msra.mxu0 %v22470_v56 }
 0x881   : > { %17544 = vmatprep.subr.bf16.mxu0 %v22471_v1 }
 0x882   : > { %17574 = vmatpush3.bf16.msra.mxu1 %v22461_v22 }
 0x883   : > { %17576 = vmatprep.subr.bf16.mxu1 %v22462_v3 }
 0x884   : > { %17546 = vmatpush3.bf16.msra.mxu0 %v22472_v6 }
 0x885   : > { %17548 = vmatprep.subr.bf16.mxu0 %v22473_v54 }
 0x886   : > { %17578 = vmatpush3.bf16.msra.mxu1 %v22462_v3 }
 0x887   : > { %17580 = vmatprep.subr.bf16.mxu1 %v22463_v12 }
 0x888   : > { %17550 = vmatpush3.bf16.msra.mxu0 %v22474_v20 }
 0x889   : > { %17552 = vmatprep.subr.bf16.mxu0 %v22475_v50 }
 0x88a   : > { %17582 = vmatpush3.bf16.msra.mxu1 %v22463_v12 }
 0x88b   : > { %17584 = vmatprep.subr.bf16.mxu1 %v22464_v43 }
 0x88c   : > { %17554 = vmatpush3.bf16.msra.mxu0 %v22476_v30 }
 0x88d   : > { %17556 = vmatprep.subr.bf16.mxu0 %v22477_v31 }
 0x88e   : > { %17586 = vmatpush3.bf16.msra.mxu1 %v22464_v43 }
 0x88f   : > { %17588 = vmatprep.subr.bf16.mxu1 %v22465_v63 }
 0x890   : > { %17558 = vmatpush3.bf16.msra.mxu0 %v22478_v33 }
 0x891   : > { %17595 = vmatprep.subr.bf16.mxu0 %v22479_v41 }
 0x892   : > { %17590 = vmatpush3.bf16.msra.mxu1 %v22465_v63 }
 0x893   : > { %10019 = vmatmul.mubr.f32.vlgmr.msra.gmra.mrb[172].mxu0 %v9723_v44  ;;  %17591 = vmatprep.subr.bf16.mxu1 %v22479_v41 }
 0x894   : > { %10023 = vmatprep.mubr.f32.mxu0 %v9726_v45 }
 0x895   : > { %15509 = vmatmul.mubr.f32.vlgmr.msra.gmra.mrb[174].mxu1 %v9728_v57 }
 0x896   : > { %15515 = vmatprep.mubr.msk.f32.mxu1 %vm18146_vm9, %v22480_v7 }
 0x897   : > { %10024 = vmatmul.mubr.f32.gmra.mrb[174].mxu0 %v9724_v0 }
 0x898   : > { %15522 = vmatprep.mubr.msk.f32.mxu0 %vm18146_vm9, %v22480_v7 }
 0x8c4   : > { %v9251_v42 = vpop.f32.mrb[156].mxu0  ;;  %v9321_v60 = vpop.f32.mrb[156].mxu1 }
 0x8c5   : > { %v15433_v2 = vpop.f32.mrb[157].mxu0  ;;  %v9325_v9 = vmax.f32 %v9251_v42, %v9321_v60  ;;  %v15440_v23 = vpop.f32.mrb[157].mxu1 }
 0x8c7   : > { %9327 = vst [vmem:[#allocation4 + $0x18] sm:$0x1f] %v9325_v9 }
 0x8e4   : > { %v13791_v52 = vpop.f32.mrb[158].mxu0 }
 0x8e5   : > { %v13829_v49 = vpop.f32.mrb[158].mxu1  ;;  %v13792_v58 = vpop.f32.mrb[159].mxu0 }
 0x8e6   : > { %v13793_v29 = vadd.f32 %v13792_v58, %v13791_v52  ;;  %v13830_v36 = vpop.f32.mrb[159].mxu1 }
 0x8e7   : > { %v13831_v4 = vadd.f32 %v13830_v36, %v13829_v49 }
 0x8e8   : > { %v9413_v11 = vadd.f32 %v18078_v61, %v13793_v29  ;;  %v13794_v27 = vpop.f32.mrb[160].mxu0 }
 0x8e9   : > { %v13832_v51 = vpop.f32.mrb[160].mxu1  ;;  %v13795_v48 = vpop.f32.mrb[161].mxu0 }
 0x8ea   : > { %v9488_v24 = vadd.f32 %v13831_v4, %v9413_v11  ;;  %v13796_v16 = vadd.f32 %v13795_v48, %v13794_v27  ;;  %v13833_v62 = vpop.f32.mrb[161].mxu1 }
 0x8eb   : > { %v13834_v32 = vadd.f32 %v13833_v62, %v13832_v51 }
 0x8ec   : > { %v9418_v17 = vadd.f32 %v18078_v61, %v13796_v16 }
 0x8ee   : > { %v9493_v18 = vadd.f32 %v13834_v32, %v9418_v17  ;;  %v10295_v32 = vld [vmem:[%s21910_s5 + $0x80] sm:$0xff] }
 0x905   : > { %v13867_v21 = vpop.f32.mrb[162].mxu0 }
 0x906   : > { %v13905_v5 = vpop.f32.mrb[162].mxu1  ;;  %v13868_v35 = vpop.f32.mrb[163].mxu0 }
 0x907   : > { %v13869_v53 = vadd.f32 %v13868_v35, %v13867_v21  ;;  %v13906_v40 = vpop.f32.mrb[163].mxu1  ;;  %v10296_v21 = vld [vmem:[%s21910_s5 + $0x88] sm:$0xff] }
 0x908   : > { %v13907_v59 = vadd.f32 %v13906_v40, %v13905_v5  ;;  %v10327_v5 = vld [vmem:[%s21910_s5 + $0x180] sm:$0xff]  ;;  %v10328_v35 = vld [vmem:[%s21910_s5 + $0x188] sm:$0xff]  ;;  %v17599_v40 = vpack.c.bf16 %v10296_v21, %v10295_v32 }
 0x909   : > { %v9563_v39 = vadd.f32 %v13869_v53, %v9488_v24  ;;  %v13870_v10 = vpop.f32.mrb[164].mxu0  ;;  %v10287_v32 = vld [vmem:[%s21910_s5 + $0x40] sm:$0xff] }
 0x90a   : > { %v13908_v15 = vpop.f32.mrb[164].mxu1  ;;  %v13871_v55 = vpop.f32.mrb[165].mxu0 }
 0x90b   : > { %v13872_v34 = vadd.f32 %v13871_v55, %v13870_v10  ;;  %v13909_v8 = vpop.f32.mrb[165].mxu1  ;;  %v9638_v47 = vadd.f32 %v13907_v59, %v9563_v39  ;;  %v17631_v59 = vpack.c.bf16 %v10328_v35, %v10327_v5  ;;  %v10279_v39 = vld [vmem:[%s21910_s5] sm:$0xff]  ;;  %v10280_v10 = vld [vmem:[%s21910_s5 + $0x8] sm:$0xff]  ;;  %v10305_v35 = vld [vmem:[%s21910_s5 + $0xd0] sm:$0xff] }
 0x90c   : > { %v13910_v25 = vadd.f32 %v13909_v8, %v13908_v15  ;;  %v10311_v55 = vld [vmem:[%s21910_s5 + $0x100] sm:$0xff]  ;;  %v10297_v8 = vld [vmem:[%s21910_s5 + $0x90] sm:$0xff]  ;;  %v10320_v5 = vld [vmem:[%s21910_s5 + $0x148] sm:$0xff] }
 0x90d   : > { %v9568_v13 = vadd.f32 %v13872_v34, %v9493_v18  ;;  %v10312_v34 = vld [vmem:[%s21910_s5 + $0x108] sm:$0xff] }
 0x90f   : > { %v9643_v22 = vadd.f32 %v13910_v25, %v9568_v13  ;;  %v10329_v25 = vld [vmem:[%s21910_s5 + $0x190] sm:$0xff]  ;;  %v10330_v13 = vld [vmem:[%s21910_s5 + $0x198] sm:$0xff] }
 0x926   : > { %v15475_v3 = vpop.f32.mrb[166].mxu0 }
 0x927   : > { %v9718_v12 = vadd.f32 %v15475_v3, %v9643_v22  ;;  %v13961_v43 = vpop.f32.mrb[166].mxu1  ;;  %v9712_v63 = vpop.f32.mrb[167].mxu0  ;;  %v17601_v3 = vpack.c.bf16 %v10280_v10, %v10279_v39  ;;  %v10308_v22 = vld [vmem:[%s21910_s5 + $0xe8] sm:$0xff] }
 0x928   : > { %v9713_v14 = vadd.f32 %v9712_v63, %v9638_v47  ;;  %v13962_v19 = vpop.f32.mrb[167].mxu1  ;;  %v10298_v47 = vld [vmem:[%s21910_s5 + $0x98] sm:$0xff] }
 0x929   : > { %v13963_v26 = vadd.f32 %v13962_v19, %v13961_v43  ;;  %v9722_v17 = vmax.f32 %v9718_v12, 0.0  ;;  %v17633_v12 = vpack.c.bf16 %v10312_v34, %v10311_v55  ;;  %v10281_v43 = vld [vmem:[%s21910_s5 + $0x10] sm:$0xff]  ;;  %v10282_v63 = vld [vmem:[%s21910_s5 + $0x18] sm:$0xff]  ;;  %v17603_v19 = vpack.c.bf16 %v10298_v47, %v10297_v8 }
 0x92a   : > { %v9721_v48 = vmax.f32 %v9713_v14, 0.0  ;;  %v10313_v14 = vld [vmem:[%s21910_s5 + $0x110] sm:$0xff]  ;;  %v10290_v34 = vld [vmem:[%s21910_s5 + $0x58] sm:$0xff] }
 0x92b   : > { %v13964_v28 = vpop.f32.mrb[168].mxu1  ;;  %v9796_v1 = vadd.f32 %v18078_v61, %v13963_v26  ;;  %v17635_v26 = vpack.c.bf16 %v10330_v13, %v10329_v25  ;;  %v10289_v55 = vld [vmem:[%s21910_s5 + $0x50] sm:$0xff]  ;;  %v10322_v25 = vld [vmem:[%s21910_s5 + $0x158] sm:$0xff]  ;;  %v10307_v13 = vld [vmem:[%s21910_s5 + $0xe0] sm:$0xff] }
 0x92c   : > { %v13965_v37 = vpop.f32.mrb[169].mxu1  ;;  %v10321_v8 = vld [vmem:[%s21910_s5 + $0x150] sm:$0xff] }
 0x92d   : > { %v13966_v38 = vadd.f32 %v13965_v37, %v13964_v28  ;;  %v10314_v28 = vld [vmem:[%s21910_s5 + $0x118] sm:$0xff]  ;;  %v10299_v37 = vld [vmem:[%s21910_s5 + $0xa0] sm:$0xff] }
 0x92f   : > { %v9801_v44 = vadd.f32 %v18078_v61, %v13966_v38  ;;  %v10300_v38 = vld [vmem:[%s21910_s5 + $0xa8] sm:$0xff] }
 0x946   : > { %v13999_v46 = vpop.f32.mrb[168].mxu0 }
 0x947   : > { %v14000_v56 = vpop.f32.mrb[169].mxu0 }
 0x948   : > { %v14037_v6 = vpop.f32.mrb[170].mxu1  ;;  %v14001_v54 = vadd.f32 %v14000_v56, %v13999_v46  ;;  %v22482_v46 = vld [vmem:[#allocation8_spill] sm:$0xff]  ;;  %v22483_v56 = vld [vmem:[#allocation9_spill] sm:$0xff] }
 0x949   : > { %v14038_v20 = vpop.f32.mrb[171].mxu1 }
 0x94a   : > { %v9871_v50 = vadd.f32 %v14001_v54, %v9796_v1  ;;  %v14039_v30 = vadd.f32 %v14038_v20, %v14037_v6  ;;  %v14002_v31 = vpop.f32.mrb[170].mxu0  ;;  %v10255_v1 = vld [vmem:[#allocation4 + $0x1] sm:$0x1]  ;;  %v10331_v6 = vld [vmem:[%s21910_s5 + $0x1a0] sm:$0xff]  ;;  %v10332_v54 = vld [vmem:[%s21910_s5 + $0x1a8] sm:$0xff] }
 0x94b   : > { %v14003_v33 = vpop.f32.mrb[171].mxu0  ;;  %v10257_v20 = vld [vmem:[#allocation4 + $0x3] sm:$0x1] }
 0x94c   : > { %v9946_v45 = vadd.f32 %v14039_v30, %v9871_v50  ;;  %v14040_v57 = vpop.f32.mrb[172].mxu1  ;;  %v14004_v0 = vadd.f32 %v14003_v33, %v14002_v31  ;;  %v17605_v50 = vpack.c.bf16 %v10282_v63, %v10281_v43  ;;  %v17637_v30 = vpack.c.bf16 %v10314_v28, %v10313_v14  ;;  %v10283_v33 = vld [vmem:[%s21910_s5 + $0x20] sm:$0xff] }
 0x94d   : > { %v14041_v42 = vpop.f32.mrb[173].mxu1  ;;  %v17607_v31 = vpack.c.bf16 %v10300_v38, %v10299_v37  ;;  %v17621_v43 = vpack.c.bf16 %v10290_v34, %v10289_v55  ;;  %v17653_v63 = vpack.c.bf16 %v10322_v25, %v10321_v8  ;;  %v17623_v14 = vpack.c.bf16 %v10308_v22, %v10307_v13  ;;  %v10323_v28 = vld [vmem:[%s21910_s5 + $0x160] sm:$0xff]  ;;  %v10324_v38 = vld [vmem:[%s21910_s5 + $0x168] sm:$0xff] }
 0x94e   : > { %v9876_v60 = vadd.f32 %v14004_v0, %v9801_v44  ;;  %v14042_v2 = vadd.f32 %v14041_v42, %v14040_v57  ;;  %v10284_v44 = vld [vmem:[%s21910_s5 + $0x28] sm:$0xff]  ;;  %v17639_v57 = vpack.c.bf16 %v10332_v54, %v10331_v6  ;;  %v10301_v42 = vld [vmem:[%s21910_s5 + $0xb0] sm:$0xff]  ;;  %v10342_v6 = vld [vmem:[%s21910_s5 + $0x1f8] sm:$0xff] }
 0x94f   : > { %v10316_v0 = vld [vmem:[%s21910_s5 + $0x128] sm:$0xff]  ;;  %v10347_v8 = vld [vmem:[%s21910_s5 + $0x220] sm:$0xff] }
 0x950   : > { %v9951_v9 = vadd.f32 %v14042_v2, %v9876_v60  ;;  %v10302_v60 = vld [vmem:[%s21910_s5 + $0xb8] sm:$0xff]  ;;  %v10333_v2 = vld [vmem:[%s21910_s5 + $0x1b0] sm:$0xff]  ;;  %v10379_v25 = vld [vmem:[%s21910_s5 + $0x320] sm:$0xff] }
 0x951   : > { %v10380_v22 = vld [vmem:[%s21910_s5 + $0x328] sm:$0xff] }
 0x966   : > { %v14075_v23 = vpop.f32.mrb[172].mxu0 }
 0x967   : > { %v14076_v52 = vpop.f32.mrb[173].mxu0 }
 0x968   : > { %v15510_v49 = vpop.f32.mrb[174].mxu1  ;;  %v14077_v58 = vadd.f32 %v14076_v52, %v14075_v23  ;;  %v17609_v23 = vpack.c.bf16 %v10284_v44, %v10283_v33  ;;  %v10325_v33 = vld [vmem:[%s21910_s5 + $0x170] sm:$0xff] }
 0x969   : > { %v10095_v29 = vpop.f32.mrb[175].mxu1 }
 0x96a   : > { %v10021_v36 = vadd.f32 %v14077_v58, %v9946_v45  ;;  %v14078_v4 = vpop.f32.mrb[174].mxu0  ;;  %v10315_v45 = vld [vmem:[%s21910_s5 + $0x120] sm:$0xff]  ;;  %v10285_v58 = vld [vmem:[%s21910_s5 + $0x30] sm:$0xff] }
 0x96b   : > { %v14079_v11 = vpop.f32.mrb[175].mxu0  ;;  %v17641_v52 = vpack.c.bf16 %v10316_v0, %v10315_v45  ;;  %v10326_v45 = vld [vmem:[%s21910_s5 + $0x178] sm:$0xff]  ;;  %v10360_v0 = vld [vmem:[%s21910_s5 + $0x288] sm:$0xff] }
 0x96c   : > { %v10096_v27 = vadd.f32 %v10095_v29, %v10021_v36  ;;  %v14080_v51 = vadd.f32 %v14079_v11, %v14078_v4  ;;  %v10286_v29 = vld [vmem:[%s21910_s5 + $0x38] sm:$0xff]  ;;  %v10317_v36 = vld [vmem:[%s21910_s5 + $0x130] sm:$0xff] }
 0x96d   : > { %v10318_v11 = vld [vmem:[%s21910_s5 + $0x138] sm:$0xff] }
 0x96e   : > { %v10104_v24 = vmax.f32 %v10096_v27, 0.0  ;;  %v10026_v61 = vadd.f32 %v14080_v51, %v9951_v9  ;;  %v10334_v9 = vld [vmem:[%s21910_s5 + $0x1b8] sm:$0xff]  ;;  %v10303_v27 = vld [vmem:[%s21910_s5 + $0xc0] sm:$0xff]  ;;  %v10304_v51 = vld [vmem:[%s21910_s5 + $0xc8] sm:$0xff] }
 0x96f   : > { %v17643_v4 = vpack.c.bf16 %v10334_v9, %v10333_v2  ;;  %v17661_v9 = vpack.c.bf16 %v10326_v45, %v10325_v33  ;;  %v10351_v33 = vld [vmem:[%s21910_s5 + $0x240] sm:$0xff] }
 0x970   : > { %v10106_v16 = vmax.f32 %v9721_v48, %v10104_v24  ;;  %v10101_v62 = vadd.f32 %v15510_v49, %v10026_v61  ;;  %v17611_v49 = vpack.c.bf16 %v10302_v60, %v10301_v42  ;;  %v10335_v48 = vld [vmem:[%s21910_s5 + $0x1c0] sm:$0xff]  ;;  %v10336_v24 = vld [vmem:[%s21910_s5 + $0x1c8] sm:$0xff]  ;;  %v17613_v61 = vpack.c.bf16 %v10286_v29, %v10285_v58 }
 0x971   : > { %v17647_v21 = vpack.c.bf16 %v10336_v24, %v10335_v48  ;;  %v10391_v42 = vld [vmem:[%s21910_s5 + $0x380] sm:$0xff]  ;;  %v10392_v60 = vld [vmem:[%s21910_s5 + $0x388] sm:$0xff]  ;;  %v10393_v48 = vld [vmem:[%s21910_s5 + $0x390] sm:$0xff] }
 0x972   : > { %v10105_v18 = vmax.f32 %v10101_v62, 0.0  ;;  %v17615_v62 = vpack.c.bf16 %v10304_v51, %v10303_v27  ;;  %v17695_v58 = vpack.c.bf16 %v10392_v60, %v10391_v42  ;;  %v10375_v29 = vld [vmem:[%s21910_s5 + $0x300] sm:$0xff]  ;;  %v10254_v27 = vld [vmem:[#allocation4] sm:$0x1]  ;;  %v10394_v24 = vld [vmem:[%s21910_s5 + $0x398] sm:$0xff] }
 0x973   : > { %v10383_v45 = vld [vmem:[%s21910_s5 + $0x340] sm:$0xff]  ;;  %v10369_v42 = vld [vmem:[%s21910_s5 + $0x2d0] sm:$0xff]  ;;  %v10370_v60 = vld [vmem:[%s21910_s5 + $0x2d8] sm:$0xff] }
 0x974   : > { %v10107_v53 = vmax.f32 %v9722_v17, %v10105_v18  ;;  %v10288_v17 = vld [vmem:[%s21910_s5 + $0x48] sm:$0xff]  ;;  %v10319_v18 = vld [vmem:[%s21910_s5 + $0x140] sm:$0xff] }
 0x975   : > { %v17617_v39 = vpack.c.bf16 %v10288_v17, %v10287_v32  ;;  %v17649_v10 = vpack.c.bf16 %v10320_v5, %v10319_v18  ;;  %v10377_v32 = vld [vmem:[%s21910_s5 + $0x310] sm:$0xff]  ;;  %v10378_v18 = vld [vmem:[%s21910_s5 + $0x318] sm:$0xff]  ;;  %v10364_v5 = vld [vmem:[%s21910_s5 + $0x2a8] sm:$0xff] }
 0x976   : > { %v17592_v15 = vpack.c.bf16 %v10107_v53, %v10106_v16  ;;  %v17645_v16 = vpack.c.bf16 %v10318_v11, %v10317_v36  ;;  %v10306_v53 = vld [vmem:[%s21910_s5 + $0xd8] sm:$0xff]  ;;  %v10376_v36 = vld [vmem:[%s21910_s5 + $0x308] sm:$0xff]  ;;  %v17701_v55 = vpack.c.bf16 %v10378_v18, %v10377_v32  ;;  %v10355_v32 = vld [vmem:[%s21910_s5 + $0x260] sm:$0xff] }
 0x977   : > { %v10362_v11 = vld [vmem:[%s21910_s5 + $0x298] sm:$0xff]  ;;  %v10387_v18 = vld [vmem:[%s21910_s5 + $0x360] sm:$0xff] }
 0x978   : > { %17594 = vmatpush3.bf16.msk.msra.mxu1 %vm19692_vm11, %v17592_v15  ;;  %17598 = vmatpush3.bf16.msk.msra.mxu0 %vm19692_vm11, %v17592_v15  ;;  %v17619_v15 = vpack.c.bf16 %v10306_v53, %v10305_v35  ;;  %v10256_v35 = vld [vmem:[#allocation4 + $0x2] sm:$0x1]  ;;  %v17699_v53 = vpack.c.bf16 %v10394_v24, %v10393_v48  ;;  %v10403_v48 = vld [vmem:[%s21910_s5 + $0x3e0] sm:$0xff]  ;;  %v10404_v24 = vld [vmem:[%s21910_s5 + $0x3e8] sm:$0xff] }
 0x979   : > { %17600 = vmatprep.subr.bf16.mxu1 %v17599_v40  ;;  %17632 = vmatprep.subr.bf16.mxu0 %v17631_v59  ;;  %v10337_v40 = vld [vmem:[%s21910_s5 + $0x1d0] sm:$0xff]  ;;  %v10338_v59 = vld [vmem:[%s21910_s5 + $0x1d8] sm:$0xff] }
 0x97a   : > { %v17651_v47 = vpack.c.bf16 %v10338_v59, %v10337_v40  ;;  %v10395_v40 = vld [vmem:[%s21910_s5 + $0x3a0] sm:$0xff]  ;;  %v10396_v59 = vld [vmem:[%s21910_s5 + $0x3a8] sm:$0xff] }
 0x97b   : > { %15516 = vmatmul.mubr.msk.f32.vlgmr.msra.gmra.mrb[176].mxu1 %vm6399_vm12, %v22482_v46  ;;  %15523 = vmatmul.mubr.msk.f32.vlgmr.msra.gmra.mrb[176].mxu0 %vm6399_vm12, %v22483_v56  ;;  %v10309_v46 = vld [vmem:[%s21910_s5 + $0xf0] sm:$0xff]  ;;  %v10310_v56 = vld [vmem:[%s21910_s5 + $0xf8] sm:$0xff]  ;;  %v17703_v13 = vpack.c.bf16 %v10396_v59, %v10395_v40 }
 0x97c   : > { %17602 = vmatpush3.bf16.msra.mxu1 %v17601_v3  ;;  %10744 = vmatprep.mubr.f32.mxu1 %v10255_v1  ;;  %v10339_v3 = vld [vmem:[%s21910_s5 + $0x1e0] sm:$0xff]  ;;  %v10341_v1 = vld [vmem:[%s21910_s5 + $0x1f0] sm:$0xff]  ;;  %v10406_v59 = vld [vmem:[%s21910_s5 + $0x3f8] sm:$0xff] }
 0x97d   : > { %17634 = vmatpush3.bf16.msra.mxu0 %v17633_v12  ;;  %10814 = vmatprep.mubr.f32.mxu0 %v10257_v20  ;;  %v10340_v12 = vld [vmem:[%s21910_s5 + $0x1e8] sm:$0xff]  ;;  %v17657_v20 = vpack.c.bf16 %v10324_v38, %v10323_v28  ;;  %v17659_v44 = vpack.c.bf16 %v10342_v6, %v10341_v1  ;;  %v10349_v28 = vld [vmem:[%s21910_s5 + $0x230] sm:$0xff]  ;;  %v10367_v1 = vld [vmem:[%s21910_s5 + $0x2c0] sm:$0xff] }
 0x97e   : > { %17604 = vmatprep.subr.bf16.mxu1 %v17603_v19  ;;  %17636 = vmatprep.subr.bf16.mxu0 %v17635_v26  ;;  %v10291_v19 = vld [vmem:[%s21910_s5 + $0x60] sm:$0xff]  ;;  %v10292_v26 = vld [vmem:[%s21910_s5 + $0x68] sm:$0xff]  ;;  %v17655_v37 = vpack.c.bf16 %v10340_v12, %v10339_v3  ;;  %v10365_v3 = vld [vmem:[%s21910_s5 + $0x2b0] sm:$0xff] }
 0x97f   : > { %v17625_v54 = vpack.c.bf16 %v10292_v26, %v10291_v19  ;;  %v10366_v12 = vld [vmem:[%s21910_s5 + $0x2b8] sm:$0xff]  ;;  %v17705_v19 = vpack.c.bf16 %v10380_v22, %v10379_v25  ;;  %v10381_v38 = vld [vmem:[%s21910_s5 + $0x330] sm:$0xff]  ;;  %v10368_v6 = vld [vmem:[%s21910_s5 + $0x2c8] sm:$0xff] }
 0x980   : > { %17606 = vmatpush3.bf16.msra.mxu1 %v17605_v50  ;;  %v17627_v50 = vpack.c.bf16 %v10310_v56, %v10309_v46  ;;  %v17675_v26 = vpack.c.bf16 %v10366_v12, %v10365_v3  ;;  %v10382_v56 = vld [vmem:[%s21910_s5 + $0x338] sm:$0xff]  ;;  %v10405_v40 = vld [vmem:[%s21910_s5 + $0x3f0] sm:$0xff]  ;;  %v10424_v22 = vld [vmem:[%s21910_s5 + $0x488] sm:$0xff] }
 0x981   : > { %17638 = vmatpush3.bf16.msra.mxu0 %v17637_v30  ;;  %17608 = vmatprep.subr.bf16.mxu1 %v17607_v31  ;;  %v10293_v30 = vld [vmem:[%s21910_s5 + $0x70] sm:$0xff]  ;;  %v10294_v31 = vld [vmem:[%s21910_s5 + $0x78] sm:$0xff]  ;;  %v10455_v3 = vld [vmem:[%s21910_s5 + $0x580] sm:$0xff] }
 0x982   : > { %17640 = vmatprep.subr.bf16.mxu0 %v17639_v57  ;;  %v10359_v57 = vld [vmem:[%s21910_s5 + $0x280] sm:$0xff]  ;;  %v17629_v2 = vpack.c.bf16 %v10294_v31, %v10293_v30  ;;  %v17709_v30 = vpack.c.bf16 %v10382_v56, %v10381_v38  ;;  %v17679_v31 = vpack.c.bf16 %v10368_v6, %v10367_v1  ;;  %v10390_v25 = vld [vmem:[%s21910_s5 + $0x378] sm:$0xff]  ;;  %v10456_v12 = vld [vmem:[%s21910_s5 + $0x588] sm:$0xff] }
 0x983   : > { %v10440_v38 = vld [vmem:[%s21910_s5 + $0x508] sm:$0xff]  ;;  %v10426_v56 = vld [vmem:[%s21910_s5 + $0x498] sm:$0xff]  ;;  %v10258_v1 = vld [vmem:[#allocation4 + $0x4] sm:$0x1] }
 0x984   : > { %17610 = vmatpush3.bf16.msra.mxu1 %v17609_v23  ;;  %v17663_v23 = vpack.c.bf16 %v10360_v0, %v10359_v57  ;;  %v10384_v0 = vld [vmem:[%s21910_s5 + $0x348] sm:$0xff] }
 0x985   : > { %17642 = vmatpush3.bf16.msra.mxu0 %v17641_v52  ;;  %17612 = vmatprep.subr.bf16.mxu1 %v17611_v49  ;;  %v10343_v52 = vld [vmem:[%s21910_s5 + $0x200] sm:$0xff]  ;;  %v10344_v49 = vld [vmem:[%s21910_s5 + $0x208] sm:$0xff] }
 0x986   : > { %17644 = vmatprep.subr.bf16.mxu0 %v17643_v4  ;;  %v10361_v4 = vld [vmem:[%s21910_s5 + $0x290] sm:$0xff]  ;;  %v17665_v51 = vpack.c.bf16 %v10344_v49, %v10343_v52  ;;  %v17713_v52 = vpack.c.bf16 %v10384_v0, %v10383_v45  ;;  %v17683_v49 = vpack.c.bf16 %v10370_v60, %v10369_v42  ;;  %v10442_v45 = vld [vmem:[%s21910_s5 + $0x518] sm:$0xff]  ;;  %v10428_v0 = vld [vmem:[%s21910_s5 + $0x4a8] sm:$0xff] }
 0x987   : > { %v17667_v17 = vpack.c.bf16 %v10362_v11, %v10361_v4  ;;  %v10386_v11 = vld [vmem:[%s21910_s5 + $0x358] sm:$0xff] }
 0x988   : > { %17614 = vmatpush3.bf16.msra.mxu1 %v17613_v61  ;;  %v17697_v61 = vpack.c.bf16 %v10376_v36, %v10375_v29  ;;  %v10354_v29 = vld [vmem:[%s21910_s5 + $0x258] sm:$0xff]  ;;  %v10385_v36 = vld [vmem:[%s21910_s5 + $0x350] sm:$0xff] }
 0x989   : > { %17646 = vmatpush3.bf16.msra.mxu0 %v17645_v16  ;;  %17616 = vmatprep.subr.bf16.mxu1 %v17615_v62  ;;  %v10345_v16 = vld [vmem:[%s21910_s5 + $0x210] sm:$0xff]  ;;  %v10346_v62 = vld [vmem:[%s21910_s5 + $0x218] sm:$0xff] }
 0x98a   : > { %17648 = vmatprep.subr.bf16.mxu0 %v17647_v21  ;;  %v10363_v21 = vld [vmem:[%s21910_s5 + $0x2a0] sm:$0xff]  ;;  %v10260_v42 = vld [vmem:[#allocation4 + $0x9] sm:$0x1] }
 0x98b   : > { %v17671_v34 = vpack.c.bf16 %v10364_v5, %v10363_v21  ;;  %v17719_v21 = vpack.c.bf16 %v10404_v24, %v10403_v48  ;;  %v10388_v5 = vld [vmem:[%s21910_s5 + $0x368] sm:$0xff]  ;;  %v10429_v48 = vld [vmem:[%s21910_s5 + $0x4b0] sm:$0xff]  ;;  %v10430_v24 = vld [vmem:[%s21910_s5 + $0x4b8] sm:$0xff] }
 0x98c   : > { %17618 = vmatpush3.bf16.msra.mxu1 %v17617_v39  ;;  %v10259_v39 = vld [vmem:[#allocation4 + $0x8] sm:$0x1] }
 0x98d   : > { %17650 = vmatpush3.bf16.msra.mxu0 %v17649_v10  ;;  %17620 = vmatprep.subr.bf16.mxu1 %v17619_v15  ;;  %v10261_v10 = vld [vmem:[#allocation4 + $0xa] sm:$0x1]  ;;  %v17669_v15 = vpack.c.bf16 %v10346_v62, %v10345_v16  ;;  %v17717_v16 = vpack.c.bf16 %v10386_v11, %v10385_v36  ;;  %v10411_v36 = vld [vmem:[%s21910_s5 + $0x420] sm:$0xff] }
 0x98e   : > { %17652 = vmatprep.subr.bf16.mxu0 %v17651_v47  ;;  %v10348_v47 = vld [vmem:[%s21910_s5 + $0x228] sm:$0xff]  ;;  %v10443_v11 = vld [vmem:[%s21910_s5 + $0x520] sm:$0xff] }
 0x990   : > { %17622 = vmatpush3.bf16.msra.mxu1 %v17621_v43  ;;  %v10397_v43 = vld [vmem:[%s21910_s5 + $0x3b0] sm:$0xff] }
 0x991   : > { %17654 = vmatpush3.bf16.msra.mxu0 %v17653_v63  ;;  %17624 = vmatprep.subr.bf16.mxu1 %v17623_v14  ;;  %v10398_v63 = vld [vmem:[%s21910_s5 + $0x3b8] sm:$0xff]  ;;  %v17673_v14 = vpack.c.bf16 %v10348_v47, %v10347_v8  ;;  %v10389_v8 = vld [vmem:[%s21910_s5 + $0x370] sm:$0xff]  ;;  %v17723_v47 = vpack.c.bf16 %v10406_v59, %v10405_v40  ;;  %v10431_v40 = vld [vmem:[%s21910_s5 + $0x4c0] sm:$0xff] }
 0x992   : > { %17656 = vmatprep.subr.bf16.mxu0 %v17655_v37  ;;  %v10350_v37 = vld [vmem:[%s21910_s5 + $0x238] sm:$0xff]  ;;  %v17707_v46 = vpack.c.bf16 %v10398_v63, %v10397_v43  ;;  %v17725_v63 = vpack.c.bf16 %v10390_v25, %v10389_v8  ;;  %v10432_v59 = vld [vmem:[%s21910_s5 + $0x4c8] sm:$0xff]  ;;  %v10415_v8 = vld [vmem:[%s21910_s5 + $0x440] sm:$0xff] }
 0x993   : > { %v10447_v25 = vld [vmem:[%s21910_s5 + $0x540] sm:$0xff] }
 0x994   : > { %17626 = vmatpush3.bf16.msra.mxu1 %v17625_v54  ;;  %v10399_v54 = vld [vmem:[%s21910_s5 + $0x3c0] sm:$0xff] }
 0x995   : > { %17658 = vmatpush3.bf16.msra.mxu0 %v17657_v20  ;;  %17628 = vmatprep.subr.bf16.mxu1 %v17627_v50  ;;  %v10400_v20 = vld [vmem:[%s21910_s5 + $0x3c8] sm:$0xff]  ;;  %v17677_v50 = vpack.c.bf16 %v10350_v37, %v10349_v28  ;;  %v17759_v28 = vpack.c.bf16 %v10456_v12, %v10455_v3  ;;  %v10439_v37 = vld [vmem:[%s21910_s5 + $0x500] sm:$0xff]  ;;  %v10433_v3 = vld [vmem:[%s21910_s5 + $0x4d0] sm:$0xff] }
 0x996   : > { %17660 = vmatprep.subr.bf16.mxu0 %v17659_v44  ;;  %v10352_v44 = vld [vmem:[%s21910_s5 + $0x248] sm:$0xff]  ;;  %v17711_v57 = vpack.c.bf16 %v10400_v20, %v10399_v54  ;;  %v10457_v54 = vld [vmem:[%s21910_s5 + $0x590] sm:$0xff]  ;;  %v10458_v20 = vld [vmem:[%s21910_s5 + $0x598] sm:$0xff] }
 0x997   : > { %v17763_v60 = vpack.c.bf16 %v10458_v20, %v10457_v54  ;;  %v10434_v12 = vld [vmem:[%s21910_s5 + $0x4d8] sm:$0xff]  ;;  %v10467_v54 = vld [vmem:[%s21910_s5 + $0x5e0] sm:$0xff]  ;;  %v10468_v20 = vld [vmem:[%s21910_s5 + $0x5e8] sm:$0xff] }
 0x998   : > { %17630 = vmatpush3.bf16.msra.mxu1 %v17629_v2  ;;  %v10401_v2 = vld [vmem:[%s21910_s5 + $0x3d0] sm:$0xff] }
 0x999   : > { %17662 = vmatpush3.bf16.msra.mxu0 %v17661_v9  ;;  %17664 = vmatprep.subr.bf16.mxu1 %v17663_v23  ;;  %v10402_v9 = vld [vmem:[%s21910_s5 + $0x3d8] sm:$0xff]  ;;  %v17681_v23 = vpack.c.bf16 %v10352_v44, %v10351_v33  ;;  %v10441_v33 = vld [vmem:[%s21910_s5 + $0x510] sm:$0xff] }
 0x99a   : > { %17696 = vmatprep.subr.bf16.mxu0 %v17695_v58  ;;  %v10353_v58 = vld [vmem:[%s21910_s5 + $0x250] sm:$0xff]  ;;  %v17715_v4 = vpack.c.bf16 %v10402_v9, %v10401_v2  ;;  %v10459_v2 = vld [vmem:[%s21910_s5 + $0x5a0] sm:$0xff]  ;;  %v10460_v9 = vld [vmem:[%s21910_s5 + $0x5a8] sm:$0xff] }
 0x99b   : > { %10745 = vmatmul.mubr.f32.vlgmr.msra.gmra.mrb[178].mxu1 %v10254_v27  ;;  %v10371_v27 = vld [vmem:[%s21910_s5 + $0x2e0] sm:$0xff] }
 0x99c   : > { %10815 = vmatmul.mubr.f32.vlgmr.msra.gmra.mrb[178].mxu0 %v10256_v35  ;;  %17666 = vmatpush3.bf16.msra.mxu1 %v17665_v51  ;;  %v10372_v51 = vld [vmem:[%s21910_s5 + $0x2e8] sm:$0xff]  ;;  %v10373_v35 = vld [vmem:[%s21910_s5 + $0x2f0] sm:$0xff] }
 0x99d   : > { %10884 = vmatprep.mubr.f32.mxu1 %v10259_v39  ;;  %17698 = vmatpush3.bf16.msra.mxu0 %v17697_v61  ;;  %v17685_v61 = vpack.c.bf16 %v10354_v29, %v10353_v58  ;;  %v17687_v62 = vpack.c.bf16 %v10372_v51, %v10371_v27  ;;  %v17765_v58 = vpack.c.bf16 %v10442_v45, %v10441_v33  ;;  %v10444_v51 = vld [vmem:[%s21910_s5 + $0x528] sm:$0xff]  ;;  %v10419_v33 = vld [vmem:[%s21910_s5 + $0x460] sm:$0xff] }
 0x99e   : > { %10954 = vmatprep.mubr.f32.mxu0 %v10261_v10  ;;  %17668 = vmatprep.subr.bf16.mxu1 %v17667_v17  ;;  %v10356_v17 = vld [vmem:[%s21910_s5 + $0x268] sm:$0xff]  ;;  %v17721_v10 = vpack.c.bf16 %v10388_v5, %v10387_v18  ;;  %v17767_v27 = vpack.c.bf16 %v10460_v9, %v10459_v2  ;;  %v10413_v18 = vld [vmem:[%s21910_s5 + $0x430] sm:$0xff]  ;;  %v10451_v45 = vld [vmem:[%s21910_s5 + $0x560] sm:$0xff] }
 0x99f   : > { %17700 = vmatprep.subr.bf16.mxu0 %v17699_v53  ;;  %v10374_v53 = vld [vmem:[%s21910_s5 + $0x2f8] sm:$0xff]  ;;  %v17689_v39 = vpack.c.bf16 %v10356_v17, %v10355_v32  ;;  %v17769_v32 = vpack.c.bf16 %v10444_v51, %v10443_v11  ;;  %v17739_v17 = vpack.c.bf16 %v10430_v24, %v10429_v48  ;;  %v10445_v5 = vld [vmem:[%s21910_s5 + $0x530] sm:$0xff]  ;;  %v10488_v51 = vld [vmem:[%s21910_s5 + $0x688] sm:$0xff] }
 0x9a0   : > { %17670 = vmatpush3.bf16.msra.mxu1 %v17669_v15  ;;  %v17691_v15 = vpack.c.bf16 %v10374_v53, %v10373_v35  ;;  %v10446_v53 = vld [vmem:[%s21910_s5 + $0x538] sm:$0xff]  ;;  %v10469_v2 = vld [vmem:[%s21910_s5 + $0x5f0] sm:$0xff]  ;;  %v10519_v48 = vld [vmem:[%s21910_s5 + $0x780] sm:$0xff] }
 0x9a1   : > { %17702 = vmatpush3.bf16.msra.mxu0 %v17701_v55  ;;  %17672 = vmatprep.subr.bf16.mxu1 %v17671_v34  ;;  %v10357_v55 = vld [vmem:[%s21910_s5 + $0x270] sm:$0xff]  ;;  %v10358_v34 = vld [vmem:[%s21910_s5 + $0x278] sm:$0xff]  ;;  %v10520_v24 = vld [vmem:[%s21910_s5 + $0x788] sm:$0xff] }
 0x9a2   : > { %17704 = vmatprep.subr.bf16.mxu0 %v17703_v13  ;;  %v10423_v13 = vld [vmem:[%s21910_s5 + $0x480] sm:$0xff]  ;;  %v17693_v43 = vpack.c.bf16 %v10358_v34, %v10357_v55  ;;  %v17773_v55 = vpack.c.bf16 %v10446_v53, %v10445_v5  ;;  %v17743_v34 = vpack.c.bf16 %v10432_v59, %v10431_v40  ;;  %v10470_v9 = vld [vmem:[%s21910_s5 + $0x5f8] sm:$0xff]  ;;  %v10504_v5 = vld [vmem:[%s21910_s5 + $0x708] sm:$0xff] }
 0x9a3   : > { %v10454_v11 = vld [vmem:[%s21910_s5 + $0x578] sm:$0xff] }
 0x9a4   : > { %17674 = vmatpush3.bf16.msra.mxu1 %v17673_v14  ;;  %v17727_v14 = vpack.c.bf16 %v10424_v22, %v10423_v13  ;;  %v10448_v22 = vld [vmem:[%s21910_s5 + $0x548] sm:$0xff]  ;;  %v10490_v53 = vld [vmem:[%s21910_s5 + $0x698] sm:$0xff] }
 0x9a5   : > { %17706 = vmatpush3.bf16.msra.mxu0 %v17705_v19  ;;  %17676 = vmatprep.subr.bf16.mxu1 %v17675_v26  ;;  %v10407_v19 = vld [vmem:[%s21910_s5 + $0x400] sm:$0xff]  ;;  %v10408_v26 = vld [vmem:[%s21910_s5 + $0x408] sm:$0xff]  ;;  %v10262_v40 = vld [vmem:[#allocation4 + $0xb] sm:$0x1] }
 0x9a6   : > { %17708 = vmatprep.subr.bf16.mxu0 %v17707_v46  ;;  %v10425_v46 = vld [vmem:[%s21910_s5 + $0x490] sm:$0xff]  ;;  %v17729_v6 = vpack.c.bf16 %v10408_v26, %v10407_v19  ;;  %v17777_v19 = vpack.c.bf16 %v10448_v22, %v10447_v25  ;;  %v17747_v26 = vpack.c.bf16 %v10434_v12, %v10433_v3  ;;  %v10506_v25 = vld [vmem:[%s21910_s5 + $0x718] sm:$0xff]  ;;  %v10492_v22 = vld [vmem:[%s21910_s5 + $0x6a8] sm:$0xff] }
 0x9a7   : > { %v17731_v44 = vpack.c.bf16 %v10426_v56, %v10425_v46  ;;  %v10450_v56 = vld [vmem:[%s21910_s5 + $0x558] sm:$0xff]  ;;  %v10264_v3 = vld [vmem:[#allocation4 + $0x10] sm:$0x1] }
 0x9a8   : > { %17678 = vmatpush3.bf16.msra.mxu1 %v17677_v50  ;;  %v17761_v50 = vpack.c.bf16 %v10440_v38, %v10439_v37  ;;  %v10418_v37 = vld [vmem:[%s21910_s5 + $0x458] sm:$0xff]  ;;  %v10449_v38 = vld [vmem:[%s21910_s5 + $0x550] sm:$0xff] }
 0x9a9   : > { %17710 = vmatpush3.bf16.msra.mxu0 %v17709_v30  ;;  %17680 = vmatprep.subr.bf16.mxu1 %v17679_v31  ;;  %v10409_v30 = vld [vmem:[%s21910_s5 + $0x410] sm:$0xff]  ;;  %v10410_v31 = vld [vmem:[%s21910_s5 + $0x418] sm:$0xff] }
 0x9aa   : > { %17712 = vmatprep.subr.bf16.mxu0 %v17711_v57  ;;  %v10427_v57 = vld [vmem:[%s21910_s5 + $0x4a0] sm:$0xff] }
 0x9ab   : > { %v17735_v29 = vpack.c.bf16 %v10428_v0, %v10427_v57  ;;  %v17783_v57 = vpack.c.bf16 %v10468_v20, %v10467_v54  ;;  %v10452_v0 = vld [vmem:[%s21910_s5 + $0x568] sm:$0xff]  ;;  %v10493_v54 = vld [vmem:[%s21910_s5 + $0x6b0] sm:$0xff]  ;;  %v10494_v20 = vld [vmem:[%s21910_s5 + $0x6b8] sm:$0xff] }
 0x9ac   : > { %17682 = vmatpush3.bf16.msra.mxu1 %v17681_v23  ;;  %v10263_v23 = vld [vmem:[#allocation4 + $0xc] sm:$0x1] }
 0x9ad   : > { %17714 = vmatpush3.bf16.msra.mxu0 %v17713_v52  ;;  %17684 = vmatprep.subr.bf16.mxu1 %v17683_v49  ;;  %v10265_v52 = vld [vmem:[#allocation4 + $0x11] sm:$0x1]  ;;  %v17733_v49 = vpack.c.bf16 %v10410_v31, %v10409_v30  ;;  %v17781_v30 = vpack.c.bf16 %v10450_v56, %v10449_v38 }
 0x9ae   : > { %17716 = vmatprep.subr.bf16.mxu0 %v17715_v4  ;;  %v10412_v4 = vld [vmem:[%s21910_s5 + $0x428] sm:$0xff]  ;;  %v10475_v38 = vld [vmem:[%s21910_s5 + $0x620] sm:$0xff] }
 0x9af   : > { %v10507_v56 = vld [vmem:[%s21910_s5 + $0x720] sm:$0xff] }
 0x9b0   : > { %17686 = vmatpush3.bf16.msra.mxu1 %v17685_v61  ;;  %v10461_v61 = vld [vmem:[%s21910_s5 + $0x5b0] sm:$0xff] }
 0x9b1   : > { %17718 = vmatpush3.bf16.msra.mxu0 %v17717_v16  ;;  %17688 = vmatprep.subr.bf16.mxu1 %v17687_v62  ;;  %v10462_v16 = vld [vmem:[%s21910_s5 + $0x5b8] sm:$0xff]  ;;  %v17737_v62 = vpack.c.bf16 %v10412_v4, %v10411_v36  ;;  %v10453_v36 = vld [vmem:[%s21910_s5 + $0x570] sm:$0xff]  ;;  %v17787_v4 = vpack.c.bf16 %v10470_v9, %v10469_v2  ;;  %v10495_v2 = vld [vmem:[%s21910_s5 + $0x6c0] sm:$0xff] }
 0x9b2   : > { %17720 = vmatprep.subr.bf16.mxu0 %v17719_v21  ;;  %v10414_v21 = vld [vmem:[%s21910_s5 + $0x438] sm:$0xff]  ;;  %v17771_v35 = vpack.c.bf16 %v10462_v16, %v10461_v61  ;;  %v17789_v16 = vpack.c.bf16 %v10454_v11, %v10453_v36  ;;  %v10496_v9 = vld [vmem:[%s21910_s5 + $0x6c8] sm:$0xff]  ;;  %v10479_v36 = vld [vmem:[%s21910_s5 + $0x640] sm:$0xff] }
 0x9b3   : > { %v10511_v11 = vld [vmem:[%s21910_s5 + $0x740] sm:$0xff] }
 0x9b4   : > { %17690 = vmatpush3.bf16.msra.mxu1 %v17689_v39  ;;  %v10463_v39 = vld [vmem:[%s21910_s5 + $0x5c0] sm:$0xff] }
 0x9b5   : > { %17722 = vmatpush3.bf16.msra.mxu0 %v17721_v10  ;;  %17692 = vmatprep.subr.bf16.mxu1 %v17691_v15  ;;  %v10464_v10 = vld [vmem:[%s21910_s5 + $0x5c8] sm:$0xff]  ;;  %v17741_v15 = vpack.c.bf16 %v10414_v21, %v10413_v18  ;;  %v17823_v18 = vpack.c.bf16 %v10520_v24, %v10519_v48  ;;  %v10503_v21 = vld [vmem:[%s21910_s5 + $0x700] sm:$0xff]  ;;  %v10497_v48 = vld [vmem:[%s21910_s5 + $0x6d0] sm:$0xff] }
 0x9b6   : > { %17724 = vmatprep.subr.bf16.mxu0 %v17723_v47  ;;  %v10416_v47 = vld [vmem:[%s21910_s5 + $0x448] sm:$0xff]  ;;  %v17775_v13 = vpack.c.bf16 %v10464_v10, %v10463_v39  ;;  %v10521_v39 = vld [vmem:[%s21910_s5 + $0x790] sm:$0xff]  ;;  %v10522_v10 = vld [vmem:[%s21910_s5 + $0x798] sm:$0xff] }
 0x9b7   : > { %v17827_v12 = vpack.c.bf16 %v10522_v10, %v10521_v39  ;;  %v10498_v24 = vld [vmem:[%s21910_s5 + $0x6d8] sm:$0xff]  ;;  %v10531_v39 = vld [vmem:[%s21910_s5 + $0x7e0] sm:$0xff]  ;;  %v10532_v10 = vld [vmem:[%s21910_s5 + $0x7e8] sm:$0xff] }
 0x9b8   : > { %17694 = vmatpush3.bf16.msra.mxu1 %v17693_v43  ;;  %v10465_v43 = vld [vmem:[%s21910_s5 + $0x5d0] sm:$0xff] }
 0x9b9   : > { %17726 = vmatpush3.bf16.msra.mxu0 %v17725_v63  ;;  %17728 = vmatprep.subr.bf16.mxu1 %v17727_v14  ;;  %v10466_v63 = vld [vmem:[%s21910_s5 + $0x5d8] sm:$0xff]  ;;  %v17745_v14 = vpack.c.bf16 %v10416_v47, %v10415_v8  ;;  %v10505_v8 = vld [vmem:[%s21910_s5 + $0x710] sm:$0xff] }
 0x9ba   : > { %17760 = vmatprep.subr.bf16.mxu0 %v17759_v28  ;;  %v10417_v28 = vld [vmem:[%s21910_s5 + $0x450] sm:$0xff]  ;;  %v17779_v46 = vpack.c.bf16 %v10466_v63, %v10465_v43  ;;  %v10523_v43 = vld [vmem:[%s21910_s5 + $0x7a0] sm:$0xff]  ;;  %v10524_v63 = vld [vmem:[%s21910_s5 + $0x7a8] sm:$0xff] }
 0x9bb   : > { %10885 = vmatmul.mubr.f32.vlgmr.msra.gmra.mrb[180].mxu1 %v10258_v1  ;;  %v10435_v1 = vld [vmem:[%s21910_s5 + $0x4e0] sm:$0xff] }
 0x9bc   : > { %10955 = vmatmul.mubr.f32.vlgmr.msra.gmra.mrb[180].mxu0 %v10260_v42  ;;  %17730 = vmatpush3.bf16.msra.mxu1 %v17729_v6  ;;  %v10436_v6 = vld [vmem:[%s21910_s5 + $0x4e8] sm:$0xff]  ;;  %v10437_v42 = vld [vmem:[%s21910_s5 + $0x4f0] sm:$0xff] }
 0x9bd   : > { %11024 = vmatprep.mubr.f32.mxu1 %v10263_v23  ;;  %17762 = vmatpush3.bf16.msra.mxu0 %v17761_v50  ;;  %v17749_v50 = vpack.c.bf16 %v10418_v37, %v10417_v28  ;;  %v17751_v31 = vpack.c.bf16 %v10436_v6, %v10435_v1  ;;  %v17829_v28 = vpack.c.bf16 %v10506_v25, %v10505_v8  ;;  %v10508_v6 = vld [vmem:[%s21910_s5 + $0x728] sm:$0xff]  ;;  %v10483_v8 = vld [vmem:[%s21910_s5 + $0x660] sm:$0xff] }
 0x9be   : > { %11094 = vmatprep.mubr.f32.mxu0 %v10265_v52  ;;  %17732 = vmatprep.subr.bf16.mxu1 %v17731_v44  ;;  %v10420_v44 = vld [vmem:[%s21910_s5 + $0x468] sm:$0xff]  ;;  %v17785_v52 = vpack.c.bf16 %v10452_v0, %v10451_v45  ;;  %v17831_v1 = vpack.c.bf16 %v10524_v63, %v10523_v43  ;;  %v10477_v45 = vld [vmem:[%s21910_s5 + $0x630] sm:$0xff]  ;;  %v10515_v25 = vld [vmem:[%s21910_s5 + $0x760] sm:$0xff] }
 0x9bf   : > { %17764 = vmatprep.subr.bf16.mxu0 %v17763_v60  ;;  %v10438_v60 = vld [vmem:[%s21910_s5 + $0x4f8] sm:$0xff]  ;;  %v17753_v23 = vpack.c.bf16 %v10420_v44, %v10419_v33  ;;  %v17833_v33 = vpack.c.bf16 %v10508_v6, %v10507_v56  ;;  %v17803_v44 = vpack.c.bf16 %v10494_v20, %v10493_v54  ;;  %v10509_v0 = vld [vmem:[%s21910_s5 + $0x730] sm:$0xff]  ;;  %v10552_v6 = vld [vmem:[%s21910_s5 + $0x888] sm:$0xff] }
 0x9c0   : > { %17734 = vmatpush3.bf16.msra.mxu1 %v17733_v49  ;;  %v17755_v49 = vpack.c.bf16 %v10438_v60, %v10437_v42  ;;  %v10510_v60 = vld [vmem:[%s21910_s5 + $0x738] sm:$0xff]  ;;  %v10533_v43 = vld [vmem:[%s21910_s5 + $0x7f0] sm:$0xff]  ;;  %v10583_v54 = vld [vmem:[%s21910_s5 + $0x980] sm:$0xff] }
 0x9c1   : > { %17766 = vmatpush3.bf16.msra.mxu0 %v17765_v58  ;;  %17736 = vmatprep.subr.bf16.mxu1 %v17735_v29  ;;  %v10421_v58 = vld [vmem:[%s21910_s5 + $0x470] sm:$0xff]  ;;  %v10422_v29 = vld [vmem:[%s21910_s5 + $0x478] sm:$0xff]  ;;  %v10584_v20 = vld [vmem:[%s21910_s5 + $0x988] sm:$0xff] }
 0x9c2   : > { %17768 = vmatprep.subr.bf16.mxu0 %v17767_v27  ;;  %v10487_v27 = vld [vmem:[%s21910_s5 + $0x680] sm:$0xff]  ;;  %v17757_v61 = vpack.c.bf16 %v10422_v29, %v10421_v58  ;;  %v17837_v58 = vpack.c.bf16 %v10510_v60, %v10509_v0  ;;  %v17807_v29 = vpack.c.bf16 %v10496_v9, %v10495_v2  ;;  %v10534_v63 = vld [vmem:[%s21910_s5 + $0x7f8] sm:$0xff]  ;;  %v10568_v0 = vld [vmem:[%s21910_s5 + $0x908] sm:$0xff] }
 0x9c3   : > { %v10518_v56 = vld [vmem:[%s21910_s5 + $0x778] sm:$0xff]  ;;  %v10266_v2 = vld [vmem:[#allocation4 + $0x12] sm:$0x1] }
 0x9c4   : > { %17738 = vmatpush3.bf16.msra.mxu1 %v17737_v62  ;;  %v17791_v62 = vpack.c.bf16 %v10488_v51, %v10487_v27  ;;  %v10512_v51 = vld [vmem:[%s21910_s5 + $0x748] sm:$0xff]  ;;  %v10554_v60 = vld [vmem:[%s21910_s5 + $0x898] sm:$0xff] }
 0x9c5   : > { %17770 = vmatpush3.bf16.msra.mxu0 %v17769_v32  ;;  %17740 = vmatprep.subr.bf16.mxu1 %v17739_v17  ;;  %v10471_v32 = vld [vmem:[%s21910_s5 + $0x600] sm:$0xff]  ;;  %v10472_v17 = vld [vmem:[%s21910_s5 + $0x608] sm:$0xff] }
 0x9c6   : > { %17772 = vmatprep.subr.bf16.mxu0 %v17771_v35  ;;  %v10489_v35 = vld [vmem:[%s21910_s5 + $0x690] sm:$0xff]  ;;  %v17793_v59 = vpack.c.bf16 %v10472_v17, %v10471_v32  ;;  %v17841_v32 = vpack.c.bf16 %v10512_v51, %v10511_v11  ;;  %v17811_v17 = vpack.c.bf16 %v10498_v24, %v10497_v48  ;;  %v10570_v11 = vld [vmem:[%s21910_s5 + $0x918] sm:$0xff]  ;;  %v10556_v51 = vld [vmem:[%s21910_s5 + $0x8a8] sm:$0xff] }
 0x9c7   : > { %v17795_v47 = vpack.c.bf16 %v10490_v53, %v10489_v35  ;;  %v10514_v53 = vld [vmem:[%s21910_s5 + $0x758] sm:$0xff]  ;;  %v10268_v48 = vld [vmem:[#allocation4 + $0x14] sm:$0x1] }
 0x9c8   : > { %17742 = vmatpush3.bf16.msra.mxu1 %v17741_v15  ;;  %v17825_v15 = vpack.c.bf16 %v10504_v5, %v10503_v21  ;;  %v10482_v21 = vld [vmem:[%s21910_s5 + $0x658] sm:$0xff]  ;;  %v10513_v5 = vld [vmem:[%s21910_s5 + $0x750] sm:$0xff] }
 0x9c9   : > { %17774 = vmatpush3.bf16.msra.mxu0 %v17773_v55  ;;  %17744 = vmatprep.subr.bf16.mxu1 %v17743_v34  ;;  %v10473_v55 = vld [vmem:[%s21910_s5 + $0x610] sm:$0xff]  ;;  %v10474_v34 = vld [vmem:[%s21910_s5 + $0x618] sm:$0xff] }
 0x9ca   : > { %17776 = vmatprep.subr.bf16.mxu0 %v17775_v13  ;;  %v10491_v13 = vld [vmem:[%s21910_s5 + $0x6a0] sm:$0xff] }
 0x9cb   : > { %v17799_v37 = vpack.c.bf16 %v10492_v22, %v10491_v13  ;;  %v17847_v13 = vpack.c.bf16 %v10532_v10, %v10531_v39  ;;  %v10516_v22 = vld [vmem:[%s21910_s5 + $0x768] sm:$0xff]  ;;  %v10557_v39 = vld [vmem:[%s21910_s5 + $0x8b0] sm:$0xff]  ;;  %v10558_v10 = vld [vmem:[%s21910_s5 + $0x8b8] sm:$0xff] }
 0x9cc   : > { %17746 = vmatpush3.bf16.msra.mxu1 %v17745_v14  ;;  %v10267_v14 = vld [vmem:[#allocation4 + $0x13] sm:$0x1] }
 0x9cd   : > { %17778 = vmatpush3.bf16.msra.mxu0 %v17777_v19  ;;  %17748 = vmatprep.subr.bf16.mxu1 %v17747_v26  ;;  %v10269_v19 = vld [vmem:[#allocation4 + $0x18] sm:$0x1]  ;;  %v17797_v26 = vpack.c.bf16 %v10474_v34, %v10473_v55  ;;  %v17845_v55 = vpack.c.bf16 %v10514_v53, %v10513_v5  ;;  %v10539_v5 = vld [vmem:[%s21910_s5 + $0x820] sm:$0xff] }
 0x9ce   : > { %17780 = vmatprep.subr.bf16.mxu0 %v17779_v46  ;;  %v10476_v46 = vld [vmem:[%s21910_s5 + $0x628] sm:$0xff]  ;;  %v10571_v53 = vld [vmem:[%s21910_s5 + $0x920] sm:$0xff] }
 0x9d0   : > { %17750 = vmatpush3.bf16.msra.mxu1 %v17749_v50  ;;  %v10525_v50 = vld [vmem:[%s21910_s5 + $0x7b0] sm:$0xff] }
 0x9d1   : > { %17782 = vmatpush3.bf16.msra.mxu0 %v17781_v30  ;;  %17752 = vmatprep.subr.bf16.mxu1 %v17751_v31  ;;  %v10526_v30 = vld [vmem:[%s21910_s5 + $0x7b8] sm:$0xff]  ;;  %v17801_v31 = vpack.c.bf16 %v10476_v46, %v10475_v38  ;;  %v10517_v38 = vld [vmem:[%s21910_s5 + $0x770] sm:$0xff]  ;;  %v17851_v46 = vpack.c.bf16 %v10534_v63, %v10533_v43  ;;  %v10559_v43 = vld [vmem:[%s21910_s5 + $0x8c0] sm:$0xff] }
 0x9d2   : > { %17784 = vmatprep.subr.bf16.mxu0 %v17783_v57  ;;  %v10478_v57 = vld [vmem:[%s21910_s5 + $0x638] sm:$0xff]  ;;  %v17835_v42 = vpack.c.bf16 %v10526_v30, %v10525_v50  ;;  %v17853_v30 = vpack.c.bf16 %v10518_v56, %v10517_v38  ;;  %v10560_v63 = vld [vmem:[%s21910_s5 + $0x8c8] sm:$0xff]  ;;  %v10543_v38 = vld [vmem:[%s21910_s5 + $0x840] sm:$0xff] }
 0x9d3   : > { %v10575_v56 = vld [vmem:[%s21910_s5 + $0x940] sm:$0xff] }
 0x9d4   : > { %17754 = vmatpush3.bf16.msra.mxu1 %v17753_v23  ;;  %v10527_v23 = vld [vmem:[%s21910_s5 + $0x7c0] sm:$0xff] }
 0x9d5   : > { %17786 = vmatpush3.bf16.msra.mxu0 %v17785_v52  ;;  %17756 = vmatprep.subr.bf16.mxu1 %v17755_v49  ;;  %v10528_v52 = vld [vmem:[%s21910_s5 + $0x7c8] sm:$0xff]  ;;  %v17805_v49 = vpack.c.bf16 %v10478_v57, %v10477_v45  ;;  %v17887_v45 = vpack.c.bf16 %v10584_v20, %v10583_v54  ;;  %v10567_v57 = vld [vmem:[%s21910_s5 + $0x900] sm:$0xff]  ;;  %v10561_v54 = vld [vmem:[%s21910_s5 + $0x8d0] sm:$0xff] }
 0x9d6   : > { %17788 = vmatprep.subr.bf16.mxu0 %v17787_v4  ;;  %v10480_v4 = vld [vmem:[%s21910_s5 + $0x648] sm:$0xff]  ;;  %v17839_v27 = vpack.c.bf16 %v10528_v52, %v10527_v23  ;;  %v10585_v23 = vld [vmem:[%s21910_s5 + $0x990] sm:$0xff]  ;;  %v10586_v52 = vld [vmem:[%s21910_s5 + $0x998] sm:$0xff] }
 0x9d7   : > { %v17891_v24 = vpack.c.bf16 %v10586_v52, %v10585_v23  ;;  %v10562_v20 = vld [vmem:[%s21910_s5 + $0x8d8] sm:$0xff]  ;;  %v10595_v23 = vld [vmem:[%s21910_s5 + $0x9e0] sm:$0xff]  ;;  %v10596_v52 = vld [vmem:[%s21910_s5 + $0x9e8] sm:$0xff] }
 0x9d8   : > { %17758 = vmatpush3.bf16.msra.mxu1 %v17757_v61  ;;  %v10529_v61 = vld [vmem:[%s21910_s5 + $0x7d0] sm:$0xff] }
 0x9d9   : > { %17790 = vmatpush3.bf16.msra.mxu0 %v17789_v16  ;;  %17792 = vmatprep.subr.bf16.mxu1 %v17791_v62  ;;  %v10530_v16 = vld [vmem:[%s21910_s5 + $0x7d8] sm:$0xff]  ;;  %v17809_v62 = vpack.c.bf16 %v10480_v4, %v10479_v36  ;;  %v10569_v36 = vld [vmem:[%s21910_s5 + $0x910] sm:$0xff] }
 0x9da   : > { %17824 = vmatprep.subr.bf16.mxu0 %v17823_v18  ;;  %v10481_v18 = vld [vmem:[%s21910_s5 + $0x650] sm:$0xff]  ;;  %v17843_v35 = vpack.c.bf16 %v10530_v16, %v10529_v61  ;;  %v10587_v61 = vld [vmem:[%s21910_s5 + $0x9a0] sm:$0xff]  ;;  %v10588_v16 = vld [vmem:[%s21910_s5 + $0x9a8] sm:$0xff] }
 0x9db   : > { %11025 = vmatmul.mubr.f32.vlgmr.msra.gmra.mrb[182].mxu1 %v10262_v40  ;;  %v10499_v40 = vld [vmem:[%s21910_s5 + $0x6e0] sm:$0xff] }
 0x9dc   : > { %11095 = vmatmul.mubr.f32.vlgmr.msra.gmra.mrb[182].mxu0 %v10264_v3  ;;  %17794 = vmatpush3.bf16.msra.mxu1 %v17793_v59  ;;  %v10500_v59 = vld [vmem:[%s21910_s5 + $0x6e8] sm:$0xff]  ;;  %v10501_v3 = vld [vmem:[%s21910_s5 + $0x6f0] sm:$0xff] }
 0x9dd   : > { %11164 = vmatprep.mubr.f32.mxu1 %v10267_v14  ;;  %17826 = vmatpush3.bf16.msra.mxu0 %v17825_v15  ;;  %v17813_v15 = vpack.c.bf16 %v10482_v21, %v10481_v18  ;;  %v17815_v34 = vpack.c.bf16 %v10500_v59, %v10499_v40  ;;  %v17893_v18 = vpack.c.bf16 %v10570_v11, %v10569_v36  ;;  %v10572_v59 = vld [vmem:[%s21910_s5 + $0x928] sm:$0xff]  ;;  %v10547_v36 = vld [vmem:[%s21910_s5 + $0x860] sm:$0xff] }
 0x9de   : > { %11234 = vmatprep.mubr.f32.mxu0 %v10269_v19  ;;  %17796 = vmatprep.subr.bf16.mxu1 %v17795_v47  ;;  %v10484_v47 = vld [vmem:[%s21910_s5 + $0x668] sm:$0xff]  ;;  %v17849_v19 = vpack.c.bf16 %v10516_v22, %v10515_v25  ;;  %v17895_v40 = vpack.c.bf16 %v10588_v16, %v10587_v61  ;;  %v10541_v25 = vld [vmem:[%s21910_s5 + $0x830] sm:$0xff]  ;;  %v10579_v11 = vld [vmem:[%s21910_s5 + $0x960] sm:$0xff] }
 0x9df   : > { %17828 = vmatprep.subr.bf16.mxu0 %v17827_v12  ;;  %v10502_v12 = vld [vmem:[%s21910_s5 + $0x6f8] sm:$0xff]  ;;  %v17817_v14 = vpack.c.bf16 %v10484_v47, %v10483_v8  ;;  %v17897_v8 = vpack.c.bf16 %v10572_v59, %v10571_v53  ;;  %v17867_v47 = vpack.c.bf16 %v10558_v10, %v10557_v39  ;;  %v10573_v22 = vld [vmem:[%s21910_s5 + $0x930] sm:$0xff]  ;;  %v10616_v59 = vld [vmem:[%s21910_s5 + $0xa88] sm:$0xff] }
 0x9e0   : > { %17798 = vmatpush3.bf16.msra.mxu1 %v17797_v26  ;;  %v17819_v26 = vpack.c.bf16 %v10502_v12, %v10501_v3  ;;  %v10574_v12 = vld [vmem:[%s21910_s5 + $0x938] sm:$0xff]  ;;  %v10597_v61 = vld [vmem:[%s21910_s5 + $0x9f0] sm:$0xff]  ;;  %v10647_v39 = vld [vmem:[%s21910_s5 + $0xb80] sm:$0xff] }
 0x9e1   : > { %17830 = vmatpush3.bf16.msra.mxu0 %v17829_v28  ;;  %17800 = vmatprep.subr.bf16.mxu1 %v17799_v37  ;;  %v10485_v28 = vld [vmem:[%s21910_s5 + $0x670] sm:$0xff]  ;;  %v10486_v37 = vld [vmem:[%s21910_s5 + $0x678] sm:$0xff]  ;;  %v10648_v10 = vld [vmem:[%s21910_s5 + $0xb88] sm:$0xff] }
 0x9e2   : > { %17832 = vmatprep.subr.bf16.mxu0 %v17831_v1  ;;  %v10551_v1 = vld [vmem:[%s21910_s5 + $0x880] sm:$0xff]  ;;  %v17821_v50 = vpack.c.bf16 %v10486_v37, %v10485_v28  ;;  %v17901_v28 = vpack.c.bf16 %v10574_v12, %v10573_v22  ;;  %v17871_v37 = vpack.c.bf16 %v10560_v63, %v10559_v43  ;;  %v10598_v16 = vld [vmem:[%s21910_s5 + $0x9f8] sm:$0xff]  ;;  %v10632_v12 = vld [vmem:[%s21910_s5 + $0xb08] sm:$0xff] }
 0x9e3   : > { %v10582_v53 = vld [vmem:[%s21910_s5 + $0x978] sm:$0xff]  ;;  %v10649_v43 = vld [vmem:[%s21910_s5 + $0xb90] sm:$0xff] }
 0x9e4   : > { %17802 = vmatpush3.bf16.msra.mxu1 %v17801_v31  ;;  %v17855_v31 = vpack.c.bf16 %v10552_v6, %v10551_v1  ;;  %v10576_v6 = vld [vmem:[%s21910_s5 + $0x948] sm:$0xff]  ;;  %v10618_v22 = vld [vmem:[%s21910_s5 + $0xa98] sm:$0xff] }
 0x9e5   : > { %17834 = vmatpush3.bf16.msra.mxu0 %v17833_v33  ;;  %17804 = vmatprep.subr.bf16.mxu1 %v17803_v44  ;;  %v10535_v33 = vld [vmem:[%s21910_s5 + $0x800] sm:$0xff]  ;;  %v10536_v44 = vld [vmem:[%s21910_s5 + $0x808] sm:$0xff]  ;;  %v10650_v63 = vld [vmem:[%s21910_s5 + $0xb98] sm:$0xff] }
 0x9e6   : > { %17836 = vmatprep.subr.bf16.mxu0 %v17835_v42  ;;  %v10553_v42 = vld [vmem:[%s21910_s5 + $0x890] sm:$0xff]  ;;  %v17857_v9 = vpack.c.bf16 %v10536_v44, %v10535_v33  ;;  %v17905_v33 = vpack.c.bf16 %v10576_v6, %v10575_v56  ;;  %v17875_v44 = vpack.c.bf16 %v10562_v20, %v10561_v54  ;;  %v17955_v56 = vpack.c.bf16 %v10650_v63, %v10649_v43  ;;  %v10634_v54 = vld [vmem:[%s21910_s5 + $0xb18] sm:$0xff]  ;;  %v10272_v20 = vld [vmem:[#allocation4 + $0x1b] sm:$0x1] }
 0x9e7   : > { %v17859_v4 = vpack.c.bf16 %v10554_v60, %v10553_v42  ;;  %v10578_v60 = vld [vmem:[%s21910_s5 + $0x958] sm:$0xff]  ;;  %v10633_v6 = vld [vmem:[%s21910_s5 + $0xb10] sm:$0xff]  ;;  %v10659_v43 = vld [vmem:[%s21910_s5 + $0xbe0] sm:$0xff] }
 0x9e8   : > { %17806 = vmatpush3.bf16.msra.mxu1 %v17805_v49  ;;  %v17889_v49 = vpack.c.bf16 %v10568_v0, %v10567_v57  ;;  %v10546_v57 = vld [vmem:[%s21910_s5 + $0x858] sm:$0xff]  ;;  %v10577_v0 = vld [vmem:[%s21910_s5 + $0x950] sm:$0xff]  ;;  %v10660_v63 = vld [vmem:[%s21910_s5 + $0xbe8] sm:$0xff] }
 0x9e9   : > { %17838 = vmatpush3.bf16.msra.mxu0 %v17837_v58  ;;  %17808 = vmatprep.subr.bf16.mxu1 %v17807_v29  ;;  %v10537_v58 = vld [vmem:[%s21910_s5 + $0x810] sm:$0xff]  ;;  %v10538_v29 = vld [vmem:[%s21910_s5 + $0x818] sm:$0xff] }
 0x9ea   : > { %17840 = vmatprep.subr.bf16.mxu0 %v17839_v27  ;;  %v10555_v27 = vld [vmem:[%s21910_s5 + $0x8a0] sm:$0xff] }
 0x9eb   : > { %v17863_v21 = vpack.c.bf16 %v10556_v51, %v10555_v27  ;;  %v17911_v27 = vpack.c.bf16 %v10596_v52, %v10595_v23  ;;  %v10580_v51 = vld [vmem:[%s21910_s5 + $0x968] sm:$0xff]  ;;  %v10653_v23 = vld [vmem:[%s21910_s5 + $0xbb0] sm:$0xff]  ;;  %v10654_v52 = vld [vmem:[%s21910_s5 + $0xbb8] sm:$0xff] }
 0x9ec   : > { %17810 = vmatpush3.bf16.msra.mxu1 %v17809_v62  ;;  %v10271_v62 = vld [vmem:[#allocation4 + $0x1a] sm:$0x1] }
 0x9ed   : > { %17842 = vmatpush3.bf16.msra.mxu0 %v17841_v32  ;;  %17812 = vmatprep.subr.bf16.mxu1 %v17811_v17  ;;  %v10273_v32 = vld [vmem:[#allocation4 + $0x1c] sm:$0x1]  ;;  %v17861_v17 = vpack.c.bf16 %v10538_v29, %v10537_v58  ;;  %v17909_v58 = vpack.c.bf16 %v10578_v60, %v10577_v0  ;;  %v10621_v0 = vld [vmem:[%s21910_s5 + $0xab0] sm:$0xff]  ;;  %v10622_v60 = vld [vmem:[%s21910_s5 + $0xab8] sm:$0xff] }
 0x9ee   : > { %17844 = vmatprep.subr.bf16.mxu0 %v17843_v35  ;;  %v10540_v35 = vld [vmem:[%s21910_s5 + $0x828] sm:$0xff] }
 0x9f0   : > { %17814 = vmatpush3.bf16.msra.mxu1 %v17813_v15  ;;  %v10589_v15 = vld [vmem:[%s21910_s5 + $0x9b0] sm:$0xff] }
 0x9f1   : > { %17846 = vmatpush3.bf16.msra.mxu0 %v17845_v55  ;;  %17816 = vmatprep.subr.bf16.mxu1 %v17815_v34  ;;  %v10590_v55 = vld [vmem:[%s21910_s5 + $0x9b8] sm:$0xff]  ;;  %v17865_v34 = vpack.c.bf16 %v10540_v35, %v10539_v5  ;;  %v10581_v5 = vld [vmem:[%s21910_s5 + $0x970] sm:$0xff]  ;;  %v17915_v35 = vpack.c.bf16 %v10598_v16, %v10597_v61  ;;  %v10655_v61 = vld [vmem:[%s21910_s5 + $0xbc0] sm:$0xff] }
 0x9f2   : > { %17848 = vmatprep.subr.bf16.mxu0 %v17847_v13  ;;  %v10542_v13 = vld [vmem:[%s21910_s5 + $0x838] sm:$0xff]  ;;  %v17899_v3 = vpack.c.bf16 %v10590_v55, %v10589_v15  ;;  %v17917_v55 = vpack.c.bf16 %v10582_v53, %v10581_v5  ;;  %v10656_v16 = vld [vmem:[%s21910_s5 + $0xbc8] sm:$0xff]  ;;  %v10625_v5 = vld [vmem:[%s21910_s5 + $0xad0] sm:$0xff] }
 0x9f3   : > { %v10626_v53 = vld [vmem:[%s21910_s5 + $0xad8] sm:$0xff] }
 0x9f4   : > { %17818 = vmatpush3.bf16.msra.mxu1 %v17817_v14  ;;  %v10591_v14 = vld [vmem:[%s21910_s5 + $0x9c0] sm:$0xff] }
 0x9f5   : > { %17850 = vmatpush3.bf16.msra.mxu0 %v17849_v19  ;;  %17820 = vmatprep.subr.bf16.mxu1 %v17819_v26  ;;  %v10592_v19 = vld [vmem:[%s21910_s5 + $0x9c8] sm:$0xff]  ;;  %v17869_v26 = vpack.c.bf16 %v10542_v13, %v10541_v25  ;;  %v10617_v25 = vld [vmem:[%s21910_s5 + $0xa90] sm:$0xff]  ;;  %v17951_v13 = vpack.c.bf16 %v10648_v10, %v10647_v39  ;;  %v10658_v10 = vld [vmem:[%s21910_s5 + $0xbd8] sm:$0xff] }
 0x9f6   : > { %17852 = vmatprep.subr.bf16.mxu0 %v17851_v46  ;;  %v10544_v46 = vld [vmem:[%s21910_s5 + $0x848] sm:$0xff]  ;;  %v17903_v1 = vpack.c.bf16 %v10592_v19, %v10591_v14  ;;  %v10657_v39 = vld [vmem:[%s21910_s5 + $0xbd0] sm:$0xff] }
 0x9f7   : > { %v10270_v14 = vld [vmem:[#allocation4 + $0x19] sm:$0x1] }
 0x9f8   : > { %17822 = vmatpush3.bf16.msra.mxu1 %v17821_v50  ;;  %v10593_v50 = vld [vmem:[%s21910_s5 + $0x9d0] sm:$0xff] }
 0x9f9   : > { %17854 = vmatpush3.bf16.msra.mxu0 %v17853_v30  ;;  %17856 = vmatprep.subr.bf16.mxu1 %v17855_v31  ;;  %v10594_v30 = vld [vmem:[%s21910_s5 + $0x9d8] sm:$0xff]  ;;  %v17873_v31 = vpack.c.bf16 %v10544_v46, %v10543_v38  ;;  %v10619_v46 = vld [vmem:[%s21910_s5 + $0xaa0] sm:$0xff] }
 0x9fa   : > { %17888 = vmatprep.subr.bf16.mxu0 %v17887_v45  ;;  %v10545_v45 = vld [vmem:[%s21910_s5 + $0x850] sm:$0xff]  ;;  %v17907_v42 = vpack.c.bf16 %v10594_v30, %v10593_v50  ;;  %v10602_v38 = vld [vmem:[%s21910_s5 + $0xa18] sm:$0xff]  ;;  %v10651_v50 = vld [vmem:[%s21910_s5 + $0xba0] sm:$0xff] }
 0x9fb   : > { %11165 = vmatmul.mubr.f32.vlgmr.msra.gmra.mrb[184].mxu1 %v10266_v2  ;;  %v10563_v2 = vld [vmem:[%s21910_s5 + $0x8e0] sm:$0xff]  ;;  %v10652_v30 = vld [vmem:[%s21910_s5 + $0xba8] sm:$0xff] }
 0x9fc   : > { %11235 = vmatmul.mubr.f32.vlgmr.msra.gmra.mrb[184].mxu0 %v10268_v48  ;;  %17858 = vmatpush3.bf16.msra.mxu1 %v17857_v9  ;;  %v10564_v9 = vld [vmem:[%s21910_s5 + $0x8e8] sm:$0xff]  ;;  %v10565_v48 = vld [vmem:[%s21910_s5 + $0x8f0] sm:$0xff] }
 0x9fd   : > { %11304 = vmatprep.mubr.f32.mxu1 %v10271_v62  ;;  %17890 = vmatpush3.bf16.msra.mxu0 %v17889_v49  ;;  %v17877_v49 = vpack.c.bf16 %v10546_v57, %v10545_v45  ;;  %v17879_v29 = vpack.c.bf16 %v10564_v9, %v10563_v2  ;;  %v10603_v45 = vld [vmem:[%s21910_s5 + $0xa20] sm:$0xff]  ;;  %v10604_v57 = vld [vmem:[%s21910_s5 + $0xa28] sm:$0xff] }
 0x9fe   : > { %11374 = vmatprep.mubr.f32.mxu0 %v10273_v32  ;;  %17860 = vmatprep.subr.bf16.mxu1 %v17859_v4  ;;  %v10548_v4 = vld [vmem:[%s21910_s5 + $0x868] sm:$0xff]  ;;  %v17913_v32 = vpack.c.bf16 %v10580_v51, %v10579_v11  ;;  %v10635_v2 = vld [vmem:[%s21910_s5 + $0xb20] sm:$0xff] }
 0x9ff   : > { %17892 = vmatprep.subr.bf16.mxu0 %v17891_v24  ;;  %v10566_v24 = vld [vmem:[%s21910_s5 + $0x8f8] sm:$0xff]  ;;  %v17881_v62 = vpack.c.bf16 %v10548_v4, %v10547_v36  ;;  %v10636_v9 = vld [vmem:[%s21910_s5 + $0xb28] sm:$0xff]  ;;  %v10605_v36 = vld [vmem:[%s21910_s5 + $0xa30] sm:$0xff] }
 0xa00   : > { %17862 = vmatpush3.bf16.msra.mxu1 %v17861_v17  ;;  %v17883_v17 = vpack.c.bf16 %v10566_v24, %v10565_v48  ;;  %v10606_v4 = vld [vmem:[%s21910_s5 + $0xa38] sm:$0xff]  ;;  %v10623_v11 = vld [vmem:[%s21910_s5 + $0xac0] sm:$0xff]  ;;  %v10624_v51 = vld [vmem:[%s21910_s5 + $0xac8] sm:$0xff] }
 0xa01   : > { %17894 = vmatpush3.bf16.msra.mxu0 %v17893_v18  ;;  %17864 = vmatprep.subr.bf16.mxu1 %v17863_v21  ;;  %v10549_v18 = vld [vmem:[%s21910_s5 + $0x870] sm:$0xff]  ;;  %v10550_v21 = vld [vmem:[%s21910_s5 + $0x878] sm:$0xff] }
 0xa02   : > { %17896 = vmatprep.subr.bf16.mxu0 %v17895_v40  ;;  %v10615_v40 = vld [vmem:[%s21910_s5 + $0xa80] sm:$0xff]  ;;  %v17885_v15 = vpack.c.bf16 %v10550_v21, %v10549_v18  ;;  %v10637_v48 = vld [vmem:[%s21910_s5 + $0xb30] sm:$0xff]  ;;  %v10638_v24 = vld [vmem:[%s21910_s5 + $0xb38] sm:$0xff] }
 0xa03   : > { %v10607_v18 = vld [vmem:[%s21910_s5 + $0xa40] sm:$0xff]  ;;  %v10608_v21 = vld [vmem:[%s21910_s5 + $0xa48] sm:$0xff] }
 0xa04   : > { %17866 = vmatpush3.bf16.msra.mxu1 %v17865_v34  ;;  %v17919_v34 = vpack.c.bf16 %v10616_v59, %v10615_v40  ;;  %v10639_v40 = vld [vmem:[%s21910_s5 + $0xb40] sm:$0xff]  ;;  %v10640_v59 = vld [vmem:[%s21910_s5 + $0xb48] sm:$0xff] }
 0xa05   : > { %17898 = vmatpush3.bf16.msra.mxu0 %v17897_v8  ;;  %17868 = vmatprep.subr.bf16.mxu1 %v17867_v47  ;;  %v10599_v8 = vld [vmem:[%s21910_s5 + $0xa00] sm:$0xff]  ;;  %v10600_v47 = vld [vmem:[%s21910_s5 + $0xa08] sm:$0xff] }
 0xa06   : > { %17900 = vmatprep.subr.bf16.mxu0 %v17899_v3  ;;  %v10631_v3 = vld [vmem:[%s21910_s5 + $0xb00] sm:$0xff]  ;;  %v17921_v19 = vpack.c.bf16 %v10600_v47, %v10599_v8  ;;  %v10609_v8 = vld [vmem:[%s21910_s5 + $0xa50] sm:$0xff]  ;;  %v10610_v47 = vld [vmem:[%s21910_s5 + $0xa58] sm:$0xff] }
 0xa08   : > { %17870 = vmatpush3.bf16.msra.mxu1 %v17869_v26  ;;  %v17923_v26 = vpack.c.bf16 %v10618_v22, %v10617_v25  ;;  %v10641_v25 = vld [vmem:[%s21910_s5 + $0xb50] sm:$0xff]  ;;  %v10627_v22 = vld [vmem:[%s21910_s5 + $0xae0] sm:$0xff] }
 0xa09   : > { %17902 = vmatpush3.bf16.msra.mxu0 %v17901_v28  ;;  %17872 = vmatprep.subr.bf16.mxu1 %v17871_v37  ;;  %v17953_v28 = vpack.c.bf16 %v10632_v12, %v10631_v3  ;;  %v10601_v37 = vld [vmem:[%s21910_s5 + $0xa10] sm:$0xff]  ;;  %v10628_v3 = vld [vmem:[%s21910_s5 + $0xae8] sm:$0xff]  ;;  %v10642_v12 = vld [vmem:[%s21910_s5 + $0xb58] sm:$0xff] }
 0xa0a   : > { %17904 = vmatprep.subr.bf16.mxu0 %v17903_v1  ;;  %v10620_v1 = vld [vmem:[%s21910_s5 + $0xaa8] sm:$0xff] }
 0xa0c   : > { %17874 = vmatpush3.bf16.msra.mxu1 %v17873_v31  ;;  %v17925_v31 = vpack.c.bf16 %v10602_v38, %v10601_v37  ;;  %v10612_v37 = vld [vmem:[%s21910_s5 + $0xa68] sm:$0xff]  ;;  %v10629_v38 = vld [vmem:[%s21910_s5 + $0xaf0] sm:$0xff] }
 0xa0d   : > { %17906 = vmatpush3.bf16.msra.mxu0 %v17905_v33  ;;  %17876 = vmatprep.subr.bf16.mxu1 %v17875_v44  ;;  %v17927_v33 = vpack.c.bf16 %v10620_v1, %v10619_v46  ;;  %v17957_v44 = vpack.c.bf16 %v10634_v54, %v10633_v6  ;;  %v17975_v46 = vpack.c.bf16 %v10660_v63, %v10659_v43  ;;  %v10643_v1 = vld [vmem:[%s21910_s5 + $0xb60] sm:$0xff]  ;;  %v10644_v6 = vld [vmem:[%s21910_s5 + $0xb68] sm:$0xff]  ;;  %v10661_v54 = vld [vmem:[%s21910_s5 + $0xbf0] sm:$0xff] }
 0xa0e   : > { %17908 = vmatprep.subr.bf16.mxu0 %v17907_v42  ;;  %v17959_v42 = vpack.c.bf16 %v10652_v30, %v10651_v50 }
 0xa10   : > { %17878 = vmatpush3.bf16.msra.mxu1 %v17877_v49  ;;  %v17929_v49 = vpack.c.bf16 %v10604_v57, %v10603_v45  ;;  %v10645_v57 = vld [vmem:[%s21910_s5 + $0xb70] sm:$0xff] }
 0xa11   : > { %17910 = vmatpush3.bf16.msra.mxu0 %v17909_v58  ;;  %17880 = vmatprep.subr.bf16.mxu1 %v17879_v29  ;;  %v17931_v58 = vpack.c.bf16 %v10622_v60, %v10621_v0  ;;  %v17961_v29 = vpack.c.bf16 %v10636_v9, %v10635_v2  ;;  %v10646_v0 = vld [vmem:[%s21910_s5 + $0xb78] sm:$0xff] }
 0xa12   : > { %17912 = vmatprep.subr.bf16.mxu0 %v17911_v27  ;;  %v17963_v27 = vpack.c.bf16 %v10654_v52, %v10653_v23  ;;  %v17981_v60 = vpack.c.bf16 %v10646_v0, %v10645_v57  ;;  %v11593_v57 = vld [vmem:[%s21912_s7 + $0x10] sm:$0xff] }
 0xa14   : > { %17882 = vmatpush3.bf16.msra.mxu1 %v17881_v62  ;;  %v17933_v62 = vpack.c.bf16 %v10606_v4, %v10605_v36  ;;  %v10665_v4 = vld [vmem:[%s21910_s5 + $0xc10] sm:$0xff] }
 0xa15   : > { %17914 = vmatpush3.bf16.msra.mxu0 %v17913_v32  ;;  %17884 = vmatprep.subr.bf16.mxu1 %v17883_v17  ;;  %v17935_v32 = vpack.c.bf16 %v10624_v51, %v10623_v11  ;;  %v17965_v17 = vpack.c.bf16 %v10638_v24, %v10637_v48  ;;  %v10666_v11 = vld [vmem:[%s21910_s5 + $0xc18] sm:$0xff] }
 0xa16   : > { %17916 = vmatprep.subr.bf16.mxu0 %v17915_v35  ;;  %v17967_v35 = vpack.c.bf16 %v10656_v16, %v10655_v61  ;;  %v17987_v61 = vpack.c.bf16 %v10666_v11, %v10665_v4  ;;  %v10667_v16 = vld [vmem:[%s21910_s5 + $0xc20] sm:$0xff]  ;;  %v11600_v11 = vld [vmem:[%s21912_s7 + $0x48] sm:$0xff] }
 0xa17   : > { %v11599_v4 = vld [vmem:[%s21912_s7 + $0x40] sm:$0xff] }
 0xa18   : > { %17886 = vmatpush3.bf16.msra.mxu1 %v17885_v15  ;;  %v17937_v15 = vpack.c.bf16 %v10608_v21, %v10607_v18  ;;  %v10670_v18 = vld [vmem:[%s21910_s5 + $0xc38] sm:$0xff] }
 0xa19   : > { %17918 = vmatpush3.bf16.msra.mxu0 %v17917_v55  ;;  %17920 = vmatprep.subr.bf16.mxu1 %v17919_v34  ;;  %v17939_v55 = vpack.c.bf16 %v10626_v53, %v10625_v5  ;;  %v17969_v34 = vpack.c.bf16 %v10640_v59, %v10639_v40  ;;  %v10672_v5 = vld [vmem:[%s21910_s5 + $0xc48] sm:$0xff]  ;;  %v10673_v53 = vld [vmem:[%s21910_s5 + $0xc50] sm:$0xff]  ;;  %v10674_v40 = vld [vmem:[%s21910_s5 + $0xc58] sm:$0xff] }
 0xa1a   : > { %17952 = vmatprep.subr.bf16.mxu0 %v17951_v13  ;;  %v17971_v13 = vpack.c.bf16 %v10658_v10, %v10657_v39  ;;  %v17999_v59 = vpack.c.bf16 %v10674_v40, %v10673_v53  ;;  %v10675_v39 = vld [vmem:[%s21910_s5 + $0xc60] sm:$0xff]  ;;  %v10676_v10 = vld [vmem:[%s21910_s5 + $0xc68] sm:$0xff] }
 0xa1b   : > { %11305 = vmatmul.mubr.f32.vlgmr.msra.gmra.mrb[186].mxu1 %v10270_v14  ;;  %v17941_v14 = vpack.c.bf16 %v10610_v47, %v10609_v8  ;;  %v18002_v47 = vpack.c.bf16 %v10676_v10, %v10675_v39 }
 0xa1c   : > { %11375 = vmatmul.mubr.f32.vlgmr.msra.gmra.mrb[186].mxu0 %v10272_v20  ;;  %17922 = vmatpush3.bf16.msra.mxu1 %v17921_v19  ;;  %v17943_v19 = vpack.c.bf16 %v10628_v3, %v10627_v22  ;;  %v10662_v20 = vld [vmem:[%s21910_s5 + $0xbf8] sm:$0xff]  ;;  %v10677_v22 = vld [vmem:[%s21910_s5 + $0xc70] sm:$0xff] }
 0xa1d   : > { %17924 = vmatprep.subr.bf16.mxu1 %v17923_v26  ;;  %17954 = vmatpush3.bf16.msra.mxu0 %v17953_v28  ;;  %v17973_v26 = vpack.c.bf16 %v10642_v12, %v10641_v25  ;;  %v10611_v28 = vld [vmem:[%s21910_s5 + $0xa60] sm:$0xff]  ;;  %v17979_v45 = vpack.c.bf16 %v10662_v20, %v10661_v54  ;;  %v10678_v3 = vld [vmem:[%s21910_s5 + $0xc78] sm:$0xff] }
 0xa1e   : > { %17956 = vmatprep.subr.bf16.mxu0 %v17955_v56  ;;  %v10630_v56 = vld [vmem:[%s21910_s5 + $0xaf8] sm:$0xff]  ;;  %v17945_v50 = vpack.c.bf16 %v10612_v37, %v10611_v28  ;;  %v18005_v63 = vpack.c.bf16 %v10678_v3, %v10677_v22 }
 0xa1f   : > { %v17947_v30 = vpack.c.bf16 %v10630_v56, %v10629_v38 }
 0xa20   : > { %17926 = vmatpush3.bf16.msra.mxu1 %v17925_v31  ;;  %v17977_v31 = vpack.c.bf16 %v10644_v6, %v10643_v1 }
 0xa21   : > { %17928 = vmatprep.subr.bf16.mxu1 %v17927_v33  ;;  %17958 = vmatpush3.bf16.msra.mxu0 %v17957_v44  ;;  %v10613_v33 = vld [vmem:[%s21910_s5 + $0xa70] sm:$0xff]  ;;  %v10614_v44 = vld [vmem:[%s21910_s5 + $0xa78] sm:$0xff] }
 0xa22   : > { %17960 = vmatprep.subr.bf16.mxu0 %v17959_v42  ;;  %v17949_v42 = vpack.c.bf16 %v10614_v44, %v10613_v33  ;;  %v11591_v44 = vld [vmem:[%s21912_s7] sm:$0xff] }
 0xa24   : > { %17930 = vmatpush3.bf16.msra.mxu1 %v17929_v49 }
 0xa25   : > { %17932 = vmatprep.subr.bf16.mxu1 %v17931_v58  ;;  %17962 = vmatpush3.bf16.msra.mxu0 %v17961_v29  ;;  %v10663_v58 = vld [vmem:[%s21910_s5 + $0xc00] sm:$0xff]  ;;  %v10664_v29 = vld [vmem:[%s21910_s5 + $0xc08] sm:$0xff] }
 0xa26   : > { %17964 = vmatprep.subr.bf16.mxu0 %v17963_v27  ;;  %v17984_v36 = vpack.c.bf16 %v10664_v29, %v10663_v58  ;;  %v11597_v58 = vld [vmem:[%s21912_s7 + $0x30] sm:$0xff]  ;;  %v11598_v29 = vld [vmem:[%s21912_s7 + $0x38] sm:$0xff] }
 0xa28   : > { %17934 = vmatpush3.bf16.msra.mxu1 %v17933_v62  ;;  %v10668_v62 = vld [vmem:[%s21910_s5 + $0xc28] sm:$0xff] }
 0xa29   : > { %17936 = vmatprep.subr.bf16.mxu1 %v17935_v32  ;;  %17966 = vmatpush3.bf16.msra.mxu0 %v17965_v17  ;;  %v17990_v32 = vpack.c.bf16 %v10668_v62, %v10667_v16  ;;  %v10669_v17 = vld [vmem:[%s21910_s5 + $0xc30] sm:$0xff]  ;;  %v11604_v16 = vld [vmem:[%s21912_s7 + $0x68] sm:$0xff] }
 0xa2a   : > { %17968 = vmatprep.subr.bf16.mxu0 %v17967_v35  ;;  %v17993_v21 = vpack.c.bf16 %v10670_v18, %v10669_v17  ;;  %v11606_v17 = vld [vmem:[%s21912_s7 + $0x78] sm:$0xff] }
 0xa2c   : > { %17938 = vmatpush3.bf16.msra.mxu1 %v17937_v15 }
 0xa2d   : > { %17940 = vmatprep.subr.bf16.mxu1 %v17939_v55  ;;  %17970 = vmatpush3.bf16.msra.mxu0 %v17969_v34  ;;  %v10679_v34 = vld [vmem:[%s21911_s6] sm:$0x1] }
 0xa2e   : > { %17972 = vmatprep.subr.bf16.mxu0 %v17971_v13 }
 0xa30   : > { %17942 = vmatpush3.bf16.msra.mxu1 %v17941_v14 }
 0xa31   : > { %17944 = vmatprep.subr.bf16.mxu1 %v17943_v19  ;;  %17974 = vmatpush3.bf16.msra.mxu0 %v17973_v26 }
 0xa32   : > { %17976 = vmatprep.subr.bf16.mxu0 %v17975_v46 }
 0xa34   : > { %17946 = vmatpush3.bf16.msra.mxu1 %v17945_v50 }
 0xa35   : > { %17948 = vmatprep.subr.bf16.mxu1 %v17947_v30  ;;  %17978 = vmatpush3.bf16.msra.mxu0 %v17977_v31 }
 0xa36   : > { %17980 = vmatprep.subr.bf16.mxu0 %v17979_v45  ;;  %v11592_v45 = vld [vmem:[%s21912_s7 + $0x8] sm:$0xff] }
 0xa38   : > { %17950 = vmatpush3.bf16.msra.mxu1 %v17949_v42  ;;  %v18008_v42 = vpack.c.bf16 %v11592_v45, %v11591_v44 }
 0xa39   : > { %17982 = vmatpush3.bf16.msra.mxu0 %v17981_v60  ;;  %17983 = vmatprep.subr.bf16.mxu1 %v22479_v41  ;;  %v11594_v60 = vld [vmem:[%s21912_s7 + $0x18] sm:$0xff] }
 0xa3a   : > { %18007 = vmatprep.subr.bf16.mxu0 %v22479_v41 }
 0xa4e   : > { %v10177_v2 = vpop.f32.mrb[176].mxu1  ;;  %v10247_v9 = vpop.f32.mrb[176].mxu0 }
 0xa4f   : > { %v10251_v23 = vmax.f32 %v10177_v2, %v10247_v9  ;;  %v15517_v52 = vpop.f32.mrb[177].mxu1  ;;  %v15524_v49 = vpop.f32.mrb[177].mxu0  ;;  %v18011_v9 = vpack.c.bf16 %v11594_v60, %v11593_v57 }
 0xa50   : > { %v11596_v52 = vld [vmem:[%s21912_s7 + $0x28] sm:$0xff] }
 0xa51   : > { %10253 = vst [vmem:[#allocation4 + $0x20] sm:$0x1f] %v10251_v23  ;;  %v11595_v23 = vld [vmem:[%s21912_s7 + $0x20] sm:$0xff] }
 0xa52   : > { %v18014_v49 = vpack.c.bf16 %v11596_v52, %v11595_v23 }
 0xa58   : > { %v10275_v27 = vld [vmem:[#allocation4 + $0x21] sm:$0x1]  ;;  %v10274_v51 = vld [vmem:[#allocation4 + $0x20] sm:$0x1]  ;;  %v10277_v48 = vld [vmem:[#allocation4 + $0x23] sm:$0x1] }
 0xa59   : > { %11444 = vmatprep.mubr.f32.mxu1 %v10275_v27  ;;  %11514 = vmatprep.mubr.f32.mxu0 %v10277_v48  ;;  %v10276_v24 = vld [vmem:[#allocation4 + $0x22] sm:$0x1]  ;;  %v10278_v19 = vld [vmem:[#allocation4 + $0x24] sm:$0x1]  ;;  %v18020_v27 = vpack.c.bf16 %v11600_v11, %v11599_v4  ;;  %v11602_v48 = vld [vmem:[%s21912_s7 + $0x58] sm:$0xff] }
 0xa5a   : > { %11445 = vmatmul.mubr.f32.vlgmr.msra.gmra.mrb[188].mxu1 %v10274_v51  ;;  %11515 = vmatmul.mubr.f32.vlgmr.msra.gmra.mrb[188].mxu0 %v10276_v24  ;;  %v11601_v51 = vld [vmem:[%s21912_s7 + $0x50] sm:$0xff] }
 0xa5b   : > { %17985 = vmatpush3.bf16.msra.mxu1 %v17984_v36  ;;  %15557 = vmatprep.mubr.msk.f32.mxu1 %vm18146_vm9, %v22480_v7  ;;  %v18017_v36 = vpack.c.bf16 %v11598_v29, %v11597_v58  ;;  %v18023_v24 = vpack.c.bf16 %v11602_v48, %v11601_v51 }
 0xa5c   : > { %17986 = vmatprep.subr.bf16.mxu1 %v22479_v41  ;;  %15592 = vmatprep.mubr.msk.f32.mxu0 %vm18146_vm9, %v22480_v7  ;;  %v10671_v7 = vld [vmem:[%s21910_s5 + $0xc40] sm:$0xff] }
 0xa5d   : > { %v17996_v35 = vpack.c.bf16 %v10672_v5, %v10671_v7  ;;  %18009 = vmatpush3.bf16.msra.mxu0 %v18008_v42 }
 0xa5e   : > { %18010 = vmatprep.subr.bf16.mxu0 %v22479_v41 }
 0xa5f   : > { %17988 = vmatpush3.bf16.msra.mxu1 %v17987_v61  ;;  %v11603_v61 = vld [vmem:[%s21912_s7 + $0x60] sm:$0xff] }
 0xa60   : > { %17989 = vmatprep.subr.bf16.mxu1 %v22479_v41  ;;  %v18026_v62 = vpack.c.bf16 %v11604_v16, %v11603_v61 }
 0xa61   : > { %18012 = vmatpush3.bf16.msra.mxu0 %v18011_v9 }
 0xa62   : > { %18013 = vmatprep.subr.bf16.mxu0 %v22479_v41 }
 0xa63   : > { %17991 = vmatpush3.bf16.msra.mxu1 %v17990_v32  ;;  %v11605_v32 = vld [vmem:[%s21912_s7 + $0x70] sm:$0xff] }
 0xa64   : > { %17992 = vmatprep.subr.bf16.mxu1 %v22479_v41 }
 0xa65   : > { %18015 = vmatpush3.bf16.msra.mxu0 %v18014_v49 }
 0xa66   : > { %18016 = vmatprep.subr.bf16.mxu0 %v22479_v41 }
 0xa67   : > { %17994 = vmatpush3.bf16.msra.mxu1 %v17993_v21  ;;  %v18029_v21 = vpack.c.bf16 %v11606_v17, %v11605_v32 }
 0xa68   : > { %17995 = vmatprep.subr.bf16.mxu1 %v22479_v41 }
 0xa69   : > { %18018 = vmatpush3.bf16.msra.mxu0 %v18017_v36 }
 0xa6a   : > { %18019 = vmatprep.subr.bf16.mxu0 %v22479_v41 }
 0xa6b   : > { %17997 = vmatpush3.bf16.msra.mxu1 %v17996_v35 }
 0xa6c   : > { %17998 = vmatprep.subr.bf16.mxu1 %v22479_v41 }
 0xa6d   : > { %18021 = vmatpush3.bf16.msra.mxu0 %v18020_v27 }
 0xa6e   : > { %v14137_v15 = vpop.f32.mrb[178].mxu1  ;;  %18022 = vmatprep.subr.bf16.mxu0 %v22479_v41 }
 0xa6f   : > { %v14172_v55 = vpop.f32.mrb[178].mxu0  ;;  %18000 = vmatpush3.bf16.msra.mxu1 %v17999_v59  ;;  %v14138_v8 = vpop.f32.mrb[179].mxu1 }
 0xa70   : > { %v14139_v25 = vadd.f32 %v14138_v8, %v14137_v15  ;;  %v14173_v13 = vpop.f32.mrb[179].mxu0  ;;  %18001 = vmatprep.subr.bf16.mxu1 %v22479_v41 }
 0xa71   : > { %v14174_v12 = vadd.f32 %v14173_v13, %v14172_v55  ;;  %18024 = vmatpush3.bf16.msra.mxu0 %v18023_v24 }
 0xa72   : > { %v10747_v43 = vadd.f32 %v14139_v25, %v10679_v34  ;;  %18025 = vmatprep.subr.bf16.mxu0 %v22479_v41 }
 0xa73   : > { %18003 = vmatpush3.bf16.msra.mxu1 %v18002_v47 }
 0xa74   : > { %v10817_v14 = vadd.f32 %v14174_v12, %v10747_v43  ;;  %18004 = vmatprep.subr.bf16.mxu1 %v22479_v41 }
 0xa75   : > { %18027 = vmatpush3.bf16.msra.mxu0 %v18026_v62 }
 0xa76   : > { %18028 = vmatprep.subr.bf16.mxu0 %v22479_v41 }
 0xa77   : > { %18006 = vmatpush3.bf16.msra.mxu1 %v18005_v63 }
 0xa79   : > { %18030 = vmatpush3.bf16.msra.mxu0 %v18029_v21 }
 0xa7a   : > { %15558 = vmatmul.mubr.f32.vlgmr.msra.gmra.mrb[190].mxu1 %v10278_v19 }
 0xa8e   : > { %v14207_v26 = vpop.f32.mrb[180].mxu1 }
 0xa8f   : > { %v14242_v28 = vpop.f32.mrb[180].mxu0  ;;  %v14208_v37 = vpop.f32.mrb[181].mxu1 }
 0xa90   : > { %v14209_v38 = vadd.f32 %v14208_v37, %v14207_v26  ;;  %v14243_v46 = vpop.f32.mrb[181].mxu0 }
 0xa91   : > { %v14244_v56 = vadd.f32 %v14243_v46, %v14242_v28  ;;  %v11607_v46 = vld [vmem:[%s21913_s8] sm:$0x1] }
 0xa92   : > { %v10887_v1 = vadd.f32 %v14209_v38, %v10817_v14 }
 0xa94   : > { %v10957_v6 = vadd.f32 %v14244_v56, %v10887_v1 }
 0xaae   : > { %v14277_v54 = vpop.f32.mrb[182].mxu1 }
 0xaaf   : > { %v14312_v20 = vpop.f32.mrb[182].mxu0  ;;  %v14278_v50 = vpop.f32.mrb[183].mxu1 }
 0xab0   : > { %v14279_v30 = vadd.f32 %v14278_v50, %v14277_v54  ;;  %v14313_v31 = vpop.f32.mrb[183].mxu0 }
 0xab1   : > { %v14314_v33 = vadd.f32 %v14313_v31, %v14312_v20 }
 0xab2   : > { %v11027_v0 = vadd.f32 %v14279_v30, %v10957_v6 }
 0xab4   : > { %v11097_v2 = vadd.f32 %v14314_v33, %v11027_v0 }
 0xace   : > { %v14347_v18 = vpop.f32.mrb[184].mxu1 }
 0xacf   : > { %v14382_v7 = vpop.f32.mrb[184].mxu0  ;;  %v14348_v5 = vpop.f32.mrb[185].mxu1 }
 0xad0   : > { %v14349_v35 = vadd.f32 %v14348_v5, %v14347_v18  ;;  %v14383_v53 = vpop.f32.mrb[185].mxu0 }
 0xad1   : > { %v14384_v40 = vadd.f32 %v14383_v53, %v14382_v7 }
 0xad2   : > { %v11167_v59 = vadd.f32 %v14349_v35, %v11097_v2 }
 0xad4   : > { %v11237_v39 = vadd.f32 %v14384_v40, %v11167_v59 }
 0xaee   : > { %v14417_v10 = vpop.f32.mrb[186].mxu1 }
 0xaef   : > { %v14452_v41 = vpop.f32.mrb[186].mxu0  ;;  %v14418_v15 = vpop.f32.mrb[187].mxu1 }
 0xaf0   : > { %v14419_v55 = vadd.f32 %v14418_v15, %v14417_v10  ;;  %v14453_v34 = vpop.f32.mrb[187].mxu0 }
 0xaf1   : > { %v14454_v8 = vadd.f32 %v14453_v34, %v14452_v41 }
 0xaf2   : > { %v11307_v47 = vadd.f32 %v14419_v55, %v11237_v39 }
 0xaf4   : > { %v11377_v25 = vadd.f32 %v14454_v8, %v11307_v47 }
 0xb2d   : > { %v14487_v13 = vpop.f32.mrb[188].mxu1  ;;  %v14522_v22 = vpop.f32.mrb[188].mxu0 }
 0xb2e   : > { %v14488_v3 = vpop.f32.mrb[189].mxu1  ;;  %v14523_v12 = vpop.f32.mrb[189].mxu0 }
 0xb2f   : > { %v14489_v43 = vadd.f32 %v14488_v3, %v14487_v13  ;;  %v14524_v63 = vadd.f32 %v14523_v12, %v14522_v22 }
 0xb31   : > { %v11447_v14 = vadd.f32 %v14489_v43, %v11377_v25 }
 0xb33   : > { %v11517_v19 = vadd.f32 %v14524_v63, %v11447_v14 }
 0xb4d   : > { %v11586_v26 = vpop.f32.mrb[190].mxu1 }
 0xb4e   : > { %v11587_v28 = vadd.f32 %v11586_v26, %v11517_v19  ;;  %v15559_v37 = vpop.f32.mrb[191].mxu1 }
 0xb50   : > { %v11590_v38 = vmax.f32 %v11587_v28, 0.0 }
 0xb52   : > { %15593 = vmatmul.mubr.f32.vlgmr.msra.gmra.mrb[190].mxu0 %v11590_v38 }
 0xc25   : > { %v11674_v56 = vpop.f32.mrb[190].mxu0 }
 0xc26   : > { %v11675_v1 = vadd.f32 %v11674_v56, %v11607_v46  ;;  %v15594_v6 = vpop.f32.mrb[191].mxu0 }
 0xc28   : > { %11678 = vst [vmem:[%s324_s26] sm:$0x1] %v11675_v1 }
 0xc29   : > { %18092 = shalt.err (!%p18089_p3)
}
 0xc2a   : > { %s18093_s22 = scalar_lea.hbm %s21863_s14, 16  ;;  %s18097_s26 = scalar_lea.hbm %s21914_s9, 32 }
 0xc2b   : > { %p18094_p4 = scmp.ne.s32.totalorder %s21863_s14, %s18093_s22  ;;  %p18098_p9 = scmp.lt.u32.totalorder %s21863_s14, %s21914_s9 }
 0xc2c   : > { %p18099_p10 = scmp.lt.u32.totalorder %s18097_s26, %s18093_s22  ;;  %p18101_p12 = scmp.lt.u32.totalorder %s18093_s22, %s21863_s14 }
 0xc2d   : > { %p18095_p7 = pnand %p18094_p4, %p18236_p5 }
 0xc2e   : > { %p18100_p11 = por %p18099_p10, %p18098_p9 }
 0xc2f   : > { %p18096_p8 = pneg %p18095_p7 }
 0xc30   : > { %p18102_p13 = por %p18101_p12, %p18100_p11 }
 0xc32   : > { %p18103_p0 = pnand %p18102_p13, %p18096_p8 }
 0xc34   : > { %18106 = shalt.err (!%p18103_p0)
}
 0xc35   : > { %18032 = dma.vmem_to_hbm [thread:$0]  (%p18236_p5), %s21865_s27, 16, %s21863_s14, %s11680_s16  }
 0xc36 PF: > { %p18038_p1 = scmp.ge.s32.totalorder %s18141_s12, 2  ;;  %s11704_s17 = sand.u32 1, %s18129_s30  }
 0xc37   : > { %s11705_s13 = scalar_lea.sflag [#allocation6], %s11704_s17 }
 0xc38   : > { %p18035_p2 = pnand %p18038_p1, %p18240_p6 }
 0xc3a   : > { %18124 = dma.done.wait (!%p18035_p2), %s11705_s13, 16  }
 0xc3b   : > { %18126 = vsyncadd (!%p18035_p2), %s11705_s13, 4294967280  ;;  %p19_p3 = scmp.ge.s32.totalorder %s18223_s15, 4   ;;  %s22484_s30 = smov %s18133_s10 }
 0xc3c   : > { %s22485_s10 = smov %s18137_s11  ;;  %s22486_s11 = smov %s18234_s18 }
 0xc3d   : > { %s22487_s12 = smov %s18223_s15  ;;  %21 = sbr.rel (!%p19_p3) target bundleno = 3 (0x3), region = 157 }
 0xc44   :  { %11709 = vsyncpa [#allocation6], 1 }
 0xc45   :  { %11711 = vsyncpa [#allocation6 + $0x1], 1 }

</bundles_post_ra>
